<compile_context>
chip_gen: v6e
topology: v6e:2x2x1
jax: 0.10.0
libtpu: 0.0.40
codegen_flags: <defaults>
</compile_context>

<pallas_src>
import jax
import jax.numpy as jnp
from jax import lax
from jax.experimental import pallas as pl
from jax.experimental.pallas import tpu as pltpu

LANE = 128  # TPU lane width: channel dims are padded to a multiple of this.

_CompilerParams = getattr(pltpu, "CompilerParams", None)
if _CompilerParams is None:  # older jax fallback
    _CompilerParams = getattr(pltpu, "TPUCompilerParams")


def _rup(c, m=LANE):
    return ((c + m - 1) // m) * m


# ----------------------------- Fused conv kernel -----------------------------

def _make_conv_kernel(KH, KW, pad, Hp, Wp, Ho, Wo, C, Co,
                      has_prologue, has_epilogue, has_residual):
    """Builds a kernel computing (per image):
         y = [residual +] [relu(bn_post(] conv( [relu(bn_pre(x)) masked at border] ) [))]
       Conv is computed at stride 1 over the spatially pre-padded input."""

    def kernel(*refs):
        it = iter(refs)
        x_ref = next(it)                       # [1, Hp, Wp, C]   bf16
        w_ref = next(it)                       # [KH*KW, C, Co]   bf16
        ps_ref = pb_ref = es_ref = eb_ref = r_ref = None
        if has_prologue:
            ps_ref = next(it); pb_ref = next(it)     # [1, C] f32 each
        if has_epilogue:
            es_ref = next(it); eb_ref = next(it)     # [1, Co] f32 each
        if has_residual:
            r_ref = next(it)                         # [1, Ho, Wo, Co] bf16
        o_ref = next(it)                             # [1, Ho, Wo, Co] bf16

        x = x_ref[0]                                 # [Hp, Wp, C] bf16
        if has_prologue:
            a = jnp.maximum(x.astype(jnp.float32) * ps_ref[...] + pb_ref[...], 0.0)
            if pad > 0:
                # The wrapper zero-padded the *raw* input; PyTorch pads the
                # *activated* tensor, so force the border ring back to zero.
                rows = lax.broadcasted_iota(jnp.int32, (Hp, Wp), 0)
                cols = lax.broadcasted_iota(jnp.int32, (Hp, Wp), 1)
                valid = ((rows >= pad) & (rows < Hp - pad) &
                         (cols >= pad) & (cols < Wp - pad))
                a = jnp.where(valid[:, :, None], a, 0.0)
            x = a.astype(jnp.bfloat16)

        acc = jnp.zeros((Ho * Wo, Co), jnp.float32)
        for kh in range(KH):
            for kw in range(KW):
                patch = x[kh:kh + Ho, kw:kw + Wo, :]            # [Ho, Wo, C]
                acc = acc + jnp.dot(patch.reshape(Ho * Wo, C),
                                    w_ref[kh * KW + kw],
                                    preferred_element_type=jnp.float32)
        out = acc
        if has_epilogue:
            out = jnp.maximum(out * es_ref[...] + eb_ref[...], 0.0)
        if has_residual:
            out = out + r_ref[0].reshape(Ho * Wo, Co).astype(jnp.float32)
        o_ref[0] = out.reshape(Ho, Wo, Co).astype(jnp.bfloat16)

    return kernel


def fused_conv(x, w, *, ksize, stride=1, pad=0,
               prologue=None, epilogue=None, residual=None):
    """x: [N, H, W, C] bf16 (C lane-padded); w: [k*k, C, Co] bf16.
       prologue/epilogue: (scale, shift) pairs of shape [1, C]/[1, Co] (f32).
       residual: [N, Ho, Wo, Co] bf16 added after the conv.
       For stride > 1 the kernel computes the stride-1 output and the wrapper
       subsamples it (exact for 3x3, pad=1)."""
    N, H, W, C = x.shape
    KK, Cw, Co = w.shape
    assert KK == ksize * ksize and Cw == C
    if pad > 0:
        x = jnp.pad(x, ((0, 0), (pad, pad), (pad, pad), (0, 0)))
    Hp, Wp = H + 2 * pad, W + 2 * pad
    Ho, Wo = Hp - ksize + 1, Wp - ksize + 1      # stride-1 output extent

    in_specs = [pl.BlockSpec((1, Hp, Wp, C), lambda n: (n, 0, 0, 0)),
                pl.BlockSpec((KK, C, Co), lambda n: (0, 0, 0))]
    args = [x, w]
    if prologue is not None:
        in_specs += [pl.BlockSpec((1, C), lambda n: (0, 0)),
                     pl.BlockSpec((1, C), lambda n: (0, 0))]
        args += [prologue[0], prologue[1]]
    if epilogue is not None:
        in_specs += [pl.BlockSpec((1, Co), lambda n: (0, 0)),
                     pl.BlockSpec((1, Co), lambda n: (0, 0))]
        args += [epilogue[0], epilogue[1]]
    if residual is not None:
        assert residual.shape == (N, Ho, Wo, Co)
        in_specs += [pl.BlockSpec((1, Ho, Wo, Co), lambda n: (n, 0, 0, 0))]
        args += [residual]

    kernel = _make_conv_kernel(ksize, ksize, pad, Hp, Wp, Ho, Wo, C, Co,
                               prologue is not None, epilogue is not None,
                               residual is not None)
    out = pl.pallas_call(
        kernel,
        out_shape=jax.ShapeDtypeStruct((N, Ho, Wo, Co), jnp.bfloat16),
        grid=(N,),
        in_specs=in_specs,
        out_specs=pl.BlockSpec((1, Ho, Wo, Co), lambda n: (n, 0, 0, 0)),
        compiler_params=_CompilerParams(dimension_semantics=("parallel",)),
    )(*args)
    if stride > 1:
        out = out[:, ::stride, ::stride, :]
    return out


# ----------------------------- Fused head kernel -----------------------------
# lastact BN+ReLU  ->  global avg pool (AvgPool2d(8) on an 8x8 map)  ->  Linear

def _head_kernel(x_ref, s_ref, b_ref, w_ref, fb_ref, o_ref):
    x = x_ref[...].astype(jnp.float32)                       # [N, HW, C]
    a = jnp.maximum(x * s_ref[...] + b_ref[...], 0.0)        # lastact BN + ReLU
    pooled = jnp.mean(a, axis=1)                              # [N, C]
    o_ref[...] = (jnp.dot(pooled, w_ref[...],
                          preferred_element_type=jnp.float32) + fb_ref[...])


def head_forward(x, lastact, fc_w, fc_b, num_classes):
    N, H, W, C = x.shape
    assert H == 8 and W == 8, "AvgPool2d(8) expects an 8x8 final map (32x32 input)"
    x2 = x.reshape(N, H * W, C)
    scale, shift = lastact
    O = fc_w.shape[1]
    out = pl.pallas_call(
        _head_kernel,
        out_shape=jax.ShapeDtypeStruct((N, O), jnp.float32),
        grid=(1,),
        in_specs=[pl.BlockSpec((N, H * W, C), lambda i: (0, 0, 0)),
                  pl.BlockSpec((1, C), lambda i: (0, 0)),
                  pl.BlockSpec((1, C), lambda i: (0, 0)),
                  pl.BlockSpec((C, O), lambda i: (0, 0)),
                  pl.BlockSpec((1, O), lambda i: (0, 0))],
        out_specs=pl.BlockSpec((N, O), lambda i: (0, 0)),
    )(x2, scale, shift, fc_w, fc_b)
    return out[:, :num_classes]


# ----------------------------- Network glue -----------------------------

def block_forward(p, x):
    bn1, bn2, s = p['bn1'], p['bn2'], p['stride']
    if p['equal']:
        # residual = x ; out = conv2(relu(bn2(conv1(relu(bn1(x)))))) + residual
        h = fused_conv(x, p['conv1'], ksize=3, stride=s, pad=1,
                       prologue=bn1, epilogue=bn2)
        y = fused_conv(h, p['conv2'], ksize=3, stride=1, pad=1, residual=x)
    else:
        # residual = relu(bn1(x)) -> 1x1 stride-s shortcut conv
        x_sc = x[:, ::s, ::s, :] if s > 1 else x      # exact for a 1x1 stride-s conv
        r = fused_conv(x_sc, p['shortcut'], ksize=1, stride=1, pad=0, prologue=bn1)
        h = fused_conv(x, p['conv1'], ksize=3, stride=s, pad=1,
                       prologue=bn1, epilogue=bn2)
        # Dropout is identity in eval mode (inference semantics).
        y = fused_conv(h, p['conv2'], ksize=3, stride=1, pad=1, residual=r)
    return y


def wrn_forward(params, x_nchw):
    x = jnp.transpose(x_nchw, (0, 2, 3, 1)).astype(jnp.float32)   # NCHW -> NHWC
    C = x.shape[-1]
    x = jnp.pad(x, ((0, 0), (0, 0), (0, 0), (0, _rup(C) - C))).astype(jnp.bfloat16)
    x = fused_conv(x, params['conv_3x3'], ksize=3, stride=1, pad=1)
    for blk in params['stage_1']:
        x = block_forward(blk, x)
    for blk in params['stage_2']:
        x = block_forward(blk, x)
    for blk in params['stage_3']:
        x = block_forward(blk, x)
    return head_forward(x, params['lastact'], params['fc_w'], params['fc_b'],
                        params['num_classes'])


# ----------------------------- Parameter init -----------------------------

def _kaiming(key, shape, fan_in):
    return jax.random.normal(key, shape, jnp.float32) * jnp.sqrt(2.0 / fan_in)


def init_wrn_params(key, depth=10, width=1, num_classes=10):
    assert (depth - 4) % 6 == 0
    num_blocks = (depth - 4) // 6
    n_channels = [16, 16 * width, 32 * width, 64 * width]
    keys = iter(jax.random.split(key, 256))
    eps = 1e-5

    def conv_w(cin, cout, k):
        w = _kaiming(next(keys), (k, k, cin, cout), cin * k * k)      # HWIO
        w = w.reshape(k * k, cin, cout)
        w = jnp.pad(w, ((0, 0), (0, _rup(cin) - cin), (0, _rup(cout) - cout)))
        return w.astype(jnp.bfloat16)

    def bn_p(c):
        gamma = jnp.ones((c,), jnp.float32)
        beta = jnp.zeros((c,), jnp.float32)
        mean = jnp.zeros((c,), jnp.float32)
        var = jnp.ones((c,), jnp.float32)
        scale = gamma / jnp.sqrt(var + eps)
        shift = beta - mean * scale
        cp = _rup(c)
        scale = jnp.pad(scale, (0, cp - c)).reshape(1, cp)
        shift = jnp.pad(shift, (0, cp - c)).reshape(1, cp)
        return (scale.astype(jnp.float32), shift.astype(jnp.float32))

    def make_block(cin, cout, stride):
        equal = cin == cout
        assert (not equal) or stride == 1
        return {'bn1': bn_p(cin), 'conv1': conv_w(cin, cout, 3),
                'bn2': bn_p(cout), 'conv2': conv_w(cout, cout, 3),
                'stride': stride, 'equal': equal,
                'shortcut': None if equal else conv_w(cin, cout, 1)}

    def make_stage(cin, cout, stride):
        blocks = [make_block(cin, cout, stride)]
        for _ in range(1, num_blocks):
            blocks.append(make_block(cout, cout, 1))
        return blocks

    feat = n_channels[3]
    fc_w = _kaiming(next(keys), (feat, num_classes), feat)
    fc_w = jnp.pad(fc_w, ((0, _rup(feat) - feat), (0, _rup(num_classes) - num_classes)))
    return {
        'conv_3x3': conv_w(3, n_channels[0], 3),
        'stage_1': make_stage(n_channels[0], n_channels[1], 1),
        'stage_2': make_stage(n_channels[1], n_channels[2], 2),
        'stage_3': make_stage(n_channels[2], n_channels[3], 2),
        'lastact': bn_p(n_channels[3]),
        'fc_w': fc_w.astype(jnp.float32),
        'fc_b': jnp.zeros((1, _rup(num_classes)), jnp.float32),
        'num_classes': num_classes,
    }


# ----------------------------- Driver -----------------------------

if __name__ == "__main__":
    key = jax.random.PRNGKey(0)
    pkey, xkey = jax.random.split(key)
    params = init_wrn_params(pkey, depth=10, width=1, num_classes=10)
    # CIFAR-like input (batch=2, 3 channels, 32x32) in NCHW to match PyTorch.
    x = jax.random.normal(xkey, (2, 3, 32, 32), jnp.float32)
    logits = wrn_forward(params, x)
    logits = jax.block_until_ready(logits)
    assert logits.shape == (2, 10)
    assert bool(jnp.all(jnp.isfinite(logits)))
    print("KERNEL_OK")
</pallas_src>

<mosaic_0001>
module attributes {stable_mosaic.version = 11 : i64} {
  func.func @kernel(%arg0: i32, %arg1: memref<1x34x34x128xbf16, #tpu.memory_space<vmem>>, %arg2: memref<9x128x128xbf16, #tpu.memory_space<vmem>>, %arg3: memref<1x32x32x128xbf16, #tpu.memory_space<vmem>>) attributes {dimension_semantics = [#tpu.dimension_semantics<parallel>], iteration_bounds = array<i64: 2>, scalar_prefetch = 0 : i64, scratch_operands = 0 : i64, tpu.core_type = #tpu.core_type<tc>, window_params = [{transform_indices = @transform_0, window_bounds = array<i64: 1, 34, 34, 128>}, {pipeline_mode = #tpu.pipeline_mode<synchronous>, transform_indices = @transform_1, window_bounds = array<i64: 9, 128, 128>}, {transform_indices = @transform_2, window_bounds = array<i64: 1, 32, 32, 128>}]} {
    %c0 = arith.constant 0 : index
    %c0_0 = arith.constant 0 : index
    %c0_1 = arith.constant 0 : index
    %c0_2 = arith.constant 0 : index
    %0 = vector.load %arg1[%c0, %c0_0, %c0_1, %c0_2] : memref<1x34x34x128xbf16, #tpu.memory_space<vmem>>, vector<1x34x34x128xbf16>
    %1 = vector.shape_cast %0 : vector<1x34x34x128xbf16> to vector<34x34x128xbf16>
    %cst = arith.constant 0.000000e+00 : f32
    %2 = vector.broadcast %cst : f32 to vector<1024x128xf32>
    %3 = vector.extract_strided_slice %1 {offsets = [0, 0, 0], sizes = [32, 32, 128], strides = [1, 1, 1]} : vector<34x34x128xbf16> to vector<32x32x128xbf16>
    %4 = vector.shape_cast %3 : vector<32x32x128xbf16> to vector<1024x128xbf16>
    %c0_3 = arith.constant 0 : index
    %c0_4 = arith.constant 0 : index
    %c0_5 = arith.constant 0 : index
    %5 = vector.load %arg2[%c0_3, %c0_4, %c0_5] : memref<9x128x128xbf16, #tpu.memory_space<vmem>>, vector<1x128x128xbf16>
    %6 = vector.shape_cast %5 : vector<1x128x128xbf16> to vector<128x128xbf16>
    %cst_6 = arith.constant dense<0.000000e+00> : vector<1024x128xf32>
    %7 = tpu.matmul %4, %6, %cst_6 {dimension_numbers = #tpu.dot_dimension_numbers<[1], [0], [0], [1], [0, 0, 1, 1], [], []>} : vector<1024x128xbf16>, vector<128x128xbf16>, vector<1024x128xf32> -> vector<1024x128xf32>
    %8 = arith.addf %2, %7 : vector<1024x128xf32>
    %9 = vector.extract_strided_slice %1 {offsets = [0, 1, 0], sizes = [32, 32, 128], strides = [1, 1, 1]} : vector<34x34x128xbf16> to vector<32x32x128xbf16>
    %10 = vector.shape_cast %9 : vector<32x32x128xbf16> to vector<1024x128xbf16>
    %c1 = arith.constant 1 : index
    %c0_7 = arith.constant 0 : index
    %c0_8 = arith.constant 0 : index
    %11 = vector.load %arg2[%c1, %c0_7, %c0_8] : memref<9x128x128xbf16, #tpu.memory_space<vmem>>, vector<1x128x128xbf16>
    %12 = vector.shape_cast %11 : vector<1x128x128xbf16> to vector<128x128xbf16>
    %cst_9 = arith.constant dense<0.000000e+00> : vector<1024x128xf32>
    %13 = tpu.matmul %10, %12, %cst_9 {dimension_numbers = #tpu.dot_dimension_numbers<[1], [0], [0], [1], [0, 0, 1, 1], [], []>} : vector<1024x128xbf16>, vector<128x128xbf16>, vector<1024x128xf32> -> vector<1024x128xf32>
    %14 = arith.addf %8, %13 : vector<1024x128xf32>
    %15 = vector.extract_strided_slice %1 {offsets = [0, 2, 0], sizes = [32, 32, 128], strides = [1, 1, 1]} : vector<34x34x128xbf16> to vector<32x32x128xbf16>
    %16 = vector.shape_cast %15 : vector<32x32x128xbf16> to vector<1024x128xbf16>
    %c2 = arith.constant 2 : index
    %c0_10 = arith.constant 0 : index
    %c0_11 = arith.constant 0 : index
    %17 = vector.load %arg2[%c2, %c0_10, %c0_11] : memref<9x128x128xbf16, #tpu.memory_space<vmem>>, vector<1x128x128xbf16>
    %18 = vector.shape_cast %17 : vector<1x128x128xbf16> to vector<128x128xbf16>
    %cst_12 = arith.constant dense<0.000000e+00> : vector<1024x128xf32>
    %19 = tpu.matmul %16, %18, %cst_12 {dimension_numbers = #tpu.dot_dimension_numbers<[1], [0], [0], [1], [0, 0, 1, 1], [], []>} : vector<1024x128xbf16>, vector<128x128xbf16>, vector<1024x128xf32> -> vector<1024x128xf32>
    %20 = arith.addf %14, %19 : vector<1024x128xf32>
    %21 = vector.extract_strided_slice %1 {offsets = [1, 0, 0], sizes = [32, 32, 128], strides = [1, 1, 1]} : vector<34x34x128xbf16> to vector<32x32x128xbf16>
    %22 = vector.shape_cast %21 : vector<32x32x128xbf16> to vector<1024x128xbf16>
    %c3 = arith.constant 3 : index
    %c0_13 = arith.constant 0 : index
    %c0_14 = arith.constant 0 : index
    %23 = vector.load %arg2[%c3, %c0_13, %c0_14] : memref<9x128x128xbf16, #tpu.memory_space<vmem>>, vector<1x128x128xbf16>
    %24 = vector.shape_cast %23 : vector<1x128x128xbf16> to vector<128x128xbf16>
    %cst_15 = arith.constant dense<0.000000e+00> : vector<1024x128xf32>
    %25 = tpu.matmul %22, %24, %cst_15 {dimension_numbers = #tpu.dot_dimension_numbers<[1], [0], [0], [1], [0, 0, 1, 1], [], []>} : vector<1024x128xbf16>, vector<128x128xbf16>, vector<1024x128xf32> -> vector<1024x128xf32>
    %26 = arith.addf %20, %25 : vector<1024x128xf32>
    %27 = vector.extract_strided_slice %1 {offsets = [1, 1, 0], sizes = [32, 32, 128], strides = [1, 1, 1]} : vector<34x34x128xbf16> to vector<32x32x128xbf16>
    %28 = vector.shape_cast %27 : vector<32x32x128xbf16> to vector<1024x128xbf16>
    %c4 = arith.constant 4 : index
    %c0_16 = arith.constant 0 : index
    %c0_17 = arith.constant 0 : index
    %29 = vector.load %arg2[%c4, %c0_16, %c0_17] : memref<9x128x128xbf16, #tpu.memory_space<vmem>>, vector<1x128x128xbf16>
    %30 = vector.shape_cast %29 : vector<1x128x128xbf16> to vector<128x128xbf16>
    %cst_18 = arith.constant dense<0.000000e+00> : vector<1024x128xf32>
    %31 = tpu.matmul %28, %30, %cst_18 {dimension_numbers = #tpu.dot_dimension_numbers<[1], [0], [0], [1], [0, 0, 1, 1], [], []>} : vector<1024x128xbf16>, vector<128x128xbf16>, vector<1024x128xf32> -> vector<1024x128xf32>
    %32 = arith.addf %26, %31 : vector<1024x128xf32>
    %33 = vector.extract_strided_slice %1 {offsets = [1, 2, 0], sizes = [32, 32, 128], strides = [1, 1, 1]} : vector<34x34x128xbf16> to vector<32x32x128xbf16>
    %34 = vector.shape_cast %33 : vector<32x32x128xbf16> to vector<1024x128xbf16>
    %c5 = arith.constant 5 : index
    %c0_19 = arith.constant 0 : index
    %c0_20 = arith.constant 0 : index
    %35 = vector.load %arg2[%c5, %c0_19, %c0_20] : memref<9x128x128xbf16, #tpu.memory_space<vmem>>, vector<1x128x128xbf16>
    %36 = vector.shape_cast %35 : vector<1x128x128xbf16> to vector<128x128xbf16>
    %cst_21 = arith.constant dense<0.000000e+00> : vector<1024x128xf32>
    %37 = tpu.matmul %34, %36, %cst_21 {dimension_numbers = #tpu.dot_dimension_numbers<[1], [0], [0], [1], [0, 0, 1, 1], [], []>} : vector<1024x128xbf16>, vector<128x128xbf16>, vector<1024x128xf32> -> vector<1024x128xf32>
    %38 = arith.addf %32, %37 : vector<1024x128xf32>
    %39 = vector.extract_strided_slice %1 {offsets = [2, 0, 0], sizes = [32, 32, 128], strides = [1, 1, 1]} : vector<34x34x128xbf16> to vector<32x32x128xbf16>
    %40 = vector.shape_cast %39 : vector<32x32x128xbf16> to vector<1024x128xbf16>
    %c6 = arith.constant 6 : index
    %c0_22 = arith.constant 0 : index
    %c0_23 = arith.constant 0 : index
    %41 = vector.load %arg2[%c6, %c0_22, %c0_23] : memref<9x128x128xbf16, #tpu.memory_space<vmem>>, vector<1x128x128xbf16>
    %42 = vector.shape_cast %41 : vector<1x128x128xbf16> to vector<128x128xbf16>
    %cst_24 = arith.constant dense<0.000000e+00> : vector<1024x128xf32>
    %43 = tpu.matmul %40, %42, %cst_24 {dimension_numbers = #tpu.dot_dimension_numbers<[1], [0], [0], [1], [0, 0, 1, 1], [], []>} : vector<1024x128xbf16>, vector<128x128xbf16>, vector<1024x128xf32> -> vector<1024x128xf32>
    %44 = arith.addf %38, %43 : vector<1024x128xf32>
    %45 = vector.extract_strided_slice %1 {offsets = [2, 1, 0], sizes = [32, 32, 128], strides = [1, 1, 1]} : vector<34x34x128xbf16> to vector<32x32x128xbf16>
    %46 = vector.shape_cast %45 : vector<32x32x128xbf16> to vector<1024x128xbf16>
    %c7 = arith.constant 7 : index
    %c0_25 = arith.constant 0 : index
    %c0_26 = arith.constant 0 : index
    %47 = vector.load %arg2[%c7, %c0_25, %c0_26] : memref<9x128x128xbf16, #tpu.memory_space<vmem>>, vector<1x128x128xbf16>
    %48 = vector.shape_cast %47 : vector<1x128x128xbf16> to vector<128x128xbf16>
    %cst_27 = arith.constant dense<0.000000e+00> : vector<1024x128xf32>
    %49 = tpu.matmul %46, %48, %cst_27 {dimension_numbers = #tpu.dot_dimension_numbers<[1], [0], [0], [1], [0, 0, 1, 1], [], []>} : vector<1024x128xbf16>, vector<128x128xbf16>, vector<1024x128xf32> -> vector<1024x128xf32>
    %50 = arith.addf %44, %49 : vector<1024x128xf32>
    %51 = vector.extract_strided_slice %1 {offsets = [2, 2, 0], sizes = [32, 32, 128], strides = [1, 1, 1]} : vector<34x34x128xbf16> to vector<32x32x128xbf16>
    %52 = vector.shape_cast %51 : vector<32x32x128xbf16> to vector<1024x128xbf16>
    %c8 = arith.constant 8 : index
    %c0_28 = arith.constant 0 : index
    %c0_29 = arith.constant 0 : index
    %53 = vector.load %arg2[%c8, %c0_28, %c0_29] : memref<9x128x128xbf16, #tpu.memory_space<vmem>>, vector<1x128x128xbf16>
    %54 = vector.shape_cast %53 : vector<1x128x128xbf16> to vector<128x128xbf16>
    %cst_30 = arith.constant dense<0.000000e+00> : vector<1024x128xf32>
    %55 = tpu.matmul %52, %54, %cst_30 {dimension_numbers = #tpu.dot_dimension_numbers<[1], [0], [0], [1], [0, 0, 1, 1], [], []>} : vector<1024x128xbf16>, vector<128x128xbf16>, vector<1024x128xf32> -> vector<1024x128xf32>
    %56 = arith.addf %50, %55 : vector<1024x128xf32>
    %57 = vector.shape_cast %56 : vector<1024x128xf32> to vector<32x32x128xf32>
    %58 = arith.truncf %57 : vector<32x32x128xf32> to vector<32x32x128xbf16>
    %c0_31 = arith.constant 0 : index
    %c0_32 = arith.constant 0 : index
    %c0_33 = arith.constant 0 : index
    %c0_34 = arith.constant 0 : index
    %59 = vector.load %arg3[%c0_31, %c0_32, %c0_33, %c0_34] : memref<1x32x32x128xbf16, #tpu.memory_space<vmem>>, vector<1x32x32x128xbf16>
    %60 = vector.shape_cast %59 : vector<1x32x32x128xbf16> to vector<32x32x128xbf16>
    %61 = vector.shape_cast %58 : vector<32x32x128xbf16> to vector<1x32x32x128xbf16>
    tpu.vector_store %arg3[%c0_31, %c0_32, %c0_33, %c0_34], %61 {strides = array<i32>} : memref<1x32x32x128xbf16, #tpu.memory_space<vmem>>, vector<1x32x32x128xbf16>,
    return
  }
  func.func @transform_0(%arg0: i32) -> (i32, i32, i32, i32) {
    %c0_i32 = arith.constant 0 : i32
    %c0_i32_0 = arith.constant 0 : i32
    %c0_i32_1 = arith.constant 0 : i32
    %c0_i32_2 = arith.constant 0 : i32
    return %arg0, %c0_i32, %c0_i32_0, %c0_i32_1 : i32, i32, i32, i32
  }
  func.func @transform_1(%arg0: i32) -> (i32, i32, i32) {
    %c0_i32 = arith.constant 0 : i32
    %c0_i32_0 = arith.constant 0 : i32
    %c0_i32_1 = arith.constant 0 : i32
    %c0_i32_2 = arith.constant 0 : i32
    return %c0_i32, %c0_i32_0, %c0_i32_1 : i32, i32, i32
  }
  func.func @transform_2(%arg0: i32) -> (i32, i32, i32, i32) {
    %c0_i32 = arith.constant 0 : i32
    %c0_i32_0 = arith.constant 0 : i32
    %c0_i32_1 = arith.constant 0 : i32
    %c0_i32_2 = arith.constant 0 : i32
    return %arg0, %c0_i32, %c0_i32_0, %c0_i32_1 : i32, i32, i32, i32
  }
}

</mosaic_0001>

<bundles_post_ra>
// kernel: tpu_custom_call.1
= control target key start
LH: loop header
LB: loop body
LE: loop exit
PB: predicated region body
PF: predicated region fallthrough
CT: control target
= control target key end

     0   :  { %7 = vsyncpa [#allocation3], 0  ;;  %s17844_s0 = inlined_call_operand.vmem [shape: bf16[2,34,34,128], index: 0, kind: input, shape index: {}]   ;;  %s17845_s1 = inlined_call_operand.vmem [shape: bf16[9,128,128], index: 1, kind: input, shape index: {}]   ;;  %s17846_s2 = inlined_call_operand.hbm [shape: bf16[2,32,32,128], index: 2, kind: output, shape index: {}]  }
   0x1   :  { %9 = vsyncpa [#allocation3 + $0x1], 0  ;;  %s13824_s9 = smov 0   ;;  %s13826_s10 = smov 0  }
   0x2   :  { %s13828_s11 = smov 0   ;;  %s13830_s12 = smov 0  }
   0x3 LB: > { %s13845_s13 = sadd.s32 4294967295, %s13804_s12   ;;  %s10344_s14 = sadd.s32 4294967294, %s13804_s12   ;;  %s13804_s12 = sphi %s13830_s12, %s19530_s12   ;;  %s13800_s11 = sphi %s13828_s11, %s19529_s11   ;;  %s13796_s10 = sphi %s13826_s10, %s19528_s10   ;;  %s13792_s9 = sphi %s13824_s9, %s19527_s9  }
   0x4   : > { %s13849_s15 = sadd.s32 1, %s13804_s12   ;;  %s69_s16 = sadd.s32 1, %s13800_s11 }
   0x5   : > { %s66_s17 = ssub.s32 %s13804_s12, %s13849_s15  ;;  %p79_p0 = scmp.ne.s32.totalorder %s13800_s11, %s13796_s10 }
   0x6   : > { %p67_p1 = scmp.eq.s32.totalorder %s66_s17, 0  ;;  %p80_p2 = scmp.eq.s32.totalorder %s13845_s13, 1 }
   0x7   : > { %p85_p3 = scmp.ne.s32.totalorder %s13796_s10, %s13792_s9  ;;  %p86_p4 = scmp.eq.s32.totalorder %s10344_s14, 1 }
   0x8   : > { %s13860_s18 = scalar_select %p67_p1, %s13800_s11, %s69_s16  }
   0x9   : > { %p13862_p5 = por %p80_p2, %p79_p0  ;;  %p13866_p6 = por %p86_p4, %p85_p3 }
   0xa   : > { %p10347_p7 = scmp.ge.s32.totalorder %s13804_s12, 1  ;;  %p115_p8 = scmp.lt.s32.totalorder %s13804_s12, 3 }
   0xc   : > { %p116_p9 = pnand %p10347_p7, %p115_p8 }
   0xe   : > { %119 = sbr.rel (%p116_p9) target bundleno = 1533 (0x5fd), region = 28 }
  0x13   : > { %v13435_v0 = vld [vmem:[%s17845_s1 + $0x78] sm:$0xff]   ;;  %p137_p10 = scmp.lt.s32.totalorder %s13845_s13, 1  ;;  %v13436_v1 = vld [vmem:[%s17845_s1 + $0x70] sm:$0xff]   ;;  %v13437_v2 = vld [vmem:[%s17845_s1 + $0x68] sm:$0xff]   ;;  %vm329_vm0 = vsmask.f32 3328 }
  0x14   : > { %12081 = vmatprep.subr.bf16.mxu0 %v13435_v0  ;;  %13377 = vmatprep.subr.bf16.mxu1 %v13435_v0  ;;  %v13438_v3 = vld [vmem:[%s17845_s1 + $0x60] sm:$0xff]   ;;  %vm330_vm1 = vsmask.f32 7440  ;;  %v13439_v18 = vld [vmem:[%s17845_s1 + $0x58] sm:$0xff]   ;;  %v13440_v27 = vld [vmem:[%s17845_s1 + $0x50] sm:$0xff]   ;;  %v18201_v28 = vmov 0 }
  0x15   : > { %s138_s25 = scalar_select %p137_p10, %s13845_s13, 1  ;;  %12082 = vmatpush3.bf16.msra.mxu0 %v13435_v0  ;;  %13385 = vmatpush3.bf16.msra.mxu1 %v13435_v0  ;;  %vm13905_vm2 = vmor %vm329_vm0, %vm330_vm1  ;;  %v13441_v55 = vld [vmem:[%s17845_s1 + $0x48] sm:$0xff]   ;;  %vm3615_vm3 = vcmask 1042432   ;;  %vm3616_vm4 = vcmask 1046532  }
  0x16   : > { %12083 = vmatprep.subr.bf16.mxu0 %v13436_v1  ;;  %13378 = vmatprep.subr.bf16.mxu1 %v13436_v1  ;;  %v18202_v28 = vsel %vm13905_vm2, 4294967295, %v18201_v28  ;;  %vm14627_vm5 = vmor %vm3615_vm3, %vm3616_vm4  ;;  %s134_s29 = sand.u32 1, %s13796_s10   ;;  %s13806_s16 = smov [#allocation2]  }
  0x17   : > { %s13393_s28 = smul.u32 680, %s138_s25  ;;  %18203 = vst [vmem:[#allocation5_spill] sm:$0xff] %v18202_v28  ;;  %s10348_s30 = sshll.u32 %s134_s29, 9 }
  0x18   : > { %s17541_s4 = scalar_lea.vmem [#allocation2], %s10348_s30  ;;  %s13748_s17 = sshll.u32 %s13806_s16, 4  ;;  %s13749_s17 = int_to_ptr.vmem [resolvable:$false] %s13748_s17 }
  0x19   : > { %s13886_s3 = scalar_lea.vmem %s17844_s0, %s13393_s28  ;;  %12084 = vmatpush3.bf16.msra.mxu0 %v13436_v1  ;;  %13386 = vmatpush3.bf16.msra.mxu1 %v13436_v1  ;;  %s10282_s5 = sshll.u32 %s17541_s4, 4  ;;  %s17798_s5 = int_to_ptr.vmem [resolvable:$true] %s10282_s5 }
  0x1a   : > { %12085 = vmatprep.subr.bf16.mxu0 %v13437_v2  ;;  %13379 = vmatprep.subr.bf16.mxu1 %v13437_v2  ;;  %v143_v4 = vld [vmem:[%s13886_s3] sm:$0xf]  ;;  %v144_v5 = vld [vmem:[%s13886_s3 + $0x4] sm:$0xf]  ;;  %v145_v6 = vld [vmem:[%s13886_s3 + $0x8] sm:$0xf]  ;;  %p13751_p0 = scmp.lt.s32.totalorder %s17798_s5, %s13749_s17 }
  0x1b   : > { %v333_v7 = vshrl.u32 %v143_v4, 16  ;;  %v336_v8 = vshll.u32 %v143_v4, 16  ;;  %v342_v9 = vshll.u32 %v144_v5, 16  ;;  %v346_v10 = vshrl.u32 %v144_v5, 16  ;;  %v223_v13 = vld [vmem:[%s13886_s3 + $0x140] sm:$0xf] }
  0x1c   : > { %v352_v11 = vshll.u32 %v145_v6, 16  ;;  %v356_v12 = vshrl.u32 %v145_v6, 16  ;;  %v224_v16 = vld [vmem:[%s13886_s3 + $0x144] sm:$0xf]  ;;  %v225_v17 = vld [vmem:[%s13886_s3 + $0x148] sm:$0xf] }
  0x1d   : > { %12086 = vmatpush3.bf16.msra.mxu0 %v13437_v2  ;;  %13387 = vmatpush3.bf16.msra.mxu1 %v13437_v2  ;;  %v335_v14 = vrot.slane %v333_v7, 4  ;;  %v338_v15 = vrot.slane %v336_v8, 5  ;;  %v344_v19 = vrot.slane %v342_v9, 5  ;;  %v348_v20 = vrot.slane %v346_v10, 4  ;;  %v146_v33 = vld [vmem:[%s13886_s3 + $0xc] sm:$0xf] }
  0x1e   : > { %12087 = vmatprep.subr.bf16.mxu0 %v13438_v3  ;;  %13380 = vmatprep.subr.bf16.mxu1 %v13438_v3  ;;  %v354_v21 = vrot.slane %v352_v11, 5  ;;  %v358_v22 = vrot.slane %v356_v12, 4  ;;  %v1037_v24 = vshrl.u32 %v223_v13, 16  ;;  %v1040_v25 = vshll.u32 %v223_v13, 16  ;;  %v147_v34 = vld [vmem:[%s13886_s3 + $0x10] sm:$0x1] }
  0x1f   : > { %v339_v23 = vor.u32 %v338_v15, %v335_v14  ;;  %v1046_v26 = vshll.u32 %v224_v16, 16  ;;  %v349_v29 = vor.u32 %v348_v20, %v344_v19  ;;  %v1050_v31 = vshrl.u32 %v224_v16, 16  ;;  %v226_v41 = vld [vmem:[%s13886_s3 + $0x14c] sm:$0xf]  ;;  %v227_v54 = vld [vmem:[%s13886_s3 + $0x150] sm:$0x1] }
  0x20   : > { %v359_v30 = vor.u32 %v358_v22, %v354_v21  ;;  %v1056_v32 = vshll.u32 %v225_v17, 16  ;;  %v1039_v36 = vrot.slane %v1037_v24, 4  ;;  %v1042_v37 = vrot.slane %v1040_v25, 5  ;;  %v148_v0 = vld [vmem:[%s13886_s3 + $0x14] sm:$0xf]  ;;  %v13442_v10 = vld [vmem:[%s17845_s1 + $0x40] sm:$0xff]  }
  0x21   : > { %12088 = vmatpush3.bf16.msra.mxu0 %v13438_v3  ;;  %13388 = vmatpush3.bf16.msra.mxu1 %v13438_v3  ;;  %v340_v35 = vrot.slane %v339_v23, 4  ;;  %v1048_v38 = vrot.slane %v1046_v26, 5  ;;  %v350_v39 = vrot.slane %v349_v29, 4  ;;  %v1052_v40 = vrot.slane %v1050_v31, 4  ;;  %v149_v5 = vld [vmem:[%s13886_s3 + $0x18] sm:$0xf] }
  0x22   : > { %12089 = vmatprep.subr.bf16.mxu0 %v13439_v18  ;;  %13381 = vmatprep.subr.bf16.mxu1 %v13439_v18  ;;  %v1043_v43 = vor.u32 %v1042_v37, %v1039_v36  ;;  %v362_v44 = vshll.u32 %v146_v33, 16  ;;  %v366_v45 = vshrl.u32 %v146_v33, 16  ;;  %v360_v47 = vrot.slane %v359_v30, 4  ;;  %v13934_v13 = vld [vmem:[%s13886_s3 + $0x1c] sm:$0xf]  ;;  %s13744_s14 = scalar_lea.vmem %s17798_s5, 8192 }
  0x23   : > { %v345_v42 = vsel %vm13905_vm2, %v340_v35, %v344_v19  ;;  %v355_v46 = vsel %vm13905_vm2, %v350_v39, %v354_v21  ;;  %v1053_v48 = vor.u32 %v1052_v40, %v1048_v38  ;;  %v372_v49 = vshll.u32 %v147_v34, 16  ;;  %v228_v20 = vld [vmem:[%s13886_s3 + $0x154] sm:$0xf]  ;;  %v229_v25 = vld [vmem:[%s13886_s3 + $0x158] sm:$0xf]  ;;  %p13745_p11 = scmp.ne.s32.totalorder %s17798_s5, %s13744_s14  ;;  %s13750_s21 = scalar_lea.vmem %s13749_s17, 16384 }
  0x24   : > { %v10366_v50 = vcombine.low %v345_v42, %v355_v46  ;;  %v1044_v51 = vrot.slane %v1043_v43, 4  ;;  %v364_v52 = vrot.slane %v362_v44, 5  ;;  %v368_v53 = vrot.slane %v366_v45, 4  ;;  %v13444_v33 = vld [vmem:[%s17845_s1 + $0xb8] sm:$0xff]   ;;  %v151_v42 = vld [vmem:[%s13886_s3 + $0x20] sm:$0xf]  ;;  %p13752_p1 = scmp.lt.s32.totalorder %s13750_s21, %s13744_s14 }
  0x25   : > { %12090 = vmatpush3.bf16.msra.mxu0 %v13439_v18  ;;  %13389 = vmatpush3.bf16.msra.mxu1 %v13439_v18  ;;  %v1054_v56 = vrot.slane %v1053_v48, 4  ;;  %v1058_v57 = vrot.slane %v1056_v32, 5  ;;  %v1060_v58 = vshrl.u32 %v225_v17, 16  ;;  %v1066_v59 = vshll.u32 %v226_v41, 16  ;;  %v13443_v32 = vld [vmem:[%s17845_s1 + $0x38] sm:$0xff]   ;;  %p13746_p12 = pnand %p13745_p11, %p13862_p5 }
  0x26   : > { %12091 = vmatprep.subr.bf16.mxu0 %v13440_v27  ;;  %13382 = vmatprep.subr.bf16.mxu1 %v13440_v27  ;;  %v1049_v60 = vsel %vm13905_vm2, %v1044_v51, %v1048_v38  ;;  %v369_v61 = vor.u32 %v368_v53, %v364_v52  ;;  %v374_v62 = vrot.slane %v372_v49, 5  ;;  %v1070_v63 = vshrl.u32 %v226_v41, 16  ;;  %v230_v35 = vld [vmem:[%s13886_s3 + $0x15c] sm:$0xf]  ;;  %v13445_v51 = vld [vmem:[%s17845_s1 + $0x30] sm:$0xff]   ;;  %p13753_p2 = por %p13752_p1, %p13751_p0 }
  0x27   : > { %12097 = vmatprep.mubr.bf16.mxu0 %v10366_v50  ;;  %v1059_v1 = vsel %vm13905_vm2, %v1054_v56, %v1058_v57  ;;  %v1062_v2 = vrot.slane %v1060_v58, 4  ;;  %v1068_v3 = vrot.slane %v1066_v59, 5  ;;  %v1076_v4 = vshll.u32 %v227_v54, 16  ;;  %v152_v54 = vld [vmem:[%s13886_s3 + $0x24] sm:$0x1]  ;;  %p13747_p13 = pneg %p13746_p12 }
  0x28   : > { %v13926_v6 = vcombine.low %v1049_v60, %v1059_v1  ;;  %v365_v7 = vsel %vm13905_vm2, %v360_v47, %v364_v52  ;;  %v370_v8 = vrot.slane %v369_v61, 4  ;;  %v1072_v9 = vrot.slane %v1070_v63, 4  ;;  %v13446_v63 = vld [vmem:[%s17845_s1 + $0xb0] sm:$0xff]  }
  0x29   : > { %12092 = vmatpush3.bf16.msra.mxu0 %v13440_v27  ;;  %13390 = vmatpush3.bf16.msra.mxu1 %v13440_v27  ;;  %v1063_v11 = vor.u32 %v1062_v2, %v1058_v57  ;;  %v1078_v12 = vrot.slane %v1076_v4, 5  ;;  %v377_v14 = vshrl.u32 %v148_v0, 16  ;;  %v380_v15 = vshll.u32 %v148_v0, 16  ;;  %v231_v57 = vld [vmem:[%s13886_s3 + $0x160] sm:$0xf]  ;;  %p13754_p3 = pnand %p13753_p2, %p13747_p13 }
  0x2a   : > { %18204 = vst [vmem:[#allocation6_spill] sm:$0xff] %v13926_v6  ;;  %12093 = vmatprep.subr.bf16.mxu0 %v13441_v55  ;;  %13383 = vmatprep.subr.bf16.mxu1 %v13441_v55  ;;  %v375_v16 = vsel %vm13905_vm2, %v370_v8, %v374_v62  ;;  %v1073_v17 = vor.u32 %v1072_v9, %v1068_v3  ;;  %v386_v18 = vshll.u32 %v149_v5, 16  ;;  %v390_v19 = vshrl.u32 %v149_v5, 16  ;;  %v232_v62 = vld [vmem:[%s13886_s3 + $0x164] sm:$0x1] }
  0x2b   : > { %12161 = vmatprep.mubr.bf16.mxu1 %v13926_v6  ;;  %v10367_v21 = vcombine.low %v365_v7, %v375_v16  ;;  %v1064_v22 = vrot.slane %v1063_v11, 4  ;;  %v379_v23 = vrot.slane %v377_v14, 4  ;;  %v382_v24 = vrot.slane %v380_v15, 5  ;;  %v13448_v14 = vld [vmem:[%s17845_s1 + $0xa8] sm:$0xff]  }
  0x2c   : > { %v1074_v26 = vrot.slane %v1073_v17, 4  ;;  %v388_v27 = vrot.slane %v386_v18, 5  ;;  %v392_v29 = vrot.slane %v390_v19, 4  ;;  %v396_v30 = vshll.u32 %v13934_v13, 16  ;;  %v297_v6 = vld [vmem:[%s13886_s3 + $0x268] sm:$0x1] }
  0x2d   : > { %12094 = vmatpush3.bf16.msra.mxu0 %v13441_v55  ;;  %13391 = vmatpush3.bf16.msra.mxu1 %v13441_v55  ;;  %v1069_v31 = vsel %vm13905_vm2, %v1064_v22, %v1068_v3  ;;  %v383_v34 = vor.u32 %v382_v24, %v379_v23  ;;  %v1081_v36 = vshrl.u32 %v228_v20, 16  ;;  %v1084_v37 = vshll.u32 %v228_v20, 16  ;;  %v153_v23 = vld [vmem:[%s13886_s3 + $0x28] sm:$0xf] }
  0x2e   : > { %12095 = vmatprep.subr.bf16.mxu0 %v13442_v10  ;;  %13384 = vmatprep.subr.bf16.mxu1 %v13442_v10  ;;  %v1079_v38 = vsel %vm13905_vm2, %v1074_v26, %v1078_v12  ;;  %v393_v39 = vor.u32 %v392_v29, %v388_v27  ;;  %v398_v40 = vrot.slane %v396_v30, 5  ;;  %v1090_v41 = vshll.u32 %v229_v25, 16 }
  0x2f   : > { %v13954_v43 = vcombine.low %v1069_v31, %v1079_v38  ;;  %v384_v44 = vrot.slane %v383_v34, 4  ;;  %v1083_v45 = vrot.slane %v1081_v36, 4  ;;  %v1086_v46 = vrot.slane %v1084_v37, 5  ;;  %v13449_v34 = vld [vmem:[%s17845_s1 + $0x20] sm:$0xff]  }
  0x30   : > { %v394_v47 = vrot.slane %v393_v39, 4  ;;  %v1092_v48 = vrot.slane %v1090_v41, 5  ;;  %v1094_v49 = vshrl.u32 %v229_v25, 16  ;;  %v1100_v50 = vshll.u32 %v230_v35, 16  ;;  %v233_v39 = vld [vmem:[%s13886_s3 + $0x168] sm:$0xf] }
  0x31   : > { %18205 = vst [vmem:[#allocation7_spill] sm:$0xff] %v13954_v43  ;;  %12096 = vmatpush3.bf16.msra.mxu0 %v13442_v10  ;;  %13392 = vmatpush3.bf16.msra.mxu1 %v13442_v10  ;;  %v389_v52 = vsel %vm13905_vm2, %v384_v44, %v388_v27  ;;  %v1087_v53 = vor.u32 %v1086_v46, %v1083_v45  ;;  %v400_v55 = vshrl.u32 %v13934_v13, 16  ;;  %v406_v56 = vshll.u32 %v151_v42, 16  ;;  %v13447_v13 = vld [vmem:[%s17845_s1 + $0x28] sm:$0xff]  }
  0x32   : > { %12225 = vmatprep.subr.bf16.mxu1 %v13443_v32  ;;  %12369 = vmatprep.subr.bf16.mxu0 %v13444_v33  ;;  %v399_v58 = vsel %vm13905_vm2, %v394_v47, %v398_v40  ;;  %v1096_v59 = vrot.slane %v1094_v49, 4  ;;  %v1102_v60 = vrot.slane %v1100_v50, 5  ;;  %v410_v61 = vshrl.u32 %v151_v42, 16  ;;  %v154_v27 = vld [vmem:[%s13886_s3 + $0x2c] sm:$0xf] }
  0x33   : > { %v13971_v0 = vcombine.low %v389_v52, %v399_v58  ;;  %v1088_v1 = vrot.slane %v1087_v53, 4  ;;  %v402_v2 = vrot.slane %v400_v55, 4  ;;  %v408_v3 = vrot.slane %v406_v56, 5  ;;  %v234_v50 = vld [vmem:[%s13886_s3 + $0x16c] sm:$0xf]  ;;  %v13452_v56 = vld [vmem:[%s17845_s1 + $0x98] sm:$0xff]  }
  0x34   : > { %12098 = vmatmul.mubr.bf16.vlgmr.msra.gmra.mxu0 %v10367_v21  ;;  %12162 = vmatmul.mubr.bf16.vlgmr.msra.gmra.mxu1 %v13954_v43  ;;  %v1097_v4 = vor.u32 %v1096_v59, %v1092_v48  ;;  %v412_v5 = vrot.slane %v410_v61, 4  ;;  %v416_v7 = vshll.u32 %v152_v54, 16  ;;  %v1104_v8 = vshrl.u32 %v230_v35, 16  ;;  %v235_v54 = vld [vmem:[%s13886_s3 + $0x170] sm:$0xf] }
  0x35   : > { %12226 = vmatpush3.bf16.msra.mxu1 %v13443_v32  ;;  %12370 = vmatpush3.bf16.msra.mxu0 %v13444_v33  ;;  %v1093_v9 = vsel %vm13905_vm2, %v1088_v1, %v1092_v48  ;;  %v403_v10 = vor.u32 %v402_v2, %v398_v40  ;;  %v1110_v11 = vshll.u32 %v231_v57, 16  ;;  %v1114_v12 = vshrl.u32 %v231_v57, 16  ;;  %v155_v33 = vld [vmem:[%s13886_s3 + $0x30] sm:$0xf]  ;;  %v13450_v40 = vld [vmem:[%s17845_s1 + $0xa0] sm:$0xff]  }
  0x36   : > { %12101 = vmatprep.mubr.bf16.mxu0 %v13971_v0  ;;  %12227 = vmatprep.subr.bf16.mxu1 %v13445_v51  ;;  %v1098_v15 = vrot.slane %v1097_v4, 4  ;;  %v413_v16 = vor.u32 %v412_v5, %v408_v3  ;;  %v418_v17 = vrot.slane %v416_v7, 5  ;;  %v1106_v18 = vrot.slane %v1104_v8, 4  ;;  %v156_v61 = vld [vmem:[%s13886_s3 + $0x34] sm:$0xf] }
  0x37   : > { %12371 = vmatprep.subr.bf16.mxu0 %v13446_v63  ;;  %v404_v19 = vrot.slane %v403_v10, 4  ;;  %v1112_v20 = vrot.slane %v1110_v11, 5  ;;  %v1116_v21 = vrot.slane %v1114_v12, 4  ;;  %v1120_v22 = vshll.u32 %v232_v62, 16  ;;  %v13451_v62 = vld [vmem:[%s17845_s1 + $0x18] sm:$0xff]  }
  0x38   : > { %v1103_v24 = vsel %vm13905_vm2, %v1098_v15, %v1102_v60  ;;  %v414_v25 = vrot.slane %v413_v16, 4  ;;  %v1107_v26 = vor.u32 %v1106_v18, %v1102_v60  ;;  %v421_v37 = vshrl.u32 %v153_v23, 16  ;;  %v157_v12 = vld [vmem:[%s13886_s3 + $0x38] sm:$0x1]  ;;  %v236_v18 = vld [vmem:[%s13886_s3 + $0x174] sm:$0xf] }
  0x39   : > { %12228 = vmatpush3.bf16.msra.mxu1 %v13445_v51  ;;  %12372 = vmatpush3.bf16.msra.mxu0 %v13446_v63  ;;  %v13986_v29 = vcombine.low %v1093_v9, %v1103_v24  ;;  %v409_v30 = vsel %vm13905_vm2, %v404_v19, %v408_v3  ;;  %v1117_v31 = vor.u32 %v1116_v21, %v1112_v20  ;;  %v1122_v32 = vrot.slane %v1120_v22, 5 }
  0x3a   : > { %12229 = vmatprep.subr.bf16.mxu1 %v13447_v13  ;;  %12373 = vmatprep.subr.bf16.mxu0 %v13448_v14  ;;  %v419_v35 = vsel %vm13905_vm2, %v414_v25, %v418_v17  ;;  %v1108_v36 = vrot.slane %v1107_v26, 4  ;;  %v424_v38 = vshll.u32 %v153_v23, 16  ;;  %v430_v44 = vshll.u32 %v154_v27, 16  ;;  %v237_v23 = vld [vmem:[%s13886_s3 + $0x178] sm:$0x1] }
  0x3b   : > { %18206 = vst [vmem:[#allocation8_spill] sm:$0xff] %v13986_v29  ;;  %12165 = vmatprep.mubr.bf16.mxu1 %v13986_v29  ;;  %v14001_v41 = vcombine.low %v409_v30, %v419_v35  ;;  %v1118_v42 = vrot.slane %v1117_v31, 4  ;;  %v434_v45 = vshrl.u32 %v154_v27, 16  ;;  %v423_v47 = vrot.slane %v421_v37, 4  ;;  %v158_v30 = vld [vmem:[%s13886_s3 + $0x3c] sm:$0xf] }
  0x3c   : > { %v1113_v46 = vsel %vm13905_vm2, %v1108_v36, %v1112_v20  ;;  %v426_v48 = vrot.slane %v424_v38, 5  ;;  %v440_v49 = vshll.u32 %v155_v33, 16  ;;  %v432_v52 = vrot.slane %v430_v44, 5 }
  0x3d   : > { %18207 = vst [vmem:[#allocation9_spill] sm:$0xff] %v14001_v41  ;;  %12230 = vmatpush3.bf16.msra.mxu1 %v13447_v13  ;;  %12374 = vmatpush3.bf16.msra.mxu0 %v13448_v14  ;;  %v1123_v51 = vsel %vm13905_vm2, %v1118_v42, %v1122_v32  ;;  %v436_v53 = vrot.slane %v434_v45, 4  ;;  %v1125_v55 = vshrl.u32 %v233_v39, 16  ;;  %v1128_v60 = vshll.u32 %v233_v39, 16  ;;  %v159_v45 = vld [vmem:[%s13886_s3 + $0x40] sm:$0xf] }
  0x3e   : > { %12102 = vmatmul.mubr.bf16.gmra.mxu0 %v14001_v41  ;;  %12231 = vmatprep.subr.bf16.mxu1 %v13449_v34  ;;  %v14013_v57 = vcombine.low %v1113_v46, %v1123_v51  ;;  %v427_v58 = vor.u32 %v426_v48, %v423_v47  ;;  %v442_v59 = vrot.slane %v440_v49, 5  ;;  %v1134_v2 = vshll.u32 %v234_v50, 16 }
  0x3f   : > { %12375 = vmatprep.subr.bf16.mxu0 %v13450_v40  ;;  %v437_v63 = vor.u32 %v436_v53, %v432_v52  ;;  %v1127_v1 = vrot.slane %v1125_v55, 4  ;;  %v1138_v3 = vshrl.u32 %v234_v50, 16  ;;  %v1130_v5 = vrot.slane %v1128_v60, 5 }
  0x40   : > { %18208 = vst [vmem:[#allocation10_spill] sm:$0xff] %v14013_v57  ;;  %12166 = vmatmul.mubr.bf16.gmra.mxu1 %v14013_v57  ;;  %v428_v4 = vrot.slane %v427_v58, 4  ;;  %v1144_v7 = vshll.u32 %v235_v54, 16  ;;  %v444_v8 = vshrl.u32 %v155_v33, 16  ;;  %v1136_v10 = vrot.slane %v1134_v2, 5 }
  0x41   : > { %12376 = vmatpush3.bf16.msra.mxu0 %v13450_v40  ;;  %v438_v9 = vrot.slane %v437_v63, 4  ;;  %v1140_v11 = vrot.slane %v1138_v3, 4  ;;  %v450_v13 = vshll.u32 %v156_v61, 16  ;;  %12232 = vmatpush3.bf16.msra.mxu1 %v13449_v34  ;;  %v1131_v15 = vor.u32 %v1130_v5, %v1127_v1  ;;  %v239_v1 = vld [vmem:[%s13886_s3 + $0x180] sm:$0xf] }
  0x42   : > { %12377 = vmatprep.subr.bf16.mxu0 %v13452_v56  ;;  %v433_v14 = vsel %vm13905_vm2, %v428_v4, %v432_v52  ;;  %v1146_v16 = vrot.slane %v1144_v7, 5  ;;  %v446_v17 = vrot.slane %v444_v8, 4  ;;  %12233 = vmatprep.subr.bf16.mxu1 %v13451_v62  ;;  %v454_v22 = vshrl.u32 %v156_v61, 16  ;;  %v160_v52 = vld [vmem:[%s13886_s3 + $0x44] sm:$0xf] }
  0x43   : > { %v443_v19 = vsel %vm13905_vm2, %v438_v9, %v442_v59  ;;  %v1141_v20 = vor.u32 %v1140_v11, %v1136_v10  ;;  %v452_v21 = vrot.slane %v450_v13, 5  ;;  %v1132_v25 = vrot.slane %v1131_v15, 4  ;;  %v240_v13 = vld [vmem:[%s13886_s3 + $0x184] sm:$0xf] }
  0x44   : > { %v14027_v24 = vcombine.low %v433_v14, %v443_v19  ;;  %v447_v26 = vor.u32 %v446_v17, %v442_v59  ;;  %v460_v27 = vshll.u32 %v157_v12, 16  ;;  %v456_v32 = vrot.slane %v454_v22, 4  ;;  %v238_v59 = vld [vmem:[%s13886_s3 + $0x17c] sm:$0xf]  ;;  %v216_v57 = vld [vmem:[%s13886_s3 + $0x124] sm:$0xf] }
  0x45   : > { %12378 = vmatpush3.bf16.msra.mxu0 %v13452_v56  ;;  %v1142_v31 = vrot.slane %v1141_v20, 4  ;;  %v1148_v33 = vshrl.u32 %v235_v54, 16  ;;  %v1154_v34 = vshll.u32 %v236_v18, 16  ;;  %12234 = vmatpush3.bf16.msra.mxu1 %v13451_v62  ;;  %v1137_v35 = vsel %vm13905_vm2, %v1132_v25, %v1136_v10 }
  0x46   : > { %18209 = vst [vmem:[#allocation11_spill] sm:$0xff] %v14027_v24  ;;  %12105 = vmatprep.mubr.bf16.mxu0 %v14027_v24  ;;  %v448_v36 = vrot.slane %v447_v26, 4  ;;  %v462_v37 = vrot.slane %v460_v27, 5  ;;  %v1158_v38 = vshrl.u32 %v236_v18, 16  ;;  %v457_v40 = vor.u32 %v456_v32, %v452_v21 }
  0x47   : > { %v1147_v39 = vsel %vm13905_vm2, %v1142_v31, %v1146_v16  ;;  %v1150_v42 = vrot.slane %v1148_v33, 4  ;;  %v1156_v44 = vrot.slane %v1154_v34, 5  ;;  %v1164_v48 = vshll.u32 %v237_v23, 16 }
  0x48   : > { %v14036_v46 = vcombine.low %v1137_v35, %v1147_v39  ;;  %v1160_v47 = vrot.slane %v1158_v38, 4  ;;  %v453_v49 = vsel %vm13905_vm2, %v448_v36, %v452_v21  ;;  %v458_v50 = vrot.slane %v457_v40, 4  ;;  %v162_v35 = vld [vmem:[%s13886_s3 + $0x4c] sm:$0x1] }
  0x49   : > { %v1151_v51 = vor.u32 %v1150_v42, %v1146_v16  ;;  %v465_v53 = vshrl.u32 %v158_v30, 16  ;;  %v1166_v55 = vrot.slane %v1164_v48, 5  ;;  %v468_v56 = vshll.u32 %v158_v30, 16  ;;  %v161_v16 = vld [vmem:[%s13886_s3 + $0x48] sm:$0xf] }
  0x4a   : > { %18210 = vst [vmem:[#allocation12_spill] sm:$0xff] %v14036_v46  ;;  %12169 = vmatprep.mubr.bf16.mxu1 %v14036_v46  ;;  %v1161_v54 = vor.u32 %v1160_v47, %v1156_v44  ;;  %v474_v58 = vshll.u32 %v159_v45, 16  ;;  %v463_v60 = vsel %vm13905_vm2, %v458_v50, %v462_v37  ;;  %v478_v63 = vshrl.u32 %v159_v45, 16  ;;  %v241_v37 = vld [vmem:[%s13886_s3 + $0x188] sm:$0xf] }
  0x4b   : > { %v1152_v61 = vrot.slane %v1151_v51, 4  ;;  %v467_v62 = vrot.slane %v465_v53, 4  ;;  %v14046_v2 = vcombine.low %v453_v49, %v463_v60  ;;  %v470_v4 = vrot.slane %v468_v56, 5  ;;  %v242_v49 = vld [vmem:[%s13886_s3 + $0x18c] sm:$0x1] }
  0x4c   : > { %v1162_v3 = vrot.slane %v1161_v54, 4  ;;  %v476_v5 = vrot.slane %v474_v58, 5  ;;  %v480_v8 = vrot.slane %v478_v63, 4  ;;  %v484_v9 = vshll.u32 %v160_v52, 16  ;;  %v163_v54 = vld [vmem:[%s13886_s3 + $0x50] sm:$0xf] }
  0x4d   : > { %18211 = vst [vmem:[#allocation13_spill] sm:$0xff] %v14046_v2  ;;  %v1157_v7 = vsel %vm13905_vm2, %v1152_v61, %v1156_v44  ;;  %v1169_v10 = vshrl.u32 %v238_v59, 16  ;;  %12106 = vmatmul.mubr.bf16.gmra.mxu0 %v14046_v2  ;;  %v471_v12 = vor.u32 %v470_v4, %v467_v62  ;;  %v1172_v14 = vshll.u32 %v238_v59, 16 }
  0x4e   : > { %v1167_v11 = vsel %vm13905_vm2, %v1162_v3, %v1166_v55  ;;  %v1178_v15 = vshll.u32 %v239_v1, 16  ;;  %v481_v18 = vor.u32 %v480_v8, %v476_v5  ;;  %v486_v19 = vrot.slane %v484_v9, 5  ;;  %v13453_v55 = vld [vmem:[%s17845_s1 + $0x10] sm:$0xff]  }
  0x4f   : > { %v14055_v17 = vcombine.low %v1157_v7, %v1167_v11  ;;  %v1171_v20 = vrot.slane %v1169_v10, 4  ;;  %v472_v21 = vrot.slane %v471_v12, 4  ;;  %v1174_v22 = vrot.slane %v1172_v14, 5  ;;  %12235 = vmatprep.subr.bf16.mxu1 %v13453_v55  ;;  %v164_v8 = vld [vmem:[%s13886_s3 + $0x54] sm:$0xf] }
  0x50   : > { %v1180_v23 = vrot.slane %v1178_v15, 5  ;;  %v1182_v25 = vshrl.u32 %v239_v1, 16  ;;  %v482_v26 = vrot.slane %v481_v18, 4  ;;  %v1188_v27 = vshll.u32 %v240_v13, 16  ;;  %12236 = vmatpush3.bf16.msra.mxu1 %v13453_v55  ;;  %v13454_v9 = vld [vmem:[%s17845_s1 + $0x90] sm:$0xff]  }
  0x51   : > { %18212 = vst [vmem:[#allocation14_spill] sm:$0xff] %v14055_v17  ;;  %12170 = vmatmul.mubr.bf16.gmra.mxu1 %v14055_v17  ;;  %v488_v30 = vshrl.u32 %v160_v52, 16  ;;  %v494_v31 = vshll.u32 %v161_v16, 16  ;;  %v477_v32 = vsel %vm13905_vm2, %v472_v21, %v476_v5  ;;  %v1175_v33 = vor.u32 %v1174_v22, %v1171_v20  ;;  %12379 = vmatprep.subr.bf16.mxu0 %v13454_v9 }
  0x52   : > { %v1184_v34 = vrot.slane %v1182_v25, 4  ;;  %v498_v36 = vshrl.u32 %v161_v16, 16  ;;  %v487_v38 = vsel %vm13905_vm2, %v482_v26, %v486_v19  ;;  %v1190_v39 = vrot.slane %v1188_v27, 5  ;;  %12380 = vmatpush3.bf16.msra.mxu0 %v13454_v9 }
  0x53   : > { %v490_v40 = vrot.slane %v488_v30, 4  ;;  %v496_v42 = vrot.slane %v494_v31, 5  ;;  %v14064_v44 = vcombine.low %v477_v32, %v487_v38  ;;  %v1176_v45 = vrot.slane %v1175_v33, 4  ;;  %v244_v31 = vld [vmem:[%s13886_s3 + $0x194] sm:$0xf] }
  0x54   : > { %v1185_v47 = vor.u32 %v1184_v34, %v1180_v23  ;;  %v500_v48 = vrot.slane %v498_v36, 4  ;;  %v504_v51 = vshll.u32 %v162_v35, 16  ;;  %v1192_v52 = vshrl.u32 %v240_v13, 16  ;;  %v165_v13 = vld [vmem:[%s13886_s3 + $0x58] sm:$0xf] }
  0x55   : > { %18213 = vst [vmem:[#allocation15_spill] sm:$0xff] %v14064_v44  ;;  %v491_v50 = vor.u32 %v490_v40, %v486_v19  ;;  %v1198_v53 = vshll.u32 %v241_v37, 16  ;;  %12109 = vmatprep.mubr.bf16.mxu0 %v14064_v44  ;;  %v1181_v56 = vsel %vm13905_vm2, %v1176_v45, %v1180_v23  ;;  %v1202_v60 = vshrl.u32 %v241_v37, 16  ;;  %v243_v19 = vld [vmem:[%s13886_s3 + $0x190] sm:$0xf] }
  0x56   : > { %v1186_v58 = vrot.slane %v1185_v47, 4  ;;  %v501_v59 = vor.u32 %v500_v48, %v496_v42  ;;  %v506_v62 = vrot.slane %v504_v51, 5  ;;  %v1194_v63 = vrot.slane %v1192_v52, 4  ;;  %v245_v35 = vld [vmem:[%s13886_s3 + $0x198] sm:$0xf] }
  0x57   : > { %v492_v61 = vrot.slane %v491_v50, 4  ;;  %v1200_v1 = vrot.slane %v1198_v53, 5  ;;  %v1204_v5 = vrot.slane %v1202_v60, 4  ;;  %v1208_v7 = vshll.u32 %v242_v49, 16 }
  0x58   : > { %v1191_v3 = vsel %vm13905_vm2, %v1186_v58, %v1190_v39  ;;  %v502_v4 = vrot.slane %v501_v59, 4  ;;  %v1195_v12 = vor.u32 %v1194_v63, %v1190_v39  ;;  %v509_v18 = vshrl.u32 %v163_v54, 16 }
  0x59   : > { %v14080_v10 = vcombine.low %v1181_v56, %v1191_v3  ;;  %v497_v11 = vsel %vm13905_vm2, %v492_v61, %v496_v42  ;;  %v1205_v15 = vor.u32 %v1204_v5, %v1200_v1  ;;  %v1210_v16 = vrot.slane %v1208_v7, 5  ;;  %v166_v42 = vld [vmem:[%s13886_s3 + $0x5c] sm:$0xf]  ;;  %v167_v56 = vld [vmem:[%s13886_s3 + $0x60] sm:$0x1] }
  0x5a   : > { %v507_v14 = vsel %vm13905_vm2, %v502_v4, %v506_v62  ;;  %v1196_v21 = vrot.slane %v1195_v12, 4  ;;  %v512_v22 = vshll.u32 %v163_v54, 16  ;;  %v518_v23 = vshll.u32 %v164_v8, 16  ;;  %v246_v7 = vld [vmem:[%s13886_s3 + $0x19c] sm:$0xf] }
  0x5b   : > { %18214 = vst [vmem:[#allocation16_spill] sm:$0xff] %v14080_v10  ;;  %12173 = vmatprep.mubr.bf16.mxu1 %v14080_v10  ;;  %v14089_v20 = vcombine.low %v497_v11, %v507_v14  ;;  %v1206_v25 = vrot.slane %v1205_v15, 4  ;;  %v511_v26 = vrot.slane %v509_v18, 4  ;;  %v522_v27 = vshrl.u32 %v164_v8, 16 }
  0x5c   : > { %v528_v30 = vshll.u32 %v165_v13, 16  ;;  %v1201_v32 = vsel %vm13905_vm2, %v1196_v21, %v1200_v1  ;;  %v514_v33 = vrot.slane %v512_v22, 5  ;;  %v520_v34 = vrot.slane %v518_v23, 5 }
  0x5d   : > { %18215 = vst [vmem:[#allocation17_spill] sm:$0xff] %v14089_v20  ;;  %12110 = vmatmul.mubr.bf16.gmra.mxu0 %v14089_v20  ;;  %v1213_v36 = vshrl.u32 %v243_v19, 16  ;;  %v1211_v37 = vsel %vm13905_vm2, %v1206_v25, %v1210_v16  ;;  %v524_v38 = vrot.slane %v522_v27, 4  ;;  %v1216_v40 = vshll.u32 %v243_v19, 16  ;;  %v247_v16 = vld [vmem:[%s13886_s3 + $0x1a0] sm:$0x1] }
  0x5e   : > { %v530_v39 = vrot.slane %v528_v30, 5  ;;  %v14099_v45 = vcombine.low %v1201_v32, %v1211_v37  ;;  %v515_v47 = vor.u32 %v514_v33, %v511_v26  ;;  %v1222_v49 = vshll.u32 %v244_v31, 16  ;;  %v168_v25 = vld [vmem:[%s13886_s3 + $0x64] sm:$0xf] }
  0x5f   : > { %v1215_v48 = vrot.slane %v1213_v36, 4  ;;  %v525_v50 = vor.u32 %v524_v38, %v520_v34  ;;  %v1218_v51 = vrot.slane %v1216_v40, 5  ;;  %v1226_v52 = vshrl.u32 %v244_v31, 16 }
  0x60   : > { %18216 = vst [vmem:[#allocation18_spill] sm:$0xff] %v14099_v45  ;;  %v1232_v53 = vshll.u32 %v245_v35, 16  ;;  %12174 = vmatmul.mubr.bf16.gmra.mxu1 %v14099_v45  ;;  %v516_v54 = vrot.slane %v515_v47, 4  ;;  %v1224_v55 = vrot.slane %v1222_v49, 5  ;;  %v532_v58 = vshrl.u32 %v165_v13, 16 }
  0x61   : > { %v538_v59 = vshll.u32 %v166_v42, 16  ;;  %v526_v60 = vrot.slane %v525_v50, 4  ;;  %v1219_v61 = vor.u32 %v1218_v51, %v1215_v48  ;;  %v1228_v62 = vrot.slane %v1226_v52, 4  ;;  %v170_v47 = vld [vmem:[%s13886_s3 + $0x6c] sm:$0xf] }
  0x62   : > { %v1234_v63 = vrot.slane %v1232_v53, 5  ;;  %v521_v1 = vsel %vm13905_vm2, %v516_v54, %v520_v34  ;;  %v534_v3 = vrot.slane %v532_v58, 4  ;;  %v542_v5 = vshrl.u32 %v166_v42, 16  ;;  %v248_v54 = vld [vmem:[%s13886_s3 + $0x1a4] sm:$0xf] }
  0x63   : > { %v540_v4 = vrot.slane %v538_v59, 5  ;;  %v531_v8 = vsel %vm13905_vm2, %v526_v60, %v530_v39  ;;  %v1220_v9 = vrot.slane %v1219_v61, 4  ;;  %v1229_v11 = vor.u32 %v1228_v62, %v1224_v55  ;;  %v249_v60 = vld [vmem:[%s13886_s3 + $0x1a8] sm:$0xf]  ;;  %v295_v45 = vld [vmem:[%s13886_s3 + $0x260] sm:$0xf] }
  0x64   : > { %v548_v12 = vshll.u32 %v167_v56, 16  ;;  %v14108_v13 = vcombine.low %v521_v1, %v531_v8  ;;  %v535_v14 = vor.u32 %v534_v3, %v530_v39  ;;  %v544_v15 = vrot.slane %v542_v5, 4 }
  0x65   : > { %v1236_v18 = vshrl.u32 %v245_v35, 16  ;;  %v1225_v19 = vsel %vm13905_vm2, %v1220_v9, %v1224_v55  ;;  %v1230_v21 = vrot.slane %v1229_v11, 4  ;;  %v1242_v23 = vshll.u32 %v246_v7, 16  ;;  %v169_v35 = vld [vmem:[%s13886_s3 + $0x68] sm:$0xf] }
  0x66   : > { %18217 = vst [vmem:[#allocation19_spill] sm:$0xff] %v14108_v13  ;;  %v550_v22 = vrot.slane %v548_v12, 5  ;;  %12113 = vmatprep.mubr.bf16.mxu0 %v14108_v13  ;;  %v536_v26 = vrot.slane %v535_v14, 4  ;;  %v545_v27 = vor.u32 %v544_v15, %v540_v4  ;;  %v1246_v31 = vshrl.u32 %v246_v7, 16  ;;  %v250_v11 = vld [vmem:[%s13886_s3 + $0x1ac] sm:$0xf] }
  0x67   : > { %v1238_v30 = vrot.slane %v1236_v18, 4  ;;  %v1235_v32 = vsel %vm13905_vm2, %v1230_v21, %v1234_v63  ;;  %v1244_v33 = vrot.slane %v1242_v23, 5  ;;  %v1252_v34 = vshll.u32 %v247_v16, 16  ;;  %v171_v21 = vld [vmem:[%s13886_s3 + $0x70] sm:$0xf] }
  0x68   : > { %v14118_v36 = vcombine.low %v1225_v19, %v1235_v32  ;;  %v541_v37 = vsel %vm13905_vm2, %v536_v26, %v540_v4  ;;  %v546_v38 = vrot.slane %v545_v27, 4  ;;  %v1248_v40 = vrot.slane %v1246_v31, 4  ;;  %v172_v32 = vld [vmem:[%s13886_s3 + $0x74] sm:$0x1] }
  0x69   : > { %v1239_v39 = vor.u32 %v1238_v30, %v1234_v63  ;;  %v1254_v42 = vrot.slane %v1252_v34, 5  ;;  %v553_v48 = vshrl.u32 %v168_v25, 16  ;;  %v556_v49 = vshll.u32 %v168_v25, 16 }
  0x6a   : > { %18218 = vst [vmem:[#allocation20_spill] sm:$0xff] %v14118_v36  ;;  %12177 = vmatprep.mubr.bf16.mxu1 %v14118_v36  ;;  %v551_v50 = vsel %vm13905_vm2, %v546_v38, %v550_v22  ;;  %v562_v52 = vshll.u32 %v169_v35, 16  ;;  %v566_v53 = vshrl.u32 %v169_v35, 16  ;;  %v1249_v56 = vor.u32 %v1248_v40, %v1244_v33  ;;  %v215_v36 = vld [vmem:[%s13886_s3 + $0x120] sm:$0xf] }
  0x6b   : > { %v1240_v51 = vrot.slane %v1239_v39, 4  ;;  %v14127_v55 = vcombine.low %v541_v37, %v551_v50  ;;  %v555_v58 = vrot.slane %v553_v48, 4  ;;  %v558_v59 = vrot.slane %v556_v49, 5  ;;  %v251_v39 = vld [vmem:[%s13886_s3 + $0x1b0] sm:$0xf] }
  0x6c   : > { %v564_v62 = vrot.slane %v562_v52, 5  ;;  %v568_v63 = vrot.slane %v566_v53, 4  ;;  %v572_v1 = vshll.u32 %v170_v47, 16  ;;  %v1250_v3 = vrot.slane %v1249_v56, 4  ;;  %v252_v56 = vld [vmem:[%s13886_s3 + $0x1b4] sm:$0x1] }
  0x6d   : > { %18219 = vst [vmem:[#allocation21_spill] sm:$0xff] %v14127_v55  ;;  %v1245_v61 = vsel %vm13905_vm2, %v1240_v51, %v1244_v33  ;;  %12114 = vmatmul.mubr.bf16.gmra.mxu0 %v14127_v55  ;;  %v559_v4 = vor.u32 %v558_v59, %v555_v58  ;;  %v1257_v5 = vshrl.u32 %v248_v54, 16  ;;  %v1260_v7 = vshll.u32 %v248_v54, 16 }
  0x6e   : > { %v569_v8 = vor.u32 %v568_v63, %v564_v62  ;;  %v574_v9 = vrot.slane %v572_v1, 5  ;;  %v1266_v12 = vshll.u32 %v249_v60, 16  ;;  %v1270_v14 = vshrl.u32 %v249_v60, 16  ;;  %v173_v1 = vld [vmem:[%s13886_s3 + $0x78] sm:$0xf] }
  0x6f   : > { %v1255_v15 = vsel %vm13905_vm2, %v1250_v3, %v1254_v42  ;;  %v560_v16 = vrot.slane %v559_v4, 4  ;;  %v1259_v18 = vrot.slane %v1257_v5, 4  ;;  %v1262_v19 = vrot.slane %v1260_v7, 5  ;;  %v174_v3 = vld [vmem:[%s13886_s3 + $0x7c] sm:$0xf] }
  0x70   : > { %v14137_v22 = vcombine.low %v1245_v61, %v1255_v15  ;;  %v570_v23 = vrot.slane %v569_v8, 4  ;;  %v1268_v25 = vrot.slane %v1266_v12, 5  ;;  %v1272_v26 = vrot.slane %v1270_v14, 4  ;;  %v175_v12 = vld [vmem:[%s13886_s3 + $0x80] sm:$0xf] }
  0x71   : > { %v565_v27 = vsel %vm13905_vm2, %v560_v16, %v564_v62  ;;  %v1263_v30 = vor.u32 %v1262_v19, %v1259_v18  ;;  %v1276_v31 = vshll.u32 %v250_v11, 16  ;;  %v576_v33 = vshrl.u32 %v170_v47, 16 }
  0x72   : > { %18220 = vst [vmem:[#allocation22_spill] sm:$0xff] %v14137_v22  ;;  %12178 = vmatmul.mubr.bf16.gmra.mxu1 %v14137_v22  ;;  %v575_v34 = vsel %vm13905_vm2, %v570_v23, %v574_v9  ;;  %v1273_v35 = vor.u32 %v1272_v26, %v1268_v25  ;;  %v582_v37 = vshll.u32 %v171_v21, 16  ;;  %v586_v38 = vshrl.u32 %v171_v21, 16  ;;  %v213_v22 = vld [vmem:[%s13886_s3 + $0x118] sm:$0xf] }
  0x73   : > { %v14146_v40 = vcombine.low %v565_v27, %v575_v34  ;;  %v1264_v42 = vrot.slane %v1263_v30, 4  ;;  %v1278_v48 = vrot.slane %v1276_v31, 5  ;;  %v578_v49 = vrot.slane %v576_v33, 4  ;;  %v253_v30 = vld [vmem:[%s13886_s3 + $0x1b8] sm:$0xf] }
  0x74   : > { %v1274_v50 = vrot.slane %v1273_v35, 4  ;;  %v584_v51 = vrot.slane %v582_v37, 5  ;;  %v588_v47 = vrot.slane %v586_v38, 4  ;;  %v592_v52 = vshll.u32 %v172_v32, 16  ;;  %v254_v35 = vld [vmem:[%s13886_s3 + $0x1bc] sm:$0xf] }
  0x75   : > { %18221 = vst [vmem:[#allocation23_spill] sm:$0xff] %v14146_v40  ;;  %12117 = vmatprep.mubr.bf16.mxu0 %v14146_v40  ;;  %v1269_v53 = vsel %vm13905_vm2, %v1264_v42, %v1268_v25  ;;  %v579_v54 = vor.u32 %v578_v49, %v574_v9  ;;  %v1280_v58 = vshrl.u32 %v250_v11, 16  ;;  %v1286_v59 = vshll.u32 %v251_v39, 16  ;;  %v13455_v9 = vld [vmem:[%s17845_s1 + $0x8] sm:$0xff]  }
  0x76   : > { %v1279_v60 = vsel %vm13905_vm2, %v1274_v50, %v1278_v48  ;;  %v589_v61 = vor.u32 %v588_v47, %v584_v51  ;;  %v594_v62 = vrot.slane %v592_v52, 5  ;;  %v1290_v63 = vshrl.u32 %v251_v39, 16  ;;  %12237 = vmatprep.subr.bf16.mxu1 %v13455_v9  ;;  %v13456_v37 = vld [vmem:[%s17845_s1 + $0x88] sm:$0xff]  }
  0x77   : > { %v14156_v4 = vcombine.low %v1269_v53, %v1279_v60  ;;  %v580_v5 = vrot.slane %v579_v54, 4  ;;  %v1282_v7 = vrot.slane %v1280_v58, 4  ;;  %v1288_v8 = vrot.slane %v1286_v59, 5  ;;  %12238 = vmatpush3.bf16.msra.mxu1 %v13455_v9  ;;  %12381 = vmatprep.subr.bf16.mxu0 %v13456_v37  ;;  %v176_v59 = vld [vmem:[%s13886_s3 + $0x84] sm:$0xf] }
  0x78   : > { %v590_v11 = vrot.slane %v589_v61, 4  ;;  %v1292_v14 = vrot.slane %v1290_v63, 4  ;;  %v1296_v15 = vshll.u32 %v252_v56, 16  ;;  %v597_v19 = vshrl.u32 %v173_v1, 16  ;;  %12382 = vmatpush3.bf16.msra.mxu0 %v13456_v37 }
  0x79   : > { %18222 = vst [vmem:[#allocation24_spill] sm:$0xff] %v14156_v4  ;;  %12181 = vmatprep.mubr.bf16.mxu1 %v14156_v4  ;;  %v585_v16 = vsel %vm13905_vm2, %v580_v5, %v584_v51  ;;  %v1283_v18 = vor.u32 %v1282_v7, %v1278_v48  ;;  %v600_v21 = vshll.u32 %v173_v1, 16  ;;  %v606_v27 = vshll.u32 %v174_v3, 16  ;;  %v255_v51 = vld [vmem:[%s13886_s3 + $0x1c0] sm:$0xf] }
  0x7a   : > { %v595_v23 = vsel %vm13905_vm2, %v590_v11, %v594_v62  ;;  %v1293_v25 = vor.u32 %v1292_v14, %v1288_v8  ;;  %v1298_v26 = vrot.slane %v1296_v15, 5  ;;  %v599_v33 = vrot.slane %v597_v19, 4 }
  0x7b   : > { %v14168_v31 = vcombine.low %v585_v16, %v595_v23  ;;  %v1284_v32 = vrot.slane %v1283_v18, 4  ;;  %v602_v34 = vrot.slane %v600_v21, 5  ;;  %v608_v39 = vrot.slane %v606_v27, 5 }
  0x7c   : > { %v1294_v38 = vrot.slane %v1293_v25, 4  ;;  %v610_v42 = vshrl.u32 %v174_v3, 16  ;;  %v616_v48 = vshll.u32 %v175_v12, 16  ;;  %v1301_v47 = vshrl.u32 %v253_v30, 16 }
  0x7d   : > { %18223 = vst [vmem:[#allocation25_spill] sm:$0xff] %v14168_v31  ;;  %12118 = vmatmul.mubr.bf16.gmra.mxu0 %v14168_v31  ;;  %v1289_v49 = vsel %vm13905_vm2, %v1284_v32, %v1288_v8  ;;  %v603_v50 = vor.u32 %v602_v34, %v599_v33  ;;  %v1304_v52 = vshll.u32 %v253_v30, 16  ;;  %v1310_v58 = vshll.u32 %v254_v35, 16  ;;  %v177_v8 = vld [vmem:[%s13886_s3 + $0x88] sm:$0x1] }
  0x7e   : > { %v1299_v53 = vsel %vm13905_vm2, %v1294_v38, %v1298_v26  ;;  %v612_v54 = vrot.slane %v610_v42, 4  ;;  %v618_v56 = vrot.slane %v616_v48, 5  ;;  %v1303_v62 = vrot.slane %v1301_v47, 4  ;;  %v256_v30 = vld [vmem:[%s13886_s3 + $0x1c4] sm:$0xf] }
  0x7f   : > { %v14181_v60 = vcombine.low %v1289_v49, %v1299_v53  ;;  %v604_v61 = vrot.slane %v603_v50, 4  ;;  %v1306_v63 = vrot.slane %v1304_v52, 5  ;;  %v1312_v3 = vrot.slane %v1310_v58, 5  ;;  %v178_v52 = vld [vmem:[%s13886_s3 + $0x8c] sm:$0xf] }
  0x80   : > { %v613_v1 = vor.u32 %v612_v54, %v608_v39  ;;  %v1314_v5 = vshrl.u32 %v254_v35, 16  ;;  %v1320_v7 = vshll.u32 %v255_v51, 16  ;;  %v620_v14 = vshrl.u32 %v175_v12, 16  ;;  %v257_v35 = vld [vmem:[%s13886_s3 + $0x1c8] sm:$0x1] }
  0x81   : > { %18224 = vst [vmem:[#allocation26_spill] sm:$0xff] %v14181_v60  ;;  %12182 = vmatmul.mubr.bf16.gmra.mxu1 %v14181_v60  ;;  %v609_v9 = vsel %vm13905_vm2, %v604_v61, %v608_v39  ;;  %v1307_v11 = vor.u32 %v1306_v63, %v1303_v62  ;;  %v626_v15 = vshll.u32 %v176_v59, 16  ;;  %v630_v21 = vshrl.u32 %v176_v59, 16  ;;  %v180_v63 = vld [vmem:[%s13886_s3 + $0x94] sm:$0xf] }
  0x82   : > { %v614_v16 = vrot.slane %v613_v1, 4  ;;  %v1316_v18 = vrot.slane %v1314_v5, 4  ;;  %v1322_v19 = vrot.slane %v1320_v7, 5  ;;  %v622_v25 = vrot.slane %v620_v14, 4  ;;  %v258_v1 = vld [vmem:[%s13886_s3 + $0x1cc] sm:$0xf] }
  0x83   : > { %v1308_v23 = vrot.slane %v1307_v11, 4  ;;  %v628_v26 = vrot.slane %v626_v15, 5  ;;  %v636_v27 = vshll.u32 %v177_v8, 16  ;;  %v632_v34 = vrot.slane %v630_v21, 4 }
  0x84   : > { %v619_v32 = vsel %vm13905_vm2, %v614_v16, %v618_v56  ;;  %v1317_v33 = vor.u32 %v1316_v18, %v1312_v3  ;;  %v1324_v37 = vshrl.u32 %v255_v51, 16  ;;  %v623_v39 = vor.u32 %v622_v25, %v618_v56  ;;  %v179_v51 = vld [vmem:[%s13886_s3 + $0x90] sm:$0xf] }
  0x85   : > { %v14191_v12 = vcombine.low %v609_v9, %v619_v32  ;;  %v1313_v38 = vsel %vm13905_vm2, %v1308_v23, %v1312_v3  ;;  %v638_v42 = vrot.slane %v636_v27, 5  ;;  %v633_v49 = vor.u32 %v632_v34, %v628_v26  ;;  %v259_v23 = vld [vmem:[%s13886_s3 + $0x1d0] sm:$0xf] }
  0x86   : > { %v1318_v48 = vrot.slane %v1317_v33, 4  ;;  %v1326_v50 = vrot.slane %v1324_v37, 4  ;;  %v1330_v47 = vshll.u32 %v256_v30, 16  ;;  %v624_v53 = vrot.slane %v623_v39, 4  ;;  %v260_v39 = vld [vmem:[%s13886_s3 + $0x1d4] sm:$0xf] }
  0x87   : > { %18225 = vst [vmem:[#allocation27_spill] sm:$0xff] %v14191_v12  ;;  %12121 = vmatprep.mubr.bf16.mxu0 %v14191_v12  ;;  %v1334_v54 = vshrl.u32 %v256_v30, 16  ;;  %v1340_v58 = vshll.u32 %v257_v35, 16  ;;  %v634_v61 = vrot.slane %v633_v49, 4  ;;  %v641_v14 = vshrl.u32 %v178_v52, 16 }
  0x88   : > { %v1323_v59 = vsel %vm13905_vm2, %v1318_v48, %v1322_v19  ;;  %v1327_v62 = vor.u32 %v1326_v50, %v1322_v19  ;;  %v1332_v56 = vrot.slane %v1330_v47, 5  ;;  %v629_v5 = vsel %vm13905_vm2, %v624_v53, %v628_v26  ;;  %v181_v53 = vld [vmem:[%s13886_s3 + $0x98] sm:$0xf] }
  0x89   : > { %v14202_v3 = vcombine.low %v1313_v38, %v1323_v59  ;;  %v1336_v7 = vrot.slane %v1334_v54, 4  ;;  %v1342_v8 = vrot.slane %v1340_v58, 5  ;;  %v639_v9 = vsel %vm13905_vm2, %v634_v61, %v638_v42 }
  0x8a   : > { %v1328_v11 = vrot.slane %v1327_v62, 4  ;;  %v644_v15 = vshll.u32 %v178_v52, 16  ;;  %v14209_v16 = vcombine.low %v629_v5, %v639_v9  ;;  %v650_v19 = vshll.u32 %v179_v51, 16 }
  0x8b   : > { %18226 = vst [vmem:[#allocation28_spill] sm:$0xff] %v14202_v3  ;;  %12185 = vmatprep.mubr.bf16.mxu1 %v14202_v3  ;;  %v1337_v18 = vor.u32 %v1336_v7, %v1332_v56  ;;  %v654_v21 = vshrl.u32 %v179_v51, 16  ;;  %v643_v26 = vrot.slane %v641_v14, 4  ;;  %v660_v30 = vshll.u32 %v180_v63, 16 }
  0x8c   : > { %18227 = vst [vmem:[#allocation29_spill] sm:$0xff] %v14209_v16  ;;  %v1333_v25 = vsel %vm13905_vm2, %v1328_v11, %v1332_v56  ;;  %v646_v27 = vrot.slane %v644_v15, 5  ;;  %12122 = vmatmul.mubr.bf16.gmra.mxu0 %v14209_v16  ;;  %v652_v33 = vrot.slane %v650_v19, 5  ;;  %v1345_v35 = vshrl.u32 %v258_v1, 16 }
  0x8d   : > { %v1338_v32 = vrot.slane %v1337_v18, 4  ;;  %v656_v34 = vrot.slane %v654_v21, 4  ;;  %v662_v38 = vrot.slane %v660_v30, 5  ;;  %v1348_v42 = vshll.u32 %v258_v1, 16  ;;  %v261_v21 = vld [vmem:[%s13886_s3 + $0x1d8] sm:$0xf] }
  0x8e   : > { %v647_v37 = vor.u32 %v646_v27, %v643_v26  ;;  %v1354_v48 = vshll.u32 %v259_v23, 16  ;;  %v1347_v47 = vrot.slane %v1345_v35, 4  ;;  %v1358_v52 = vshrl.u32 %v259_v23, 16 }
  0x8f   : > { %v1343_v49 = vsel %vm13905_vm2, %v1338_v32, %v1342_v8  ;;  %v657_v50 = vor.u32 %v656_v34, %v652_v33  ;;  %v1350_v51 = vrot.slane %v1348_v42, 5  ;;  %v1364_v56 = vshll.u32 %v260_v39, 16  ;;  %v182_v8 = vld [vmem:[%s13886_s3 + $0x9c] sm:$0x1]  ;;  %v13457_v34 = vld [vmem:[%s17845_s1] sm:$0xff]  }
  0x90   : > { %v14219_v54 = vcombine.low %v1333_v25, %v1343_v49  ;;  %v648_v58 = vrot.slane %v647_v37, 4  ;;  %v1356_v59 = vrot.slane %v1354_v48, 5  ;;  %v1360_v62 = vrot.slane %v1358_v52, 4  ;;  %v262_v42 = vld [vmem:[%s13886_s3 + $0x1dc] sm:$0x1]  ;;  %12239 = vmatprep.subr.bf16.mxu1 %v13457_v34 }
  0x91   : > { %v658_v61 = vrot.slane %v657_v50, 4  ;;  %v664_v5 = vshrl.u32 %v180_v63, 16  ;;  %v1351_v7 = vor.u32 %v1350_v51, %v1347_v47  ;;  %v670_v9 = vshll.u32 %v181_v53, 16  ;;  %v183_v52 = vld [vmem:[%s13886_s3 + $0xa0] sm:$0xf]  ;;  %12240 = vmatpush3.bf16.msra.mxu1 %v13457_v34 }
  0x92   : > { %18228 = vst [vmem:[#allocation30_spill] sm:$0xff] %v14219_v54  ;;  %12186 = vmatmul.mubr.bf16.gmra.mxu1 %v14219_v54  ;;  %v653_v1 = vsel %vm13905_vm2, %v648_v58, %v652_v33  ;;  %v674_v11 = vshrl.u32 %v181_v53, 16  ;;  %v1361_v15 = vor.u32 %v1360_v62, %v1356_v59  ;;  %v1366_v18 = vrot.slane %v1364_v56, 5  ;;  %v13458_v53 = vld [vmem:[%s17845_s1 + $0x80] sm:$0xff]  }
  0x93   : > { %v663_v14 = vsel %vm13905_vm2, %v658_v61, %v662_v38  ;;  %v666_v19 = vrot.slane %v664_v5, 4  ;;  %v1352_v63 = vrot.slane %v1351_v7, 4  ;;  %v672_v25 = vrot.slane %v670_v9, 5  ;;  %v184_v62 = vld [vmem:[%s13886_s3 + $0xa4] sm:$0xf]  ;;  %12383 = vmatprep.subr.bf16.mxu0 %v13458_v53 }
  0x94   : > { %v14228_v23 = vcombine.low %v653_v1, %v663_v14  ;;  %v676_v26 = vrot.slane %v674_v11, 4  ;;  %v1362_v27 = vrot.slane %v1361_v15, 4  ;;  %v680_v32 = vshll.u32 %v182_v8, 16  ;;  %v185_v7 = vld [vmem:[%s13886_s3 + $0xa8] sm:$0xf]  ;;  %12384 = vmatpush3.bf16.msra.mxu0 %v13458_v53 }
  0x95   : > { %v667_v30 = vor.u32 %v666_v19, %v662_v38  ;;  %v1368_v33 = vshrl.u32 %v260_v39, 16  ;;  %v1357_v35 = vsel %vm13905_vm2, %v1352_v63, %v1356_v59  ;;  %v1374_v48 = vshll.u32 %v261_v21, 16  ;;  %v263_v8 = vld [vmem:[%s13886_s3 + $0x1e0] sm:$0xf]  ;;  %v264_v19 = vld [vmem:[%s13886_s3 + $0x1e4] sm:$0xf] }
  0x96   : > { %18229 = vst [vmem:[#allocation31_spill] sm:$0xff] %v14228_v23  ;;  %12125 = vmatprep.mubr.bf16.mxu0 %v14228_v23  ;;  %v677_v37 = vor.u32 %v676_v26, %v672_v25  ;;  %v1378_v49 = vshrl.u32 %v261_v21, 16  ;;  %v1367_v50 = vsel %vm13905_vm2, %v1362_v27, %v1366_v18  ;;  %v682_v39 = vrot.slane %v680_v32, 5 }
  0x97   : > { %v668_v38 = vrot.slane %v667_v30, 4  ;;  %v1370_v47 = vrot.slane %v1368_v33, 4  ;;  %v14243_v58 = vcombine.low %v1357_v35, %v1367_v50  ;;  %v1376_v59 = vrot.slane %v1374_v48, 5  ;;  %v265_v50 = vld [vmem:[%s13886_s3 + $0x1e8] sm:$0xf] }
  0x98   : > { %v678_v51 = vrot.slane %v677_v37, 4  ;;  %v1380_v61 = vrot.slane %v1378_v49, 4  ;;  %v1384_v1 = vshll.u32 %v262_v42, 16  ;;  %v685_v14 = vshrl.u32 %v183_v52, 16 }
  0x99   : > { %18230 = vst [vmem:[#allocation32_spill] sm:$0xff] %v14243_v58  ;;  %v673_v56 = vsel %vm13905_vm2, %v668_v38, %v672_v25  ;;  %v1371_v5 = vor.u32 %v1370_v47, %v1366_v18  ;;  %12189 = vmatprep.mubr.bf16.mxu1 %v14243_v58  ;;  %v688_v15 = vshll.u32 %v183_v52, 16  ;;  %v694_v18 = vshll.u32 %v184_v62, 16 }
  0x9a   : > { %v683_v9 = vsel %vm13905_vm2, %v678_v51, %v682_v39  ;;  %v1381_v11 = vor.u32 %v1380_v61, %v1376_v59  ;;  %v1386_v25 = vrot.slane %v1384_v1, 5  ;;  %v687_v27 = vrot.slane %v685_v14, 4  ;;  %v186_v39 = vld [vmem:[%s13886_s3 + $0xac] sm:$0xf] }
  0x9b   : > { %v14254_v21 = vcombine.low %v673_v56, %v683_v9  ;;  %v1372_v63 = vrot.slane %v1371_v5, 4  ;;  %v690_v30 = vrot.slane %v688_v15, 5  ;;  %v698_v32 = vshrl.u32 %v184_v62, 16  ;;  %v187_v9 = vld [vmem:[%s13886_s3 + $0xb0] sm:$0x1] }
  0x9c   : > { %v1382_v26 = vrot.slane %v1381_v11, 4  ;;  %v696_v34 = vrot.slane %v694_v18, 5  ;;  %v704_v35 = vshll.u32 %v185_v7, 16  ;;  %v1389_v37 = vshrl.u32 %v263_v8, 16 }
  0x9d   : > { %18231 = vst [vmem:[#allocation33_spill] sm:$0xff] %v14254_v21  ;;  %12126 = vmatmul.mubr.bf16.gmra.mxu0 %v14254_v21  ;;  %v1377_v33 = vsel %vm13905_vm2, %v1372_v63, %v1376_v59  ;;  %v691_v48 = vor.u32 %v690_v30, %v687_v27  ;;  %v700_v49 = vrot.slane %v698_v32, 4  ;;  %v1392_v38 = vshll.u32 %v263_v8, 16  ;;  %v14758_v21 = vld [vmem:[%s13886_s3 + $0x48] sm:$0xf] }
  0x9e   : > { %v1387_v42 = vsel %vm13905_vm2, %v1382_v26, %v1386_v25  ;;  %v706_v52 = vrot.slane %v704_v35, 5  ;;  %v1391_v53 = vrot.slane %v1389_v37, 4  ;;  %v1398_v51 = vshll.u32 %v264_v19, 16  ;;  %v267_v37 = vld [vmem:[%s13886_s3 + $0x1f0] sm:$0x1] }
  0x9f   : > { %v14263_v47 = vcombine.low %v1377_v33, %v1387_v42  ;;  %v692_v61 = vrot.slane %v691_v48, 4  ;;  %v701_v62 = vor.u32 %v700_v49, %v696_v34  ;;  %v1394_v59 = vrot.slane %v1392_v38, 5  ;;  %v188_v38 = vld [vmem:[%s13886_s3 + $0xb4] sm:$0xf] }
  0xa0   : > { %v1402_v56 = vshrl.u32 %v264_v19, 16  ;;  %v1400_v5 = vrot.slane %v1398_v51, 5  ;;  %v1408_v1 = vshll.u32 %v265_v50, 16  ;;  %v708_v11 = vshrl.u32 %v185_v7, 16  ;;  %v266_v19 = vld [vmem:[%s13886_s3 + $0x1ec] sm:$0xf] }
  0xa1   : > { %18232 = vst [vmem:[#allocation34_spill] sm:$0xff] %v14263_v47  ;;  %12190 = vmatmul.mubr.bf16.gmra.mxu1 %v14263_v47  ;;  %v714_v14 = vshll.u32 %v186_v39, 16  ;;  %v697_v8 = vsel %vm13905_vm2, %v692_v61, %v696_v34  ;;  %v702_v15 = vrot.slane %v701_v62, 4  ;;  %v1395_v63 = vor.u32 %v1394_v59, %v1391_v53  ;;  %v189_v62 = vld [vmem:[%s13886_s3 + $0xb8] sm:$0xf] }
  0xa2   : > { %v1404_v25 = vrot.slane %v1402_v56, 4  ;;  %v1410_v18 = vrot.slane %v1408_v1, 5  ;;  %v710_v26 = vrot.slane %v708_v11, 4  ;;  %v718_v30 = vshrl.u32 %v186_v39, 16  ;;  %v202_v47 = vld [vmem:[%s13886_s3 + $0xec] sm:$0x1] }
  0xa3   : > { %v716_v27 = vrot.slane %v714_v14, 5  ;;  %v707_v32 = vsel %vm13905_vm2, %v702_v15, %v706_v52  ;;  %v1396_v33 = vrot.slane %v1395_v63, 4  ;;  %v724_v7 = vshll.u32 %v187_v9, 16  ;;  %v190_v14 = vld [vmem:[%s13886_s3 + $0xbc] sm:$0xf] }
  0xa4   : > { %v1405_v35 = vor.u32 %v1404_v25, %v1400_v5  ;;  %v14273_v42 = vcombine.low %v697_v8, %v707_v32  ;;  %v711_v34 = vor.u32 %v710_v26, %v706_v52  ;;  %v720_v48 = vrot.slane %v718_v30, 4  ;;  %v268_v25 = vld [vmem:[%s13886_s3 + $0x1f4] sm:$0xf] }
  0xa5   : > { %v1412_v49 = vshrl.u32 %v265_v50, 16  ;;  %v1401_v53 = vsel %vm13905_vm2, %v1396_v33, %v1400_v5  ;;  %v726_v51 = vrot.slane %v724_v7, 5  ;;  %v1418_v61 = vshll.u32 %v266_v19, 16 }
  0xa6   : > { %18233 = vst [vmem:[#allocation35_spill] sm:$0xff] %v14273_v42  ;;  %v1406_v39 = vrot.slane %v1405_v35, 4  ;;  %12129 = vmatprep.mubr.bf16.mxu0 %v14273_v42  ;;  %v712_v59 = vrot.slane %v711_v34, 4  ;;  %v721_v56 = vor.u32 %v720_v48, %v716_v27  ;;  %v1422_v9 = vshrl.u32 %v266_v19, 16  ;;  %v269_v19 = vld [vmem:[%s13886_s3 + $0x1f8] sm:$0xf] }
  0xa7   : > { %v1414_v1 = vrot.slane %v1412_v49, 4  ;;  %v1420_v50 = vrot.slane %v1418_v61, 5  ;;  %v1428_v11 = vshll.u32 %v267_v37, 16  ;;  %v729_v32 = vshrl.u32 %v188_v38, 16 }
  0xa8   : > { %v1411_v52 = vsel %vm13905_vm2, %v1406_v39, %v1410_v18  ;;  %v717_v5 = vsel %vm13905_vm2, %v712_v59, %v716_v27  ;;  %v722_v15 = vrot.slane %v721_v56, 4  ;;  %v1424_v26 = vrot.slane %v1422_v9, 4  ;;  %v270_v59 = vld [vmem:[%s13886_s3 + $0x1fc] sm:$0xf] }
  0xa9   : > { %v14283_v8 = vcombine.low %v1401_v53, %v1411_v52  ;;  %v1415_v63 = vor.u32 %v1414_v1, %v1410_v18  ;;  %v1430_v30 = vrot.slane %v1428_v11, 5  ;;  %v732_v33 = vshll.u32 %v188_v38, 16  ;;  %v191_v52 = vld [vmem:[%s13886_s3 + $0xc0] sm:$0xf] }
  0xaa   : > { %v727_v35 = vsel %vm13905_vm2, %v722_v15, %v726_v51  ;;  %v738_v37 = vshll.u32 %v189_v62, 16  ;;  %v742_v34 = vshrl.u32 %v189_v62, 16  ;;  %v1425_v27 = vor.u32 %v1424_v26, %v1420_v50  ;;  %v13461_v51 = vld [vmem:[%s17845_s1 + $0xf8] sm:$0xff]  }
  0xab   : > { %18234 = vst [vmem:[#allocation36_spill] sm:$0xff] %v14283_v8  ;;  %12193 = vmatprep.mubr.bf16.mxu1 %v14283_v8  ;;  %v1416_v7 = vrot.slane %v1415_v63, 4  ;;  %v14292_v48 = vcombine.low %v717_v5, %v727_v35  ;;  %v731_v18 = vrot.slane %v729_v32, 4  ;;  %v734_v49 = vrot.slane %v732_v33, 5  ;;  %12513 = vmatprep.subr.bf16.mxu1 %v13461_v51 }
  0xac   : > { %v740_v39 = vrot.slane %v738_v37, 5  ;;  %v744_v38 = vrot.slane %v742_v34, 4  ;;  %v748_v61 = vshll.u32 %v190_v14, 16  ;;  %v1426_v62 = vrot.slane %v1425_v27, 4 }
  0xad   : > { %18235 = vst [vmem:[#allocation37_spill] sm:$0xff] %v14292_v48  ;;  %v1421_v53 = vsel %vm13905_vm2, %v1416_v7, %v1420_v50  ;;  %12130 = vmatmul.mubr.bf16.gmra.mxu0 %v14292_v48  ;;  %v735_v56 = vor.u32 %v734_v49, %v731_v18  ;;  %v1433_v1 = vshrl.u32 %v268_v25, 16  ;;  %v1436_v9 = vshll.u32 %v268_v25, 16  ;;  %v13462_v50 = vld [vmem:[%s17845_s1 + $0x138] sm:$0xff]   ;;  %v192_v7 = vld [vmem:[%s13886_s3 + $0xc4] sm:$0x1] }
  0xae   : > { %v745_v11 = vor.u32 %v744_v38, %v740_v39  ;;  %v750_v5 = vrot.slane %v748_v61, 5  ;;  %v1442_v15 = vshll.u32 %v269_v19, 16  ;;  %v1446_v63 = vshrl.u32 %v269_v19, 16  ;;  %12657 = vmatprep.subr.bf16.mxu0 %v13462_v50  ;;  %v271_v18 = vld [vmem:[%s13886_s3 + $0x200] sm:$0xf]  ;;  %v13592_v48 = vld [vmem:[%s17845_s1 + $0xf8] sm:$0xff]  }
  0xaf   : > { %v1431_v26 = vsel %vm13905_vm2, %v1426_v62, %v1430_v30  ;;  %v736_v32 = vrot.slane %v735_v56, 4  ;;  %v1435_v33 = vrot.slane %v1433_v1, 4  ;;  %v1438_v35 = vrot.slane %v1436_v9, 5 }
  0xb0   : > { %v14308_v25 = vcombine.low %v1421_v53, %v1431_v26  ;;  %v746_v37 = vrot.slane %v745_v11, 4  ;;  %v1444_v34 = vrot.slane %v1442_v15, 5  ;;  %v1448_v27 = vrot.slane %v1446_v63, 4  ;;  %v272_v11 = vld [vmem:[%s13886_s3 + $0x204] sm:$0x1] }
  0xb1   : > { %v741_v49 = vsel %vm13905_vm2, %v736_v32, %v740_v39  ;;  %v1439_v19 = vor.u32 %v1438_v35, %v1435_v33  ;;  %v1452_v38 = vshll.u32 %v270_v59, 16  ;;  %v752_v61 = vshrl.u32 %v190_v14, 16  ;;  %v193_v14 = vld [vmem:[%s13886_s3 + $0xc8] sm:$0xf] }
  0xb2   : > { %18236 = vst [vmem:[#allocation38_spill] sm:$0xff] %v14308_v25  ;;  %12194 = vmatmul.mubr.bf16.gmra.mxu1 %v14308_v25  ;;  %v751_v30 = vsel %vm13905_vm2, %v746_v37, %v750_v5  ;;  %v1449_v51 = vor.u32 %v1448_v27, %v1444_v34  ;;  %v758_v53 = vshll.u32 %v191_v52, 16  ;;  %v762_v62 = vshrl.u32 %v191_v52, 16  ;;  %v194_v37 = vld [vmem:[%s13886_s3 + $0xcc] sm:$0xf] }
  0xb3   : > { %v14316_v56 = vcombine.low %v741_v49, %v751_v30  ;;  %v1440_v1 = vrot.slane %v1439_v19, 4  ;;  %v1454_v9 = vrot.slane %v1452_v38, 5  ;;  %v754_v50 = vrot.slane %v752_v61, 4 }
  0xb4   : > { %v1450_v39 = vrot.slane %v1449_v51, 4  ;;  %v760_v15 = vrot.slane %v758_v53, 5  ;;  %v764_v63 = vrot.slane %v762_v62, 4  ;;  %v768_v26 = vshll.u32 %v192_v7, 16  ;;  %v195_v53 = vld [vmem:[%s13886_s3 + $0xd0] sm:$0xf] }
  0xb5   : > { %18237 = vst [vmem:[#allocation39_spill] sm:$0xff] %v14316_v56  ;;  %12133 = vmatprep.mubr.bf16.mxu0 %v14316_v56  ;;  %v1445_v32 = vsel %vm13905_vm2, %v1440_v1, %v1444_v34  ;;  %v755_v33 = vor.u32 %v754_v50, %v750_v5  ;;  %v1456_v52 = vshrl.u32 %v270_v59, 16  ;;  %v1462_v35 = vshll.u32 %v271_v18, 16  ;;  %v273_v59 = vld [vmem:[%s13886_s3 + $0x208] sm:$0xf] }
  0xb6   : > { %v1455_v27 = vsel %vm13905_vm2, %v1450_v39, %v1454_v9  ;;  %v765_v49 = vor.u32 %v764_v63, %v760_v15  ;;  %v770_v19 = vrot.slane %v768_v26, 5  ;;  %v1466_v38 = vshrl.u32 %v271_v18, 16  ;;  %v274_v63 = vld [vmem:[%s13886_s3 + $0x20c] sm:$0xf] }
  0xb7   : > { %v14326_v7 = vcombine.low %v1445_v32, %v1455_v27  ;;  %v756_v61 = vrot.slane %v755_v33, 4  ;;  %v1458_v30 = vrot.slane %v1456_v52, 4  ;;  %v1464_v51 = vrot.slane %v1462_v35, 5 }
  0xb8   : > { %v766_v62 = vrot.slane %v765_v49, 4  ;;  %v1468_v34 = vrot.slane %v1466_v38, 4  ;;  %v1472_v5 = vshll.u32 %v272_v11, 16  ;;  %v773_v39 = vshrl.u32 %v193_v14, 16  ;;  %v275_v38 = vld [vmem:[%s13886_s3 + $0x210] sm:$0xf] }
  0xb9   : > { %18238 = vst [vmem:[#allocation40_spill] sm:$0xff] %v14326_v7  ;;  %12197 = vmatprep.mubr.bf16.mxu1 %v14326_v7  ;;  %v761_v1 = vsel %vm13905_vm2, %v756_v61, %v760_v15  ;;  %v1459_v50 = vor.u32 %v1458_v30, %v1454_v9  ;;  %v776_v18 = vshll.u32 %v193_v14, 16  ;;  %v782_v52 = vshll.u32 %v194_v37, 16  ;;  %v196_v30 = vld [vmem:[%s13886_s3 + $0xd4] sm:$0xf] }
  0xba   : > { %v771_v26 = vsel %vm13905_vm2, %v766_v62, %v770_v19  ;;  %v1469_v32 = vor.u32 %v1468_v34, %v1464_v51  ;;  %v1474_v33 = vrot.slane %v1472_v5, 5  ;;  %v775_v27 = vrot.slane %v773_v39, 4 }
  0xbb   : > { %v14336_v35 = vcombine.low %v761_v1, %v771_v26  ;;  %v1460_v11 = vrot.slane %v1459_v50, 4  ;;  %v778_v49 = vrot.slane %v776_v18, 5  ;;  %v784_v15 = vrot.slane %v782_v52, 5  ;;  %v197_v18 = vld [vmem:[%s13886_s3 + $0xd8] sm:$0x1] }
  0xbc   : > { %v1470_v7 = vrot.slane %v1469_v32, 4  ;;  %v786_v9 = vshrl.u32 %v194_v37, 16  ;;  %v792_v61 = vshll.u32 %v195_v53, 16  ;;  %v1477_v62 = vshrl.u32 %v273_v59, 16 }
  0xbd   : > { %18239 = vst [vmem:[#allocation41_spill] sm:$0xff] %v14336_v35  ;;  %12134 = vmatmul.mubr.bf16.gmra.mxu0 %v14336_v35  ;;  %v1465_v14 = vsel %vm13905_vm2, %v1460_v11, %v1464_v51  ;;  %v779_v19 = vor.u32 %v778_v49, %v775_v27  ;;  %v1480_v34 = vshll.u32 %v273_v59, 16  ;;  %v1486_v39 = vshll.u32 %v274_v63, 16  ;;  %v276_v49 = vld [vmem:[%s13886_s3 + $0x214] sm:$0xf] }
  0xbe   : > { %v1475_v5 = vsel %vm13905_vm2, %v1470_v7, %v1474_v33  ;;  %v788_v1 = vrot.slane %v786_v9, 4  ;;  %v794_v50 = vrot.slane %v792_v61, 5  ;;  %v1479_v32 = vrot.slane %v1477_v62, 4  ;;  %v277_v62 = vld [vmem:[%s13886_s3 + $0x218] sm:$0x1] }
  0xbf   : > { %v14346_v26 = vcombine.low %v1465_v14, %v1475_v5  ;;  %v780_v37 = vrot.slane %v779_v19, 4  ;;  %v1482_v52 = vrot.slane %v1480_v34, 5  ;;  %v1488_v8 = vrot.slane %v1486_v39, 5 }
  0xc0   : > { %v789_v25 = vor.u32 %v788_v1, %v784_v15  ;;  %v1490_v51 = vshrl.u32 %v274_v63, 16  ;;  %v1496_v11 = vshll.u32 %v275_v38, 16  ;;  %v796_v33 = vshrl.u32 %v195_v53, 16 }
  0xc1   : > { %18240 = vst [vmem:[#allocation42_spill] sm:$0xff] %v14346_v26  ;;  %12198 = vmatmul.mubr.bf16.gmra.mxu1 %v14346_v26  ;;  %v785_v7 = vsel %vm13905_vm2, %v780_v37, %v784_v15  ;;  %v1483_v59 = vor.u32 %v1482_v52, %v1479_v32  ;;  %v802_v27 = vshll.u32 %v196_v30, 16  ;;  %v806_v19 = vshrl.u32 %v196_v30, 16  ;;  %v198_v52 = vld [vmem:[%s13886_s3 + $0xdc] sm:$0xf] }
  0xc2   : > { %v790_v9 = vrot.slane %v789_v25, 4  ;;  %v1492_v61 = vrot.slane %v1490_v51, 4  ;;  %v1498_v14 = vrot.slane %v1496_v11, 5  ;;  %v798_v5 = vrot.slane %v796_v33, 4  ;;  %v199_v33 = vld [vmem:[%s13886_s3 + $0xe0] sm:$0xf] }
  0xc3   : > { %v1484_v34 = vrot.slane %v1483_v59, 4  ;;  %v804_v63 = vrot.slane %v802_v27, 5  ;;  %v812_v1 = vshll.u32 %v197_v18, 16  ;;  %v808_v15 = vrot.slane %v806_v19, 4 }
  0xc4   : > { %v795_v39 = vsel %vm13905_vm2, %v790_v9, %v794_v50  ;;  %v1493_v26 = vor.u32 %v1492_v61, %v1488_v8  ;;  %v1500_v53 = vshrl.u32 %v275_v38, 16  ;;  %v799_v32 = vor.u32 %v798_v5, %v794_v50 }
  0xc5   : > { %v14355_v37 = vcombine.low %v785_v7, %v795_v39  ;;  %v1489_v25 = vsel %vm13905_vm2, %v1484_v34, %v1488_v8  ;;  %v814_v30 = vrot.slane %v812_v1, 5  ;;  %v809_v11 = vor.u32 %v808_v15, %v804_v63  ;;  %v200_v7 = vld [vmem:[%s13886_s3 + $0xe4] sm:$0xf]  ;;  %v278_v34 = vld [vmem:[%s13886_s3 + $0x21c] sm:$0xf] }
  0xc6   : > { %v1494_v51 = vrot.slane %v1493_v26, 4  ;;  %v1502_v59 = vrot.slane %v1500_v53, 4  ;;  %v1506_v18 = vshll.u32 %v276_v49, 16  ;;  %v800_v27 = vrot.slane %v799_v32, 4  ;;  %v279_v15 = vld [vmem:[%s13886_s3 + $0x220] sm:$0xf] }
  0xc7   : > { %18241 = vst [vmem:[#allocation43_spill] sm:$0xff] %v14355_v37  ;;  %12137 = vmatprep.mubr.bf16.mxu0 %v14355_v37  ;;  %v1510_v9 = vshrl.u32 %v276_v49, 16  ;;  %v1516_v38 = vshll.u32 %v277_v62, 16  ;;  %v810_v8 = vrot.slane %v809_v11, 4  ;;  %v817_v53 = vshrl.u32 %v198_v52, 16 }
  0xc8   : > { %v1499_v61 = vsel %vm13905_vm2, %v1494_v51, %v1498_v14  ;;  %v1503_v50 = vor.u32 %v1502_v59, %v1498_v14  ;;  %v1508_v19 = vrot.slane %v1506_v18, 5  ;;  %v805_v26 = vsel %vm13905_vm2, %v800_v27, %v804_v63 }
  0xc9   : > { %v14366_v5 = vcombine.low %v1489_v25, %v1499_v61  ;;  %v1512_v1 = vrot.slane %v1510_v9, 4  ;;  %v1518_v39 = vrot.slane %v1516_v38, 5  ;;  %v815_v49 = vsel %vm13905_vm2, %v810_v8, %v814_v30  ;;  %v280_v9 = vld [vmem:[%s13886_s3 + $0x224] sm:$0xf]  ;;  %v201_v8 = vld [vmem:[%s13886_s3 + $0xe8] sm:$0xf] }
  0xca   : > { %v1504_v62 = vrot.slane %v1503_v50, 4  ;;  %v820_v32 = vshll.u32 %v198_v52, 16  ;;  %v14374_v14 = vcombine.low %v805_v26, %v815_v49  ;;  %v826_v51 = vshll.u32 %v199_v33, 16 }
  0xcb   : > { %18242 = vst [vmem:[#allocation44_spill] sm:$0xff] %v14366_v5  ;;  %12201 = vmatprep.mubr.bf16.mxu1 %v14366_v5  ;;  %v1513_v25 = vor.u32 %v1512_v1, %v1508_v19  ;;  %v830_v11 = vshrl.u32 %v199_v33, 16  ;;  %v819_v59 = vrot.slane %v817_v53, 4  ;;  %v836_v27 = vshll.u32 %v200_v7, 16 }
  0xcc   : > { %18243 = vst [vmem:[#allocation45_spill] sm:$0xff] %v14374_v14  ;;  %v1509_v63 = vsel %vm13905_vm2, %v1504_v62, %v1508_v19  ;;  %v822_v18 = vrot.slane %v820_v32, 5  ;;  %12138 = vmatmul.mubr.bf16.gmra.mxu0 %v14374_v14  ;;  %v828_v38 = vrot.slane %v826_v51, 5  ;;  %v1521_v61 = vshrl.u32 %v278_v34, 16 }
  0xcd   : > { %v1514_v30 = vrot.slane %v1513_v25, 4  ;;  %v832_v52 = vrot.slane %v830_v11, 4  ;;  %v838_v26 = vrot.slane %v836_v27, 5  ;;  %v1524_v1 = vshll.u32 %v278_v34, 16 }
  0xce   : > { %v823_v50 = vor.u32 %v822_v18, %v819_v59  ;;  %v1530_v33 = vshll.u32 %v279_v15, 16  ;;  %v1523_v62 = vrot.slane %v1521_v61, 4  ;;  %v1534_v53 = vshrl.u32 %v279_v15, 16  ;;  %v281_v18 = vld [vmem:[%s13886_s3 + $0x228] sm:$0xf] }
  0xcf   : > { %v1519_v19 = vsel %vm13905_vm2, %v1514_v30, %v1518_v39  ;;  %v833_v49 = vor.u32 %v832_v52, %v828_v38  ;;  %v1526_v25 = vrot.slane %v1524_v1, 5  ;;  %v1540_v54 = vshll.u32 %v280_v9, 16 }
  0xd0   : > { %v14383_v32 = vcombine.low %v1509_v63, %v1519_v19  ;;  %v824_v5 = vrot.slane %v823_v50, 4  ;;  %v1532_v51 = vrot.slane %v1530_v33, 5  ;;  %v1536_v58 = vrot.slane %v1534_v53, 4  ;;  %v282_v19 = vld [vmem:[%s13886_s3 + $0x22c] sm:$0x1] }
  0xd1   : > { %v834_v11 = vrot.slane %v833_v49, 4  ;;  %v840_v59 = vshrl.u32 %v200_v7, 16  ;;  %v1527_v39 = vor.u32 %v1526_v25, %v1523_v62  ;;  %v846_v15 = vshll.u32 %v201_v8, 16  ;;  %v203_v62 = vld [vmem:[%s13886_s3 + $0xf0] sm:$0xf] }
  0xd2   : > { %18244 = vst [vmem:[#allocation46_spill] sm:$0xff] %v14383_v32  ;;  %12202 = vmatmul.mubr.bf16.gmra.mxu1 %v14383_v32  ;;  %v829_v34 = vsel %vm13905_vm2, %v824_v5, %v828_v38  ;;  %v850_v63 = vshrl.u32 %v201_v8, 16  ;;  %v1537_v30 = vor.u32 %v1536_v58, %v1532_v51  ;;  %v1542_v52 = vrot.slane %v1540_v54, 5 }
  0xd3   : > { %v839_v27 = vsel %vm13905_vm2, %v834_v11, %v838_v26  ;;  %v842_v61 = vrot.slane %v840_v59, 4  ;;  %v1528_v7 = vrot.slane %v1527_v39, 4  ;;  %v848_v1 = vrot.slane %v846_v15, 5  ;;  %v204_v11 = vld [vmem:[%s13886_s3 + $0xf4] sm:$0xf] }
  0xd4   : > { %v14392_v50 = vcombine.low %v829_v34, %v839_v27  ;;  %v852_v33 = vrot.slane %v850_v63, 4  ;;  %v1538_v49 = vrot.slane %v1537_v30, 4  ;;  %v856_v5 = vshll.u32 %v202_v47, 16  ;;  %v205_v27 = vld [vmem:[%s13886_s3 + $0xf8] sm:$0xf] }
  0xd5   : > { %v843_v53 = vor.u32 %v842_v61, %v838_v26  ;;  %v1544_v38 = vshrl.u32 %v280_v9, 16  ;;  %v1533_v54 = vsel %vm13905_vm2, %v1528_v7, %v1532_v51  ;;  %v1550_v8 = vshll.u32 %v281_v18, 16  ;;  %v283_v30 = vld [vmem:[%s13886_s3 + $0x230] sm:$0xf] }
  0xd6   : > { %18245 = vst [vmem:[#allocation47_spill] sm:$0xff] %v14392_v50  ;;  %12141 = vmatprep.mubr.bf16.mxu0 %v14392_v50  ;;  %v853_v58 = vor.u32 %v852_v33, %v848_v1  ;;  %v1554_v25 = vshrl.u32 %v281_v18, 16  ;;  %v1543_v59 = vsel %vm13905_vm2, %v1538_v49, %v1542_v52  ;;  %v858_v39 = vrot.slane %v856_v5, 5  ;;  %v284_v5 = vld [vmem:[%s13886_s3 + $0x234] sm:$0xf] }
  0xd7   : > { %v844_v34 = vrot.slane %v843_v53, 4  ;;  %v1546_v47 = vrot.slane %v1544_v38, 4  ;;  %v14402_v9 = vcombine.low %v1533_v54, %v1543_v59  ;;  %v1552_v15 = vrot.slane %v1550_v8, 5 }
  0xd8   : > { %v854_v26 = vrot.slane %v853_v58, 4  ;;  %v1556_v63 = vrot.slane %v1554_v25, 4  ;;  %v1560_v18 = vshll.u32 %v282_v19, 16  ;;  %v861_v49 = vshrl.u32 %v203_v62, 16  ;;  %v285_v19 = vld [vmem:[%s13886_s3 + $0x238] sm:$0xf] }
  0xd9   : > { %18246 = vst [vmem:[#allocation48_spill] sm:$0xff] %v14402_v9  ;;  %v849_v51 = vsel %vm13905_vm2, %v844_v34, %v848_v1  ;;  %v1547_v61 = vor.u32 %v1546_v47, %v1542_v52  ;;  %12205 = vmatprep.mubr.bf16.mxu1 %v14402_v9  ;;  %v864_v53 = vshll.u32 %v203_v62, 16  ;;  %v870_v8 = vshll.u32 %v204_v11, 16  ;;  %v206_v34 = vld [vmem:[%s13886_s3 + $0xfc] sm:$0xf] }
  0xda   : > { %v859_v7 = vsel %vm13905_vm2, %v854_v26, %v858_v39  ;;  %v1557_v33 = vor.u32 %v1556_v63, %v1552_v15  ;;  %v1562_v58 = vrot.slane %v1560_v18, 5  ;;  %v863_v1 = vrot.slane %v861_v49, 4 }
  0xdb   : > { %v14412_v38 = vcombine.low %v849_v51, %v859_v7  ;;  %v1548_v54 = vrot.slane %v1547_v61, 4  ;;  %v866_v52 = vrot.slane %v864_v53, 5  ;;  %v874_v59 = vshrl.u32 %v204_v11, 16  ;;  %v207_v53 = vld [vmem:[%s13886_s3 + $0x100] sm:$0x1] }
  0xdc   : > { %v1558_v25 = vrot.slane %v1557_v33, 4  ;;  %v872_v47 = vrot.slane %v870_v8, 5  ;;  %v880_v62 = vshll.u32 %v205_v27, 16  ;;  %v1565_v26 = vshrl.u32 %v283_v30, 16 }
  0xdd   : > { %18247 = vst [vmem:[#allocation49_spill] sm:$0xff] %v14412_v38  ;;  %12142 = vmatmul.mubr.bf16.gmra.mxu0 %v14412_v38  ;;  %v1553_v39 = vsel %vm13905_vm2, %v1548_v54, %v1552_v15  ;;  %v867_v51 = vor.u32 %v866_v52, %v863_v1  ;;  %v876_v61 = vrot.slane %v874_v59, 4  ;;  %v1568_v18 = vshll.u32 %v283_v30, 16 }
  0xde   : > { %v1563_v63 = vsel %vm13905_vm2, %v1558_v25, %v1562_v58  ;;  %v882_v11 = vrot.slane %v880_v62, 5  ;;  %v1567_v33 = vrot.slane %v1565_v26, 4  ;;  %v1574_v49 = vshll.u32 %v284_v5, 16 }
  0xdf   : > { %v14421_v7 = vcombine.low %v1553_v39, %v1563_v63  ;;  %v868_v9 = vrot.slane %v867_v51, 4  ;;  %v877_v32 = vor.u32 %v876_v61, %v872_v47  ;;  %v1570_v15 = vrot.slane %v1568_v18, 5  ;;  %v286_v39 = vld [vmem:[%s13886_s3 + $0x23c] sm:$0xf]  ;;  %v287_v51 = vld [vmem:[%s13886_s3 + $0x240] sm:$0x1] }
  0xe0   : > { %v1578_v54 = vshrl.u32 %v284_v5, 16  ;;  %v1576_v8 = vrot.slane %v1574_v49, 5  ;;  %v1584_v3 = vshll.u32 %v285_v19, 16  ;;  %v884_v58 = vshrl.u32 %v205_v27, 16 }
  0xe1   : > { %18248 = vst [vmem:[#allocation50_spill] sm:$0xff] %v14421_v7  ;;  %12206 = vmatmul.mubr.bf16.gmra.mxu1 %v14421_v7  ;;  %v890_v25 = vshll.u32 %v206_v34, 16  ;;  %v873_v30 = vsel %vm13905_vm2, %v868_v9, %v872_v47  ;;  %v878_v1 = vrot.slane %v877_v32, 4  ;;  %v1571_v52 = vor.u32 %v1570_v15, %v1567_v33  ;;  %v208_v47 = vld [vmem:[%s13886_s3 + $0x104] sm:$0xf] }
  0xe2   : > { %v1580_v59 = vrot.slane %v1578_v54, 4  ;;  %v886_v62 = vrot.slane %v884_v58, 4  ;;  %v894_v63 = vshrl.u32 %v206_v34, 16  ;;  %v900_v49 = vshll.u32 %v207_v53, 16 }
  0xe3   : > { %v892_v26 = vrot.slane %v890_v25, 5  ;;  %v883_v5 = vsel %vm13905_vm2, %v878_v1, %v882_v11  ;;  %v1572_v61 = vrot.slane %v1571_v52, 4  ;;  %v1586_v7 = vrot.slane %v1584_v3, 5  ;;  %v209_v52 = vld [vmem:[%s13886_s3 + $0x108] sm:$0xf] }
  0xe4   : > { %v1581_v18 = vor.u32 %v1580_v59, %v1576_v8  ;;  %v14431_v27 = vcombine.low %v873_v30, %v883_v5  ;;  %v887_v9 = vor.u32 %v886_v62, %v882_v11  ;;  %v896_v32 = vrot.slane %v894_v63, 4 }
  0xe5   : > { %v1577_v33 = vsel %vm13905_vm2, %v1572_v61, %v1576_v8  ;;  %v902_v54 = vrot.slane %v900_v49, 5  ;;  %v1588_v34 = vshrl.u32 %v285_v19, 16  ;;  %v1594_v1 = vshll.u32 %v286_v39, 16 }
  0xe6   : > { %18249 = vst [vmem:[#allocation51_spill] sm:$0xff] %v14431_v27  ;;  %v1582_v15 = vrot.slane %v1581_v18, 4  ;;  %12145 = vmatprep.mubr.bf16.mxu0 %v14431_v27  ;;  %v888_v58 = vrot.slane %v887_v9, 4  ;;  %v897_v25 = vor.u32 %v896_v32, %v892_v26  ;;  %v1598_v53 = vshrl.u32 %v286_v39, 16  ;;  %v210_v18 = vld [vmem:[%s13886_s3 + $0x10c] sm:$0xf] }
  0xe7   : > { %v1590_v30 = vrot.slane %v1588_v34, 4  ;;  %v1604_v11 = vshll.u32 %v287_v51, 16  ;;  %v1596_v62 = vrot.slane %v1594_v1, 5  ;;  %v905_v39 = vshrl.u32 %v208_v47, 16 }
  0xe8   : > { %v1587_v3 = vsel %vm13905_vm2, %v1582_v15, %v1586_v7  ;;  %v893_v8 = vsel %vm13905_vm2, %v888_v58, %v892_v26  ;;  %v898_v19 = vrot.slane %v897_v25, 4  ;;  %v1600_v5 = vrot.slane %v1598_v53, 4 }
  0xe9   : > { %v14440_v59 = vcombine.low %v1577_v33, %v1587_v3  ;;  %v1591_v63 = vor.u32 %v1590_v30, %v1586_v7  ;;  %v1606_v61 = vrot.slane %v1604_v11, 5  ;;  %v908_v49 = vshll.u32 %v208_v47, 16  ;;  %v288_v33 = vld [vmem:[%s13886_s3 + $0x244] sm:$0xf]  ;;  %v289_v7 = vld [vmem:[%s13886_s3 + $0x248] sm:$0xf] }
  0xea   : > { %v903_v51 = vsel %vm13905_vm2, %v898_v19, %v902_v54  ;;  %v914_v9 = vshll.u32 %v209_v52, 16  ;;  %v918_v32 = vshrl.u32 %v209_v52, 16  ;;  %v1601_v34 = vor.u32 %v1600_v5, %v1596_v62 }
  0xeb   : > { %18250 = vst [vmem:[#allocation52_spill] sm:$0xff] %v14440_v59  ;;  %12209 = vmatprep.mubr.bf16.mxu1 %v14440_v59  ;;  %v14449_v15 = vcombine.low %v893_v8, %v903_v51  ;;  %v1592_v26 = vrot.slane %v1591_v63, 4  ;;  %v907_v58 = vrot.slane %v905_v39, 4  ;;  %v910_v25 = vrot.slane %v908_v49, 5  ;;  %v290_v63 = vld [vmem:[%s13886_s3 + $0x24c] sm:$0xf] }
  0xec   : > { %v916_v1 = vrot.slane %v914_v9, 5  ;;  %v920_v53 = vrot.slane %v918_v32, 4  ;;  %v924_v3 = vshll.u32 %v210_v18, 16  ;;  %v1602_v54 = vrot.slane %v1601_v34, 4  ;;  %v211_v32 = vld [vmem:[%s13886_s3 + $0x110] sm:$0xf] }
  0xed   : > { %18251 = vst [vmem:[#allocation53_spill] sm:$0xff] %v14449_v15  ;;  %12146 = vmatmul.mubr.bf16.gmra.mxu0 %v14449_v15  ;;  %v1597_v47 = vsel %vm13905_vm2, %v1592_v26, %v1596_v62  ;;  %v1609_v30 = vshrl.u32 %v288_v33, 16  ;;  %v1612_v11 = vshll.u32 %v288_v33, 16  ;;  %v911_v52 = vor.u32 %v910_v25, %v907_v58 }
  0xee   : > { %v921_v8 = vor.u32 %v920_v53, %v916_v1  ;;  %v926_v19 = vrot.slane %v924_v3, 5  ;;  %v1618_v5 = vshll.u32 %v289_v7, 16  ;;  %v1607_v39 = vsel %vm13905_vm2, %v1602_v54, %v1606_v61  ;;  %v212_v53 = vld [vmem:[%s13886_s3 + $0x114] sm:$0x1] }
  0xef   : > { %v1611_v51 = vrot.slane %v1609_v30, 4  ;;  %v1614_v49 = vrot.slane %v1612_v11, 5  ;;  %v1622_v9 = vshrl.u32 %v289_v7, 16  ;;  %v14459_v59 = vcombine.low %v1597_v47, %v1607_v39 }
  0xf0   : > { %v912_v60 = vrot.slane %v911_v52, 4  ;;  %v922_v62 = vrot.slane %v921_v8, 4  ;;  %v1620_v26 = vrot.slane %v1618_v5, 5  ;;  %v1628_v25 = vshll.u32 %v290_v63, 16  ;;  %v291_v5 = vld [vmem:[%s13886_s3 + $0x250] sm:$0xf] }
  0xf1   : > { %18252 = vst [vmem:[#allocation54_spill] sm:$0xff] %v14459_v59  ;;  %v1615_v34 = vor.u32 %v1614_v49, %v1611_v51  ;;  %v1624_v58 = vrot.slane %v1622_v9, 4  ;;  %v928_v3 = vshrl.u32 %v210_v18, 16  ;;  %12210 = vmatmul.mubr.bf16.gmra.mxu1 %v14459_v59  ;;  %v934_v47 = vshll.u32 %v211_v32, 16 }
  0xf2   : > { %v917_v61 = vsel %vm13905_vm2, %v912_v60, %v916_v1  ;;  %v927_v7 = vsel %vm13905_vm2, %v922_v62, %v926_v19  ;;  %v938_v54 = vshrl.u32 %v211_v32, 16  ;;  %v944_v9 = vshll.u32 %v212_v53, 16  ;;  %v292_v60 = vld [vmem:[%s13886_s3 + $0x254] sm:$0x1] }
  0xf3   : > { %v14471_v11 = vcombine.low %v917_v61, %v927_v7  ;;  %v1616_v52 = vrot.slane %v1615_v34, 4  ;;  %v1625_v8 = vor.u32 %v1624_v58, %v1620_v26  ;;  %v930_v18 = vrot.slane %v928_v3, 4 }
  0xf4   : > { %v14461_v33 = vpop.f32.mrf.mxu0  ;;  %v14474_v39 = vpop.f32.mrf.mxu1  ;;  %v936_v51 = vrot.slane %v934_v47, 5  ;;  %v940_v49 = vrot.slane %v938_v54, 4  ;;  %v1630_v62 = vrot.slane %v1628_v25, 5  ;;  %v1632_v61 = vshrl.u32 %v290_v63, 16 }
  0xf5   : > { %18253 = vst [vmem:[#allocation55_spill] sm:$0xff] %v14471_v11  ;;  %18254 = vst [vmem:[#allocation56_spill] sm:$0xff] %v14474_v39  ;;  %12149 = vmatprep.mubr.bf16.mxu0 %v14471_v11  ;;  %v1621_v1 = vsel %vm13905_vm2, %v1616_v52, %v1620_v26  ;;  %v1626_v32 = vrot.slane %v1625_v8, 4  ;;  %v931_v34 = vor.u32 %v930_v18, %v926_v19  ;;  %v946_v7 = vrot.slane %v944_v9, 5  ;;  %v214_v8 = vld [vmem:[%s13886_s3 + $0x11c] sm:$0xf] }
  0xf6   : > { %v14469_v30 = vpop.f32.mrf.mxu0  ;;  %v941_v58 = vor.u32 %v940_v49, %v936_v51  ;;  %v1638_v59 = vshll.u32 %v291_v5, 16  ;;  %v1634_v47 = vrot.slane %v1632_v61, 4  ;;  %v1642_v54 = vshrl.u32 %v291_v5, 16  ;;  %v14485_v26 = vpop.f32.mrf.mxu1  ;;  %v293_v61 = vld [vmem:[%s13886_s3 + $0x258] sm:$0xf] }
  0xf7   : > { %v1631_v53 = vsel %vm13905_vm2, %v1626_v32, %v1630_v62  ;;  %v1648_v4 = vshll.u32 %v292_v60, 16  ;;  %18255 = vst [vmem:[#allocation57_spill] sm:$0xff] %v14485_v26  ;;  %v932_v63 = vrot.slane %v931_v34, 4  ;;  %v949_v32 = vshrl.u32 %v213_v22, 16 }
  0xf8   : > { %v14480_v3 = vpop.f32.mrf.mxu0  ;;  %v14487_v25 = vcombine.low %v1621_v1, %v1631_v53  ;;  %v942_v19 = vrot.slane %v941_v58, 4  ;;  %v1640_v52 = vrot.slane %v1638_v59, 5  ;;  %v1635_v18 = vor.u32 %v1634_v47, %v1630_v62  ;;  %v14501_v53 = vpop.f32.mrf.mxu1 }
  0xf9   : > { %v1644_v49 = vrot.slane %v1642_v54, 4  ;;  %v1650_v9 = vrot.slane %v1648_v4, 5  ;;  %v937_v5 = vsel %vm13905_vm2, %v932_v63, %v936_v51  ;;  %v952_v1 = vshll.u32 %v213_v22, 16  ;;  %18258 = vst [vmem:[#allocation60_spill] sm:$0xff] %v14501_v53  ;;  %v294_v63 = vld [vmem:[%s13886_s3 + $0x25c] sm:$0xf] }
  0xfa   : > { %18256 = vst [vmem:[#allocation58_spill] sm:$0xff] %v14487_v25  ;;  %12213 = vmatprep.mubr.bf16.mxu1 %v14487_v25  ;;  %v947_v60 = vsel %vm13905_vm2, %v942_v19, %v946_v7  ;;  %v14497_v34 = vpop.f32.mrf.mxu0  ;;  %v1636_v62 = vrot.slane %v1635_v18, 4  ;;  %v958_v4 = vshll.u32 %v214_v8, 16  ;;  %v951_v47 = vrot.slane %v949_v32, 4  ;;  %v14513_v29 = vpop.f32.mrf.mxu1 }
  0xfb   : > { %v14499_v59 = vcombine.low %v937_v5, %v947_v60  ;;  %v1645_v58 = vor.u32 %v1644_v49, %v1640_v52  ;;  %v954_v54 = vrot.slane %v952_v1, 5  ;;  %v962_v25 = vshrl.u32 %v214_v8, 16  ;;  %18259 = vst [vmem:[#allocation61_spill] sm:$0xff] %v14513_v29 }
  0xfc   : > { %v968_v51 = vshll.u32 %v215_v36, 16  ;;  %v1641_v22 = vsel %vm13905_vm2, %v1636_v62, %v1640_v52  ;;  %v960_v19 = vrot.slane %v958_v4, 5  ;;  %v1653_v5 = vshrl.u32 %v293_v61, 16 }
  0xfd   : > { %18257 = vst [vmem:[#allocation59_spill] sm:$0xff] %v14499_v59  ;;  %12150 = vmatmul.mubr.bf16.gmra.mxu0 %v14499_v59  ;;  %v1646_v7 = vrot.slane %v1645_v58, 4  ;;  %v955_v18 = vor.u32 %v954_v54, %v951_v47  ;;  %v964_v49 = vrot.slane %v962_v25, 4  ;;  %v1656_v10 = vshll.u32 %v293_v61, 16  ;;  %v217_v61 = vld [vmem:[%s13886_s3 + $0x128] sm:$0x1] }
  0xfe   : > { %v970_v60 = vrot.slane %v968_v51, 5  ;;  %v14508_v32 = vpop.f32.mrf.mxu0  ;;  %v1655_v1 = vrot.slane %v1653_v5, 4  ;;  %v1662_v17 = vshll.u32 %v294_v63, 16  ;;  %v1666_v46 = vshrl.u32 %v294_v63, 16 }
  0xff   : > { %v1651_v8 = vsel %vm13905_vm2, %v1646_v7, %v1650_v9  ;;  %v956_v62 = vrot.slane %v955_v18, 4  ;;  %v965_v58 = vor.u32 %v964_v49, %v960_v19  ;;  %v1658_v25 = vrot.slane %v1656_v10, 5 }
 0x100   : > { %v14515_v52 = vcombine.low %v1641_v22, %v1651_v8  ;;  %v1664_v4 = vrot.slane %v1662_v17, 5  ;;  %v1668_v47 = vrot.slane %v1666_v46, 4  ;;  %v1672_v54 = vshll.u32 %v295_v45, 16  ;;  %v14521_v22 = vpop.f32.mrf.mxu0  ;;  %v14523_v46 = vpop.f32.mrf.mxu1 }
 0x101   : > { %v972_v51 = vshrl.u32 %v215_v36, 16  ;;  %v961_v9 = vsel %vm13905_vm2, %v956_v62, %v960_v19  ;;  %v966_v63 = vrot.slane %v965_v58, 4  ;;  %v1659_v7 = vor.u32 %v1658_v25, %v1655_v1  ;;  %18261 = vst [vmem:[#allocation63_spill] sm:$0xff] %v14523_v46  ;;  %v296_v19 = vld [vmem:[%s13886_s3 + $0x264] sm:$0xf] }
 0x102   : > { %18260 = vst [vmem:[#allocation62_spill] sm:$0xff] %v14515_v52  ;;  %12214 = vmatmul.mubr.bf16.gmra.mxu1 %v14515_v52  ;;  %v978_v5 = vshll.u32 %v216_v57, 16  ;;  %v1669_v18 = vor.u32 %v1668_v47, %v1664_v4  ;;  %v1674_v49 = vrot.slane %v1672_v54, 5  ;;  %v982_v17 = vshrl.u32 %v216_v57, 16  ;;  %v14585_v46 = vld [vmem:[%s13886_s3 + $0x13c] sm:$0x1] }
 0x103   : > { %v974_v10 = vrot.slane %v972_v51, 4  ;;  %v971_v36 = vsel %vm13905_vm2, %v966_v63, %v970_v60  ;;  %v1660_v8 = vrot.slane %v1659_v7, 4  ;;  %v988_v43 = vshll.u32 %v217_v61, 16  ;;  %v14533_v51 = vpop.f32.mrf.mxu0 }
 0x104   : > { %v980_v52 = vrot.slane %v978_v5, 5  ;;  %v14528_v62 = vcombine.low %v961_v9, %v971_v36  ;;  %v1670_v1 = vrot.slane %v1669_v18, 4  ;;  %v984_v25 = vrot.slane %v982_v17, 4  ;;  %v14541_v5 = vpop.f32.mrf.mxu1 }
 0x105   : > { %v975_v58 = vor.u32 %v974_v10, %v970_v60  ;;  %v1665_v57 = vsel %vm13905_vm2, %v1660_v8, %v1664_v4  ;;  %v990_v47 = vrot.slane %v988_v43, 5  ;;  %v1676_v54 = vshrl.u32 %v295_v45, 16  ;;  %v14539_v60 = vld [vmem:[%s13886_s3 + $0x12c] sm:$0xf]  ;;  %18263 = vst [vmem:[#allocation65_spill] sm:$0xff] %v14541_v5 }
 0x106   : > { %18262 = vst [vmem:[#allocation64_spill] sm:$0xff] %v14528_v62  ;;  %12153 = vmatprep.mubr.bf16.mxu0 %v14528_v62  ;;  %v1675_v61 = vsel %vm13905_vm2, %v1670_v1, %v1674_v49  ;;  %v985_v9 = vor.u32 %v984_v25, %v980_v52  ;;  %v1682_v7 = vshll.u32 %v296_v19, 16  ;;  %v1686_v43 = vshrl.u32 %v296_v19, 16  ;;  %v14546_v10 = vld [vmem:[%s13886_s3 + $0x130] sm:$0xf]  ;;  %v14555_v19 = vpop.f32.mrf.mxu0 }
 0x107   : > { %v976_v63 = vrot.slane %v975_v58, 4  ;;  %v14543_v18 = vcombine.low %v1665_v57, %v1675_v61  ;;  %v1678_v4 = vrot.slane %v1676_v54, 4  ;;  %v1692_v45 = vshll.u32 %v297_v6, 16  ;;  %v14552_v62 = vld [vmem:[%s13886_s3 + $0x134] sm:$0xf] }
 0x108   : > { %v986_v36 = vrot.slane %v985_v9, 4  ;;  %v1684_v8 = vrot.slane %v1682_v7, 5  ;;  %v1688_v58 = vrot.slane %v1686_v43, 4  ;;  %v993_v57 = vshrl.u32 %v14539_v60, 16 }
 0x109   : > { %18264 = vst [vmem:[#allocation66_spill] sm:$0xff] %v14543_v18  ;;  %v981_v17 = vsel %vm13905_vm2, %v976_v63, %v980_v52  ;;  %12217 = vmatprep.mubr.bf16.mxu1 %v14543_v18  ;;  %v1679_v1 = vor.u32 %v1678_v4, %v1674_v49  ;;  %v1694_v25 = vrot.slane %v1692_v45, 5  ;;  %v996_v54 = vshll.u32 %v14539_v60, 16  ;;  %v298_v63 = vld [vmem:[%s13886_s3 + $0x26c] sm:$0xf]  ;;  %v14563_v49 = vpop.f32.mrf.mxu1 }
 0x10a   : > { %v991_v6 = vsel %vm13905_vm2, %v986_v36, %v990_v47  ;;  %v1002_v52 = vshll.u32 %v14546_v10, 16  ;;  %v1006_v61 = vshrl.u32 %v14546_v10, 16  ;;  %18265 = vst [vmem:[#allocation67_spill] sm:$0xff] %v14563_v49  ;;  %v1689_v4 = vor.u32 %v1688_v58, %v1684_v8  ;;  %v299_v45 = vld [vmem:[%s13886_s3 + $0x270] sm:$0xf] }
 0x10b   : > { %v14565_v9 = vcombine.low %v981_v17, %v991_v6  ;;  %v1680_v7 = vrot.slane %v1679_v1, 4  ;;  %v995_v43 = vrot.slane %v993_v57, 4  ;;  %v998_v18 = vrot.slane %v996_v54, 5  ;;  %v300_v54 = vld [vmem:[%s13886_s3 + $0x274] sm:$0xf] }
 0x10c   : > { %v1004_v59 = vrot.slane %v1002_v52, 5  ;;  %v1008_v11 = vrot.slane %v1006_v61, 4  ;;  %v1012_v47 = vshll.u32 %v14552_v62, 16  ;;  %v1690_v15 = vrot.slane %v1689_v4, 4  ;;  %v14575_v61 = vpop.f32.mrf.mxu1 }
 0x10d   : > { %18266 = vst [vmem:[#allocation68_spill] sm:$0xff] %v14565_v9  ;;  %12154 = vmatmul.mubr.bf16.gmra.mxu0 %v14565_v9  ;;  %v1685_v36 = vsel %vm13905_vm2, %v1680_v7, %v1684_v8  ;;  %v1697_v49 = vshrl.u32 %v298_v63, 16  ;;  %v1700_v17 = vshll.u32 %v298_v63, 16  ;;  %v14572_v6 = vpop.f32.mrf.mxu0  ;;  %v999_v1 = vor.u32 %v998_v18, %v995_v43  ;;  %18267 = vst [vmem:[#allocation69_spill] sm:$0xff] %v14575_v61  ;;  %v14580_v8 = vld [vmem:[%s13886_s3 + $0x138] sm:$0xf] }
 0x10e   : > { %v1009_v58 = vor.u32 %v1008_v11, %v1004_v59  ;;  %v1014_v57 = vrot.slane %v1012_v47, 5  ;;  %v1706_v52 = vshll.u32 %v299_v45, 16  ;;  %v1695_v9 = vsel %vm13905_vm2, %v1690_v15, %v1694_v25 }
 0x10f   : > { %v1699_v27 = vrot.slane %v1697_v49, 4  ;;  %v1702_v38 = vrot.slane %v1700_v17, 5  ;;  %v1710_v5 = vshrl.u32 %v299_v45, 16  ;;  %v14582_v7 = vcombine.low %v1685_v36, %v1695_v9  ;;  %v14588_v15 = vpop.f32.mrf.mxu0  ;;  %v301_v17 = vld [vmem:[%s13886_s3 + $0x278] sm:$0xf] }
 0x110   : > { %v1000_v63 = vrot.slane %v999_v1, 4  ;;  %v1010_v4 = vrot.slane %v1009_v58, 4  ;;  %v1708_v18 = vrot.slane %v1706_v52, 5  ;;  %v1716_v47 = vshll.u32 %v300_v54, 16 }
 0x111   : > { %18268 = vst [vmem:[#allocation70_spill] sm:$0xff] %v14582_v7  ;;  %v1703_v11 = vor.u32 %v1702_v38, %v1699_v27  ;;  %v1712_v43 = vrot.slane %v1710_v5, 4  ;;  %v1016_v61 = vshrl.u32 %v14552_v62, 16  ;;  %12218 = vmatmul.mubr.bf16.gmra.mxu1 %v14582_v7  ;;  %v1022_v9 = vshll.u32 %v14580_v8, 16  ;;  %v14597_v27 = vpop.f32.mrf.mxu1 }
 0x112   : > { %v1005_v25 = vsel %vm13905_vm2, %v1000_v63, %v1004_v59  ;;  %v1015_v49 = vsel %vm13905_vm2, %v1010_v4, %v1014_v57  ;;  %v1026_v38 = vshrl.u32 %v14580_v8, 16  ;;  %18269 = vst [vmem:[#allocation71_spill] sm:$0xff] %v14597_v27  ;;  %v1032_v7 = vshll.u32 %v14585_v46, 16  ;;  %v302_v59 = vld [vmem:[%s13886_s3 + $0x27c] sm:$0x1]  ;;  %v14607_v27 = vpop.f32.mrf.mxu0 }
 0x113   : > { %v14599_v5 = vcombine.low %v1005_v25, %v1015_v49  ;;  %v1704_v45 = vrot.slane %v1703_v11, 4  ;;  %v1713_v36 = vor.u32 %v1712_v43, %v1708_v18  ;;  %v1018_v1 = vrot.slane %v1016_v61, 4  ;;  %v14609_v61 = vpop.f32.mrf.mxu1 }
 0x114   : > { %v1024_v58 = vrot.slane %v1022_v9, 5  ;;  %v1028_v52 = vrot.slane %v1026_v38, 4  ;;  %v1718_v29 = vrot.slane %v1716_v47, 5  ;;  %v1720_v53 = vshrl.u32 %v300_v54, 16  ;;  %18271 = vst [vmem:[#allocation73_spill] sm:$0xff] %v14609_v61 }
 0x115   : > { %18270 = vst [vmem:[#allocation72_spill] sm:$0xff] %v14599_v5  ;;  %12157 = vmatprep.mubr.bf16.mxu0 %v14599_v5  ;;  %v1709_v63 = vsel %vm13905_vm2, %v1704_v45, %v1708_v18  ;;  %v1714_v4 = vrot.slane %v1713_v36, 4  ;;  %v1019_v25 = vor.u32 %v1018_v1, %v1014_v57  ;;  %v1034_v43 = vrot.slane %v1032_v7, 5  ;;  %v14615_v36 = vpop.f32.mrf.mxu0  ;;  %v14622_v1 = vpop.f32.mrf.mxu1 }
 0x116   : > { %v1029_v11 = vor.u32 %v1028_v52, %v1024_v58  ;;  %v1726_v49 = vshll.u32 %v301_v17, 16  ;;  %v1722_v38 = vrot.slane %v1720_v53, 4  ;;  %v1730_v50 = vshrl.u32 %v301_v17, 16  ;;  %18273 = vst [vmem:[#allocation75_spill] sm:$0xff] %v14622_v1 }
 0x117   : > { %v1719_v9 = vsel %vm13905_vm2, %v1714_v4, %v1718_v29  ;;  %v1736_v5 = vshll.u32 %v302_v59, 16  ;;  %v1020_v18 = vrot.slane %v1019_v25, 4  ;;  %v13575_v59 = vld [vmem:[%s13886_s3 + $0x10] sm:$0x1]  ;;  %v18275_v4 = vmov 0 }
 0x118   : > { %v14613_v14 = vcombine.low %v1709_v63, %v1719_v9  ;;  %v1030_v47 = vrot.slane %v1029_v11, 4  ;;  %v1728_v54 = vrot.slane %v1726_v49, 5  ;;  %v1723_v45 = vor.u32 %v1722_v38, %v1718_v29  ;;  %v13577_v11 = vld [vmem:[%s13886_s3 + $0x4] sm:$0xf] }
 0x119   : > { %v1732_v57 = vrot.slane %v1730_v50, 4  ;;  %v1025_v7 = vsel %vm13905_vm2, %v1020_v18, %v1024_v58  ;;  %v1738_v17 = vrot.slane %v1736_v5, 5  ;;  %v3629_v63 = vrot.slane %v13575_v59, 5  ;;  %v13576_v58 = vld [vmem:[%s13886_s3] sm:$0xf] }
 0x11a   : > { %18272 = vst [vmem:[#allocation74_spill] sm:$0xff] %v14613_v14  ;;  %12221 = vmatprep.mubr.bf16.mxu1 %v14613_v14  ;;  %v1035_v53 = vsel %vm13905_vm2, %v1030_v47, %v1034_v43  ;;  %v1724_v29 = vrot.slane %v1723_v45, 4  ;;  %v18276_v4 = vsel %vm14627_vm5, 4294967295, %v18275_v4  ;;  %v10510_v25 = vrot.slane %v13576_v58, 9  ;;  %v14634_v43 = vld [vmem:[%s13886_s3 + $0x8] sm:$0xf] }
 0x11b   : > { %v14624_v52 = vcombine.low %v1025_v7, %v1035_v53  ;;  %v1733_v50 = vor.u32 %v1732_v57, %v1728_v54  ;;  %18277 = vst [vmem:[#allocation77_spill] sm:$0xff] %v18276_v4  ;;  %v3620_v5 = vrot.slane %v13577_v11, 5  ;;  %v3623_v49 = vrot.slane %v14634_v43, 5  ;;  %v14641_v47 = vld [vmem:[%s13886_s3 + $0xc] sm:$0xf] }
 0x11c   : > { %v1729_v9 = vsel %vm13905_vm2, %v1724_v29, %v1728_v54  ;;  %v10438_v18 = vcombine.low %v13576_v58, %v13577_v11  ;;  %v3626_v45 = vrot.slane %v14641_v47, 5  ;;  %v13580_v14 = vld [vmem:[%s13886_s3 + $0x14] sm:$0xf]  ;;  %v14655_v11 = vld [vmem:[%s13886_s3 + $0x1c] sm:$0xf]  ;;  %v3665_v23 = vrot.slane %v14758_v21, 5 }
 0x11d   : > { %18274 = vst [vmem:[#allocation76_spill] sm:$0xff] %v14624_v52  ;;  %12158 = vmatmul.mubr.bf16.gmra.mxu0 %v14624_v52  ;;  %v1734_v38 = vrot.slane %v1733_v50, 4  ;;  %v14644_v57 = vpop.f32.mrf.mxu0  ;;  %v3621_v7 = vsel %vm14627_vm5, %v10510_v25, %v3620_v5  ;;  %v3622_v53 = vrot.slane %v3620_v5, 4  ;;  %v3625_v59 = vrot.slane %v3623_v49, 4  ;;  %v14649_v52 = vpop.f32.mrf.mxu1  ;;  %v13581_v50 = vld [vmem:[%s13886_s3 + $0x18] sm:$0xf] }
 0x11e   : > { %v10511_v1 = vrot.slane %v13580_v14, 9  ;;  %18278 = vst [vmem:[#allocation78_spill] sm:$0xff] %v14649_v52  ;;  %v3628_v29 = vrot.slane %v3626_v45, 4  ;;  %v3633_v58 = vrot.slane %v13581_v50, 5  ;;  %v3636_v61 = vrot.slane %v14655_v11, 5 }
 0x11f   : > { %v1739_v54 = vsel %vm13905_vm2, %v1734_v38, %v1738_v17  ;;  %v3624_v25 = vsel %vm14627_vm5, %v3622_v53, %v3623_v49  ;;  %v3627_v5 = vsel %vm14627_vm5, %v3625_v59, %v3626_v45  ;;  %v14668_v39 = vpop.f32.mrf.mxu0  ;;  %v13583_v49 = vld [vmem:[%s13886_s3 + $0x20] sm:$0xf]  ;;  %v13584_v45 = vld [vmem:[%s13886_s3 + $0x24] sm:$0x1] }
 0x120   : > { %v14658_v26 = vcombine.low %v1729_v9, %v1739_v54  ;;  %v10558_v52 = vcombine.low %v3621_v7, %v3624_v25  ;;  %v3630_v17 = vsel %vm14627_vm5, %v3628_v29, %v3629_v63  ;;  %v3634_v38 = vsel %vm14627_vm5, %v10511_v1, %v3633_v58  ;;  %v14673_v59 = vpop.f32.mrf.mxu1  ;;  %v13585_v63 = vld [vmem:[%s13886_s3 + $0x28] sm:$0xf] }
 0x121   : > { %v3635_v28 = vrot.slane %v3633_v58, 4  ;;  %v10559_v9 = vcombine.low %v3627_v5, %v3630_v17  ;;  %v3638_v54 = vrot.slane %v3636_v61, 4  ;;  %v3639_v53 = vrot.slane %v13583_v49, 5  ;;  %18280 = vst [vmem:[#allocation80_spill] sm:$0xff] %v14673_v59  ;;  %v13586_v58 = vld [vmem:[%s13886_s3 + $0x2c] sm:$0xf] }
 0x122   : > { %18279 = vst [vmem:[#allocation79_spill] sm:$0xff] %v14658_v26  ;;  %12222 = vmatmul.mubr.bf16.gmra.mxu1 %v14658_v26  ;;  %v3642_v7 = vrot.slane %v13584_v45, 5  ;;  %12385 = vmatprep.mubr.bf16.mxu0 %v10558_v52  ;;  %v10512_v29 = vrot.slane %v13585_v63, 9  ;;  %v3646_v25 = vrot.slane %v13586_v58, 5  ;;  %v13472_v5 = vld [vmem:[%s17845_s1 + $0x130] sm:$0xff]   ;;  %v13588_v59 = vld [vmem:[%s17845_s1 + $0x138] sm:$0xff]   ;;  %v14704_v35 = vpop.f32.mrf.mxu1 }
 0x123   : > { %12241 = vmatprep.mubr.bf16.mxu1 %v10438_v18  ;;  %v3637_v1 = vsel %vm14627_vm5, %v3635_v28, %v3636_v61  ;;  %v3641_v26 = vrot.slane %v3639_v53, 4  ;;  %v14685_v45 = vld [vmem:[%s13886_s3 + $0x30] sm:$0xf]  ;;  %v14688_v28 = vpop.f32.mrf.mxu0  ;;  %v10439_v61 = vcombine.low %v14634_v43, %v14641_v47  ;;  %18282 = vst [vmem:[#allocation82_spill] sm:$0xff] %v14704_v35  ;;  %v14706_v43 = vcombine.low %v13580_v14, %v13581_v50  ;;  %v13482_v14 = vld [vmem:[%s17845_s1 + $0x128] sm:$0xff]  }
 0x124   : > { %v14682_v17 = vcombine.low %v3634_v38, %v3637_v1  ;;  %v3649_v18 = vrot.slane %v14685_v45, 5  ;;  %v3648_v52 = vrot.slane %v3646_v25, 4  ;;  %v3640_v38 = vsel %vm14627_vm5, %v3638_v54, %v3639_v53  ;;  %v14701_v1 = vld [vmem:[%s13886_s3 + $0x34] sm:$0xf]  ;;  %v14713_v54 = vld [vmem:[%s13886_s3 + $0x40] sm:$0xf]  ;;  %v14729_v56 = vpop.f32.mrf.mxu1 }
 0x125   : > { %12386 = vmatmul.mubr.bf16.vlgmr.msra.gmra.mxu0 %v10559_v9  ;;  %v3643_v9 = vsel %vm14627_vm5, %v3641_v26, %v3642_v7  ;;  %v3652_v37 = vrot.slane %v14701_v1, 5  ;;  %v3647_v47 = vsel %vm14627_vm5, %v10512_v29, %v3646_v25  ;;  %v3659_v26 = vrot.slane %v14713_v54, 5  ;;  %v13471_v53 = vld [vmem:[%s17845_s1 + $0xf0] sm:$0xff]   ;;  %v14724_v7 = vpop.f32.mrf.mxu0  ;;  %18285 = vst [vmem:[#allocation85_spill] sm:$0xff] %v14729_v56 }
 0x126   : > { %18281 = vst [vmem:[#allocation81_spill] sm:$0xff] %v14682_v17  ;;  %12658 = vmatpush3.bf16.msra.mxu0 %v13588_v59  ;;  %12389 = vmatprep.mubr.bf16.mxu0 %v14682_v17  ;;  %v3650_v59 = vsel %vm14627_vm5, %v3648_v52, %v3649_v18  ;;  %v14722_v50 = vcombine.low %v3640_v38, %v3643_v9  ;;  %v3651_v25 = vrot.slane %v3649_v18, 4  ;;  %v13591_v17 = vld [vmem:[%s13886_s3 + $0x38] sm:$0x1]  ;;  %v13593_v38 = vld [vmem:[%s13886_s3 + $0x3c] sm:$0xf]  ;;  %v14761_v16 = vpop.f32.mrf.mxu1 }
 0x127   : > { %12659 = vmatprep.subr.bf16.mxu0 %v13472_v5  ;;  %v14726_v29 = vcombine.low %v3647_v47, %v3650_v59  ;;  %v3654_v52 = vrot.slane %v3652_v37, 4  ;;  %v3655_v35 = vrot.slane %v13591_v17, 5  ;;  %v10513_v9 = vrot.slane %v13593_v38, 9  ;;  %v14737_v47 = vld [vmem:[%s13886_s3 + $0x44] sm:$0xf]  ;;  %18287 = vst [vmem:[#allocation87_spill] sm:$0xff] %v14761_v16 }
 0x128   : > { %18283 = vst [vmem:[#allocation83_spill] sm:$0xff] %v14722_v50  ;;  %v3662_v18 = vrot.slane %v14737_v47, 5  ;;  %v14750_v59 = vcombine.low %v14655_v11, %v13583_v49  ;;  %v3653_v56 = vsel %vm14627_vm5, %v3651_v25, %v3652_v37  ;;  %v14770_v37 = vld [vmem:[%s13886_s3 + $0x54] sm:$0xf]  ;;  %v13598_v16 = vld [vmem:[%s13886_s3 + $0x50] sm:$0xf] }
 0x129   : > { %18284 = vst [vmem:[#allocation84_spill] sm:$0xff] %v14726_v29  ;;  %v3656_v42 = vsel %vm14627_vm5, %v3654_v52, %v3655_v35  ;;  %v3660_v11 = vsel %vm14627_vm5, %v10513_v9, %v3659_v26  ;;  %v3672_v35 = vrot.slane %v14770_v37, 5  ;;  %v3667_v52 = vrot.slane %v3665_v23, 4  ;;  %v13597_v9 = vld [vmem:[%s13886_s3 + $0x4c] sm:$0x1] }
 0x12a   : > { %12242 = vmatmul.mubr.bf16.vlgmr.msra.gmra.mxu1 %v10439_v61  ;;  %12660 = vmatpush3.bf16.msra.mxu0 %v13472_v5  ;;  %v3661_v61 = vrot.slane %v3659_v26, 4  ;;  %v13492_v5 = vld [vmem:[%s17845_s1 + $0x120] sm:$0xff]   ;;  %18286 = vst [vmem:[#allocation86_spill] sm:$0xff] %v14750_v59  ;;  %v14779_v26 = vcombine.low %v3653_v56, %v3656_v42  ;;  %v10514_v12 = vrot.slane %v13598_v16, 9  ;;  %v14792_v56 = vld [vmem:[%s13886_s3 + $0x58] sm:$0xf] }
 0x12b   : > { %12514 = vmatpush3.bf16.msra.mxu1 %v13592_v48  ;;  %12245 = vmatprep.mubr.bf16.mxu1 %v14706_v43  ;;  %v13481_v48 = vld [vmem:[%s17845_s1 + $0xe8] sm:$0xff]   ;;  %v3674_v42 = vrot.slane %v3672_v35, 4  ;;  %v3675_v31 = vrot.slane %v14792_v56, 5 }
 0x12c   : > { %12515 = vmatprep.subr.bf16.mxu1 %v13471_v53  ;;  %12661 = vmatprep.subr.bf16.mxu0 %v13482_v14  ;;  %v3663_v49 = vsel %vm14627_vm5, %v3661_v61, %v3662_v18  ;;  %18289 = vst [vmem:[#allocation89_spill] sm:$0xff] %v14779_v26  ;;  %v3668_v61 = vrot.slane %v13597_v9, 5  ;;  %v13600_v9 = vld [vmem:[%s13886_s3 + $0x5c] sm:$0xf] }
 0x12d   : > { %12390 = vmatmul.mubr.bf16.gmra.mxu0 %v14722_v50  ;;  %v14747_v17 = vpop.f32.mrf.mxu0  ;;  %v14763_v50 = vcombine.low %v13585_v63, %v13586_v58  ;;  %v13491_v63 = vld [vmem:[%s17845_s1 + $0xe0] sm:$0xff]   ;;  %v13502_v58 = vld [vmem:[%s17845_s1 + $0x118] sm:$0xff]   ;;  %v14784_v25 = vcombine.low %v3660_v11, %v3663_v49  ;;  %v14803_v11 = vcombine.low %v14685_v45, %v14701_v1  ;;  %v3673_v45 = vsel %vm14627_vm5, %v10514_v12, %v3672_v35 }
 0x12e   : > { %12393 = vmatprep.mubr.bf16.mxu0 %v14726_v29  ;;  %12662 = vmatpush3.bf16.msra.mxu0 %v13482_v14  ;;  %v3669_v49 = vsel %vm14627_vm5, %v3667_v52, %v3668_v61  ;;  %v3676_v1 = vsel %vm14627_vm5, %v3674_v42, %v3675_v31  ;;  %v13602_v12 = vld [vmem:[%s13886_s3 + $0x60] sm:$0x1]  ;;  %v13603_v42 = vld [vmem:[%s13886_s3 + $0x64] sm:$0xf] }
 0x12f   : > { %18288 = vst [vmem:[#allocation88_spill] sm:$0xff] %v14763_v50  ;;  %12516 = vmatpush3.bf16.msra.mxu1 %v13471_v53  ;;  %12663 = vmatprep.subr.bf16.mxu0 %v13492_v5  ;;  %v14781_v14 = vpop.f32.mrf.mxu0  ;;  %18290 = vst [vmem:[#allocation90_spill] sm:$0xff] %v14784_v25  ;;  %v3664_v53 = vrot.slane %v3662_v18, 4  ;;  %v13501_v18 = vld [vmem:[%s17845_s1 + $0xd8] sm:$0xff]   ;;  %v3681_v35 = vrot.slane %v13602_v12, 5 }
 0x130   : > { %12517 = vmatprep.subr.bf16.mxu1 %v13481_v48  ;;  %18292 = vst [vmem:[#allocation92_spill] sm:$0xff] %v14803_v11 }
 0x132   : > { %12246 = vmatmul.mubr.bf16.gmra.mxu1 %v14750_v59  ;;  %v14787_v29 = vpop.f32.mrf.mxu1  ;;  %12664 = vmatpush3.bf16.msra.mxu0 %v13492_v5  ;;  %v14799_v5 = vpop.f32.mrf.mxu0 }
 0x133   : > { %18291 = vst [vmem:[#allocation91_spill] sm:$0xff] %v14787_v29  ;;  %12249 = vmatprep.mubr.bf16.mxu1 %v14763_v50  ;;  %12518 = vmatpush3.bf16.msra.mxu1 %v13481_v48  ;;  %v3666_v48 = vsel %vm14627_vm5, %v3664_v53, %v3665_v23  ;;  %v3678_v29 = vrot.slane %v13600_v9, 5  ;;  %v13601_v23 = vld [vmem:[%s13886_s3 + $0x68] sm:$0xf] }
 0x134   : > { %12519 = vmatprep.subr.bf16.mxu1 %v13491_v63  ;;  %12665 = vmatprep.subr.bf16.mxu0 %v13502_v58  ;;  %v14811_v40 = vpop.f32.mrf.mxu1  ;;  %v3685_v53 = vrot.slane %v13601_v23, 5  ;;  %v14821_v52 = vcombine.low %v3666_v48, %v3669_v49  ;;  %v14823_v61 = vpop.f32.mrf.mxu0  ;;  %v14834_v48 = vld [vmem:[%s13886_s3 + $0x6c] sm:$0xf] }
 0x135   : > { %12394 = vmatmul.mubr.bf16.gmra.mxu0 %v14779_v26  ;;  %18293 = vst [vmem:[#allocation93_spill] sm:$0xff] %v14811_v40  ;;  %v14814_v26 = vcombine.low %v13593_v38, %v14713_v54  ;;  %v14826_v54 = vcombine.low %v3673_v45, %v3676_v1  ;;  %v3677_v38 = vrot.slane %v3675_v31, 4  ;;  %v3688_v49 = vrot.slane %v14834_v48, 5 }
 0x136   : > { %12397 = vmatprep.mubr.bf16.mxu0 %v14784_v25  ;;  %12666 = vmatpush3.bf16.msra.mxu0 %v13502_v58  ;;  %18295 = vst [vmem:[#allocation95_spill] sm:$0xff] %v14821_v52  ;;  %v3680_v58 = vrot.slane %v3678_v29, 4  ;;  %v14829_v25 = vpop.f32.mrf.mxu1  ;;  %v3687_v40 = vrot.slane %v3685_v53, 4  ;;  %v14842_v45 = vcombine.low %v14737_v47, %v14758_v21 }
 0x137   : > { %18294 = vst [vmem:[#allocation94_spill] sm:$0xff] %v14814_v26  ;;  %12520 = vmatpush3.bf16.msra.mxu1 %v13491_v63  ;;  %18296 = vst [vmem:[#allocation96_spill] sm:$0xff] %v14826_v54  ;;  %v10515_v63 = vrot.slane %v13603_v42, 9  ;;  %v3679_v1 = vsel %vm14627_vm5, %v3677_v38, %v3678_v29  ;;  %v13606_v29 = vld [vmem:[%s13886_s3 + $0x7c] sm:$0xf] }
 0x138   : > { %12521 = vmatprep.subr.bf16.mxu1 %v13501_v18  ;;  %18297 = vst [vmem:[#allocation97_spill] sm:$0xff] %v14829_v25  ;;  %18298 = vst [vmem:[#allocation98_spill] sm:$0xff] %v14842_v45  ;;  %v3682_v12 = vsel %vm14627_vm5, %v3680_v58, %v3681_v35  ;;  %v13605_v25 = vld [vmem:[%s13886_s3 + $0x70] sm:$0xf]  ;;  %v3689_v47 = vsel %vm14627_vm5, %v3687_v40, %v3688_v49  ;;  %v3698_v38 = vrot.slane %v13606_v29, 5 }
 0x139   : > { %v3691_v55 = vrot.slane %v13605_v25, 5  ;;  %v3686_v21 = vsel %vm14627_vm5, %v10515_v63, %v3685_v53  ;;  %v13608_v40 = vld [vmem:[%s13886_s3 + $0x78] sm:$0xf] }
 0x13a   : > { %12250 = vmatmul.mubr.bf16.gmra.mxu1 %v14803_v11  ;;  %v14865_v35 = vcombine.low %v3686_v21, %v3689_v47  ;;  %v10516_v63 = vrot.slane %v13608_v40, 9  ;;  %v13615_v11 = vld [vmem:[%s13886_s3 + $0x98] sm:$0xf] }
 0x13b   : > { %12253 = vmatprep.mubr.bf16.mxu1 %v14814_v26  ;;  %12522 = vmatpush3.bf16.msra.mxu1 %v13501_v18  ;;  %v14850_v18 = vpop.f32.mrf.mxu1  ;;  %v14890_v26 = vcombine.low %v13603_v42, %v13601_v23  ;;  %v3717_v44 = vrot.slane %v13615_v11, 5 }
 0x13c   : > { %18299 = vst [vmem:[#allocation99_spill] sm:$0xff] %v14850_v18  ;;  %18302 = vst [vmem:[#allocation102_spill] sm:$0xff] %v14865_v35  ;;  %v3690_v18 = vrot.slane %v3688_v49, 4  ;;  %v14880_v49 = vcombine.low %v14792_v56, %v13600_v9  ;;  %v13611_v9 = vld [vmem:[%s13886_s3 + $0x90] sm:$0xf] }
 0x13d   : > { %12398 = vmatmul.mubr.bf16.gmra.mxu0 %v14821_v52  ;;  %v14838_v31 = vpop.f32.mrf.mxu0  ;;  %v14853_v52 = vcombine.low %v13598_v16, %v14770_v37  ;;  %v3693_v16 = vrot.slane %v3691_v55, 4  ;;  %v13607_v37 = vld [vmem:[%s13886_s3 + $0x74] sm:$0x1]  ;;  %18306 = vst [vmem:[#allocation106_spill] sm:$0xff] %v14890_v26 }
 0x13e   : > { %12401 = vmatprep.mubr.bf16.mxu0 %v14826_v54  ;;  %v14860_v54 = vcombine.low %v3679_v1, %v3682_v12  ;;  %v3694_v13 = vrot.slane %v13607_v37, 5  ;;  %v3700_v1 = vrot.slane %v3698_v38, 4  ;;  %v14873_v12 = vld [vmem:[%s13886_s3 + $0x80] sm:$0xf]  ;;  %18304 = vst [vmem:[#allocation104_spill] sm:$0xff] %v14880_v49  ;;  %v3692_v47 = vsel %vm14627_vm5, %v3690_v18, %v3691_v55  ;;  %v18511_v4 = vld [vmem:[#allocation94_spill] sm:$0xff] }
 0x13f   : > { %18300 = vst [vmem:[#allocation100_spill] sm:$0xff] %v14853_v52  ;;  %v14862_v58 = vpop.f32.mrf.mxu0  ;;  %v3701_v20 = vrot.slane %v14873_v12, 5 }
 0x140   : > { %18301 = vst [vmem:[#allocation101_spill] sm:$0xff] %v14860_v54  ;;  %v3695_v37 = vsel %vm14627_vm5, %v3693_v16, %v3694_v13  ;;  %v13612_v16 = vld [vmem:[%s13886_s3 + $0x88] sm:$0x1] }
 0x141   : > { %v14868_v53 = vpop.f32.mrf.mxu1  ;;  %v14877_v21 = vpop.f32.mrf.mxu0  ;;  %v3702_v56 = vsel %vm14627_vm5, %v3700_v1, %v3701_v20  ;;  %v14897_v55 = vcombine.low %v3692_v47, %v3695_v37  ;;  %v3703_v23 = vrot.slane %v3701_v20, 4  ;;  %v13512_v1 = vld [vmem:[%s17845_s1 + $0x110] sm:$0xff]   ;;  %v13613_v47 = vld [vmem:[%s13886_s3 + $0x8c] sm:$0xf] }
 0x142   : > { %12254 = vmatmul.mubr.bf16.gmra.mxu1 %v14842_v45  ;;  %18303 = vst [vmem:[#allocation103_spill] sm:$0xff] %v14868_v53  ;;  %v13610_v53 = vld [vmem:[%s13886_s3 + $0x84] sm:$0xf]  ;;  %v14916_v20 = vld [vmem:[%s13886_s3 + $0x94] sm:$0xf]  ;;  %12667 = vmatprep.subr.bf16.mxu0 %v13512_v1 }
 0x143   : > { %12257 = vmatprep.mubr.bf16.mxu1 %v14853_v52  ;;  %v3704_v52 = vrot.slane %v13610_v53, 5  ;;  %v14888_v45 = vpop.f32.mrf.mxu1  ;;  %18307 = vst [vmem:[#allocation107_spill] sm:$0xff] %v14897_v55  ;;  %v14899_v18 = vpop.f32.mrf.mxu0  ;;  %12668 = vmatpush3.bf16.msra.mxu0 %v13512_v1 }
 0x144   : > { %18305 = vst [vmem:[#allocation105_spill] sm:$0xff] %v14888_v45  ;;  %v3707_v45 = vrot.slane %v13612_v16, 5 }
 0x145   : > { %12402 = vmatmul.mubr.bf16.gmra.mxu0 %v14860_v54  ;;  %v3699_v54 = vsel %vm14627_vm5, %v10516_v63, %v3698_v38  ;;  %v3706_v42 = vrot.slane %v3704_v52, 4  ;;  %v14905_v38 = vpop.f32.mrf.mxu1  ;;  %v13511_v63 = vld [vmem:[%s17845_s1 + $0xd0] sm:$0xff]  }
 0x146   : > { %12405 = vmatprep.mubr.bf16.mxu0 %v14865_v35  ;;  %v3711_v35 = vrot.slane %v13611_v9, 5  ;;  %v14902_v13 = vcombine.low %v3699_v54, %v3702_v56  ;;  %18309 = vst [vmem:[#allocation109_spill] sm:$0xff] %v14905_v38  ;;  %v10517_v54 = vrot.slane %v13613_v47, 9  ;;  %v3714_v56 = vrot.slane %v14916_v20, 5  ;;  %12523 = vmatprep.subr.bf16.mxu1 %v13511_v63 }
 0x147   : > { %12524 = vmatpush3.bf16.msra.mxu1 %v13511_v63  ;;  %v14923_v38 = vcombine.low %v14834_v48, %v13605_v25  ;;  %v14931_v2 = vpop.f32.mrf.mxu1 }
 0x148   : > { %18308 = vst [vmem:[#allocation108_spill] sm:$0xff] %v14902_v13  ;;  %v3713_v37 = vrot.slane %v3711_v35, 4  ;;  %18311 = vst [vmem:[#allocation111_spill] sm:$0xff] %v14931_v2  ;;  %v3712_v25 = vsel %vm14627_vm5, %v10517_v54, %v3711_v35  ;;  %v3716_v1 = vrot.slane %v3714_v56, 4  ;;  %v13618_v54 = vld [vmem:[%s13886_s3 + $0xa0] sm:$0xf] }
 0x149   : > { %18310 = vst [vmem:[#allocation110_spill] sm:$0xff] %v14923_v38 }
 0x14a   : > { %12258 = vmatmul.mubr.bf16.gmra.mxu1 %v14880_v49  ;;  %v3708_v49 = vsel %vm14627_vm5, %v3706_v42, %v3707_v45  ;;  %v3715_v48 = vsel %vm14627_vm5, %v3713_v37, %v3714_v56  ;;  %v10518_v37 = vrot.slane %v13618_v54, 9  ;;  %v14957_v56 = vcombine.low %v14873_v12, %v13610_v53 }
 0x14b   : > { %12261 = vmatprep.mubr.bf16.mxu1 %v14890_v26  ;;  %v3705_v26 = vsel %vm14627_vm5, %v3703_v23, %v3704_v52  ;;  %v13616_v52 = vld [vmem:[%s13886_s3 + $0xa4] sm:$0xf]  ;;  %v14945_v42 = vcombine.low %v3712_v25, %v3715_v48  ;;  %v3718_v25 = vsel %vm14627_vm5, %v3716_v1, %v3717_v44 }
 0x14c   : > { %v14920_v16 = vpop.f32.mrf.mxu0  ;;  %v3724_v23 = vrot.slane %v13616_v52, 5  ;;  %v14940_v63 = vcombine.low %v3705_v26, %v3708_v49  ;;  %v13619_v49 = vld [vmem:[%s13886_s3 + $0xa8] sm:$0xf]  ;;  %18316 = vst [vmem:[#allocation116_spill] sm:$0xff] %v14957_v56 }
 0x14d   : > { %12406 = vmatmul.mubr.bf16.gmra.mxu0 %v14897_v55  ;;  %v14933_v55 = vcombine.low %v13608_v40, %v13606_v29  ;;  %18314 = vst [vmem:[#allocation114_spill] sm:$0xff] %v14945_v42  ;;  %v3719_v29 = vrot.slane %v3717_v44, 4  ;;  %v13617_v40 = vld [vmem:[%s13886_s3 + $0x9c] sm:$0x1]  ;;  %v3727_v2 = vrot.slane %v13619_v49, 5 }
 0x14e   : > { %12409 = vmatprep.mubr.bf16.mxu0 %v14902_v13  ;;  %18313 = vst [vmem:[#allocation113_spill] sm:$0xff] %v14940_v63  ;;  %v14942_v45 = vpop.f32.mrf.mxu0  ;;  %v3720_v13 = vrot.slane %v13617_v40, 5  ;;  %v3726_v26 = vrot.slane %v3724_v23, 4  ;;  %v13620_v40 = vld [vmem:[%s13886_s3 + $0xac] sm:$0xf]  ;;  %v3725_v53 = vsel %vm14627_vm5, %v10518_v37, %v3724_v23 }
 0x14f   : > { %18312 = vst [vmem:[#allocation112_spill] sm:$0xff] %v14933_v55  ;;  %v13623_v37 = vld [vmem:[%s13886_s3 + $0xb4] sm:$0xf] }
 0x150   : > { %v3721_v48 = vsel %vm14627_vm5, %v3719_v29, %v3720_v13  ;;  %v3728_v12 = vsel %vm14627_vm5, %v3726_v26, %v3727_v2  ;;  %v3729_v29 = vrot.slane %v3727_v2, 4  ;;  %v10519_v26 = vrot.slane %v13623_v37, 9 }
 0x151   : > { %v14974_v1 = vcombine.low %v3718_v25, %v3721_v48  ;;  %v14979_v13 = vcombine.low %v3725_v53, %v3728_v12  ;;  %v14987_v48 = vld [vmem:[%s13886_s3 + $0xbc] sm:$0xf]  ;;  %v14994_v2 = vcombine.low %v14916_v20, %v13615_v11 }
 0x152   : > { %12262 = vmatmul.mubr.bf16.gmra.mxu1 %v14923_v38  ;;  %v14948_v35 = vpop.f32.mrf.mxu1  ;;  %v14954_v38 = vpop.f32.mrf.mxu0  ;;  %v3740_v59 = vrot.slane %v14987_v48, 5 }
 0x153   : > { %18315 = vst [vmem:[#allocation115_spill] sm:$0xff] %v14948_v35  ;;  %12265 = vmatprep.mubr.bf16.mxu1 %v14933_v55  ;;  %v3730_v35 = vrot.slane %v13620_v40, 5  ;;  %18319 = vst [vmem:[#allocation119_spill] sm:$0xff] %v14974_v1 }
 0x154   : > { %v14965_v55 = vpop.f32.mrf.mxu1  ;;  %v14976_v50 = vpop.f32.mrf.mxu0  ;;  %18320 = vst [vmem:[#allocation120_spill] sm:$0xff] %v14979_v13  ;;  %18322 = vst [vmem:[#allocation122_spill] sm:$0xff] %v14994_v2 }
 0x155   : > { %12410 = vmatmul.mubr.bf16.gmra.mxu0 %v14940_v63  ;;  %18317 = vst [vmem:[#allocation117_spill] sm:$0xff] %v14965_v55  ;;  %v14967_v63 = vcombine.low %v13613_v47, %v13611_v9  ;;  %v3732_v9 = vrot.slane %v3730_v35, 4  ;;  %v13622_v47 = vld [vmem:[%s13886_s3 + $0xb0] sm:$0x1]  ;;  %v3731_v12 = vsel %vm14627_vm5, %v3729_v29, %v3730_v35 }
 0x156   : > { %12413 = vmatprep.mubr.bf16.mxu0 %v14945_v42  ;;  %v13621_v42 = vld [vmem:[%s13886_s3 + $0xb8] sm:$0xf]  ;;  %v3733_v55 = vrot.slane %v13622_v47, 5  ;;  %v14982_v23 = vpop.f32.mrf.mxu1 }
 0x157   : > { %18318 = vst [vmem:[#allocation118_spill] sm:$0xff] %v14967_v63  ;;  %v3737_v44 = vrot.slane %v13621_v42, 5  ;;  %18321 = vst [vmem:[#allocation121_spill] sm:$0xff] %v14982_v23  ;;  %v13625_v23 = vld [vmem:[%s13886_s3 + $0xc0] sm:$0xf] }
 0x158   : > { %v3734_v47 = vsel %vm14627_vm5, %v3732_v9, %v3733_v55  ;;  %v3742_v9 = vrot.slane %v3740_v59, 4 }
 0x159   : > { %v3739_v25 = vrot.slane %v3737_v44, 4  ;;  %v3738_v11 = vsel %vm14627_vm5, %v10519_v26, %v3737_v44  ;;  %v15011_v29 = vcombine.low %v3731_v12, %v3734_v47  ;;  %v13628_v26 = vld [vmem:[%s13886_s3 + $0xc8] sm:$0xf]  ;;  %v15024_v47 = vld [vmem:[%s13886_s3 + $0xd0] sm:$0xf] }
 0x15a   : > { %12266 = vmatmul.mubr.bf16.gmra.mxu1 %v14957_v56  ;;  %v15002_v56 = vpop.f32.mrf.mxu1  ;;  %v3753_v41 = vrot.slane %v15024_v47, 5 }
 0x15b   : > { %12269 = vmatprep.mubr.bf16.mxu1 %v14967_v63  ;;  %v3743_v63 = vrot.slane %v13625_v23, 5  ;;  %18323 = vst [vmem:[#allocation123_spill] sm:$0xff] %v15002_v56  ;;  %v3741_v20 = vsel %vm14627_vm5, %v3739_v25, %v3740_v59  ;;  %18325 = vst [vmem:[#allocation125_spill] sm:$0xff] %v15011_v29  ;;  %v10520_v25 = vrot.slane %v13628_v26, 9  ;;  %v15030_v59 = vcombine.low %v13619_v49, %v13620_v40 }
 0x15c   : > { %v15016_v55 = vcombine.low %v3738_v11, %v3741_v20 }
 0x15d   : > { %12414 = vmatmul.mubr.bf16.gmra.mxu0 %v14974_v1  ;;  %v14991_v53 = vpop.f32.mrf.mxu0  ;;  %v15004_v1 = vcombine.low %v13618_v54, %v13616_v52  ;;  %v3745_v52 = vrot.slane %v3743_v63, 4  ;;  %v13627_v54 = vld [vmem:[%s13886_s3 + $0xc4] sm:$0x1]  ;;  %18330 = vst [vmem:[#allocation130_spill] sm:$0xff] %v15030_v59  ;;  %v3744_v20 = vsel %vm14627_vm5, %v3742_v9, %v3743_v63 }
 0x15e   : > { %12417 = vmatprep.mubr.bf16.mxu0 %v14979_v13  ;;  %v13626_v13 = vld [vmem:[%s13886_s3 + $0xcc] sm:$0xf]  ;;  %18327 = vst [vmem:[#allocation127_spill] sm:$0xff] %v15016_v55  ;;  %v3746_v56 = vrot.slane %v13627_v54, 5 }
 0x15f   : > { %18324 = vst [vmem:[#allocation124_spill] sm:$0xff] %v15004_v1  ;;  %v3750_v35 = vrot.slane %v13626_v13, 5  ;;  %v15013_v24 = vpop.f32.mrf.mxu0 }
 0x160   : > { %18326 = vst [vmem:[#allocation126_spill] sm:$0xff] %v15013_v24  ;;  %v3747_v54 = vsel %vm14627_vm5, %v3745_v52, %v3746_v56  ;;  %v15040_v24 = vcombine.low %v13623_v37, %v13621_v42  ;;  %v3755_v52 = vrot.slane %v3753_v41, 4  ;;  %v13632_v37 = vld [vmem:[%s13886_s3 + $0xd8] sm:$0x1] }
 0x161   : > { %v15019_v44 = vpop.f32.mrf.mxu1  ;;  %v3752_v12 = vrot.slane %v3750_v35, 4  ;;  %v15028_v11 = vpop.f32.mrf.mxu0  ;;  %v3751_v49 = vsel %vm14627_vm5, %v10520_v25, %v3750_v35  ;;  %v15047_v9 = vcombine.low %v3744_v20, %v3747_v54  ;;  %v13633_v25 = vld [vmem:[%s13886_s3 + $0xdc] sm:$0xf]  ;;  %v15060_v20 = vld [vmem:[%s13886_s3 + $0xe4] sm:$0xf] }
 0x162   : > { %12270 = vmatmul.mubr.bf16.gmra.mxu1 %v14994_v2  ;;  %18328 = vst [vmem:[#allocation128_spill] sm:$0xff] %v15019_v44  ;;  %18329 = vst [vmem:[#allocation129_spill] sm:$0xff] %v15028_v11  ;;  %v13630_v44 = vld [vmem:[%s13886_s3 + $0xd4] sm:$0xf]  ;;  %v3766_v54 = vrot.slane %v15060_v20, 5 }
 0x163   : > { %12273 = vmatprep.mubr.bf16.mxu1 %v15004_v1  ;;  %v3756_v1 = vrot.slane %v13630_v44, 5  ;;  %v15038_v2 = vpop.f32.mrf.mxu1  ;;  %18332 = vst [vmem:[#allocation132_spill] sm:$0xff] %v15040_v24  ;;  %v3754_v40 = vsel %vm14627_vm5, %v3752_v12, %v3753_v41  ;;  %18333 = vst [vmem:[#allocation133_spill] sm:$0xff] %v15047_v9  ;;  %v10521_v12 = vrot.slane %v13633_v25, 9  ;;  %v13521_v41 = vld [vmem:[%s17845_s1 + $0xc8] sm:$0xff]  }
 0x164   : > { %18331 = vst [vmem:[#allocation131_spill] sm:$0xff] %v15038_v2  ;;  %v15052_v56 = vcombine.low %v3751_v49, %v3754_v40  ;;  %v3759_v2 = vrot.slane %v13632_v37, 5  ;;  %v15070_v40 = vcombine.low %v14987_v48, %v13625_v23  ;;  %v13636_v48 = vld [vmem:[%s13886_s3 + $0xf4] sm:$0xf]  ;;  %12525 = vmatprep.subr.bf16.mxu1 %v13521_v41 }
 0x165   : > { %12418 = vmatmul.mubr.bf16.gmra.mxu0 %v15011_v29  ;;  %v15049_v29 = vpop.f32.mrf.mxu0  ;;  %v3758_v42 = vrot.slane %v3756_v1, 4  ;;  %v15055_v35 = vpop.f32.mrf.mxu1  ;;  %v3757_v37 = vsel %vm14627_vm5, %v3755_v52, %v3756_v1  ;;  %v13522_v1 = vld [vmem:[%s17845_s1 + $0x108] sm:$0xff]   ;;  %12526 = vmatpush3.bf16.msra.mxu1 %v13521_v41  ;;  %v13638_v41 = vld [vmem:[%s13886_s3 + $0xf0] sm:$0xf] }
 0x166   : > { %12421 = vmatprep.mubr.bf16.mxu0 %v15016_v55  ;;  %v13631_v55 = vld [vmem:[%s13886_s3 + $0xe0] sm:$0xf]  ;;  %18334 = vst [vmem:[#allocation134_spill] sm:$0xff] %v15049_v29  ;;  %18335 = vst [vmem:[#allocation135_spill] sm:$0xff] %v15052_v56  ;;  %12669 = vmatprep.subr.bf16.mxu0 %v13522_v1  ;;  %v13637_v52 = vld [vmem:[%s13886_s3 + $0xec] sm:$0x1] }
 0x167   : > { %v3763_v63 = vrot.slane %v13631_v55, 5  ;;  %18336 = vst [vmem:[#allocation136_spill] sm:$0xff] %v15055_v35  ;;  %18338 = vst [vmem:[#allocation138_spill] sm:$0xff] %v15070_v40  ;;  %v3760_v35 = vsel %vm14627_vm5, %v3758_v42, %v3759_v2  ;;  %v3772_v42 = vrot.slane %v13637_v52, 5  ;;  %12670 = vmatpush3.bf16.msra.mxu0 %v13522_v1  ;;  %v13640_v52 = vld [vmem:[%s13886_s3 + $0xfc] sm:$0xf] }
 0x168   : > { %v15090_v2 = vcombine.low %v3757_v37, %v3760_v35  ;;  %v10522_v35 = vrot.slane %v13638_v41, 9 }
 0x169   : > { %v3765_v11 = vrot.slane %v3763_v63, 4  ;;  %v3764_v29 = vsel %vm14627_vm5, %v10521_v12, %v3763_v63 }
 0x16a   : > { %12274 = vmatmul.mubr.bf16.gmra.mxu1 %v15030_v59  ;;  %18341 = vst [vmem:[#allocation141_spill] sm:$0xff] %v15090_v2 }
 0x16b   : > { %12277 = vmatprep.mubr.bf16.mxu1 %v15040_v24  ;;  %v13635_v24 = vld [vmem:[%s13886_s3 + $0xe8] sm:$0xf]  ;;  %v3767_v23 = vsel %vm14627_vm5, %v3765_v11, %v3766_v54  ;;  %v3768_v11 = vrot.slane %v3766_v54, 4  ;;  %v15107_v54 = vcombine.low %v15024_v47, %v13630_v44 }
 0x16c   : > { %v3769_v59 = vrot.slane %v13635_v24, 5  ;;  %v13641_v47 = vld [vmem:[%s13886_s3 + $0x108] sm:$0xf] }
 0x16d   : > { %12422 = vmatmul.mubr.bf16.gmra.mxu0 %v15047_v9  ;;  %v15064_v49 = vpop.f32.mrf.mxu0  ;;  %v15078_v9 = vpop.f32.mrf.mxu1  ;;  %18346 = vst [vmem:[#allocation146_spill] sm:$0xff] %v15107_v54 }
 0x16e   : > { %18337 = vst [vmem:[#allocation137_spill] sm:$0xff] %v15064_v49  ;;  %12425 = vmatprep.mubr.bf16.mxu0 %v15052_v56  ;;  %18339 = vst [vmem:[#allocation139_spill] sm:$0xff] %v15078_v9  ;;  %v15080_v49 = vcombine.low %v13628_v26, %v13626_v13  ;;  %v3776_v56 = vrot.slane %v13636_v48, 5  ;;  %v15095_v26 = vcombine.low %v3764_v29, %v3767_v23  ;;  %v3771_v63 = vrot.slane %v3769_v59, 4  ;;  %v13639_v9 = vld [vmem:[%s13886_s3 + $0xf8] sm:$0xf] }
 0x16f   : > { %v15092_v13 = vpop.f32.mrf.mxu0  ;;  %v3770_v23 = vsel %vm14627_vm5, %v3768_v11, %v3769_v59 }
 0x170   : > { %18340 = vst [vmem:[#allocation140_spill] sm:$0xff] %v15080_v49  ;;  %18342 = vst [vmem:[#allocation142_spill] sm:$0xff] %v15092_v13  ;;  %v3778_v37 = vrot.slane %v3776_v56, 4  ;;  %v3779_v13 = vrot.slane %v13639_v9, 5  ;;  %v3773_v1 = vsel %vm14627_vm5, %v3771_v63, %v3772_v42  ;;  %v13642_v63 = vld [vmem:[%s13886_s3 + $0x100] sm:$0x1] }
 0x171   : > { %18343 = vst [vmem:[#allocation143_spill] sm:$0xff] %v15095_v26  ;;  %v15104_v29 = vpop.f32.mrf.mxu0  ;;  %v15124_v59 = vcombine.low %v3770_v23, %v3773_v1  ;;  %v3785_v42 = vrot.slane %v13642_v63, 5  ;;  %v13644_v1 = vld [vmem:[%s13886_s3 + $0x10c] sm:$0xf] }
 0x172   : > { %12278 = vmatmul.mubr.bf16.gmra.mxu1 %v15070_v40  ;;  %v15098_v12 = vpop.f32.mrf.mxu1  ;;  %18345 = vst [vmem:[#allocation145_spill] sm:$0xff] %v15104_v29  ;;  %v3777_v40 = vsel %vm14627_vm5, %v10522_v35, %v3776_v56  ;;  %v3780_v44 = vsel %vm14627_vm5, %v3778_v37, %v3779_v13  ;;  %v13643_v35 = vld [vmem:[%s13886_s3 + $0x104] sm:$0xf]  ;;  %v3792_v29 = vrot.slane %v13644_v1, 5 }
 0x173   : > { %18344 = vst [vmem:[#allocation144_spill] sm:$0xff] %v15098_v12  ;;  %12281 = vmatprep.mubr.bf16.mxu1 %v15080_v49  ;;  %v3782_v12 = vrot.slane %v13640_v52, 5  ;;  %18349 = vst [vmem:[#allocation149_spill] sm:$0xff] %v15124_v59  ;;  %v15126_v11 = vpop.f32.mrf.mxu0  ;;  %v10523_v37 = vrot.slane %v13643_v35, 9 }
 0x174   : > { %v15115_v49 = vpop.f32.mrf.mxu1  ;;  %18350 = vst [vmem:[#allocation150_spill] sm:$0xff] %v15126_v11 }
 0x175   : > { %12426 = vmatmul.mubr.bf16.gmra.mxu0 %v15090_v2  ;;  %18347 = vst [vmem:[#allocation147_spill] sm:$0xff] %v15115_v49  ;;  %v15117_v2 = vcombine.low %v13633_v25, %v13631_v55  ;;  %v3781_v49 = vrot.slane %v3779_v13, 4  ;;  %v15130_v55 = vcombine.low %v3777_v40, %v3780_v44  ;;  %v3784_v25 = vrot.slane %v3782_v12, 4 }
 0x176   : > { %12429 = vmatprep.mubr.bf16.mxu0 %v15095_v26  ;;  %v3789_v26 = vrot.slane %v13641_v47, 5  ;;  %v15132_v56 = vpop.f32.mrf.mxu1  ;;  %v15141_v13 = vcombine.low %v15060_v20, %v13635_v24  ;;  %v13646_v20 = vld [vmem:[%s13886_s3 + $0x11c] sm:$0xf] }
 0x177   : > { %18348 = vst [vmem:[#allocation148_spill] sm:$0xff] %v15117_v2  ;;  %18351 = vst [vmem:[#allocation151_spill] sm:$0xff] %v15130_v55  ;;  %v3783_v40 = vsel %vm14627_vm5, %v3781_v49, %v3782_v12  ;;  %v3786_v44 = vsel %vm14627_vm5, %v3784_v25, %v3785_v42  ;;  %v13647_v42 = vld [vmem:[%s13886_s3 + $0x114] sm:$0x1] }
 0x178   : > { %18352 = vst [vmem:[#allocation152_spill] sm:$0xff] %v15132_v56  ;;  %v3791_v23 = vrot.slane %v3789_v26, 4  ;;  %18354 = vst [vmem:[#allocation154_spill] sm:$0xff] %v15141_v13  ;;  %v13645_v56 = vld [vmem:[%s13886_s3 + $0x110] sm:$0xf]  ;;  %v15158_v49 = vcombine.low %v3783_v40, %v3786_v44  ;;  %v3798_v25 = vrot.slane %v13647_v42, 5 }
 0x179   : > { %v15171_v40 = vld [vmem:[%s13886_s3 + $0x120] sm:$0xf] }
 0x17a   : > { %12282 = vmatmul.mubr.bf16.gmra.mxu1 %v15107_v54  ;;  %v15149_v54 = vpop.f32.mrf.mxu1  ;;  %v3793_v24 = vsel %vm14627_vm5, %v3791_v23, %v3792_v29  ;;  %18357 = vst [vmem:[#allocation157_spill] sm:$0xff] %v15158_v49  ;;  %v3805_v44 = vrot.slane %v15171_v40, 5 }
 0x17b   : > { %12285 = vmatprep.mubr.bf16.mxu1 %v15117_v2  ;;  %v3795_v2 = vrot.slane %v13645_v56, 5  ;;  %18355 = vst [vmem:[#allocation155_spill] sm:$0xff] %v15149_v54  ;;  %v3794_v54 = vrot.slane %v3792_v29, 4  ;;  %v15177_v29 = vcombine.low %v13639_v9, %v13640_v52  ;;  %v3815_v52 = vrot.slane %v14546_v10, 5 }
 0x17d   : > { %12430 = vmatmul.mubr.bf16.gmra.mxu0 %v15124_v59  ;;  %v15138_v63 = vpop.f32.mrf.mxu0  ;;  %v15151_v59 = vcombine.low %v13638_v41, %v13636_v48  ;;  %v3797_v41 = vrot.slane %v3795_v2, 4  ;;  %18362 = vst [vmem:[#allocation162_spill] sm:$0xff] %v15177_v29  ;;  %v3817_v10 = vrot.slane %v3815_v52, 4 }
 0x17e   : > { %18353 = vst [vmem:[#allocation153_spill] sm:$0xff] %v15138_v63  ;;  %12433 = vmatprep.mubr.bf16.mxu0 %v15130_v55  ;;  %v3790_v63 = vsel %vm14627_vm5, %v10523_v37, %v3789_v26  ;;  %v3802_v55 = vrot.slane %v13646_v20, 5  ;;  %v13648_v37 = vld [vmem:[%s13886_s3 + $0x118] sm:$0xf] }
 0x17f   : > { %18356 = vst [vmem:[#allocation156_spill] sm:$0xff] %v15151_v59  ;;  %v15160_v12 = vpop.f32.mrf.mxu0  ;;  %v15164_v48 = vcombine.low %v3790_v63, %v3793_v24  ;;  %v10524_v23 = vrot.slane %v13648_v37, 9  ;;  %v3796_v63 = vsel %vm14627_vm5, %v3794_v54, %v3795_v2  ;;  %v3799_v24 = vsel %vm14627_vm5, %v3797_v41, %v3798_v25  ;;  %v13651_v54 = vld [vmem:[%s13886_s3 + $0x128] sm:$0x1] }
 0x180   : > { %18358 = vst [vmem:[#allocation158_spill] sm:$0xff] %v15160_v12  ;;  %v3804_v11 = vrot.slane %v3802_v55, 4  ;;  %v15187_v12 = vcombine.low %v13643_v35, %v13641_v47  ;;  %v3811_v25 = vrot.slane %v13651_v54, 5  ;;  %v3807_v41 = vrot.slane %v3805_v44, 4 }
 0x181   : > { %18359 = vst [vmem:[#allocation159_spill] sm:$0xff] %v15164_v48  ;;  %v15166_v26 = vpop.f32.mrf.mxu1  ;;  %v15175_v42 = vpop.f32.mrf.mxu0 }
 0x182   : > { %12286 = vmatmul.mubr.bf16.gmra.mxu1 %v15141_v13  ;;  %18360 = vst [vmem:[#allocation160_spill] sm:$0xff] %v15166_v26  ;;  %18361 = vst [vmem:[#allocation161_spill] sm:$0xff] %v15175_v42  ;;  %v13650_v26 = vld [vmem:[%s13886_s3 + $0x124] sm:$0xf]  ;;  %v3806_v9 = vsel %vm14627_vm5, %v3804_v11, %v3805_v44  ;;  %v10525_v11 = vrot.slane %v14539_v60, 9  ;;  %v15213_v44 = vcombine.low %v13644_v1, %v13645_v56 }
 0x183   : > { %12289 = vmatprep.mubr.bf16.mxu1 %v15151_v59  ;;  %v3808_v59 = vrot.slane %v13650_v26, 5  ;;  %v15185_v13 = vpop.f32.mrf.mxu1  ;;  %18364 = vst [vmem:[#allocation164_spill] sm:$0xff] %v15187_v12  ;;  %v15196_v2 = vpop.f32.mrf.mxu0  ;;  %v13652_v1 = vld [vmem:[%s13886_s3 + $0x144] sm:$0xf] }
 0x184   : > { %18363 = vst [vmem:[#allocation163_spill] sm:$0xff] %v15185_v13  ;;  %18366 = vst [vmem:[#allocation166_spill] sm:$0xff] %v15196_v2  ;;  %v3816_v54 = vsel %vm14627_vm5, %v10525_v11, %v3815_v52 }
 0x185   : > { %12434 = vmatmul.mubr.bf16.gmra.mxu0 %v15158_v49  ;;  %v3803_v49 = vsel %vm14627_vm5, %v10524_v23, %v3802_v55  ;;  %v3810_v47 = vrot.slane %v3808_v59, 4  ;;  %v15202_v35 = vpop.f32.mrf.mxu1  ;;  %v3818_v55 = vrot.slane %v14552_v62, 5  ;;  %18370 = vst [vmem:[#allocation170_spill] sm:$0xff] %v15213_v44  ;;  %v3821_v62 = vrot.slane %v14580_v8, 5 }
 0x186   : > { %12437 = vmatprep.mubr.bf16.mxu0 %v15164_v48  ;;  %v15194_v48 = vcombine.low %v3796_v63, %v3799_v24  ;;  %v15200_v13 = vcombine.low %v3803_v49, %v3806_v9  ;;  %18368 = vst [vmem:[#allocation168_spill] sm:$0xff] %v15202_v35  ;;  %v13531_v49 = vld [vmem:[%s17845_s1 + $0xc0] sm:$0xff]   ;;  %v3809_v63 = vsel %vm14627_vm5, %v3807_v41, %v3808_v59  ;;  %v13656_v35 = vld [vmem:[%s13886_s3 + $0x12c] sm:$0xf] }
 0x187   : > { %v3812_v60 = vsel %vm14627_vm5, %v3810_v47, %v3811_v25  ;;  %v15221_v24 = vpop.f32.mrf.mxu1  ;;  %v15223_v9 = vcombine.low %v13648_v37, %v13646_v20  ;;  %v3819_v56 = vsel %vm14627_vm5, %v3817_v10, %v3818_v55  ;;  %12527 = vmatprep.subr.bf16.mxu1 %v13531_v49  ;;  %v13532_v59 = vld [vmem:[%s17845_s1 + $0x100] sm:$0xff]   ;;  %v3824_v37 = vrot.slane %v14585_v46, 5 }
 0x188   : > { %18365 = vst [vmem:[#allocation165_spill] sm:$0xff] %v15194_v48  ;;  %18367 = vst [vmem:[#allocation167_spill] sm:$0xff] %v15200_v13  ;;  %12528 = vmatpush3.bf16.msra.mxu1 %v13531_v49  ;;  %v15233_v25 = vcombine.low %v3809_v63, %v3812_v60  ;;  %12671 = vmatprep.subr.bf16.mxu0 %v13532_v59  ;;  %v3820_v52 = vrot.slane %v3818_v55, 4  ;;  %v15239_v41 = vcombine.low %v3816_v54, %v3819_v56  ;;  %v13653_v10 = vld [vmem:[%s13886_s3 + $0x140] sm:$0xf] }
 0x189   : > { %18371 = vst [vmem:[#allocation171_spill] sm:$0xff] %v15221_v24  ;;  %18372 = vst [vmem:[#allocation172_spill] sm:$0xff] %v15223_v9  ;;  %v3823_v47 = vrot.slane %v3821_v62, 4  ;;  %12672 = vmatpush3.bf16.msra.mxu0 %v13532_v59  ;;  %v10526_v49 = vrot.slane %v13653_v10, 9  ;;  %v15246_v60 = vld [vmem:[%s13886_s3 + $0x148] sm:$0xf]  ;;  %v15253_v54 = vcombine.low %v15171_v40, %v13650_v26 }
 0x18a   : > { %12290 = vmatmul.mubr.bf16.gmra.mxu1 %v15177_v29  ;;  %18373 = vst [vmem:[#allocation173_spill] sm:$0xff] %v15233_v25  ;;  %18375 = vst [vmem:[#allocation175_spill] sm:$0xff] %v15239_v41  ;;  %v3831_v46 = vrot.slane %v15246_v60, 5  ;;  %v3822_v56 = vsel %vm14627_vm5, %v3820_v52, %v3821_v62  ;;  %v13658_v62 = vld [vmem:[%s13886_s3 + $0x158] sm:$0xf] }
 0x18b   : > { %12293 = vmatprep.mubr.bf16.mxu1 %v15187_v12  ;;  %18378 = vst [vmem:[#allocation178_spill] sm:$0xff] %v15253_v54  ;;  %v3825_v59 = vsel %vm14627_vm5, %v3823_v47, %v3824_v37  ;;  %v3841_v52 = vrot.slane %v13658_v62, 5  ;;  %v13659_v47 = vld [vmem:[%s13886_s3 + $0x150] sm:$0x1] }
 0x18c   : > { %v15208_v23 = vpop.f32.mrf.mxu0 }
 0x18d   : > { %12438 = vmatmul.mubr.bf16.gmra.mxu0 %v15194_v48  ;;  %18369 = vst [vmem:[#allocation169_spill] sm:$0xff] %v15208_v23  ;;  %v13655_v48 = vld [vmem:[%s13886_s3 + $0x14c] sm:$0xf] }
 0x18e   : > { %12441 = vmatprep.mubr.bf16.mxu0 %v15200_v13  ;;  %v3828_v13 = vrot.slane %v13652_v1, 5  ;;  %v15235_v20 = vpop.f32.mrf.mxu0 }
 0x18f   : > { %18374 = vst [vmem:[#allocation174_spill] sm:$0xff] %v15235_v20 }
 0x190   : > { %v3830_v63 = vrot.slane %v3828_v13, 4  ;;  %v15250_v55 = vpop.f32.mrf.mxu0  ;;  %v3829_v26 = vsel %vm14627_vm5, %v10526_v49, %v3828_v13 }
 0x191   : > { %18377 = vst [vmem:[#allocation177_spill] sm:$0xff] %v15250_v55 }
 0x192   : > { %12294 = vmatmul.mubr.bf16.gmra.mxu1 %v15213_v44  ;;  %v15241_v11 = vpop.f32.mrf.mxu1  ;;  %v3832_v40 = vsel %vm14627_vm5, %v3830_v63, %v3831_v46  ;;  %v15274_v37 = vpop.f32.mrf.mxu0  ;;  %v13660_v63 = vld [vmem:[%s13886_s3 + $0x154] sm:$0xf] }
 0x193   : > { %18376 = vst [vmem:[#allocation176_spill] sm:$0xff] %v15241_v11  ;;  %12297 = vmatprep.mubr.bf16.mxu1 %v15223_v9  ;;  %v3834_v11 = vrot.slane %v13655_v48, 5  ;;  %18382 = vst [vmem:[#allocation182_spill] sm:$0xff] %v15274_v37  ;;  %v10527_v44 = vrot.slane %v13660_v63, 9 }
 0x194   : > { %v15261_v24 = vpop.f32.mrf.mxu1 }
 0x195   : > { %12442 = vmatmul.mubr.bf16.gmra.mxu0 %v15233_v25  ;;  %18379 = vst [vmem:[#allocation179_spill] sm:$0xff] %v15261_v24  ;;  %v13657_v25 = vld [vmem:[%s13886_s3 + $0x130] sm:$0xf]  ;;  %v3837_v24 = vrot.slane %v13659_v47, 5  ;;  %v3836_v13 = vrot.slane %v3834_v11, 4 }
 0x196   : > { %12445 = vmatprep.mubr.bf16.mxu0 %v15239_v41  ;;  %v15265_v9 = vcombine.low %v13656_v35, %v13657_v25  ;;  %v15272_v41 = vcombine.low %v3822_v56, %v3825_v59  ;;  %v3833_v35 = vrot.slane %v3831_v46, 4  ;;  %v15278_v25 = vcombine.low %v3829_v26, %v3832_v40  ;;  %v15280_v49 = vpop.f32.mrf.mxu1  ;;  %v15285_v59 = vld [vmem:[%s13886_s3 + $0x15c] sm:$0xf]  ;;  %v13662_v46 = vld [vmem:[%s13886_s3 + $0x134] sm:$0xf] }
 0x197   : > { %18384 = vst [vmem:[#allocation184_spill] sm:$0xff] %v15280_v49  ;;  %v3843_v56 = vrot.slane %v3841_v52, 4  ;;  %v3844_v12 = vrot.slane %v15285_v59, 5  ;;  %v15293_v26 = vcombine.low %v13662_v46, %v14580_v8  ;;  %v3838_v49 = vsel %vm14627_vm5, %v3836_v13, %v3837_v24  ;;  %v13664_v46 = vld [vmem:[%s13886_s3 + $0x16c] sm:$0xf] }
 0x198   : > { %18380 = vst [vmem:[#allocation180_spill] sm:$0xff] %v15265_v9  ;;  %18381 = vst [vmem:[#allocation181_spill] sm:$0xff] %v15272_v41  ;;  %v3835_v40 = vsel %vm14627_vm5, %v3833_v35, %v3834_v11  ;;  %v15301_v29 = vpop.f32.mrf.mxu1  ;;  %v13665_v24 = vld [vmem:[%s13886_s3 + $0x164] sm:$0x1] }
 0x199   : > { %18383 = vst [vmem:[#allocation183_spill] sm:$0xff] %v15278_v25  ;;  %18386 = vst [vmem:[#allocation186_spill] sm:$0xff] %v15293_v26  ;;  %v3845_v8 = vsel %vm14627_vm5, %v3843_v56, %v3844_v12  ;;  %v15310_v11 = vcombine.low %v3835_v40, %v3838_v49  ;;  %v3850_v13 = vrot.slane %v13665_v24, 5  ;;  %v15323_v40 = vld [vmem:[%s13886_s3 + $0x170] sm:$0xf] }
 0x19a   : > { %12298 = vmatmul.mubr.bf16.gmra.mxu1 %v15253_v54  ;;  %18387 = vst [vmem:[#allocation187_spill] sm:$0xff] %v15301_v29  ;;  %v3846_v29 = vrot.slane %v3844_v12, 4 }
 0x19b   : > { %12301 = vmatprep.mubr.bf16.mxu1 %v15265_v9  ;;  %v13663_v9 = vld [vmem:[%s13886_s3 + $0x160] sm:$0xf]  ;;  %18389 = vst [vmem:[#allocation189_spill] sm:$0xff] %v15310_v11 }
 0x19c   : > { %v3847_v54 = vrot.slane %v13663_v9, 5 }
 0x19d   : > { %12446 = vmatmul.mubr.bf16.gmra.mxu0 %v15272_v41  ;;  %v15289_v47 = vpop.f32.mrf.mxu0  ;;  %v15303_v41 = vcombine.low %v13653_v10, %v13652_v1 }
 0x19e   : > { %18385 = vst [vmem:[#allocation185_spill] sm:$0xff] %v15289_v47  ;;  %12449 = vmatprep.mubr.bf16.mxu0 %v15278_v25  ;;  %v3842_v47 = vsel %vm14627_vm5, %v10527_v44, %v3841_v52  ;;  %v3854_v25 = vrot.slane %v13664_v46, 5  ;;  %v3849_v10 = vrot.slane %v3847_v54, 4  ;;  %v13666_v52 = vld [vmem:[%s13886_s3 + $0x168] sm:$0xf] }
 0x19f   : > { %18388 = vst [vmem:[#allocation188_spill] sm:$0xff] %v15303_v41  ;;  %v15312_v35 = vpop.f32.mrf.mxu0  ;;  %v15316_v1 = vcombine.low %v3842_v47, %v3845_v8  ;;  %v10528_v56 = vrot.slane %v13666_v52, 9  ;;  %v15330_v47 = vcombine.low %v15246_v60, %v13655_v48  ;;  %v3848_v8 = vsel %vm14627_vm5, %v3846_v29, %v3847_v54  ;;  %v13669_v60 = vld [vmem:[%s13886_s3 + $0x180] sm:$0xf] }
 0x1a0   : > { %18390 = vst [vmem:[#allocation190_spill] sm:$0xff] %v15312_v35  ;;  %v3856_v49 = vrot.slane %v3854_v25, 4  ;;  %v3857_v35 = vrot.slane %v15323_v40, 5  ;;  %v3851_v24 = vsel %vm14627_vm5, %v3849_v10, %v3850_v13  ;;  %v13670_v13 = vld [vmem:[%s13886_s3 + $0x178] sm:$0x1] }
 0x1a1   : > { %18391 = vst [vmem:[#allocation191_spill] sm:$0xff] %v15316_v1  ;;  %v15318_v44 = vpop.f32.mrf.mxu1  ;;  %v15327_v12 = vpop.f32.mrf.mxu0  ;;  %18394 = vst [vmem:[#allocation194_spill] sm:$0xff] %v15330_v47  ;;  %v15347_v29 = vcombine.low %v3848_v8, %v3851_v24  ;;  %v3863_v10 = vrot.slane %v13670_v13, 5  ;;  %v15360_v8 = vld [vmem:[%s13886_s3 + $0x184] sm:$0xf] }
 0x1a2   : > { %12302 = vmatmul.mubr.bf16.gmra.mxu1 %v15293_v26  ;;  %18392 = vst [vmem:[#allocation192_spill] sm:$0xff] %v15318_v44  ;;  %18393 = vst [vmem:[#allocation193_spill] sm:$0xff] %v15327_v12  ;;  %v13668_v44 = vld [vmem:[%s13886_s3 + $0x174] sm:$0xf]  ;;  %v3855_v12 = vsel %vm14627_vm5, %v10528_v56, %v3854_v25  ;;  %v3858_v48 = vsel %vm14627_vm5, %v3856_v49, %v3857_v35  ;;  %v13671_v56 = vld [vmem:[%s13886_s3 + $0x17c] sm:$0xf] }
 0x1a3   : > { %12305 = vmatprep.mubr.bf16.mxu1 %v15303_v41  ;;  %v3860_v41 = vrot.slane %v13668_v44, 5  ;;  %v15338_v26 = vpop.f32.mrf.mxu1  ;;  %18397 = vst [vmem:[#allocation197_spill] sm:$0xff] %v15347_v29  ;;  %v15349_v54 = vpop.f32.mrf.mxu0  ;;  %v10529_v49 = vrot.slane %v13671_v56, 9  ;;  %v3870_v24 = vrot.slane %v15360_v8, 5 }
 0x1a4   : > { %18395 = vst [vmem:[#allocation195_spill] sm:$0xff] %v15338_v26  ;;  %18398 = vst [vmem:[#allocation198_spill] sm:$0xff] %v15349_v54  ;;  %v3859_v26 = vrot.slane %v3857_v35, 4  ;;  %v15369_v35 = vld [vmem:[%s17845_s1 + $0x178] sm:$0xff]  }
 0x1a5   : > { %12450 = vmatmul.mubr.bf16.gmra.mxu0 %v15310_v11  ;;  %v15340_v11 = vcombine.low %v13660_v63, %v13658_v62  ;;  %v15353_v62 = vcombine.low %v3855_v12, %v3858_v48  ;;  %v3862_v63 = vrot.slane %v3860_v41, 4  ;;  %v15355_v25 = vpop.f32.mrf.mxu1  ;;  %18402 = vst [vmem:[#allocation202_spill] sm:$0xff] %v15369_v35  ;;  %v15372_v12 = vcombine.low %v15285_v59, %v13663_v9  ;;  %v13674_v59 = vld [vmem:[%s13886_s3 + $0x194] sm:$0xf] }
 0x1a6   : > { %12453 = vmatprep.mubr.bf16.mxu0 %v15316_v1  ;;  %v3867_v1 = vrot.slane %v13669_v60, 5  ;;  %18400 = vst [vmem:[#allocation200_spill] sm:$0xff] %v15355_v25  ;;  %v3861_v48 = vsel %vm14627_vm5, %v3859_v26, %v3860_v41  ;;  %12801 = vmatprep.subr.bf16.mxu1 %v15369_v35  ;;  %v15393_v41 = vld [vmem:[%s17845_s1 + $0x1b8] sm:$0xff]  }
 0x1a7   : > { %18396 = vst [vmem:[#allocation196_spill] sm:$0xff] %v15340_v11  ;;  %18399 = vst [vmem:[#allocation199_spill] sm:$0xff] %v15353_v62  ;;  %v3864_v25 = vsel %vm14627_vm5, %v3862_v63, %v3863_v10  ;;  %12945 = vmatprep.subr.bf16.mxu0 %v15393_v41 }
 0x1a8   : > { %v3869_v37 = vrot.slane %v3867_v1, 4  ;;  %18403 = vst [vmem:[#allocation203_spill] sm:$0xff] %v15372_v12  ;;  %v3868_v54 = vsel %vm14627_vm5, %v10529_v49, %v3867_v1  ;;  %18406 = vst [vmem:[#allocation206_spill] sm:$0xff] %v15393_v41  ;;  %v15395_v26 = vcombine.low %v3861_v48, %v3864_v25  ;;  %v13675_v1 = vld [vmem:[%s13886_s3 + $0x18c] sm:$0x1] }
 0x1aa   : > { %12306 = vmatmul.mubr.bf16.gmra.mxu1 %v15330_v47  ;;  %v15380_v47 = vpop.f32.mrf.mxu1  ;;  %v3871_v9 = vsel %vm14627_vm5, %v3869_v37, %v3870_v24  ;;  %18407 = vst [vmem:[#allocation207_spill] sm:$0xff] %v15395_v26  ;;  %v3872_v37 = vrot.slane %v3870_v24, 4  ;;  %v15413_v24 = vcombine.low %v15323_v40, %v13668_v44  ;;  %v13679_v40 = vld [vmem:[%s13886_s3 + $0x1a8] sm:$0xf] }
 0x1ab   : > { %12309 = vmatprep.mubr.bf16.mxu1 %v15340_v11  ;;  %18404 = vst [vmem:[#allocation204_spill] sm:$0xff] %v15380_v47  ;;  %v15402_v10 = vcombine.low %v3868_v54, %v3871_v9  ;;  %v13676_v47 = vld [vmem:[%s13886_s3 + $0x190] sm:$0xf] }
 0x1ac   : > { %v10530_v25 = vrot.slane %v13676_v47, 9  ;;  %18412 = vst [vmem:[#allocation212_spill] sm:$0xff] %v15413_v24 }
 0x1ad   : > { %12454 = vmatmul.mubr.bf16.gmra.mxu0 %v15347_v29  ;;  %v15364_v13 = vpop.f32.mrf.mxu0  ;;  %v13673_v29 = vld [vmem:[%s13886_s3 + $0x188] sm:$0xf]  ;;  %18409 = vst [vmem:[#allocation209_spill] sm:$0xff] %v15402_v10 }
 0x1ae   : > { %18401 = vst [vmem:[#allocation201_spill] sm:$0xff] %v15364_v13  ;;  %12457 = vmatprep.mubr.bf16.mxu0 %v15353_v62  ;;  %v3873_v11 = vrot.slane %v13673_v29, 5  ;;  %v15382_v13 = vcombine.low %v13666_v52, %v13664_v46  ;;  %v3880_v62 = vrot.slane %v13674_v59, 5  ;;  %v3876_v52 = vrot.slane %v13675_v1, 5 }
 0x1af   : > { %v15397_v46 = vpop.f32.mrf.mxu0 }
 0x1b0   : > { %18405 = vst [vmem:[#allocation205_spill] sm:$0xff] %v15382_v13  ;;  %18408 = vst [vmem:[#allocation208_spill] sm:$0xff] %v15397_v46  ;;  %v3875_v63 = vrot.slane %v3873_v11, 4  ;;  %v3882_v48 = vrot.slane %v3880_v62, 4  ;;  %v13677_v46 = vld [vmem:[%s13886_s3 + $0x198] sm:$0xf]  ;;  %v3874_v54 = vsel %vm14627_vm5, %v3872_v37, %v3873_v11 }
 0x1b1   : > { %v15404_v49 = vpop.f32.mrf.mxu1  ;;  %v3883_v55 = vrot.slane %v13677_v46, 5  ;;  %v15410_v1 = vpop.f32.mrf.mxu0 }
 0x1b2   : > { %12310 = vmatmul.mubr.bf16.gmra.mxu1 %v15372_v12  ;;  %18410 = vst [vmem:[#allocation210_spill] sm:$0xff] %v15404_v49  ;;  %18411 = vst [vmem:[#allocation211_spill] sm:$0xff] %v15410_v1  ;;  %v3877_v9 = vsel %vm14627_vm5, %v3875_v63, %v3876_v52  ;;  %v13678_v49 = vld [vmem:[%s13886_s3 + $0x19c] sm:$0xf]  ;;  %v3881_v1 = vsel %vm14627_vm5, %v10530_v25, %v3880_v62  ;;  %v13680_v52 = vld [vmem:[%s13886_s3 + $0x1a0] sm:$0x1] }
 0x1b3   : > { %12313 = vmatprep.mubr.bf16.mxu1 %v15382_v13  ;;  %v3886_v13 = vrot.slane %v13678_v49, 5  ;;  %v15421_v12 = vpop.f32.mrf.mxu1  ;;  %v3884_v44 = vsel %vm14627_vm5, %v3882_v48, %v3883_v55  ;;  %v15430_v11 = vcombine.low %v3874_v54, %v3877_v9  ;;  %v15432_v37 = vpop.f32.mrf.mxu0  ;;  %v3889_v63 = vrot.slane %v13680_v52, 5  ;;  %v13681_v25 = vld [vmem:[%s13886_s3 + $0x1a4] sm:$0xf]  ;;  %v13682_v9 = vld [vmem:[%s13886_s3 + $0x1ac] sm:$0xf] }
 0x1b4   : > { %18413 = vst [vmem:[#allocation213_spill] sm:$0xff] %v15421_v12  ;;  %18416 = vst [vmem:[#allocation216_spill] sm:$0xff] %v15432_v37  ;;  %v3885_v12 = vrot.slane %v3883_v55, 4  ;;  %v10531_v48 = vrot.slane %v13681_v25, 9  ;;  %v3896_v20 = vrot.slane %v13682_v9, 5  ;;  %v15447_v55 = vcombine.low %v15360_v8, %v13673_v29 }
 0x1b5   : > { %12458 = vmatmul.mubr.bf16.gmra.mxu0 %v15395_v26  ;;  %v15423_v26 = vcombine.low %v13671_v56, %v13669_v60  ;;  %18415 = vst [vmem:[#allocation215_spill] sm:$0xff] %v15430_v11  ;;  %v15436_v60 = vcombine.low %v3881_v1, %v3884_v44  ;;  %v3888_v56 = vrot.slane %v3886_v13, 4  ;;  %v15438_v62 = vpop.f32.mrf.mxu1  ;;  %v13684_v8 = vld [vmem:[%s13886_s3 + $0x1bc] sm:$0xf] }
 0x1b6   : > { %12461 = vmatprep.mubr.bf16.mxu0 %v15402_v10  ;;  %v3893_v10 = vrot.slane %v13679_v40, 5  ;;  %18418 = vst [vmem:[#allocation218_spill] sm:$0xff] %v15438_v62  ;;  %18420 = vst [vmem:[#allocation220_spill] sm:$0xff] %v15447_v55  ;;  %v3887_v1 = vsel %vm14627_vm5, %v3885_v12, %v3886_v13 }
 0x1b7   : > { %18414 = vst [vmem:[#allocation214_spill] sm:$0xff] %v15423_v26  ;;  %18417 = vst [vmem:[#allocation217_spill] sm:$0xff] %v15436_v60  ;;  %v3890_v44 = vsel %vm14627_vm5, %v3888_v56, %v3889_v63  ;;  %v15454_v62 = vpop.f32.mrf.mxu1  ;;  %v13685_v63 = vld [vmem:[%s13886_s3 + $0x1b4] sm:$0x1] }
 0x1b8   : > { %v3895_v54 = vrot.slane %v3893_v10, 4  ;;  %18421 = vst [vmem:[#allocation221_spill] sm:$0xff] %v15454_v62  ;;  %v15464_v13 = vcombine.low %v3887_v1, %v3890_v44  ;;  %v3902_v56 = vrot.slane %v13685_v63, 5  ;;  %v3898_v62 = vrot.slane %v3896_v20, 4  ;;  %v13687_v44 = vld [vmem:[%s13886_s3 + $0x1c0] sm:$0xf] }
 0x1b9   : > { %v3909_v37 = vrot.slane %v13687_v44, 5 }
 0x1ba   : > { %12314 = vmatmul.mubr.bf16.gmra.mxu1 %v15413_v24  ;;  %v3897_v29 = vsel %vm14627_vm5, %v3895_v54, %v3896_v20  ;;  %18423 = vst [vmem:[#allocation223_spill] sm:$0xff] %v15464_v13  ;;  %v15480_v20 = vcombine.low %v13677_v46, %v13678_v49  ;;  %v13689_v49 = vld [vmem:[%s13886_s3 + $0x1d0] sm:$0xf] }
 0x1bb   : > { %12317 = vmatprep.mubr.bf16.mxu1 %v15423_v26  ;;  %v13683_v26 = vld [vmem:[%s13886_s3 + $0x1b0] sm:$0xf] }
 0x1bc   : > { %v3899_v24 = vrot.slane %v13683_v26, 5  ;;  %18428 = vst [vmem:[#allocation228_spill] sm:$0xff] %v15480_v20 }
 0x1bd   : > { %12462 = vmatmul.mubr.bf16.gmra.mxu0 %v15430_v11  ;;  %v15444_v52 = vpop.f32.mrf.mxu0  ;;  %v15457_v11 = vcombine.low %v13676_v47, %v13674_v59 }
 0x1be   : > { %18419 = vst [vmem:[#allocation219_spill] sm:$0xff] %v15444_v52  ;;  %12465 = vmatprep.mubr.bf16.mxu0 %v15436_v60  ;;  %v3894_v52 = vsel %vm14627_vm5, %v10531_v48, %v3893_v10  ;;  %v3906_v60 = vrot.slane %v13684_v8, 5  ;;  %v3901_v10 = vrot.slane %v3899_v24, 4  ;;  %v13686_v48 = vld [vmem:[%s13886_s3 + $0x1b8] sm:$0xf] }
 0x1bf   : > { %18422 = vst [vmem:[#allocation222_spill] sm:$0xff] %v15457_v11  ;;  %v15466_v12 = vpop.f32.mrf.mxu0  ;;  %v15470_v47 = vcombine.low %v3894_v52, %v3897_v29  ;;  %v10532_v54 = vrot.slane %v13686_v48, 9  ;;  %v3900_v52 = vsel %vm14627_vm5, %v3898_v62, %v3899_v24 }
 0x1c0   : > { %18424 = vst [vmem:[#allocation224_spill] sm:$0xff] %v15466_v12  ;;  %v3908_v1 = vrot.slane %v3906_v60, 4  ;;  %v3903_v29 = vsel %vm14627_vm5, %v3901_v10, %v3902_v56  ;;  %v15490_v12 = vcombine.low %v13681_v25, %v13679_v40  ;;  %v13690_v56 = vld [vmem:[%s13886_s3 + $0x1c8] sm:$0x1]  ;;  %v3911_v40 = vrot.slane %v3909_v37, 4 }
 0x1c1   : > { %18425 = vst [vmem:[#allocation225_spill] sm:$0xff] %v15470_v47  ;;  %v15478_v63 = vpop.f32.mrf.mxu0  ;;  %v15497_v24 = vcombine.low %v3900_v52, %v3903_v29  ;;  %v3915_v10 = vrot.slane %v13690_v56, 5  ;;  %v15510_v29 = vld [vmem:[%s13886_s3 + $0x1d4] sm:$0xf] }
 0x1c2   : > { %12318 = vmatmul.mubr.bf16.gmra.mxu1 %v15447_v55  ;;  %v15472_v59 = vpop.f32.mrf.mxu1  ;;  %18427 = vst [vmem:[#allocation227_spill] sm:$0xff] %v15478_v63  ;;  %18430 = vst [vmem:[#allocation230_spill] sm:$0xff] %v15490_v12  ;;  %v3910_v46 = vsel %vm14627_vm5, %v3908_v1, %v3909_v37  ;;  %v15516_v37 = vcombine.low %v13682_v9, %v13683_v26  ;;  %v15526_v63 = vcombine.low %v13686_v48, %v13684_v8  ;;  %v13694_v9 = vld [vmem:[%s13886_s3 + $0x1e4] sm:$0xf] }
 0x1c3   : > { %18426 = vst [vmem:[#allocation226_spill] sm:$0xff] %v15472_v59  ;;  %12321 = vmatprep.mubr.bf16.mxu1 %v15457_v11  ;;  %v13688_v11 = vld [vmem:[%s13886_s3 + $0x1c4] sm:$0xf]  ;;  %18431 = vst [vmem:[#allocation231_spill] sm:$0xff] %v15497_v24  ;;  %v15499_v62 = vpop.f32.mrf.mxu0 }
 0x1c4   : > { %v15487_v59 = vpop.f32.mrf.mxu1  ;;  %v3912_v55 = vrot.slane %v13688_v11, 5  ;;  %18432 = vst [vmem:[#allocation232_spill] sm:$0xff] %v15499_v62  ;;  %v3922_v62 = vrot.slane %v15510_v29, 5  ;;  %18436 = vst [vmem:[#allocation236_spill] sm:$0xff] %v15516_v37 }
 0x1c5   : > { %12466 = vmatmul.mubr.bf16.gmra.mxu0 %v15464_v13  ;;  %18429 = vst [vmem:[#allocation229_spill] sm:$0xff] %v15487_v59  ;;  %v3907_v13 = vsel %vm14627_vm5, %v10532_v54, %v3906_v60  ;;  %v13691_v54 = vld [vmem:[%s13886_s3 + $0x1cc] sm:$0xf]  ;;  %18438 = vst [vmem:[#allocation238_spill] sm:$0xff] %v15526_v63 }
 0x1c6   : > { %12469 = vmatprep.mubr.bf16.mxu0 %v15470_v47  ;;  %v3919_v47 = vrot.slane %v13689_v49, 5  ;;  %v15503_v59 = vpop.f32.mrf.mxu1  ;;  %v15505_v25 = vcombine.low %v3907_v13, %v3910_v46  ;;  %v3914_v60 = vrot.slane %v3912_v55, 4  ;;  %v10533_v1 = vrot.slane %v13691_v54, 9 }
 0x1c7   : > { %18433 = vst [vmem:[#allocation233_spill] sm:$0xff] %v15503_v59  ;;  %v3913_v46 = vsel %vm14627_vm5, %v3911_v40, %v3912_v55  ;;  %v13695_v40 = vld [vmem:[%s13886_s3 + $0x1dc] sm:$0x1]  ;;  %v3924_v8 = vrot.slane %v3922_v62, 4 }
 0x1c8   : > { %18434 = vst [vmem:[#allocation234_spill] sm:$0xff] %v15505_v25  ;;  %v3921_v52 = vrot.slane %v3919_v47, 4  ;;  %v15518_v13 = vpop.f32.mrf.mxu1  ;;  %v3916_v59 = vsel %vm14627_vm5, %v3914_v60, %v3915_v10  ;;  %v3928_v10 = vrot.slane %v13695_v40, 5 }
 0x1c9   : > { %18437 = vst [vmem:[#allocation237_spill] sm:$0xff] %v15518_v13  ;;  %v15533_v13 = vcombine.low %v3913_v46, %v3916_v59  ;;  %v15546_v46 = vld [vmem:[%s13886_s3 + $0x1e8] sm:$0xf] }
 0x1ca   : > { %12322 = vmatmul.mubr.bf16.gmra.mxu1 %v15480_v20  ;;  %v3923_v26 = vsel %vm14627_vm5, %v3921_v52, %v3922_v62  ;;  %v15552_v62 = vcombine.low %v13687_v44, %v13688_v11  ;;  %v13699_v44 = vld [vmem:[%s13886_s3 + $0x1f8] sm:$0xf] }
 0x1cb   : > { %12325 = vmatprep.mubr.bf16.mxu1 %v15490_v12  ;;  %v13693_v12 = vld [vmem:[%s13886_s3 + $0x1d8] sm:$0xf]  ;;  %18439 = vst [vmem:[#allocation239_spill] sm:$0xff] %v15533_v13 }
 0x1cc   : > { %v3925_v20 = vrot.slane %v13693_v12, 5  ;;  %18444 = vst [vmem:[#allocation244_spill] sm:$0xff] %v15552_v62 }
 0x1cd   : > { %12470 = vmatmul.mubr.bf16.gmra.mxu0 %v15497_v24  ;;  %v15514_v56 = vpop.f32.mrf.mxu0  ;;  %v3920_v24 = vsel %vm14627_vm5, %v10533_v1, %v3919_v47  ;;  %v13696_v1 = vld [vmem:[%s13886_s3 + $0x1e0] sm:$0xf] }
 0x1ce   : > { %18435 = vst [vmem:[#allocation235_spill] sm:$0xff] %v15514_v56  ;;  %12473 = vmatprep.mubr.bf16.mxu0 %v15505_v25  ;;  %v3932_v25 = vrot.slane %v13694_v9, 5  ;;  %v15541_v48 = vcombine.low %v3920_v24, %v3923_v26  ;;  %v3927_v47 = vrot.slane %v3925_v20, 4  ;;  %v10534_v52 = vrot.slane %v13696_v1, 9 }
 0x1cf   : > { %v15535_v55 = vpop.f32.mrf.mxu0  ;;  %v3926_v26 = vsel %vm14627_vm5, %v3924_v8, %v3925_v20  ;;  %v15562_v56 = vcombine.low %v13691_v54, %v13689_v49  ;;  %v13700_v8 = vld [vmem:[%s13886_s3 + $0x1f0] sm:$0x1] }
 0x1d0   : > { %18440 = vst [vmem:[#allocation240_spill] sm:$0xff] %v15535_v55  ;;  %18442 = vst [vmem:[#allocation242_spill] sm:$0xff] %v15541_v48  ;;  %v3934_v59 = vrot.slane %v3932_v25, 4  ;;  %v3935_v55 = vrot.slane %v15546_v46, 5 }
 0x1d1   : > { %v15539_v60 = vpop.f32.mrf.mxu1  ;;  %v15550_v40 = vpop.f32.mrf.mxu0  ;;  %18446 = vst [vmem:[#allocation246_spill] sm:$0xff] %v15562_v56 }
 0x1d2   : > { %12326 = vmatmul.mubr.bf16.gmra.mxu1 %v15516_v37  ;;  %18441 = vst [vmem:[#allocation241_spill] sm:$0xff] %v15539_v60  ;;  %18443 = vst [vmem:[#allocation243_spill] sm:$0xff] %v15550_v40  ;;  %v3929_v60 = vsel %vm14627_vm5, %v3927_v47, %v3928_v10  ;;  %v3936_v11 = vsel %vm14627_vm5, %v3934_v59, %v3935_v55  ;;  %v3941_v10 = vrot.slane %v13700_v8, 5  ;;  %v3937_v49 = vrot.slane %v3935_v55, 4 }
 0x1d3   : > { %12329 = vmatprep.mubr.bf16.mxu1 %v15526_v63  ;;  %v15554_v24 = vpop.f32.mrf.mxu1  ;;  %v13698_v63 = vld [vmem:[%s13886_s3 + $0x1ec] sm:$0xf]  ;;  %v15571_v20 = vcombine.low %v3926_v26, %v3929_v60 }
 0x1d4   : > { %18445 = vst [vmem:[#allocation245_spill] sm:$0xff] %v15554_v24  ;;  %v3938_v37 = vrot.slane %v13698_v63, 5  ;;  %v15569_v24 = vpop.f32.mrf.mxu0 }
 0x1d5   : > { %12474 = vmatmul.mubr.bf16.gmra.mxu0 %v15533_v13  ;;  %v3933_v13 = vsel %vm14627_vm5, %v10534_v52, %v3932_v25  ;;  %18447 = vst [vmem:[#allocation247_spill] sm:$0xff] %v15569_v24  ;;  %18448 = vst [vmem:[#allocation248_spill] sm:$0xff] %v15571_v20  ;;  %v15575_v47 = vpop.f32.mrf.mxu1  ;;  %v13701_v52 = vld [vmem:[%s13886_s3 + $0x1f4] sm:$0xf]  ;;  %v15582_v24 = vld [vmem:[%s13886_s3 + $0x1fc] sm:$0xf] }
 0x1d6   : > { %12477 = vmatprep.mubr.bf16.mxu0 %v15541_v48  ;;  %v3945_v48 = vrot.slane %v13699_v44, 5  ;;  %18449 = vst [vmem:[#allocation249_spill] sm:$0xff] %v15575_v47  ;;  %v15577_v54 = vcombine.low %v3933_v13, %v3936_v11  ;;  %v3940_v25 = vrot.slane %v3938_v37, 4  ;;  %v10535_v59 = vrot.slane %v13701_v52, 9  ;;  %v13703_v47 = vld [vmem:[%s13886_s3 + $0x200] sm:$0xf] }
 0x1d7   : > { %v3948_v60 = vrot.slane %v15582_v24, 5  ;;  %v15588_v55 = vpop.f32.mrf.mxu1  ;;  %v15591_v13 = vcombine.low %v15510_v29, %v13693_v12  ;;  %v3939_v11 = vsel %vm14627_vm5, %v3937_v49, %v3938_v37  ;;  %v13704_v29 = vld [vmem:[%s13886_s3 + $0x20c] sm:$0xf] }
 0x1d8   : > { %18450 = vst [vmem:[#allocation250_spill] sm:$0xff] %v15577_v54  ;;  %v3947_v40 = vrot.slane %v3945_v48, 4  ;;  %18452 = vst [vmem:[#allocation252_spill] sm:$0xff] %v15588_v55  ;;  %v3942_v8 = vsel %vm14627_vm5, %v3940_v25, %v3941_v10  ;;  %v13705_v10 = vld [vmem:[%s13886_s3 + $0x204] sm:$0x1] }
 0x1d9   : > { %18453 = vst [vmem:[#allocation253_spill] sm:$0xff] %v15591_v13  ;;  %v15610_v49 = vcombine.low %v3939_v11, %v3942_v8  ;;  %v3954_v25 = vrot.slane %v13705_v10, 5  ;;  %v15623_v11 = vld [vmem:[%s13886_s3 + $0x210] sm:$0xf] }
 0x1da   : > { %12330 = vmatmul.mubr.bf16.gmra.mxu1 %v15552_v62  ;;  %v3949_v12 = vsel %vm14627_vm5, %v3947_v40, %v3948_v60  ;;  %v13706_v40 = vld [vmem:[%s13886_s3 + $0x208] sm:$0xf]  ;;  %v3961_v8 = vrot.slane %v15623_v11, 5 }
 0x1db   : > { %12333 = vmatprep.mubr.bf16.mxu1 %v15562_v56  ;;  %v3951_v56 = vrot.slane %v13703_v47, 5  ;;  %18457 = vst [vmem:[#allocation257_spill] sm:$0xff] %v15610_v49 }
 0x1dd   : > { %v15585_v26 = vpop.f32.mrf.mxu0  ;;  %12478 = vmatmul.mubr.bf16.gmra.mxu0 %v15571_v20  ;;  %v3946_v20 = vsel %vm14627_vm5, %v10535_v59, %v3945_v48  ;;  %v3953_v48 = vrot.slane %v3951_v56, 4 }
 0x1de   : > { %18451 = vst [vmem:[#allocation251_spill] sm:$0xff] %v15585_v26  ;;  %12481 = vmatprep.mubr.bf16.mxu0 %v15577_v54  ;;  %v15601_v26 = vcombine.low %v13696_v1, %v13694_v9  ;;  %v3958_v54 = vrot.slane %v13704_v29, 5  ;;  %v3950_v9 = vrot.slane %v3948_v60, 4  ;;  %v15616_v1 = vcombine.low %v3946_v20, %v3949_v12 }
 0x1df   : > { %v15599_v62 = vpop.f32.mrf.mxu0  ;;  %v15632_v60 = vcombine.low %v15546_v46, %v13698_v63 }
 0x1e0   : > { %18454 = vst [vmem:[#allocation254_spill] sm:$0xff] %v15599_v62  ;;  %18455 = vst [vmem:[#allocation255_spill] sm:$0xff] %v15601_v26  ;;  %v10536_v62 = vrot.slane %v13706_v40, 9  ;;  %v3952_v12 = vsel %vm14627_vm5, %v3950_v9, %v3951_v56 }
 0x1e1   : > { %v15608_v37 = vpop.f32.mrf.mxu0  ;;  %18459 = vst [vmem:[#allocation259_spill] sm:$0xff] %v15616_v1  ;;  %18463 = vst [vmem:[#allocation263_spill] sm:$0xff] %v15632_v60 }
 0x1e2   : > { %18456 = vst [vmem:[#allocation256_spill] sm:$0xff] %v15608_v37  ;;  %v15613_v55 = vpop.f32.mrf.mxu1  ;;  %12334 = vmatmul.mubr.bf16.gmra.mxu1 %v15591_v13  ;;  %v3960_v37 = vrot.slane %v3958_v54, 4  ;;  %v15640_v13 = vld [vmem:[%s13886_s3 + $0x214] sm:$0xf]  ;;  %v3959_v63 = vsel %vm14627_vm5, %v10536_v62, %v3958_v54 }
 0x1e3   : > { %18458 = vst [vmem:[#allocation258_spill] sm:$0xff] %v15613_v55  ;;  %v15618_v59 = vpop.f32.mrf.mxu0  ;;  %12337 = vmatprep.mubr.bf16.mxu1 %v15601_v26  ;;  %v3955_v26 = vsel %vm14627_vm5, %v3953_v48, %v3954_v25  ;;  %v13710_v25 = vld [vmem:[%s13886_s3 + $0x218] sm:$0x1] }
 0x1e4   : > { %18460 = vst [vmem:[#allocation260_spill] sm:$0xff] %v15618_v59  ;;  %v15626_v10 = vpop.f32.mrf.mxu1  ;;  %v3962_v46 = vsel %vm14627_vm5, %v3960_v37, %v3961_v8  ;;  %v3967_v48 = vrot.slane %v13710_v25, 5  ;;  %v15656_v23 = vcombine.low %v3952_v12, %v3955_v26  ;;  %v13711_v37 = vld [vmem:[%s13886_s3 + $0x21c] sm:$0xf]  ;;  %v15665_v25 = vld [vmem:[%s13886_s3 + $0x224] sm:$0xf] }
 0x1e5   : > { %18461 = vst [vmem:[#allocation261_spill] sm:$0xff] %v15626_v10  ;;  %v12387_v55 = vpop.f32.mrf.mxu0  ;;  %12482 = vmatmul.mubr.bf16.gmra.mxu0 %v15610_v49  ;;  %v3964_v10 = vrot.slane %v15640_v13, 5  ;;  %v15643_v49 = vcombine.low %v13701_v52, %v13699_v44  ;;  %v3963_v52 = vrot.slane %v3961_v8, 4  ;;  %v15659_v62 = vcombine.low %v3959_v63, %v3962_v46 }
 0x1e6   : > { %v15629_v20 = vpop.f32.mrf.mxu1  ;;  %12485 = vmatprep.mubr.bf16.mxu0 %v15616_v1  ;;  %v15650_v1 = vld [vmem:[%s13886_s3 + $0x220] sm:$0xf]  ;;  %18466 = vst [vmem:[#allocation266_spill] sm:$0xff] %v15656_v23  ;;  %v10537_v2 = vrot.slane %v13711_v37, 9  ;;  %v3974_v26 = vrot.slane %v15665_v25, 5  ;;  %v15672_v63 = vcombine.low %v15582_v24, %v13703_v47 }
 0x1e7   : > { %18462 = vst [vmem:[#allocation262_spill] sm:$0xff] %v15629_v20  ;;  %v4389_v59 = vpop.f32.mrf.mxu0  ;;  %18464 = vst [vmem:[#allocation264_spill] sm:$0xff] %v15643_v49  ;;  %v3971_v56 = vrot.slane %v15650_v1, 5  ;;  %v3966_v54 = vrot.slane %v3964_v10, 4  ;;  %v15685_v24 = vld [vmem:[%s13886_s3 + $0x228] sm:$0xf] }
 0x1e8   : > { %v15653_v9 = vpop.f32.mrf.mxu1  ;;  %18467 = vst [vmem:[#allocation267_spill] sm:$0xff] %v15659_v62  ;;  %v3977_v47 = vrot.slane %v15685_v24, 5 }
 0x1e9   : > { %18465 = vst [vmem:[#allocation265_spill] sm:$0xff] %v15653_v9  ;;  %v12388_v20 = vpop.f32.mrf.mxu0  ;;  %v3973_v9 = vrot.slane %v3971_v56, 4 }
 0x1ea   : > { %v12243_v44 = vpop.f32.mrf.mxu1  ;;  %12338 = vmatmul.mubr.bf16.gmra.mxu1 %v15632_v60 }
 0x1eb   : > { %v3081_v42 = vadd.f32 %v12243_v44, %v14461_v33  ;;  %v4392_v35 = vpop.f32.mrf.mxu0  ;;  %12341 = vmatprep.mubr.bf16.mxu1 %v15643_v49  ;;  %v15675_v33 = vcombine.low %v13706_v40, %v13704_v29  ;;  %v3965_v49 = vsel %vm14627_vm5, %v3963_v52, %v3964_v10  ;;  %v15694_v10 = vld [vmem:[%s13886_s3 + $0x234] sm:$0xf] }
 0x1ec   : > { %v3072_v12 = vpop.f32.mrf.mxu1 }
 0x1ed   : > { %v15668_v41 = vadd.f32 %v12387_v55, %v3081_v42  ;;  %v3073_v8 = vadd.f32 %v3072_v12, %v14469_v30  ;;  %v12391_v46 = vpop.f32.mrf.mxu0  ;;  %12486 = vmatmul.mubr.bf16.gmra.mxu0 %v15656_v23  ;;  %v3968_v42 = vsel %vm14627_vm5, %v3966_v54, %v3967_v48  ;;  %v3972_v30 = vsel %vm14627_vm5, %v10537_v2, %v3971_v56  ;;  %v13715_v54 = vld [vmem:[%s13886_s3 + $0x22c] sm:$0x1] }
 0x1ee   : > { %v12244_v44 = vpop.f32.mrf.mxu1  ;;  %12489 = vmatprep.mubr.bf16.mxu0 %v15659_v62  ;;  %v3975_v12 = vsel %vm14627_vm5, %v3973_v9, %v3974_v26  ;;  %v3984_v48 = vrot.slane %v15694_v10, 5  ;;  %v3980_v2 = vrot.slane %v13715_v54, 5  ;;  %v15701_v62 = vcombine.low %v3965_v49, %v3968_v42  ;;  %v15712_v49 = vld [vmem:[%s13886_s3 + $0x238] sm:$0xf] }
 0x1ef   : > { %18468 = vst [vmem:[#allocation268_spill] sm:$0xff] %v15668_v41  ;;  %v15688_v55 = vadd.f32 %v4389_v59, %v3073_v8  ;;  %v3084_v29 = vadd.f32 %v12244_v44, %v14480_v3  ;;  %v4405_v40 = vpop.f32.mrf.mxu0  ;;  %v3976_v44 = vrot.slane %v3974_v26, 4  ;;  %v15704_v9 = vcombine.low %v3972_v30, %v3975_v12 }
 0x1f0   : > { %v3075_v52 = vpop.f32.mrf.mxu1  ;;  %18470 = vst [vmem:[#allocation270_spill] sm:$0xff] %v15701_v62  ;;  %v3979_v23 = vrot.slane %v3977_v47, 4  ;;  %v3987_v42 = vrot.slane %v15712_v49, 5  ;;  %v15724_v12 = vcombine.low %v13711_v37, %v15650_v1 }
 0x1f1   : > { %18469 = vst [vmem:[#allocation269_spill] sm:$0xff] %v15688_v55  ;;  %v15698_v56 = vadd.f32 %v12388_v20, %v3084_v29  ;;  %v3076_v59 = vadd.f32 %v3075_v52, %v14497_v34  ;;  %v12392_v8 = vpop.f32.mrf.mxu0  ;;  %18471 = vst [vmem:[#allocation271_spill] sm:$0xff] %v15704_v9  ;;  %v13716_v55 = vld [vmem:[%s13886_s3 + $0x230] sm:$0xf]  ;;  %v3986_v34 = vrot.slane %v3984_v48, 4 }
 0x1f2   : > { %v12247_v3 = vpop.f32.mrf.mxu1  ;;  %12342 = vmatmul.mubr.bf16.gmra.mxu1 %v15672_v63  ;;  %v10538_v41 = vrot.slane %v13716_v55, 9 }
 0x1f3   : > { %v15707_v60 = vadd.f32 %v4392_v35, %v3076_v59  ;;  %v3097_v20 = vadd.f32 %v12247_v3, %v14508_v32  ;;  %v4408_v29 = vpop.f32.mrf.mxu0  ;;  %12345 = vmatprep.mubr.bf16.mxu1 %v15675_v33  ;;  %v15720_v35 = vcombine.low %v15623_v11, %v15640_v13  ;;  %v15734_v11 = vld [vmem:[%s13886_s3 + $0x23c] sm:$0xf] }
 0x1f4   : > { %v3088_v52 = vpop.f32.mrf.mxu1  ;;  %v3985_v13 = vsel %vm14627_vm5, %v10538_v41, %v3984_v48  ;;  %v3990_v59 = vrot.slane %v15734_v11, 5 }
 0x1f5   : > { %v15715_v26 = vadd.f32 %v12391_v46, %v3097_v20  ;;  %v3089_v30 = vadd.f32 %v3088_v52, %v14521_v22  ;;  %v12395_v32 = vpop.f32.mrf.mxu0  ;;  %12490 = vmatmul.mubr.bf16.gmra.mxu0 %v15701_v62  ;;  %v3978_v46 = vsel %vm14627_vm5, %v3976_v44, %v3977_v47  ;;  %v3981_v22 = vsel %vm14627_vm5, %v3979_v23, %v3980_v2  ;;  %v15743_v47 = vld [vmem:[%s13886_s3 + $0x248] sm:$0xf]  ;;  %v13720_v44 = vld [vmem:[%s13886_s3 + $0x240] sm:$0x1]  ;;  %v13721_v62 = vld [vmem:[%s13886_s3 + $0x244] sm:$0xf] }
 0x1f6   : > { %v12248_v54 = vpop.f32.mrf.mxu1  ;;  %12493 = vmatprep.mubr.bf16.mxu0 %v15704_v9  ;;  %v3988_v20 = vsel %vm14627_vm5, %v3986_v34, %v3987_v42  ;;  %v3997_v23 = vrot.slane %v15743_v47, 5  ;;  %v3993_v41 = vrot.slane %v13720_v44, 5  ;;  %v3992_v9 = vrot.slane %v3990_v59, 4 }
 0x1f7   : > { %18472 = vst [vmem:[#allocation272_spill] sm:$0xff] %v15715_v26  ;;  %v15737_v3 = vadd.f32 %v4405_v40, %v3089_v30  ;;  %v3100_v1 = vadd.f32 %v12248_v54, %v14533_v51  ;;  %v4421_v37 = vpop.f32.mrf.mxu0  ;;  %v15750_v30 = vcombine.low %v3978_v46, %v3981_v22  ;;  %v3989_v54 = vrot.slane %v3987_v42, 4  ;;  %v15761_v46 = vld [vmem:[%s13886_s3 + $0x24c] sm:$0xf] }
 0x1f8   : > { %v3091_v2 = vpop.f32.mrf.mxu1  ;;  %v15753_v34 = vcombine.low %v3985_v13, %v3988_v20  ;;  %v4000_v22 = vrot.slane %v15761_v46, 5  ;;  %v15773_v20 = vcombine.low %v13716_v55, %v15694_v10 }
 0x1f9   : > { %18473 = vst [vmem:[#allocation273_spill] sm:$0xff] %v15737_v3  ;;  %v15747_v48 = vadd.f32 %v12392_v8, %v3100_v1  ;;  %v3092_v40 = vadd.f32 %v3091_v2, %v14555_v19  ;;  %v12396_v52 = vpop.f32.mrf.mxu0  ;;  %18474 = vst [vmem:[#allocation274_spill] sm:$0xff] %v15750_v30  ;;  %v10539_v3 = vrot.slane %v13721_v62, 9  ;;  %v3999_v19 = vrot.slane %v3997_v23, 4 }
 0x1fa   : > { %v12251_v51 = vpop.f32.mrf.mxu1  ;;  %12346 = vmatmul.mubr.bf16.gmra.mxu1 %v15720_v35  ;;  %18475 = vst [vmem:[#allocation275_spill] sm:$0xff] %v15753_v34  ;;  %18478 = vst [vmem:[#allocation278_spill] sm:$0xff] %v15773_v20 }
 0x1fb   : > { %v15756_v26 = vadd.f32 %v4408_v29, %v3092_v40  ;;  %v3113_v8 = vadd.f32 %v12251_v51, %v14572_v6  ;;  %v4424_v1 = vpop.f32.mrf.mxu0  ;;  %12349 = vmatprep.mubr.bf16.mxu1 %v15724_v12  ;;  %v15769_v29 = vcombine.low %v15665_v25, %v15685_v24  ;;  %v3998_v25 = vsel %vm14627_vm5, %v10539_v3, %v3997_v23  ;;  %v15783_v24 = vld [vmem:[%s13886_s3 + $0x250] sm:$0xf] }
 0x1fc   : > { %v3104_v2 = vpop.f32.mrf.mxu1  ;;  %v4003_v40 = vrot.slane %v15783_v24, 5 }
 0x1fd   : > { %v15764_v42 = vadd.f32 %v12395_v32, %v3113_v8  ;;  %v3105_v13 = vadd.f32 %v3104_v2, %v14588_v15  ;;  %18477 = vst [vmem:[#allocation277_spill] sm:$0xff] %v15769_v29  ;;  %v12399_v6 = vpop.f32.mrf.mxu0  ;;  %12494 = vmatmul.mubr.bf16.gmra.mxu0 %v15750_v30  ;;  %v3991_v32 = vsel %vm14627_vm5, %v3989_v54, %v3990_v59  ;;  %v15792_v59 = vld [vmem:[%s13886_s3 + $0x25c] sm:$0xf]  ;;  %v13725_v54 = vld [vmem:[%s13886_s3 + $0x254] sm:$0x1] }
 0x1fe   : > { %v12252_v44 = vpop.f32.mrf.mxu1  ;;  %12497 = vmatprep.mubr.bf16.mxu0 %v15753_v34  ;;  %v3994_v15 = vsel %vm14627_vm5, %v3992_v9, %v3993_v41  ;;  %v4001_v8 = vsel %vm14627_vm5, %v3999_v19, %v4000_v22  ;;  %v4010_v9 = vrot.slane %v15792_v59, 5  ;;  %v4006_v3 = vrot.slane %v13725_v54, 5  ;;  %v13726_v30 = vld [vmem:[%s13886_s3 + $0x258] sm:$0xf] }
 0x1ff   : > { %18476 = vst [vmem:[#allocation276_spill] sm:$0xff] %v15764_v42  ;;  %v15786_v51 = vadd.f32 %v4421_v37, %v3105_v13  ;;  %v3116_v55 = vadd.f32 %v12252_v44, %v14607_v27  ;;  %v4437_v10 = vpop.f32.mrf.mxu0  ;;  %v15799_v13 = vcombine.low %v3991_v32, %v3994_v15  ;;  %v4002_v44 = vrot.slane %v4000_v22, 4  ;;  %v15810_v32 = vld [vmem:[%s13886_s3 + $0x260] sm:$0xf] }
 0x200   : > { %v3107_v41 = vpop.f32.mrf.mxu1  ;;  %v15802_v19 = vcombine.low %v3998_v25, %v4001_v8  ;;  %v4005_v34 = vrot.slane %v4003_v40, 4  ;;  %v4013_v15 = vrot.slane %v15810_v32, 5  ;;  %v15822_v8 = vcombine.low %v13721_v62, %v15743_v47 }
 0x201   : > { %18479 = vst [vmem:[#allocation279_spill] sm:$0xff] %v15786_v51  ;;  %v15796_v23 = vadd.f32 %v12396_v52, %v3116_v55  ;;  %v3108_v37 = vadd.f32 %v3107_v41, %v14615_v36  ;;  %v12400_v2 = vpop.f32.mrf.mxu0  ;;  %18480 = vst [vmem:[#allocation280_spill] sm:$0xff] %v15799_v13  ;;  %v10540_v51 = vrot.slane %v13726_v30, 9  ;;  %v4012_v36 = vrot.slane %v4010_v9, 4 }
 0x202   : > { %v12255_v27 = vpop.f32.mrf.mxu1  ;;  %12350 = vmatmul.mubr.bf16.gmra.mxu1 %v15769_v29  ;;  %18481 = vst [vmem:[#allocation281_spill] sm:$0xff] %v15802_v19  ;;  %18483 = vst [vmem:[#allocation283_spill] sm:$0xff] %v15822_v8 }
 0x203   : > { %v15805_v42 = vadd.f32 %v4424_v1, %v3108_v37  ;;  %v3129_v52 = vadd.f32 %v12255_v27, %v14644_v57  ;;  %v4440_v55 = vpop.f32.mrf.mxu0  ;;  %12353 = vmatprep.mubr.bf16.mxu1 %v15773_v20  ;;  %v15818_v1 = vcombine.low %v15712_v49, %v15734_v11  ;;  %v4011_v49 = vsel %vm14627_vm5, %v10540_v51, %v4010_v9  ;;  %v15832_v11 = vld [vmem:[%s13886_s3 + $0x264] sm:$0xf] }
 0x204   : > { %v3120_v41 = vpop.f32.mrf.mxu1  ;;  %v4016_v37 = vrot.slane %v15832_v11, 5 }
 0x205   : > { %v15813_v22 = vadd.f32 %v12399_v6, %v3129_v52  ;;  %v3121_v25 = vadd.f32 %v3120_v41, %v14668_v39  ;;  %18482 = vst [vmem:[#allocation282_spill] sm:$0xff] %v15818_v1  ;;  %v12403_v57 = vpop.f32.mrf.mxu0  ;;  %12498 = vmatmul.mubr.bf16.gmra.mxu0 %v15799_v13  ;;  %v4004_v6 = vsel %vm14627_vm5, %v4002_v44, %v4003_v40  ;;  %v15841_v40 = vld [vmem:[%s13886_s3 + $0x270] sm:$0xf]  ;;  %v13730_v44 = vld [vmem:[%s13886_s3 + $0x268] sm:$0x1] }
 0x206   : > { %v12256_v54 = vpop.f32.mrf.mxu1  ;;  %12501 = vmatprep.mubr.bf16.mxu0 %v15802_v19  ;;  %v4007_v39 = vsel %vm14627_vm5, %v4005_v34, %v4006_v3  ;;  %v4014_v52 = vsel %vm14627_vm5, %v4012_v36, %v4013_v15  ;;  %v4023_v34 = vrot.slane %v15841_v40, 5  ;;  %v4019_v51 = vrot.slane %v13730_v44, 5  ;;  %v15854_v13 = vld [vmem:[%s13886_s3 + $0x274] sm:$0xf] }
 0x207   : > { %v15835_v27 = vadd.f32 %v4437_v10, %v3121_v25  ;;  %v3132_v62 = vadd.f32 %v12256_v54, %v14688_v28  ;;  %v4453_v47 = vpop.f32.mrf.mxu0  ;;  %v15848_v25 = vcombine.low %v4004_v6, %v4007_v39  ;;  %v4015_v54 = vrot.slane %v4013_v15, 4 }
 0x208   : > { %v3123_v3 = vpop.f32.mrf.mxu1  ;;  %v15851_v36 = vcombine.low %v4011_v49, %v4014_v52  ;;  %v4018_v19 = vrot.slane %v4016_v37, 4  ;;  %v4025_v39 = vrot.slane %v4023_v34, 4  ;;  %v15867_v52 = vcombine.low %v15761_v46, %v15783_v24 }
 0x209   : > { %18484 = vst [vmem:[#allocation284_spill] sm:$0xff] %v15835_v27  ;;  %v15845_v9 = vadd.f32 %v12400_v2, %v3132_v62  ;;  %v3124_v10 = vadd.f32 %v3123_v3, %v14724_v7  ;;  %v12404_v41 = vpop.f32.mrf.mxu0  ;;  %18485 = vst [vmem:[#allocation285_spill] sm:$0xff] %v15848_v25  ;;  %v4026_v27 = vrot.slane %v15854_v13, 5  ;;  %v13732_v7 = vld [vmem:[%s13886_s3 + $0x26c] sm:$0xf] }
 0x20a   : > { %v12259_v28 = vpop.f32.mrf.mxu1  ;;  %12354 = vmatmul.mubr.bf16.gmra.mxu1 %v15818_v1  ;;  %18486 = vst [vmem:[#allocation286_spill] sm:$0xff] %v15851_v36  ;;  %v10541_v6 = vrot.slane %v13732_v7, 9 }
 0x20b   : > { %v15857_v44 = vadd.f32 %v4440_v55, %v3124_v10  ;;  %v3145_v2 = vadd.f32 %v12259_v28, %v14747_v17  ;;  %v4456_v62 = vpop.f32.mrf.mxu0  ;;  %12357 = vmatprep.mubr.bf16.mxu1 %v15822_v8  ;;  %v15871_v10 = vcombine.low %v13726_v30, %v15792_v59  ;;  %v13733_v28 = vld [vmem:[%s13886_s3 + $0x278] sm:$0xf]  ;;  %v4027_v59 = vsel %vm14627_vm5, %v4025_v39, %v4026_v27 }
 0x20c   : > { %v3136_v3 = vpop.f32.mrf.mxu1  ;;  %v4024_v30 = vsel %vm14627_vm5, %v10541_v6, %v4023_v34 }
 0x20d   : > { %v15862_v15 = vadd.f32 %v12403_v57, %v3145_v2  ;;  %v3137_v49 = vadd.f32 %v3136_v3, %v14781_v14  ;;  %v12407_v55 = vpop.f32.mrf.mxu0  ;;  %12502 = vmatmul.mubr.bf16.gmra.mxu0 %v15848_v25  ;;  %v4017_v57 = vsel %vm14627_vm5, %v4015_v54, %v4016_v37  ;;  %v4020_v14 = vsel %vm14627_vm5, %v4018_v19, %v4019_v51  ;;  %v13734_v51 = vld [vmem:[%s13886_s3 + $0x27c] sm:$0x1] }
 0x20e   : > { %v12260_v17 = vpop.f32.mrf.mxu1  ;;  %12505 = vmatprep.mubr.bf16.mxu0 %v15851_v36  ;;  %v4029_v2 = vrot.slane %v13733_v28, 5  ;;  %v15889_v19 = vcombine.low %v4017_v57, %v4020_v14 }
 0x20f   : > { %v15879_v46 = vadd.f32 %v4453_v47, %v3137_v49  ;;  %v3148_v24 = vadd.f32 %v12260_v17, %v14799_v5  ;;  %v4469_v3 = vpop.f32.mrf.mxu0  ;;  %v4032_v47 = vrot.slane %v13734_v51, 5  ;;  %v4028_v5 = vrot.slane %v4026_v27, 4 }
 0x210   : > { %v3139_v36 = vpop.f32.mrf.mxu1  ;;  %18487 = vst [vmem:[#allocation287_spill] sm:$0xff] %v15889_v19  ;;  %v15893_v17 = vcombine.low %v4024_v30, %v4027_v59  ;;  %v4031_v34 = vrot.slane %v4029_v2, 4  ;;  %v15905_v27 = vcombine.low %v15810_v32, %v15832_v11  ;;  %v15916_v59 = vcombine.low %v13732_v7, %v15841_v40 }
 0x211   : > { %v15886_v25 = vadd.f32 %v12404_v41, %v3148_v24  ;;  %v3140_v37 = vadd.f32 %v3139_v36, %v14823_v61  ;;  %v12408_v54 = vpop.f32.mrf.mxu0 }
 0x212   : > { %v12263_v49 = vpop.f32.mrf.mxu1  ;;  %12358 = vmatmul.mubr.bf16.gmra.mxu1 %v15867_v52  ;;  %18488 = vst [vmem:[#allocation288_spill] sm:$0xff] %v15893_v17 }
 0x213   : > { %v15895_v6 = vadd.f32 %v4456_v62, %v3140_v37  ;;  %v3161_v39 = vadd.f32 %v12263_v49, %v14838_v31  ;;  %v4472_v41 = vpop.f32.mrf.mxu0  ;;  %12361 = vmatprep.mubr.bf16.mxu1 %v15871_v10  ;;  %v4030_v31 = vsel %vm14627_vm5, %v4028_v5, %v4029_v2  ;;  %v4033_v62 = vsel %vm14627_vm5, %v4031_v34, %v4032_v47 }
 0x214   : > { %v3152_v61 = vpop.f32.mrf.mxu1  ;;  %v15921_v49 = vcombine.low %v4030_v31, %v4033_v62  ;;  %v15933_v34 = vcombine.low %v15854_v13, %v13733_v28 }
 0x215   : > { %v15899_v36 = vadd.f32 %v12407_v55, %v3161_v39  ;;  %v3153_v57 = vadd.f32 %v3152_v61, %v14862_v58  ;;  %v12411_v14 = vpop.f32.mrf.mxu0  ;;  %12506 = vmatmul.mubr.bf16.gmra.mxu0 %v15889_v19 }
 0x216   : > { %v12264_v24 = vpop.f32.mrf.mxu1  ;;  %12509 = vmatprep.mubr.bf16.mxu0 %v15893_v17  ;;  %18489 = vst [vmem:[#allocation289_spill] sm:$0xff] %v15921_v49 }
 0x217   : > { %v15912_v55 = vadd.f32 %v4469_v3, %v3153_v57  ;;  %v3164_v58 = vadd.f32 %v12264_v24, %v14877_v21  ;;  %v4485_v30 = vpop.f32.mrf.mxu0 }
 0x218   : > { %v3155_v37 = vpop.f32.mrf.mxu1 }
 0x219   : > { %v15918_v51 = vadd.f32 %v12408_v54, %v3164_v58  ;;  %v3156_v32 = vadd.f32 %v3155_v37, %v14899_v18  ;;  %v12412_v11 = vpop.f32.mrf.mxu0  ;;  %v18490_v58 = vld [vmem:[#allocation126_spill] sm:$0xff]  ;;  %v18491_v37 = vld [vmem:[#allocation9_spill] sm:$0xff] }
 0x21a   : > { %v12267_v2 = vpop.f32.mrf.mxu1  ;;  %12362 = vmatmul.mubr.bf16.gmra.mxu1 %v15905_v27 }
 0x21b   : > { %v15924_v47 = vadd.f32 %v4472_v41, %v3156_v32  ;;  %v3177_v3 = vadd.f32 %v12267_v2, %v14920_v16  ;;  %v4488_v21 = vpop.f32.mrf.mxu0  ;;  %12365 = vmatprep.mubr.bf16.mxu1 %v15916_v59  ;;  %v18493_v2 = vld [vmem:[#allocation11_spill] sm:$0xff] }
 0x21c   : > { %v3168_v40 = vpop.f32.mrf.mxu1 }
 0x21d   : > { %v15928_v7 = vadd.f32 %v12411_v14, %v3177_v3  ;;  %v3169_v54 = vadd.f32 %v3168_v40, %v14942_v45  ;;  %v12415_v5 = vpop.f32.mrf.mxu0  ;;  %12510 = vmatmul.mubr.bf16.gmra.mxu0 %v15921_v49 }
 0x21e   : > { %v12268_v18 = vpop.f32.mrf.mxu1  ;;  %12673 = vmatprep.mubr.bf16.mxu0 %v13971_v0  ;;  %v13542_v0 = vld [vmem:[%s17845_s1 + $0x1b0] sm:$0xff]  }
 0x21f   : > { %v15936_v39 = vadd.f32 %v4485_v30, %v3169_v54  ;;  %v3180_v16 = vadd.f32 %v12268_v18, %v14954_v38  ;;  %v4501_v41 = vpop.f32.mrf.mxu0  ;;  %v13541_v54 = vld [vmem:[%s17845_s1 + $0x170] sm:$0xff]  }
 0x220   : > { %v3171_v61 = vpop.f32.mrf.mxu1 }
 0x221   : > { %v15939_v57 = vadd.f32 %v12412_v11, %v3180_v16  ;;  %v3172_v14 = vadd.f32 %v3171_v61, %v14976_v50  ;;  %v12416_v45 = vpop.f32.mrf.mxu0  ;;  %v18492_v11 = vld [vmem:[#allocation206_spill] sm:$0xff] }
 0x222   : > { %v12271_v24 = vpop.f32.mrf.mxu1  ;;  %12366 = vmatmul.mubr.bf16.gmra.mxu1 %v15933_v34  ;;  %v18495_v16 = vld [vmem:[#allocation134_spill] sm:$0xff] }
 0x223   : > { %v15943_v31 = vadd.f32 %v4488_v21, %v3172_v14  ;;  %v3193_v13 = vadd.f32 %v12271_v24, %v14991_v53  ;;  %v4504_v28 = vpop.f32.mrf.mxu0  ;;  %12529 = vmatprep.mubr.bf16.mxu1 %v14706_v43  ;;  %v18494_v43 = vld [vmem:[#allocation129_spill] sm:$0xff]  ;;  %v18496_v24 = vld [vmem:[#allocation86_spill] sm:$0xff] }
 0x224   : > { %v3184_v38 = vpop.f32.mrf.mxu1 }
 0x225   : > { %v15950_v62 = vadd.f32 %v12415_v5, %v3193_v13  ;;  %v3185_v50 = vadd.f32 %v3184_v38, %v18490_v58  ;;  %v12419_v30 = vpop.f32.mrf.mxu0  ;;  %12674 = vmatmul.mubr.bf16.vlgmr.msra.gmra.mxu0 %v18491_v37  ;;  %v13544_v5 = vld [vmem:[%s17845_s1 + $0x1a8] sm:$0xff]   ;;  %v18497_v38 = vld [vmem:[#allocation137_spill] sm:$0xff] }
 0x226   : > { %v12272_v32 = vpop.f32.mrf.mxu1  ;;  %12946 = vmatpush3.bf16.msra.mxu0 %v18492_v11  ;;  %12677 = vmatprep.mubr.bf16.mxu0 %v18493_v2 }
 0x227   : > { %v15956_v53 = vadd.f32 %v4501_v41, %v3185_v50  ;;  %v3196_v3 = vadd.f32 %v12272_v32, %v18494_v43  ;;  %v4517_v21 = vpop.f32.mrf.mxu0  ;;  %12947 = vmatprep.subr.bf16.mxu0 %v13542_v0  ;;  %v18498_v50 = vld [vmem:[#allocation202_spill] sm:$0xff]  ;;  %v18499_v32 = vld [vmem:[#allocation88_spill] sm:$0xff] }
 0x228   : > { %v3187_v40 = vpop.f32.mrf.mxu1  ;;  %v13543_v43 = vld [vmem:[%s17845_s1 + $0x168] sm:$0xff]  }
 0x229   : > { %v15965_v18 = vadd.f32 %v12416_v45, %v3196_v3  ;;  %v3188_v61 = vadd.f32 %v3187_v40, %v18495_v16  ;;  %v12420_v14 = vpop.f32.mrf.mxu0  ;;  %v13546_v45 = vld [vmem:[%s17845_s1 + $0x1a0] sm:$0xff]  }
 0x22a   : > { %v12275_v41 = vpop.f32.mrf.mxu1  ;;  %12530 = vmatmul.mubr.bf16.vlgmr.msra.gmra.mxu1 %v18496_v24  ;;  %12948 = vmatpush3.bf16.msra.mxu0 %v13542_v0  ;;  %v18501_v0 = vld [vmem:[#allocation142_spill] sm:$0xff]  ;;  %v18502_v16 = vld [vmem:[#allocation13_spill] sm:$0xff] }
 0x22b   : > { %v15969_v13 = vadd.f32 %v4504_v28, %v3188_v61  ;;  %v3209_v58 = vadd.f32 %v12275_v41, %v18497_v38  ;;  %12802 = vmatpush3.bf16.msra.mxu1 %v18498_v50  ;;  %v4520_v37 = vpop.f32.mrf.mxu0  ;;  %12533 = vmatprep.mubr.bf16.mxu1 %v18499_v32  ;;  %v18503_v41 = vld [vmem:[#allocation15_spill] sm:$0xff]  ;;  %v18505_v38 = vld [vmem:[#allocation145_spill] sm:$0xff] }
 0x22c   : > { %v3200_v11 = vpop.f32.mrf.mxu1  ;;  %12803 = vmatprep.subr.bf16.mxu1 %v13541_v54  ;;  %12949 = vmatprep.subr.bf16.mxu0 %v13544_v5 }
 0x22d   : > { %v15980_v28 = vadd.f32 %v12419_v30, %v3209_v58  ;;  %v3201_v3 = vadd.f32 %v3200_v11, %v18501_v0  ;;  %v12423_v40 = vpop.f32.mrf.mxu0  ;;  %12678 = vmatmul.mubr.bf16.gmra.mxu0 %v18502_v16  ;;  %v13545_v30 = vld [vmem:[%s17845_s1 + $0x160] sm:$0xff]   ;;  %v13548_v58 = vld [vmem:[%s17845_s1 + $0x198] sm:$0xff]  }
 0x22e   : > { %v12276_v61 = vpop.f32.mrf.mxu1  ;;  %12681 = vmatprep.mubr.bf16.mxu0 %v18503_v41  ;;  %12950 = vmatpush3.bf16.msra.mxu0 %v13544_v5  ;;  %v18507_v5 = vld [vmem:[#allocation150_spill] sm:$0xff] }
 0x22f   : > { %18500 = vst [vmem:[#allocation126_spill] sm:$0xff] %v15980_v28  ;;  %v15985_v24 = vadd.f32 %v4517_v21, %v3201_v3  ;;  %v3212_v50 = vadd.f32 %v12276_v61, %v18505_v38  ;;  %v4533_v2 = vpop.f32.mrf.mxu0  ;;  %12804 = vmatpush3.bf16.msra.mxu1 %v13541_v54  ;;  %12951 = vmatprep.subr.bf16.mxu0 %v13546_v45  ;;  %v18508_v61 = vld [vmem:[#allocation92_spill] sm:$0xff]  ;;  %v18510_v38 = vld [vmem:[#allocation153_spill] sm:$0xff] }
 0x230   : > { %v3203_v49 = vpop.f32.mrf.mxu1  ;;  %12805 = vmatprep.subr.bf16.mxu1 %v13543_v43 }
 0x231   : > { %18504 = vst [vmem:[#allocation9_spill] sm:$0xff] %v15985_v24  ;;  %v15994_v11 = vadd.f32 %v12420_v14, %v3212_v50  ;;  %v3204_v21 = vadd.f32 %v3203_v49, %v18507_v5  ;;  %v12424_v0 = vpop.f32.mrf.mxu0  ;;  %v13547_v14 = vld [vmem:[%s17845_s1 + $0x158] sm:$0xff]   ;;  %v18513_v50 = vld [vmem:[#allocation158_spill] sm:$0xff] }
 0x232   : > { %v12279_v3 = vpop.f32.mrf.mxu1  ;;  %12534 = vmatmul.mubr.bf16.gmra.mxu1 %v18508_v61  ;;  %12952 = vmatpush3.bf16.msra.mxu0 %v13546_v45 }
 0x233   : > { %18506 = vst [vmem:[#allocation206_spill] sm:$0xff] %v15994_v11  ;;  %v15998_v54 = vadd.f32 %v4520_v37, %v3204_v21  ;;  %v3225_v41 = vadd.f32 %v12279_v3, %v18510_v38  ;;  %v4536_v16 = vpop.f32.mrf.mxu0  ;;  %12537 = vmatprep.mubr.bf16.mxu1 %v18511_v4  ;;  %12806 = vmatpush3.bf16.msra.mxu1 %v13543_v43  ;;  %v18514_v37 = vld [vmem:[#allocation17_spill] sm:$0xff]  ;;  %v18515_v3 = vld [vmem:[#allocation19_spill] sm:$0xff] }
 0x234   : > { %v3216_v17 = vpop.f32.mrf.mxu1  ;;  %12807 = vmatprep.subr.bf16.mxu1 %v13545_v30  ;;  %12953 = vmatprep.subr.bf16.mxu0 %v13548_v58  ;;  %v18517_v43 = vld [vmem:[#allocation161_spill] sm:$0xff] }
 0x235   : > { %18509 = vst [vmem:[#allocation129_spill] sm:$0xff] %v15998_v54  ;;  %v16005_v49 = vadd.f32 %v12423_v40, %v3225_v41  ;;  %v3217_v5 = vadd.f32 %v3216_v17, %v18513_v50  ;;  %v12427_v45 = vpop.f32.mrf.mxu0  ;;  %12682 = vmatmul.mubr.bf16.gmra.mxu0 %v18514_v37  ;;  %v18519_v40 = vld [vmem:[#allocation166_spill] sm:$0xff] }
 0x236   : > { %v12280_v21 = vpop.f32.mrf.mxu1  ;;  %12685 = vmatprep.mubr.bf16.mxu0 %v18515_v3  ;;  %12954 = vmatpush3.bf16.msra.mxu0 %v13548_v58  ;;  %v18522_v3 = vld [vmem:[#allocation169_spill] sm:$0xff] }
 0x237   : > { %18512 = vst [vmem:[#allocation134_spill] sm:$0xff] %v16005_v49  ;;  %v16010_v38 = vadd.f32 %v4533_v2, %v3217_v5  ;;  %v3228_v19 = vadd.f32 %v12280_v21, %v18517_v43  ;;  %v4549_v54 = vpop.f32.mrf.mxu0  ;;  %12808 = vmatpush3.bf16.msra.mxu1 %v13545_v30  ;;  %v18520_v49 = vld [vmem:[#allocation98_spill] sm:$0xff]  ;;  %v18523_v5 = vld [vmem:[#allocation100_spill] sm:$0xff] }
 0x238   : > { %v3219_v11 = vpop.f32.mrf.mxu1  ;;  %12809 = vmatprep.subr.bf16.mxu1 %v13547_v14  ;;  %v18525_v43 = vld [vmem:[#allocation174_spill] sm:$0xff] }
 0x239   : > { %18516 = vst [vmem:[#allocation86_spill] sm:$0xff] %v16010_v38  ;;  %v16013_v24 = vadd.f32 %v12424_v0, %v3228_v19  ;;  %v3220_v41 = vadd.f32 %v3219_v11, %v18519_v40  ;;  %v12428_v17 = vpop.f32.mrf.mxu0  ;;  %v18527_v40 = vld [vmem:[#allocation23_spill] sm:$0xff] }
 0x23a   : > { %v12283_v50 = vpop.f32.mrf.mxu1  ;;  %12538 = vmatmul.mubr.bf16.gmra.mxu1 %v18520_v49 }
 0x23b   : > { %18518 = vst [vmem:[#allocation137_spill] sm:$0xff] %v16013_v24  ;;  %v16017_v37 = vadd.f32 %v4536_v16, %v3220_v41  ;;  %v3241_v58 = vadd.f32 %v12283_v50, %v18522_v3  ;;  %v4552_v2 = vpop.f32.mrf.mxu0  ;;  %12541 = vmatprep.mubr.bf16.mxu1 %v18523_v5  ;;  %12810 = vmatpush3.bf16.msra.mxu1 %v13547_v14  ;;  %v18526_v24 = vld [vmem:[#allocation21_spill] sm:$0xff]  ;;  %v18531_v14 = vld [vmem:[#allocation182_spill] sm:$0xff] }
 0x23c   : > { %v3232_v21 = vpop.f32.mrf.mxu1  ;;  %v18529_v16 = vld [vmem:[#allocation177_spill] sm:$0xff] }
 0x23d   : > { %18521 = vst [vmem:[#allocation202_spill] sm:$0xff] %v16017_v37  ;;  %v16021_v30 = vadd.f32 %v12427_v45, %v3241_v58  ;;  %v3233_v19 = vadd.f32 %v3232_v21, %v18525_v43  ;;  %v12431_v0 = vpop.f32.mrf.mxu0  ;;  %12686 = vmatmul.mubr.bf16.gmra.mxu0 %v18526_v24  ;;  %v18534_v43 = vld [vmem:[#allocation185_spill] sm:$0xff] }
 0x23e   : > { %v12284_v11 = vpop.f32.mrf.mxu1  ;;  %12689 = vmatprep.mubr.bf16.mxu0 %v18527_v40  ;;  %v18535_v40 = vld [vmem:[#allocation106_spill] sm:$0xff] }
 0x23f   : > { %18524 = vst [vmem:[#allocation88_spill] sm:$0xff] %v16021_v30  ;;  %v16026_v38 = vadd.f32 %v4549_v54, %v3233_v19  ;;  %v3244_v41 = vadd.f32 %v12284_v11, %v18529_v16  ;;  %v4565_v3 = vpop.f32.mrf.mxu0  ;;  %v18532_v30 = vld [vmem:[#allocation104_spill] sm:$0xff]  ;;  %v18537_v11 = vld [vmem:[#allocation190_spill] sm:$0xff] }
 0x240   : > { %v3235_v50 = vpop.f32.mrf.mxu1 }
 0x241   : > { %18528 = vst [vmem:[#allocation142_spill] sm:$0xff] %v16026_v38  ;;  %v16029_v37 = vadd.f32 %v12428_v17, %v3244_v41  ;;  %v3236_v5 = vadd.f32 %v3235_v50, %v18531_v14  ;;  %v12432_v45 = vpop.f32.mrf.mxu0  ;;  %v18538_v41 = vld [vmem:[#allocation25_spill] sm:$0xff]  ;;  %v18539_v14 = vld [vmem:[#allocation27_spill] sm:$0xff]  ;;  %v18543_v38 = vld [vmem:[#allocation198_spill] sm:$0xff] }
 0x242   : > { %v12287_v58 = vpop.f32.mrf.mxu1  ;;  %12542 = vmatmul.mubr.bf16.gmra.mxu1 %v18532_v30 }
 0x243   : > { %18530 = vst [vmem:[#allocation145_spill] sm:$0xff] %v16029_v37  ;;  %v16033_v21 = vadd.f32 %v4552_v2, %v3236_v5  ;;  %v3257_v24 = vadd.f32 %v12287_v58, %v18534_v43  ;;  %v4568_v49 = vpop.f32.mrf.mxu0  ;;  %12545 = vmatprep.mubr.bf16.mxu1 %v18535_v40  ;;  %v18541_v2 = vld [vmem:[#allocation193_spill] sm:$0xff] }
 0x244   : > { %v3248_v54 = vpop.f32.mrf.mxu1 }
 0x245   : > { %18533 = vst [vmem:[#allocation150_spill] sm:$0xff] %v16033_v21  ;;  %v16037_v19 = vadd.f32 %v12431_v0, %v3257_v24  ;;  %v3249_v16 = vadd.f32 %v3248_v54, %v18537_v11  ;;  %v12435_v17 = vpop.f32.mrf.mxu0  ;;  %12690 = vmatmul.mubr.bf16.gmra.mxu0 %v18538_v41  ;;  %v18546_v11 = vld [vmem:[#allocation201_spill] sm:$0xff] }
 0x246   : > { %v12288_v50 = vpop.f32.mrf.mxu1  ;;  %12693 = vmatprep.mubr.bf16.mxu0 %v18539_v14  ;;  %v18547_v14 = vld [vmem:[#allocation112_spill] sm:$0xff] }
 0x247   : > { %18536 = vst [vmem:[#allocation92_spill] sm:$0xff] %v16037_v19  ;;  %v16042_v37 = vadd.f32 %v4565_v3, %v3249_v16  ;;  %v3260_v5 = vadd.f32 %v12288_v50, %v18541_v2  ;;  %v4581_v21 = vpop.f32.mrf.mxu0  ;;  %v18544_v19 = vld [vmem:[#allocation110_spill] sm:$0xff]  ;;  %v18549_v50 = vld [vmem:[#allocation208_spill] sm:$0xff] }
 0x248   : > { %v3251_v58 = vpop.f32.mrf.mxu1 }
 0x249   : > { %18540 = vst [vmem:[#allocation153_spill] sm:$0xff] %v16042_v37  ;;  %v16045_v43 = vadd.f32 %v12432_v45, %v3260_v5  ;;  %v3252_v40 = vadd.f32 %v3251_v58, %v18543_v38  ;;  %v12436_v24 = vpop.f32.mrf.mxu0  ;;  %v18550_v5 = vld [vmem:[#allocation29_spill] sm:$0xff]  ;;  %v13549_v38 = vld [vmem:[%s17845_s1 + $0x150] sm:$0xff]  }
 0x24a   : > { %v12291_v0 = vpop.f32.mrf.mxu1  ;;  %12546 = vmatmul.mubr.bf16.gmra.mxu1 %v18544_v19  ;;  %12811 = vmatprep.subr.bf16.mxu1 %v13549_v38 }
 0x24b   : > { %18542 = vst [vmem:[#allocation94_spill] sm:$0xff] %v16045_v43  ;;  %v16049_v54 = vadd.f32 %v4568_v49, %v3252_v40  ;;  %v3273_v41 = vadd.f32 %v12291_v0, %v18546_v11  ;;  %v4584_v30 = vpop.f32.mrf.mxu0  ;;  %12549 = vmatprep.mubr.bf16.mxu1 %v18547_v14  ;;  %v18551_v49 = vld [vmem:[#allocation31_spill] sm:$0xff]  ;;  %12812 = vmatpush3.bf16.msra.mxu1 %v13549_v38 }
 0x24c   : > { %v3264_v3 = vpop.f32.mrf.mxu1  ;;  %v18553_v0 = vld [vmem:[#allocation211_spill] sm:$0xff] }
 0x24d   : > { %18545 = vst [vmem:[#allocation158_spill] sm:$0xff] %v16049_v54  ;;  %v16053_v16 = vadd.f32 %v12435_v17, %v3273_v41  ;;  %v3265_v2 = vadd.f32 %v3264_v3, %v18549_v50  ;;  %v12439_v45 = vpop.f32.mrf.mxu0  ;;  %12694 = vmatmul.mubr.bf16.gmra.mxu0 %v18550_v5  ;;  %v13550_v17 = vld [vmem:[%s17845_s1 + $0x190] sm:$0xff]   ;;  %v18555_v50 = vld [vmem:[#allocation216_spill] sm:$0xff] }
 0x24e   : > { %v12292_v58 = vpop.f32.mrf.mxu1  ;;  %12697 = vmatprep.mubr.bf16.mxu0 %v18551_v49  ;;  %12955 = vmatprep.subr.bf16.mxu0 %v13550_v17  ;;  %v18556_v49 = vld [vmem:[#allocation116_spill] sm:$0xff] }
 0x24f   : > { %18548 = vst [vmem:[#allocation161_spill] sm:$0xff] %v16053_v16  ;;  %v16061_v40 = vadd.f32 %v4581_v21, %v3265_v2  ;;  %v3276_v11 = vadd.f32 %v12292_v58, %v18553_v0  ;;  %v4597_v54 = vpop.f32.mrf.mxu0  ;;  %12956 = vmatpush3.bf16.msra.mxu0 %v13550_v17  ;;  %v18558_v2 = vld [vmem:[#allocation219_spill] sm:$0xff] }
 0x250   : > { %v3267_v41 = vpop.f32.mrf.mxu1 }
 0x251   : > { %18552 = vst [vmem:[#allocation166_spill] sm:$0xff] %v16061_v40  ;;  %v16067_v3 = vadd.f32 %v12436_v24, %v3276_v11  ;;  %v3268_v5 = vadd.f32 %v3267_v41, %v18555_v50  ;;  %v12440_v16 = vpop.f32.mrf.mxu0  ;;  %v18559_v40 = vld [vmem:[#allocation118_spill] sm:$0xff]  ;;  %v18561_v24 = vld [vmem:[#allocation224_spill] sm:$0xff]  ;;  %v18562_v41 = vld [vmem:[#allocation33_spill] sm:$0xff] }
 0x252   : > { %v12295_v43 = vpop.f32.mrf.mxu1  ;;  %12550 = vmatmul.mubr.bf16.gmra.mxu1 %v18556_v49 }
 0x253   : > { %18554 = vst [vmem:[#allocation169_spill] sm:$0xff] %v16067_v3  ;;  %v16071_v21 = vadd.f32 %v4584_v30, %v3268_v5  ;;  %v3289_v58 = vadd.f32 %v12295_v43, %v18558_v2  ;;  %v4600_v0 = vpop.f32.mrf.mxu0  ;;  %12553 = vmatprep.mubr.bf16.mxu1 %v18559_v40  ;;  %v18563_v3 = vld [vmem:[#allocation35_spill] sm:$0xff] }
 0x254   : > { %v3280_v37 = vpop.f32.mrf.mxu1  ;;  %v18565_v30 = vld [vmem:[#allocation227_spill] sm:$0xff] }
 0x255   : > { %18557 = vst [vmem:[#allocation174_spill] sm:$0xff] %v16071_v21  ;;  %v16075_v14 = vadd.f32 %v12439_v45, %v3289_v58  ;;  %v3281_v38 = vadd.f32 %v3280_v37, %v18561_v24  ;;  %v12443_v11 = vpop.f32.mrf.mxu0  ;;  %12698 = vmatmul.mubr.bf16.gmra.mxu0 %v18562_v41  ;;  %v18567_v21 = vld [vmem:[#allocation232_spill] sm:$0xff]  ;;  %v18570_v24 = vld [vmem:[#allocation235_spill] sm:$0xff] }
 0x256   : > { %v12296_v50 = vpop.f32.mrf.mxu1  ;;  %12701 = vmatprep.mubr.bf16.mxu0 %v18563_v3  ;;  %v18571_v3 = vld [vmem:[#allocation124_spill] sm:$0xff] }
 0x257   : > { %18560 = vst [vmem:[#allocation177_spill] sm:$0xff] %v16075_v14  ;;  %v16080_v49 = vadd.f32 %v4597_v54, %v3281_v38  ;;  %v3292_v5 = vadd.f32 %v12296_v50, %v18565_v30  ;;  %v4613_v17 = vpop.f32.mrf.mxu0  ;;  %v18568_v14 = vld [vmem:[#allocation122_spill] sm:$0xff]  ;;  %v18573_v50 = vld [vmem:[#allocation240_spill] sm:$0xff] }
 0x258   : > { %v3283_v43 = vpop.f32.mrf.mxu1 }
 0x259   : > { %18564 = vst [vmem:[#allocation182_spill] sm:$0xff] %v16080_v49  ;;  %v16083_v2 = vadd.f32 %v12440_v16, %v3292_v5  ;;  %v3284_v40 = vadd.f32 %v3283_v43, %v18567_v21  ;;  %v12444_v45 = vpop.f32.mrf.mxu0  ;;  %v18574_v5 = vld [vmem:[#allocation37_spill] sm:$0xff]  ;;  %v18575_v43 = vld [vmem:[#allocation39_spill] sm:$0xff] }
 0x25a   : > { %v12299_v58 = vpop.f32.mrf.mxu1  ;;  %12554 = vmatmul.mubr.bf16.gmra.mxu1 %v18568_v14  ;;  %v18579_v49 = vld [vmem:[#allocation247_spill] sm:$0xff] }
 0x25b   : > { %18566 = vst [vmem:[#allocation185_spill] sm:$0xff] %v16083_v2  ;;  %v16087_v37 = vadd.f32 %v4600_v0, %v3284_v40  ;;  %v3305_v41 = vadd.f32 %v12299_v58, %v18570_v24  ;;  %v4616_v19 = vpop.f32.mrf.mxu0  ;;  %12557 = vmatprep.mubr.bf16.mxu1 %v18571_v3  ;;  %v18577_v40 = vld [vmem:[#allocation243_spill] sm:$0xff] }
 0x25c   : > { %v3296_v54 = vpop.f32.mrf.mxu1 }
 0x25d   : > { %18569 = vst [vmem:[#allocation190_spill] sm:$0xff] %v16087_v37  ;;  %v16091_v38 = vadd.f32 %v12443_v11, %v3305_v41  ;;  %v3297_v30 = vadd.f32 %v3296_v54, %v18573_v50  ;;  %v12447_v16 = vpop.f32.mrf.mxu0  ;;  %12702 = vmatmul.mubr.bf16.gmra.mxu0 %v18574_v5  ;;  %v18582_v50 = vld [vmem:[#allocation251_spill] sm:$0xff] }
 0x25e   : > { %v12300_v21 = vpop.f32.mrf.mxu1  ;;  %12705 = vmatprep.mubr.bf16.mxu0 %v18575_v43  ;;  %v18583_v43 = vld [vmem:[#allocation132_spill] sm:$0xff] }
 0x25f   : > { %18572 = vst [vmem:[#allocation193_spill] sm:$0xff] %v16091_v38  ;;  %v16096_v2 = vadd.f32 %v4613_v17, %v3297_v30  ;;  %v3308_v0 = vadd.f32 %v12300_v21, %v18577_v40  ;;  %v4629_v37 = vpop.f32.mrf.mxu0  ;;  %v18580_v38 = vld [vmem:[#allocation130_spill] sm:$0xff] }
 0x260   : > { %v3299_v58 = vpop.f32.mrf.mxu1  ;;  %v18585_v21 = vld [vmem:[#allocation254_spill] sm:$0xff] }
 0x261   : > { %18576 = vst [vmem:[#allocation198_spill] sm:$0xff] %v16096_v2  ;;  %v16099_v24 = vadd.f32 %v12444_v45, %v3308_v0  ;;  %v3300_v3 = vadd.f32 %v3299_v58, %v18579_v49  ;;  %v12448_v11 = vpop.f32.mrf.mxu0  ;;  %v18586_v0 = vld [vmem:[#allocation41_spill] sm:$0xff]  ;;  %v18587_v58 = vld [vmem:[#allocation43_spill] sm:$0xff]  ;;  %v18591_v2 = vld [vmem:[#allocation260_spill] sm:$0xff] }
 0x262   : > { %v12303_v41 = vpop.f32.mrf.mxu1  ;;  %12558 = vmatmul.mubr.bf16.gmra.mxu1 %v18580_v38 }
 0x263   : > { %18578 = vst [vmem:[#allocation201_spill] sm:$0xff] %v16099_v24  ;;  %v16103_v54 = vadd.f32 %v4616_v19, %v3300_v3  ;;  %v3321_v5 = vadd.f32 %v12303_v41, %v18582_v50  ;;  %v4632_v14 = vpop.f32.mrf.mxu0  ;;  %12561 = vmatprep.mubr.bf16.mxu1 %v18583_v43  ;;  %v18589_v19 = vld [vmem:[#allocation256_spill] sm:$0xff] }
 0x264   : > { %v3312_v17 = vpop.f32.mrf.mxu1 }
 0x265   : > { %18581 = vst [vmem:[#allocation208_spill] sm:$0xff] %v16103_v54  ;;  %v16107_v30 = vadd.f32 %v12447_v16, %v3321_v5  ;;  %v3313_v40 = vadd.f32 %v3312_v17, %v18585_v21  ;;  %v12451_v45 = vpop.f32.mrf.mxu0  ;;  %12706 = vmatmul.mubr.bf16.gmra.mxu0 %v18586_v0  ;;  %v18594_v21 = vld [vmem:[#allocation56_spill] sm:$0xff] }
 0x266   : > { %v12304_v49 = vpop.f32.mrf.mxu1  ;;  %12709 = vmatprep.mubr.bf16.mxu0 %v18587_v58  ;;  %v18595_v58 = vld [vmem:[#allocation140_spill] sm:$0xff] }
 0x267   : > { %18584 = vst [vmem:[#allocation211_spill] sm:$0xff] %v16107_v30  ;;  %v16112_v24 = vadd.f32 %v4629_v37, %v3313_v40  ;;  %v3324_v3 = vadd.f32 %v12304_v49, %v18589_v19  ;;  %v4645_v54 = vpop.f32.mrf.mxu0  ;;  %v18592_v30 = vld [vmem:[#allocation138_spill] sm:$0xff]  ;;  %v18597_v49 = vld [vmem:[#allocation57_spill] sm:$0xff] }
 0x268   : > { %v3315_v41 = vpop.f32.mrf.mxu1 }
 0x269   : > { %18588 = vst [vmem:[#allocation216_spill] sm:$0xff] %v16112_v24  ;;  %v16115_v50 = vadd.f32 %v12448_v11, %v3324_v3  ;;  %v3316_v43 = vadd.f32 %v3315_v41, %v18591_v2  ;;  %v12452_v16 = vpop.f32.mrf.mxu0  ;;  %v18598_v3 = vld [vmem:[#allocation45_spill] sm:$0xff]  ;;  %v13551_v2 = vld [vmem:[%s17845_s1 + $0x148] sm:$0xff]  }
 0x26a   : > { %v12307_v5 = vpop.f32.mrf.mxu1  ;;  %12562 = vmatmul.mubr.bf16.gmra.mxu1 %v18592_v30  ;;  %12813 = vmatprep.subr.bf16.mxu1 %v13551_v2 }
 0x26b   : > { %18590 = vst [vmem:[#allocation219_spill] sm:$0xff] %v16115_v50  ;;  %v16119_v17 = vadd.f32 %v4632_v14, %v3316_v43  ;;  %v3337_v0 = vadd.f32 %v12307_v5, %v18594_v21  ;;  %v4648_v38 = vpop.f32.mrf.mxu0  ;;  %12565 = vmatprep.mubr.bf16.mxu1 %v18595_v58  ;;  %v18599_v14 = vld [vmem:[#allocation47_spill] sm:$0xff]  ;;  %v18601_v5 = vld [vmem:[#allocation60_spill] sm:$0xff]  ;;  %12814 = vmatpush3.bf16.msra.mxu1 %v13551_v2 }
 0x26c   : > { %v3328_v37 = vpop.f32.mrf.mxu1 }
 0x26d   : > { %18593 = vst [vmem:[#allocation224_spill] sm:$0xff] %v16119_v17  ;;  %v16123_v40 = vadd.f32 %v12451_v45, %v3337_v0  ;;  %v3329_v19 = vadd.f32 %v3328_v37, %v18597_v49  ;;  %v12455_v11 = vpop.f32.mrf.mxu0  ;;  %12710 = vmatmul.mubr.bf16.gmra.mxu0 %v18598_v3  ;;  %v13552_v45 = vld [vmem:[%s17845_s1 + $0x188] sm:$0xff]   ;;  %v18603_v49 = vld [vmem:[#allocation61_spill] sm:$0xff] }
 0x26e   : > { %v12308_v41 = vpop.f32.mrf.mxu1  ;;  %12713 = vmatprep.mubr.bf16.mxu0 %v18599_v14  ;;  %12957 = vmatprep.subr.bf16.mxu0 %v13552_v45  ;;  %v18604_v14 = vld [vmem:[#allocation146_spill] sm:$0xff] }
 0x26f   : > { %18596 = vst [vmem:[#allocation227_spill] sm:$0xff] %v16123_v40  ;;  %v16131_v43 = vadd.f32 %v4645_v54, %v3329_v19  ;;  %v3340_v21 = vadd.f32 %v12308_v41, %v18601_v5  ;;  %v4661_v17 = vpop.f32.mrf.mxu0  ;;  %12958 = vmatpush3.bf16.msra.mxu0 %v13552_v45  ;;  %v18606_v19 = vld [vmem:[#allocation63_spill] sm:$0xff] }
 0x270   : > { %v3331_v0 = vpop.f32.mrf.mxu1 }
 0x271   : > { %18600 = vst [vmem:[#allocation232_spill] sm:$0xff] %v16131_v43  ;;  %v16137_v37 = vadd.f32 %v12452_v16, %v3340_v21  ;;  %v3332_v3 = vadd.f32 %v3331_v0, %v18603_v49  ;;  %v12456_v40 = vpop.f32.mrf.mxu0  ;;  %v18607_v43 = vld [vmem:[#allocation148_spill] sm:$0xff]  ;;  %v18609_v16 = vld [vmem:[#allocation65_spill] sm:$0xff] }
 0x272   : > { %v12311_v50 = vpop.f32.mrf.mxu1  ;;  %12566 = vmatmul.mubr.bf16.gmra.mxu1 %v18604_v14  ;;  %v18610_v0 = vld [vmem:[#allocation49_spill] sm:$0xff] }
 0x273   : > { %18602 = vst [vmem:[#allocation235_spill] sm:$0xff] %v16137_v37  ;;  %v16141_v54 = vadd.f32 %v4648_v38, %v3332_v3  ;;  %v3353_v41 = vadd.f32 %v12311_v50, %v18606_v19  ;;  %v4664_v5 = vpop.f32.mrf.mxu0  ;;  %12569 = vmatprep.mubr.bf16.mxu1 %v18607_v43  ;;  %v18611_v37 = vld [vmem:[#allocation51_spill] sm:$0xff] }
 0x274   : > { %v3344_v24 = vpop.f32.mrf.mxu1  ;;  %v18613_v38 = vld [vmem:[#allocation67_spill] sm:$0xff] }
 0x275   : > { %18605 = vst [vmem:[#allocation240_spill] sm:$0xff] %v16141_v54  ;;  %v16145_v58 = vadd.f32 %v12455_v11, %v3353_v41  ;;  %v3345_v2 = vadd.f32 %v3344_v24, %v18609_v16  ;;  %v12459_v21 = vpop.f32.mrf.mxu0  ;;  %12714 = vmatmul.mubr.bf16.gmra.mxu0 %v18610_v0  ;;  %v18615_v54 = vld [vmem:[#allocation69_spill] sm:$0xff]  ;;  %v18618_v16 = vld [vmem:[#allocation71_spill] sm:$0xff] }
 0x276   : > { %v12312_v49 = vpop.f32.mrf.mxu1  ;;  %12717 = vmatprep.mubr.bf16.mxu0 %v18611_v37  ;;  %v18619_v37 = vld [vmem:[#allocation156_spill] sm:$0xff] }
 0x277   : > { %18608 = vst [vmem:[#allocation243_spill] sm:$0xff] %v16145_v58  ;;  %v16150_v14 = vadd.f32 %v4661_v17, %v3345_v2  ;;  %v3356_v3 = vadd.f32 %v12312_v49, %v18613_v38  ;;  %v4677_v45 = vpop.f32.mrf.mxu0  ;;  %v18616_v58 = vld [vmem:[#allocation154_spill] sm:$0xff]  ;;  %v18621_v49 = vld [vmem:[#allocation73_spill] sm:$0xff] }
 0x278   : > { %v3347_v50 = vpop.f32.mrf.mxu1 }
 0x279   : > { %18612 = vst [vmem:[#allocation247_spill] sm:$0xff] %v16150_v14  ;;  %v16153_v19 = vadd.f32 %v12456_v40, %v3356_v3  ;;  %v3348_v43 = vadd.f32 %v3347_v50, %v18615_v54  ;;  %v12460_v11 = vpop.f32.mrf.mxu0  ;;  %v18622_v3 = vld [vmem:[#allocation53_spill] sm:$0xff]  ;;  %v18623_v50 = vld [vmem:[#allocation55_spill] sm:$0xff]  ;;  %v18627_v14 = vld [vmem:[#allocation78_spill] sm:$0xff] }
 0x27a   : > { %v12315_v41 = vpop.f32.mrf.mxu1  ;;  %12570 = vmatmul.mubr.bf16.gmra.mxu1 %v18616_v58 }
 0x27b   : > { %18614 = vst [vmem:[#allocation251_spill] sm:$0xff] %v16153_v19  ;;  %v16157_v24 = vadd.f32 %v4664_v5, %v3348_v43  ;;  %v3369_v0 = vadd.f32 %v12315_v41, %v18618_v16  ;;  %v4680_v30 = vpop.f32.mrf.mxu0  ;;  %12573 = vmatprep.mubr.bf16.mxu1 %v18619_v37  ;;  %v18625_v43 = vld [vmem:[#allocation75_spill] sm:$0xff] }
 0x27c   : > { %v3360_v17 = vpop.f32.mrf.mxu1 }
 0x27d   : > { %18617 = vst [vmem:[#allocation254_spill] sm:$0xff] %v16157_v24  ;;  %v16161_v2 = vadd.f32 %v12459_v21, %v3369_v0  ;;  %v3361_v38 = vadd.f32 %v3360_v17, %v18621_v49  ;;  %v12463_v40 = vpop.f32.mrf.mxu0  ;;  %12718 = vmatmul.mubr.bf16.gmra.mxu0 %v18622_v3  ;;  %v18630_v49 = vld [vmem:[#allocation80_spill] sm:$0xff] }
 0x27e   : > { %v12316_v54 = vpop.f32.mrf.mxu1  ;;  %12721 = vmatprep.mubr.bf16.mxu0 %v18623_v50  ;;  %v18631_v50 = vld [vmem:[#allocation164_spill] sm:$0xff] }
 0x27f   : > { %18620 = vst [vmem:[#allocation256_spill] sm:$0xff] %v16161_v2  ;;  %v16166_v19 = vadd.f32 %v4677_v45, %v3361_v38  ;;  %v3372_v5 = vadd.f32 %v12316_v54, %v18625_v43  ;;  %v4693_v24 = vpop.f32.mrf.mxu0  ;;  %v18628_v2 = vld [vmem:[#allocation162_spill] sm:$0xff] }
 0x280   : > { %v3363_v41 = vpop.f32.mrf.mxu1  ;;  %v18633_v54 = vld [vmem:[#allocation82_spill] sm:$0xff] }
 0x281   : > { %18624 = vst [vmem:[#allocation260_spill] sm:$0xff] %v16166_v19  ;;  %v16169_v16 = vadd.f32 %v12460_v11, %v3372_v5  ;;  %v3364_v37 = vadd.f32 %v3363_v41, %v18627_v14  ;;  %v12464_v21 = vpop.f32.mrf.mxu0  ;;  %v18634_v5 = vld [vmem:[#allocation59_spill] sm:$0xff]  ;;  %v18635_v41 = vld [vmem:[#allocation64_spill] sm:$0xff] }
 0x282   : > { %v12319_v0 = vpop.f32.mrf.mxu1  ;;  %12574 = vmatmul.mubr.bf16.gmra.mxu1 %v18628_v2  ;;  %v18639_v19 = vld [vmem:[#allocation87_spill] sm:$0xff] }
 0x283   : > { %18626 = vst [vmem:[#allocation56_spill] sm:$0xff] %v16169_v16  ;;  %v16173_v17 = vadd.f32 %v4680_v30, %v3364_v37  ;;  %v3385_v3 = vadd.f32 %v12319_v0, %v18630_v49  ;;  %v4696_v58 = vpop.f32.mrf.mxu0  ;;  %12577 = vmatprep.mubr.bf16.mxu1 %v18631_v50  ;;  %v18637_v30 = vld [vmem:[#allocation85_spill] sm:$0xff] }
 0x284   : > { %v3376_v45 = vpop.f32.mrf.mxu1 }
 0x285   : > { %18629 = vst [vmem:[#allocation57_spill] sm:$0xff] %v16173_v17  ;;  %v16177_v38 = vadd.f32 %v12463_v40, %v3385_v3  ;;  %v3377_v43 = vadd.f32 %v3376_v45, %v18633_v54  ;;  %v12467_v11 = vpop.f32.mrf.mxu0  ;;  %12722 = vmatmul.mubr.bf16.gmra.mxu0 %v18634_v5  ;;  %v18642_v54 = vld [vmem:[#allocation91_spill] sm:$0xff] }
 0x286   : > { %v12320_v14 = vpop.f32.mrf.mxu1  ;;  %12725 = vmatprep.mubr.bf16.mxu0 %v18635_v41  ;;  %v18643_v41 = vld [vmem:[#allocation172_spill] sm:$0xff] }
 0x287   : > { %18632 = vst [vmem:[#allocation60_spill] sm:$0xff] %v16177_v38  ;;  %v16182_v16 = vadd.f32 %v4693_v24, %v3377_v43  ;;  %v3388_v37 = vadd.f32 %v12320_v14, %v18637_v30  ;;  %v4709_v17 = vpop.f32.mrf.mxu0  ;;  %v18640_v38 = vld [vmem:[#allocation170_spill] sm:$0xff]  ;;  %v18645_v14 = vld [vmem:[#allocation93_spill] sm:$0xff] }
 0x288   : > { %v3379_v0 = vpop.f32.mrf.mxu1 }
 0x289   : > { %18636 = vst [vmem:[#allocation61_spill] sm:$0xff] %v16182_v16  ;;  %v16185_v49 = vadd.f32 %v12464_v21, %v3388_v37  ;;  %v3380_v50 = vadd.f32 %v3379_v0, %v18639_v19  ;;  %v12468_v40 = vpop.f32.mrf.mxu0  ;;  %v18646_v37 = vld [vmem:[#allocation68_spill] sm:$0xff]  ;;  %v13553_v19 = vld [vmem:[%s17845_s1 + $0x140] sm:$0xff]  }
 0x28a   : > { %v12323_v3 = vpop.f32.mrf.mxu1  ;;  %12578 = vmatmul.mubr.bf16.gmra.mxu1 %v18640_v38  ;;  %12815 = vmatprep.subr.bf16.mxu1 %v13553_v19 }
 0x28b   : > { %18638 = vst [vmem:[#allocation63_spill] sm:$0xff] %v16185_v49  ;;  %v16189_v45 = vadd.f32 %v4696_v58, %v3380_v50  ;;  %v3401_v5 = vadd.f32 %v12323_v3, %v18642_v54  ;;  %v4712_v2 = vpop.f32.mrf.mxu0  ;;  %12581 = vmatprep.mubr.bf16.mxu1 %v18643_v41  ;;  %v18647_v58 = vld [vmem:[#allocation72_spill] sm:$0xff]  ;;  %v18649_v3 = vld [vmem:[#allocation97_spill] sm:$0xff]  ;;  %12816 = vmatpush3.bf16.msra.mxu1 %v13553_v19 }
 0x28c   : > { %v3392_v24 = vpop.f32.mrf.mxu1 }
 0x28d   : > { %18641 = vst [vmem:[#allocation65_spill] sm:$0xff] %v16189_v45  ;;  %v16193_v43 = vadd.f32 %v12467_v11, %v3401_v5  ;;  %v3393_v30 = vadd.f32 %v3392_v24, %v18645_v14  ;;  %v12471_v21 = vpop.f32.mrf.mxu0  ;;  %12726 = vmatmul.mubr.bf16.gmra.mxu0 %v18646_v37  ;;  %v13554_v11 = vld [vmem:[%s17845_s1 + $0x180] sm:$0xff]   ;;  %v18651_v14 = vld [vmem:[#allocation99_spill] sm:$0xff] }
 0x28e   : > { %v12324_v0 = vpop.f32.mrf.mxu1  ;;  %12729 = vmatprep.mubr.bf16.mxu0 %v18647_v58  ;;  %12959 = vmatprep.subr.bf16.mxu0 %v13554_v11  ;;  %v18652_v58 = vld [vmem:[#allocation178_spill] sm:$0xff] }
 0x28f   : > { %18644 = vst [vmem:[#allocation67_spill] sm:$0xff] %v16193_v43  ;;  %v16201_v50 = vadd.f32 %v4709_v17, %v3393_v30  ;;  %v3404_v54 = vadd.f32 %v12324_v0, %v18649_v3  ;;  %v4725_v45 = vpop.f32.mrf.mxu0  ;;  %12960 = vmatpush3.bf16.msra.mxu0 %v13554_v11  ;;  %v18654_v30 = vld [vmem:[#allocation103_spill] sm:$0xff] }
 0x290   : > { %v3395_v5 = vpop.f32.mrf.mxu1 }
 0x291   : > { %18648 = vst [vmem:[#allocation69_spill] sm:$0xff] %v16201_v50  ;;  %v16207_v24 = vadd.f32 %v12468_v40, %v3404_v54  ;;  %v3396_v37 = vadd.f32 %v3395_v5, %v18651_v14  ;;  %v12472_v43 = vpop.f32.mrf.mxu0  ;;  %v18655_v50 = vld [vmem:[#allocation180_spill] sm:$0xff]  ;;  %v18657_v40 = vld [vmem:[#allocation105_spill] sm:$0xff] }
 0x292   : > { %v12327_v49 = vpop.f32.mrf.mxu1  ;;  %12582 = vmatmul.mubr.bf16.gmra.mxu1 %v18652_v58  ;;  %v18658_v5 = vld [vmem:[#allocation76_spill] sm:$0xff] }
 0x293   : > { %18650 = vst [vmem:[#allocation71_spill] sm:$0xff] %v16207_v24  ;;  %v16211_v17 = vadd.f32 %v4712_v2, %v3396_v37  ;;  %v3417_v0 = vadd.f32 %v12327_v49, %v18654_v30  ;;  %v4728_v3 = vpop.f32.mrf.mxu0  ;;  %12585 = vmatprep.mubr.bf16.mxu1 %v18655_v50  ;;  %v18659_v24 = vld [vmem:[#allocation6_spill] sm:$0xff]  ;;  %v18661_v2 = vld [vmem:[#allocation109_spill] sm:$0xff] }
 0x294   : > { %v3408_v16 = vpop.f32.mrf.mxu1 }
 0x295   : > { %18653 = vst [vmem:[#allocation73_spill] sm:$0xff] %v16211_v17  ;;  %v16215_v41 = vadd.f32 %v12471_v21, %v3417_v0  ;;  %v3409_v19 = vadd.f32 %v3408_v16, %v18657_v40  ;;  %v12475_v54 = vpop.f32.mrf.mxu0  ;;  %12730 = vmatmul.mubr.bf16.gmra.mxu0 %v18658_v5  ;;  %v18663_v17 = vld [vmem:[#allocation111_spill] sm:$0xff] }
 0x296   : > { %v12328_v14 = vpop.f32.mrf.mxu1  ;;  %12733 = vmatprep.mubr.bf16.mxu0 %v18659_v24  ;;  %v18666_v40 = vld [vmem:[#allocation115_spill] sm:$0xff]  ;;  %v18667_v24 = vld [vmem:[#allocation188_spill] sm:$0xff] }
 0x297   : > { %18656 = vst [vmem:[#allocation75_spill] sm:$0xff] %v16215_v41  ;;  %v16220_v58 = vadd.f32 %v4725_v45, %v3409_v19  ;;  %v3420_v37 = vadd.f32 %v12328_v14, %v18661_v2  ;;  %v4741_v11 = vpop.f32.mrf.mxu0  ;;  %v18664_v41 = vld [vmem:[#allocation186_spill] sm:$0xff]  ;;  %v18669_v14 = vld [vmem:[#allocation117_spill] sm:$0xff] }
 0x298   : > { %v3411_v49 = vpop.f32.mrf.mxu1 }
 0x299   : > { %18660 = vst [vmem:[#allocation78_spill] sm:$0xff] %v16220_v58  ;;  %v16223_v30 = vadd.f32 %v12472_v43, %v3420_v37  ;;  %v3412_v50 = vadd.f32 %v3411_v49, %v18663_v17  ;;  %v12476_v21 = vpop.f32.mrf.mxu0  ;;  %v18670_v37 = vld [vmem:[#allocation7_spill] sm:$0xff]  ;;  %v18671_v49 = vld [vmem:[#allocation8_spill] sm:$0xff] }
 0x29a   : > { %v12331_v0 = vpop.f32.mrf.mxu1  ;;  %12586 = vmatmul.mubr.bf16.gmra.mxu1 %v18664_v41  ;;  %v18675_v58 = vld [vmem:[#allocation123_spill] sm:$0xff] }
 0x29b   : > { %18662 = vst [vmem:[#allocation80_spill] sm:$0xff] %v16223_v30  ;;  %v16227_v16 = vadd.f32 %v4728_v3, %v3412_v50  ;;  %v3433_v5 = vadd.f32 %v12331_v0, %v18666_v40  ;;  %v4744_v38 = vpop.f32.mrf.mxu0  ;;  %12589 = vmatprep.mubr.bf16.mxu1 %v18667_v24  ;;  %v18673_v50 = vld [vmem:[#allocation121_spill] sm:$0xff] }
 0x29c   : > { %v3424_v45 = vpop.f32.mrf.mxu1 }
 0x29d   : > { %18665 = vst [vmem:[#allocation82_spill] sm:$0xff] %v16227_v16  ;;  %v16231_v19 = vadd.f32 %v12475_v54, %v3433_v5  ;;  %v3425_v2 = vadd.f32 %v3424_v45, %v18669_v14  ;;  %v12479_v43 = vpop.f32.mrf.mxu0  ;;  %12734 = vmatmul.mubr.bf16.gmra.mxu0 %v18670_v37  ;;  %v18678_v14 = vld [vmem:[#allocation128_spill] sm:$0xff] }
 0x29e   : > { %v12332_v17 = vpop.f32.mrf.mxu1  ;;  %12737 = vmatprep.mubr.bf16.mxu0 %v18671_v49  ;;  %v18679_v49 = vld [vmem:[#allocation196_spill] sm:$0xff] }
 0x29f   : > { %18668 = vst [vmem:[#allocation85_spill] sm:$0xff] %v16231_v19  ;;  %v16236_v30 = vadd.f32 %v4741_v11, %v3425_v2  ;;  %v3436_v3 = vadd.f32 %v12332_v17, %v18673_v50  ;;  %v4757_v16 = vpop.f32.mrf.mxu0  ;;  %v18676_v19 = vld [vmem:[#allocation194_spill] sm:$0xff]  ;;  %v18681_v17 = vld [vmem:[#allocation131_spill] sm:$0xff] }
 0x2a0   : > { %v3427_v0 = vpop.f32.mrf.mxu1 }
 0x2a1   : > { %18672 = vst [vmem:[#allocation87_spill] sm:$0xff] %v16236_v30  ;;  %v16239_v40 = vadd.f32 %v12476_v21, %v3436_v3  ;;  %v3428_v24 = vadd.f32 %v3427_v0, %v18675_v58  ;;  %v12480_v54 = vpop.f32.mrf.mxu0  ;;  %v18682_v3 = vld [vmem:[#allocation10_spill] sm:$0xff]  ;;  %v18683_v0 = vld [vmem:[#allocation12_spill] sm:$0xff]  ;;  %v18687_v30 = vld [vmem:[#allocation139_spill] sm:$0xff] }
 0x2a2   : > { %v12335_v5 = vpop.f32.mrf.mxu1  ;;  %12590 = vmatmul.mubr.bf16.gmra.mxu1 %v18676_v19 }
 0x2a3   : > { %18674 = vst [vmem:[#allocation91_spill] sm:$0xff] %v16239_v40  ;;  %v16243_v45 = vadd.f32 %v4744_v38, %v3428_v24  ;;  %v3449_v37 = vadd.f32 %v12335_v5, %v18678_v14  ;;  %v4760_v41 = vpop.f32.mrf.mxu0  ;;  %12593 = vmatprep.mubr.bf16.mxu1 %v18679_v49  ;;  %v18685_v38 = vld [vmem:[#allocation136_spill] sm:$0xff] }
 0x2a4   : > { %v3440_v11 = vpop.f32.mrf.mxu1 }
 0x2a5   : > { %18677 = vst [vmem:[#allocation93_spill] sm:$0xff] %v16243_v45  ;;  %v16247_v2 = vadd.f32 %v12479_v43, %v3449_v37  ;;  %v3441_v50 = vadd.f32 %v3440_v11, %v18681_v17  ;;  %v12483_v21 = vpop.f32.mrf.mxu0  ;;  %12738 = vmatmul.mubr.bf16.gmra.mxu0 %v18682_v3  ;;  %v18690_v17 = vld [vmem:[#allocation144_spill] sm:$0xff] }
 0x2a6   : > { %v12336_v58 = vpop.f32.mrf.mxu1  ;;  %12741 = vmatprep.mubr.bf16.mxu0 %v18683_v0  ;;  %v18691_v0 = vld [vmem:[#allocation205_spill] sm:$0xff] }
 0x2a7   : > { %18680 = vst [vmem:[#allocation97_spill] sm:$0xff] %v16247_v2  ;;  %v16252_v40 = vadd.f32 %v4757_v16, %v3441_v50  ;;  %v3452_v24 = vadd.f32 %v12336_v58, %v18685_v38  ;;  %v4773_v45 = vpop.f32.mrf.mxu0  ;;  %v18688_v2 = vld [vmem:[#allocation203_spill] sm:$0xff] }
 0x2a8   : > { %v3443_v5 = vpop.f32.mrf.mxu1  ;;  %v18693_v58 = vld [vmem:[#allocation147_spill] sm:$0xff] }
 0x2a9   : > { %18684 = vst [vmem:[#allocation99_spill] sm:$0xff] %v16252_v40  ;;  %v16255_v14 = vadd.f32 %v12480_v54, %v3452_v24  ;;  %v3444_v49 = vadd.f32 %v3443_v5, %v18687_v30  ;;  %v12484_v43 = vpop.f32.mrf.mxu0  ;;  %v18694_v24 = vld [vmem:[#allocation14_spill] sm:$0xff]  ;;  %v16270_v30 = vld [vmem:[%s17845_s1 + $0x1f8] sm:$0xff]  }
 0x2aa   : > { %v12339_v37 = vpop.f32.mrf.mxu1  ;;  %12594 = vmatmul.mubr.bf16.gmra.mxu1 %v18688_v2  ;;  %18695 = vst [vmem:[#allocation111_spill] sm:$0xff] %v16270_v30  ;;  %13089 = vmatprep.subr.bf16.mxu1 %v16270_v30  ;;  %v18708_v2 = vld [vmem:[#allocation20_spill] sm:$0xff] }
 0x2ab   : > { %18686 = vst [vmem:[#allocation103_spill] sm:$0xff] %v16255_v14  ;;  %v16259_v11 = vadd.f32 %v4760_v41, %v3444_v49  ;;  %v3465_v3 = vadd.f32 %v12339_v37, %v18690_v17  ;;  %v4776_v19 = vpop.f32.mrf.mxu0  ;;  %12597 = vmatprep.mubr.bf16.mxu1 %v18691_v0  ;;  %v18696_v49 = vld [vmem:[#allocation16_spill] sm:$0xff]  ;;  %v18704_v14 = vld [vmem:[#allocation214_spill] sm:$0xff] }
 0x2ac   : > { %v3456_v16 = vpop.f32.mrf.mxu1  ;;  %v18698_v37 = vld [vmem:[#allocation152_spill] sm:$0xff] }
 0x2ad   : > { %18689 = vst [vmem:[#allocation105_spill] sm:$0xff] %v16259_v11  ;;  %v16263_v50 = vadd.f32 %v12483_v21, %v3465_v3  ;;  %v3457_v38 = vadd.f32 %v3456_v16, %v18693_v58  ;;  %v12487_v54 = vpop.f32.mrf.mxu0  ;;  %12742 = vmatmul.mubr.bf16.gmra.mxu0 %v18694_v24  ;;  %v16280_v21 = vld [vmem:[%s17845_s1 + $0x238] sm:$0xff]   ;;  %v18700_v58 = vld [vmem:[#allocation155_spill] sm:$0xff] }
 0x2ae   : > { %v12340_v41 = vpop.f32.mrf.mxu1  ;;  %12745 = vmatprep.mubr.bf16.mxu0 %v18696_v49  ;;  %13233 = vmatprep.subr.bf16.mxu0 %v16280_v21 }
 0x2af   : > { %18692 = vst [vmem:[#allocation109_spill] sm:$0xff] %v16263_v50  ;;  %v16273_v5 = vadd.f32 %v4773_v45, %v3457_v38  ;;  %v3468_v17 = vadd.f32 %v12340_v41, %v18698_v37  ;;  %v4789_v11 = vpop.f32.mrf.mxu0  ;;  %v18701_v38 = vld [vmem:[#allocation212_spill] sm:$0xff] }
 0x2b0   : > { %v3459_v3 = vpop.f32.mrf.mxu1  ;;  %v18703_v37 = vld [vmem:[#allocation160_spill] sm:$0xff] }
 0x2b1   : > { %18697 = vst [vmem:[#allocation115_spill] sm:$0xff] %v16273_v5  ;;  %v16282_v16 = vadd.f32 %v12484_v43, %v3468_v17  ;;  %v3460_v24 = vadd.f32 %v3459_v3, %v18700_v58  ;;  %v12488_v50 = vpop.f32.mrf.mxu0  ;;  %v18706_v43 = vld [vmem:[#allocation163_spill] sm:$0xff]  ;;  %v18707_v3 = vld [vmem:[#allocation18_spill] sm:$0xff] }
 0x2b2   : > { %v12343_v45 = vpop.f32.mrf.mxu1  ;;  %12598 = vmatmul.mubr.bf16.gmra.mxu1 %v18701_v38 }
 0x2b3   : > { %18699 = vst [vmem:[#allocation117_spill] sm:$0xff] %v16282_v16  ;;  %v16287_v41 = vadd.f32 %v4776_v19, %v3460_v24  ;;  %v3481_v49 = vadd.f32 %v12343_v45, %v18703_v37  ;;  %v4792_v5 = vpop.f32.mrf.mxu0  ;;  %12601 = vmatprep.mubr.bf16.mxu1 %v18704_v14  ;;  %v18710_v19 = vld [vmem:[#allocation168_spill] sm:$0xff]  ;;  %v18712_v14 = vld [vmem:[#allocation171_spill] sm:$0xff] }
 0x2b4   : > { %v3472_v40 = vpop.f32.mrf.mxu1 }
 0x2b5   : > { %18702 = vst [vmem:[#allocation121_spill] sm:$0xff] %v16287_v41  ;;  %v16291_v0 = vadd.f32 %v12487_v54, %v3481_v49  ;;  %v3473_v17 = vadd.f32 %v3472_v40, %v18706_v43  ;;  %v12491_v16 = vpop.f32.mrf.mxu0  ;;  %12746 = vmatmul.mubr.bf16.gmra.mxu0 %v18707_v3  ;;  %v18715_v43 = vld [vmem:[#allocation176_spill] sm:$0xff] }
 0x2b6   : > { %v12344_v58 = vpop.f32.mrf.mxu1  ;;  %12749 = vmatprep.mubr.bf16.mxu0 %v18708_v2  ;;  %v18716_v2 = vld [vmem:[#allocation222_spill] sm:$0xff] }
 0x2b7   : > { %18705 = vst [vmem:[#allocation123_spill] sm:$0xff] %v16291_v0  ;;  %v16296_v30 = vadd.f32 %v4789_v11, %v3473_v17  ;;  %v3484_v24 = vadd.f32 %v12344_v58, %v18710_v19  ;;  %v4805_v41 = vpop.f32.mrf.mxu0  ;;  %v18713_v0 = vld [vmem:[#allocation220_spill] sm:$0xff]  ;;  %v18718_v58 = vld [vmem:[#allocation179_spill] sm:$0xff] }
 0x2b8   : > { %v3475_v45 = vpop.f32.mrf.mxu1 }
 0x2b9   : > { %18709 = vst [vmem:[#allocation128_spill] sm:$0xff] %v16296_v30  ;;  %v16299_v37 = vadd.f32 %v12488_v50, %v3484_v24  ;;  %v3476_v38 = vadd.f32 %v3475_v45, %v18712_v14  ;;  %v12492_v54 = vpop.f32.mrf.mxu0  ;;  %v18719_v24 = vld [vmem:[#allocation22_spill] sm:$0xff]  ;;  %v18720_v45 = vld [vmem:[#allocation24_spill] sm:$0xff]  ;;  %v18724_v30 = vld [vmem:[#allocation187_spill] sm:$0xff] }
 0x2ba   : > { %v12347_v49 = vpop.f32.mrf.mxu1  ;;  %12602 = vmatmul.mubr.bf16.gmra.mxu1 %v18713_v0 }
 0x2bb   : > { %18711 = vst [vmem:[#allocation131_spill] sm:$0xff] %v16299_v37  ;;  %v16303_v40 = vadd.f32 %v4792_v5, %v3476_v38  ;;  %v3497_v3 = vadd.f32 %v12347_v49, %v18715_v43  ;;  %v4808_v28 = vpop.f32.mrf.mxu0  ;;  %12605 = vmatprep.mubr.bf16.mxu1 %v18716_v2  ;;  %v18722_v5 = vld [vmem:[#allocation184_spill] sm:$0xff] }
 0x2bc   : > { %v3488_v11 = vpop.f32.mrf.mxu1 }
 0x2bd   : > { %18714 = vst [vmem:[#allocation136_spill] sm:$0xff] %v16303_v40  ;;  %v16307_v17 = vadd.f32 %v12491_v16, %v3497_v3  ;;  %v3489_v19 = vadd.f32 %v3488_v11, %v18718_v58  ;;  %v12495_v50 = vpop.f32.mrf.mxu0  ;;  %12750 = vmatmul.mubr.bf16.gmra.mxu0 %v18719_v24  ;;  %v18727_v58 = vld [vmem:[#allocation192_spill] sm:$0xff] }
 0x2be   : > { %v12348_v14 = vpop.f32.mrf.mxu1  ;;  %12753 = vmatprep.mubr.bf16.mxu0 %v18720_v45  ;;  %v18728_v45 = vld [vmem:[#allocation230_spill] sm:$0xff] }
 0x2bf   : > { %18717 = vst [vmem:[#allocation139_spill] sm:$0xff] %v16307_v17  ;;  %v16312_v37 = vadd.f32 %v4805_v41, %v3489_v19  ;;  %v3500_v38 = vadd.f32 %v12348_v14, %v18722_v5  ;;  %v4821_v40 = vpop.f32.mrf.mxu0  ;;  %v18725_v17 = vld [vmem:[#allocation228_spill] sm:$0xff]  ;;  %v18730_v14 = vld [vmem:[#allocation195_spill] sm:$0xff] }
 0x2c0   : > { %v3491_v49 = vpop.f32.mrf.mxu1 }
 0x2c1   : > { %18721 = vst [vmem:[#allocation144_spill] sm:$0xff] %v16312_v37  ;;  %v16315_v43 = vadd.f32 %v12492_v54, %v3500_v38  ;;  %v3492_v2 = vadd.f32 %v3491_v49, %v18724_v30  ;;  %v12496_v16 = vpop.f32.mrf.mxu0  ;;  %v18731_v38 = vld [vmem:[#allocation26_spill] sm:$0xff]  ;;  %v18732_v49 = vld [vmem:[#allocation28_spill] sm:$0xff] }
 0x2c2   : > { %v12351_v3 = vpop.f32.mrf.mxu1  ;;  %12606 = vmatmul.mubr.bf16.gmra.mxu1 %v18725_v17  ;;  %v18736_v37 = vld [vmem:[#allocation204_spill] sm:$0xff] }
 0x2c3   : > { %18723 = vst [vmem:[#allocation147_spill] sm:$0xff] %v16315_v43  ;;  %v16319_v11 = vadd.f32 %v4808_v28, %v3492_v2  ;;  %v3513_v24 = vadd.f32 %v12351_v3, %v18727_v58  ;;  %v4824_v0 = vpop.f32.mrf.mxu0  ;;  %12609 = vmatprep.mubr.bf16.mxu1 %v18728_v45  ;;  %v18734_v28 = vld [vmem:[#allocation200_spill] sm:$0xff] }
 0x2c4   : > { %v3504_v41 = vpop.f32.mrf.mxu1 }
 0x2c5   : > { %18726 = vst [vmem:[#allocation152_spill] sm:$0xff] %v16319_v11  ;;  %v16323_v19 = vadd.f32 %v12495_v50, %v3513_v24  ;;  %v3505_v5 = vadd.f32 %v3504_v41, %v18730_v14  ;;  %v12499_v54 = vpop.f32.mrf.mxu0  ;;  %12754 = vmatmul.mubr.bf16.gmra.mxu0 %v18731_v38  ;;  %v18739_v14 = vld [vmem:[#allocation210_spill] sm:$0xff] }
 0x2c6   : > { %v12352_v30 = vpop.f32.mrf.mxu1  ;;  %12757 = vmatprep.mubr.bf16.mxu0 %v18732_v49  ;;  %v18740_v49 = vld [vmem:[#allocation238_spill] sm:$0xff] }
 0x2c7   : > { %18729 = vst [vmem:[#allocation155_spill] sm:$0xff] %v16323_v19  ;;  %v16328_v43 = vadd.f32 %v4821_v40, %v3505_v5  ;;  %v3516_v2 = vadd.f32 %v12352_v30, %v18734_v28  ;;  %v4837_v11 = vpop.f32.mrf.mxu0  ;;  %v18737_v19 = vld [vmem:[#allocation236_spill] sm:$0xff]  ;;  %v18742_v30 = vld [vmem:[#allocation213_spill] sm:$0xff] }
 0x2c8   : > { %v3507_v3 = vpop.f32.mrf.mxu1 }
 0x2c9   : > { %18733 = vst [vmem:[#allocation160_spill] sm:$0xff] %v16328_v43  ;;  %v16331_v58 = vadd.f32 %v12496_v16, %v3516_v2  ;;  %v3508_v45 = vadd.f32 %v3507_v3, %v18736_v37  ;;  %v12500_v50 = vpop.f32.mrf.mxu0  ;;  %v18743_v2 = vld [vmem:[#allocation30_spill] sm:$0xff]  ;;  %v18744_v3 = vld [vmem:[#allocation32_spill] sm:$0xff]  ;;  %v18748_v43 = vld [vmem:[#allocation221_spill] sm:$0xff] }
 0x2ca   : > { %v12355_v24 = vpop.f32.mrf.mxu1  ;;  %12610 = vmatmul.mubr.bf16.gmra.mxu1 %v18737_v19 }
 0x2cb   : > { %18735 = vst [vmem:[#allocation163_spill] sm:$0xff] %v16331_v58  ;;  %v16335_v41 = vadd.f32 %v4824_v0, %v3508_v45  ;;  %v3529_v38 = vadd.f32 %v12355_v24, %v18739_v14  ;;  %v4840_v17 = vpop.f32.mrf.mxu0  ;;  %12613 = vmatprep.mubr.bf16.mxu1 %v18740_v49  ;;  %v18746_v0 = vld [vmem:[#allocation218_spill] sm:$0xff] }
 0x2cc   : > { %v3520_v40 = vpop.f32.mrf.mxu1 }
 0x2cd   : > { %18738 = vst [vmem:[#allocation168_spill] sm:$0xff] %v16335_v41  ;;  %v16339_v5 = vadd.f32 %v12499_v54, %v3529_v38  ;;  %v3521_v28 = vadd.f32 %v3520_v40, %v18742_v30  ;;  %v12503_v16 = vpop.f32.mrf.mxu0  ;;  %12758 = vmatmul.mubr.bf16.gmra.mxu0 %v18743_v2  ;;  %v18751_v30 = vld [vmem:[#allocation226_spill] sm:$0xff] }
 0x2ce   : > { %v12356_v37 = vpop.f32.mrf.mxu1  ;;  %12761 = vmatprep.mubr.bf16.mxu0 %v18744_v3  ;;  %v18752_v3 = vld [vmem:[#allocation246_spill] sm:$0xff] }
 0x2cf   : > { %18741 = vst [vmem:[#allocation171_spill] sm:$0xff] %v16339_v5  ;;  %v16344_v58 = vadd.f32 %v4837_v11, %v3521_v28  ;;  %v3532_v45 = vadd.f32 %v12356_v37, %v18746_v0  ;;  %v4853_v41 = vpop.f32.mrf.mxu0  ;;  %v18749_v5 = vld [vmem:[#allocation244_spill] sm:$0xff]  ;;  %v18754_v37 = vld [vmem:[#allocation229_spill] sm:$0xff] }
 0x2d0   : > { %v3523_v24 = vpop.f32.mrf.mxu1 }
 0x2d1   : > { %18745 = vst [vmem:[#allocation176_spill] sm:$0xff] %v16344_v58  ;;  %v16347_v14 = vadd.f32 %v12500_v50, %v3532_v45  ;;  %v3524_v49 = vadd.f32 %v3523_v24, %v18748_v43  ;;  %v12504_v54 = vpop.f32.mrf.mxu0  ;;  %v18755_v45 = vld [vmem:[#allocation34_spill] sm:$0xff]  ;;  %v18756_v24 = vld [vmem:[#allocation36_spill] sm:$0xff]  ;;  %v18760_v58 = vld [vmem:[#allocation237_spill] sm:$0xff] }
 0x2d2   : > { %v12359_v38 = vpop.f32.mrf.mxu1  ;;  %12614 = vmatmul.mubr.bf16.gmra.mxu1 %v18749_v5 }
 0x2d3   : > { %18747 = vst [vmem:[#allocation179_spill] sm:$0xff] %v16347_v14  ;;  %v16351_v40 = vadd.f32 %v4840_v17, %v3524_v49  ;;  %v3545_v2 = vadd.f32 %v12359_v38, %v18751_v30  ;;  %v4856_v19 = vpop.f32.mrf.mxu0  ;;  %12617 = vmatprep.mubr.bf16.mxu1 %v18752_v3  ;;  %v18758_v17 = vld [vmem:[#allocation233_spill] sm:$0xff] }
 0x2d4   : > { %v3536_v11 = vpop.f32.mrf.mxu1 }
 0x2d5   : > { %18750 = vst [vmem:[#allocation184_spill] sm:$0xff] %v16351_v40  ;;  %v16355_v28 = vadd.f32 %v12503_v16, %v3545_v2  ;;  %v3537_v0 = vadd.f32 %v3536_v11, %v18754_v37  ;;  %v12507_v50 = vpop.f32.mrf.mxu0  ;;  %12762 = vmatmul.mubr.bf16.gmra.mxu0 %v18755_v45  ;;  %v18763_v37 = vld [vmem:[#allocation241_spill] sm:$0xff] }
 0x2d6   : > { %v12360_v43 = vpop.f32.mrf.mxu1  ;;  %12765 = vmatprep.mubr.bf16.mxu0 %v18756_v24  ;;  %v18764_v24 = vld [vmem:[#allocation255_spill] sm:$0xff] }
 0x2d7   : > { %18753 = vst [vmem:[#allocation187_spill] sm:$0xff] %v16355_v28  ;;  %v16360_v14 = vadd.f32 %v4853_v41, %v3537_v0  ;;  %v3548_v49 = vadd.f32 %v12360_v43, %v18758_v17  ;;  %v4869_v40 = vpop.f32.mrf.mxu0  ;;  %v18761_v28 = vld [vmem:[#allocation253_spill] sm:$0xff] }
 0x2d8   : > { %v3539_v38 = vpop.f32.mrf.mxu1  ;;  %v18766_v43 = vld [vmem:[#allocation245_spill] sm:$0xff] }
 0x2d9   : > { %18757 = vst [vmem:[#allocation192_spill] sm:$0xff] %v16360_v14  ;;  %v16363_v30 = vadd.f32 %v12504_v54, %v3548_v49  ;;  %v3540_v3 = vadd.f32 %v3539_v38, %v18760_v58  ;;  %v12508_v16 = vpop.f32.mrf.mxu0  ;;  %v18767_v49 = vld [vmem:[#allocation38_spill] sm:$0xff]  ;;  %v18768_v38 = vld [vmem:[#allocation40_spill] sm:$0xff] }
 0x2da   : > { %v12363_v2 = vpop.f32.mrf.mxu1  ;;  %12618 = vmatmul.mubr.bf16.gmra.mxu1 %v18761_v28  ;;  %v18772_v14 = vld [vmem:[#allocation252_spill] sm:$0xff] }
 0x2db   : > { %18759 = vst [vmem:[#allocation195_spill] sm:$0xff] %v16363_v30  ;;  %v16367_v11 = vadd.f32 %v4856_v19, %v3540_v3  ;;  %v3561_v45 = vadd.f32 %v12363_v2, %v18763_v37  ;;  %v4872_v5 = vpop.f32.mrf.mxu0  ;;  %12621 = vmatprep.mubr.bf16.mxu1 %v18764_v24  ;;  %v18770_v19 = vld [vmem:[#allocation249_spill] sm:$0xff] }
 0x2dc   : > { %v3552_v41 = vpop.f32.mrf.mxu1 }
 0x2dd   : > { %18762 = vst [vmem:[#allocation200_spill] sm:$0xff] %v16367_v11  ;;  %v16371_v0 = vadd.f32 %v12507_v50, %v3561_v45  ;;  %v3553_v17 = vadd.f32 %v3552_v41, %v18766_v43  ;;  %v12511_v54 = vpop.f32.mrf.mxu0  ;;  %12766 = vmatmul.mubr.bf16.gmra.mxu0 %v18767_v49  ;;  %v18775_v43 = vld [vmem:[#allocation258_spill] sm:$0xff] }
 0x2de   : > { %v12364_v58 = vpop.f32.mrf.mxu1  ;;  %12769 = vmatprep.mubr.bf16.mxu0 %v18768_v38  ;;  %v18776_v38 = vld [vmem:[#allocation264_spill] sm:$0xff] }
 0x2df   : > { %18765 = vst [vmem:[#allocation204_spill] sm:$0xff] %v16371_v0  ;;  %v16376_v30 = vadd.f32 %v4869_v40, %v3553_v17  ;;  %v3564_v3 = vadd.f32 %v12364_v58, %v18770_v19  ;;  %v4885_v11 = vpop.f32.mrf.mxu0  ;;  %v18773_v0 = vld [vmem:[#allocation263_spill] sm:$0xff]  ;;  %v18778_v58 = vld [vmem:[#allocation261_spill] sm:$0xff] }
 0x2e0   : > { %v3555_v2 = vpop.f32.mrf.mxu1 }
 0x2e1   : > { %18769 = vst [vmem:[#allocation210_spill] sm:$0xff] %v16376_v30  ;;  %v16379_v37 = vadd.f32 %v12508_v16, %v3564_v3  ;;  %v3556_v24 = vadd.f32 %v3555_v2, %v18772_v14  ;;  %v12512_v50 = vpop.f32.mrf.mxu0  ;;  %v18779_v3 = vld [vmem:[#allocation42_spill] sm:$0xff]  ;;  %v18780_v2 = vld [vmem:[#allocation44_spill] sm:$0xff]  ;;  %v18783_v30 = vld [vmem:[#allocation265_spill] sm:$0xff] }
 0x2e2   : > { %v12367_v45 = vpop.f32.mrf.mxu1  ;;  %12622 = vmatmul.mubr.bf16.gmra.mxu1 %v18773_v0 }
 0x2e3   : > { %18771 = vst [vmem:[#allocation213_spill] sm:$0xff] %v16379_v37  ;;  %v16383_v41 = vadd.f32 %v4872_v5, %v3556_v24  ;;  %v3577_v49 = vadd.f32 %v12367_v45, %v18775_v43  ;;  %v4888_v28 = vpop.f32.mrf.mxu0  ;;  %12625 = vmatprep.mubr.bf16.mxu1 %v18776_v38  ;;  %v18781_v5 = vld [vmem:[#allocation262_spill] sm:$0xff] }
 0x2e4   : > { %v3568_v40 = vpop.f32.mrf.mxu1 }
 0x2e5   : > { %18774 = vst [vmem:[#allocation218_spill] sm:$0xff] %v16383_v41  ;;  %v16387_v17 = vadd.f32 %v12511_v54, %v3577_v49  ;;  %v3569_v19 = vadd.f32 %v3568_v40, %v18778_v58  ;;  %v12675_v16 = vpop.f32.mrf.mxu0  ;;  %12770 = vmatmul.mubr.bf16.gmra.mxu0 %v18779_v3  ;;  %v18785_v58 = vld [vmem:[#allocation268_spill] sm:$0xff] }
 0x2e6   : > { %v12368_v14 = vpop.f32.mrf.mxu1  ;;  %12773 = vmatprep.mubr.bf16.mxu0 %v18780_v2 }
 0x2e7   : > { %18777 = vst [vmem:[#allocation221_spill] sm:$0xff] %v16387_v17  ;;  %v16392_v37 = vadd.f32 %v4885_v11, %v3569_v19  ;;  %v3580_v24 = vadd.f32 %v12368_v14, %v18781_v5  ;;  %v5929_v41 = vpop.f32.mrf.mxu0  ;;  %v18787_v14 = vld [vmem:[#allocation269_spill] sm:$0xff] }
 0x2e8   : > { %v3571_v45 = vpop.f32.mrf.mxu1 }
 0x2e9   : > { %v16395_v43 = vadd.f32 %v12512_v50, %v3580_v24  ;;  %v3572_v38 = vadd.f32 %v3571_v45, %v18783_v30  ;;  %v12676_v54 = vpop.f32.mrf.mxu0  ;;  %v18788_v24 = vld [vmem:[#allocation46_spill] sm:$0xff]  ;;  %v18789_v45 = vld [vmem:[#allocation48_spill] sm:$0xff] }
 0x2ea   : > { %v12531_v49 = vpop.f32.mrf.mxu1  ;;  %12626 = vmatmul.mubr.bf16.gmra.mxu1 %v15672_v63 }
 0x2eb   : > { %18782 = vst [vmem:[#allocation226_spill] sm:$0xff] %v16395_v43  ;;  %v16399_v40 = vadd.f32 %v4888_v28, %v3572_v38  ;;  %v5652_v3 = vadd.f32 %v12531_v49, %v18785_v58  ;;  %v5932_v17 = vpop.f32.mrf.mxu0  ;;  %12629 = vmatprep.mubr.bf16.mxu1 %v15675_v33 }
 0x2ec   : > { %v5139_v11 = vpop.f32.mrf.mxu1 }
 0x2ed   : > { %18784 = vst [vmem:[#allocation229_spill] sm:$0xff] %v16399_v40  ;;  %v16403_v19 = vadd.f32 %v12675_v16, %v5652_v3  ;;  %v5650_v5 = vadd.f32 %v5139_v11, %v18787_v14  ;;  %v12679_v50 = vpop.f32.mrf.mxu0  ;;  %12774 = vmatmul.mubr.bf16.gmra.mxu0 %v18788_v24  ;;  %v18793_v14 = vld [vmem:[#allocation272_spill] sm:$0xff] }
 0x2ee   : > { %v12532_v30 = vpop.f32.mrf.mxu1  ;;  %12777 = vmatprep.mubr.bf16.mxu0 %v18789_v45 }
 0x2ef   : > { %18786 = vst [vmem:[#allocation233_spill] sm:$0xff] %v16403_v19  ;;  %v16408_v2 = vadd.f32 %v5929_v41, %v5650_v5  ;;  %v5653_v28 = vadd.f32 %v12532_v30, %v15698_v56  ;;  %v5945_v38 = vpop.f32.mrf.mxu0  ;;  %v18795_v56 = vld [vmem:[#allocation273_spill] sm:$0xff] }
 0x2f0   : > { %v5142_v49 = vpop.f32.mrf.mxu1 }
 0x2f1   : > { %18790 = vst [vmem:[#allocation237_spill] sm:$0xff] %v16408_v2  ;;  %v16411_v58 = vadd.f32 %v12676_v54, %v5653_v28  ;;  %v5651_v40 = vadd.f32 %v5142_v49, %v15707_v60  ;;  %v12680_v16 = vpop.f32.mrf.mxu0  ;;  %v18796_v28 = vld [vmem:[#allocation50_spill] sm:$0xff]  ;;  %v18797_v49 = vld [vmem:[#allocation52_spill] sm:$0xff] }
 0x2f2   : > { %v12535_v3 = vpop.f32.mrf.mxu1  ;;  %12630 = vmatmul.mubr.bf16.gmra.mxu1 %v15720_v35 }
 0x2f3   : > { %18791 = vst [vmem:[#allocation241_spill] sm:$0xff] %v16411_v58  ;;  %v16415_v11 = vadd.f32 %v5932_v17, %v5651_v40  ;;  %v5656_v24 = vadd.f32 %v12535_v3, %v18793_v14  ;;  %v5948_v19 = vpop.f32.mrf.mxu0  ;;  %12633 = vmatprep.mubr.bf16.mxu1 %v15724_v12 }
 0x2f4   : > { %v5155_v41 = vpop.f32.mrf.mxu1 }
 0x2f5   : > { %18792 = vst [vmem:[#allocation245_spill] sm:$0xff] %v16415_v11  ;;  %v16419_v5 = vadd.f32 %v12679_v50, %v5656_v24  ;;  %v5654_v30 = vadd.f32 %v5155_v41, %v18795_v56  ;;  %v12683_v54 = vpop.f32.mrf.mxu0  ;;  %12778 = vmatmul.mubr.bf16.gmra.mxu0 %v18796_v28  ;;  %v18801_v28 = vld [vmem:[#allocation276_spill] sm:$0xff]  ;;  %v16462_v11 = vld [vmem:[%s13886_s3 + $0x288] sm:$0xf] }
 0x2f6   : > { %v12536_v60 = vpop.f32.mrf.mxu1  ;;  %12781 = vmatprep.mubr.bf16.mxu0 %v18797_v49 }
 0x2f7   : > { %18794 = vst [vmem:[#allocation249_spill] sm:$0xff] %v16419_v5  ;;  %v16424_v17 = vadd.f32 %v5945_v38, %v5654_v30  ;;  %v5657_v40 = vadd.f32 %v12536_v60, %v15747_v48  ;;  %v5961_v3 = vpop.f32.mrf.mxu0  ;;  %v16436_v38 = vld [vmem:[%s13886_s3 + $0x280] sm:$0xf]  ;;  %v16439_v30 = vld [vmem:[%s13886_s3 + $0x284] sm:$0xf]  ;;  %v18803_v60 = vld [vmem:[#allocation279_spill] sm:$0xff] }
 0x2f8   : > { %v5158_v14 = vpop.f32.mrf.mxu1 }
 0x2f9   : > { %18798 = vst [vmem:[#allocation252_spill] sm:$0xff] %v16424_v17  ;;  %v16427_v45 = vadd.f32 %v12680_v16, %v5657_v40  ;;  %v5655_v50 = vadd.f32 %v5158_v14, %v15756_v26  ;;  %v12684_v24 = vpop.f32.mrf.mxu0  ;;  %v18804_v14 = vld [vmem:[#allocation54_spill] sm:$0xff] }
 0x2fa   : > { %v12539_v41 = vpop.f32.mrf.mxu1  ;;  %12634 = vmatmul.mubr.bf16.gmra.mxu1 %v15769_v29 }
 0x2fb   : > { %18799 = vst [vmem:[#allocation263_spill] sm:$0xff] %v16427_v45  ;;  %v16431_v56 = vadd.f32 %v5948_v19, %v5655_v50  ;;  %v5660_v5 = vadd.f32 %v12539_v41, %v18801_v28  ;;  %v5964_v49 = vpop.f32.mrf.mxu0  ;;  %12637 = vmatprep.mubr.bf16.mxu1 %v15773_v20  ;;  %v18805_v19 = vld [vmem:[#allocation58_spill] sm:$0xff]  ;;  %v5779_v28 = vshrl.u32 %v16436_v38, 16  ;;  %v5782_v50 = vshll.u32 %v16436_v38, 16 }
 0x2fc   : > { %v5171_v48 = vpop.f32.mrf.mxu1 }
 0x2fd   : > { %18800 = vst [vmem:[#allocation258_spill] sm:$0xff] %v16431_v56  ;;  %v16441_v16 = vadd.f32 %v12683_v54, %v5660_v5  ;;  %v5658_v26 = vadd.f32 %v5171_v48, %v18803_v60  ;;  %v12687_v40 = vpop.f32.mrf.mxu0  ;;  %12782 = vmatmul.mubr.bf16.gmra.mxu0 %v18804_v14  ;;  %v5792_v5 = vshrl.u32 %v16439_v30, 16  ;;  %v5788_v54 = vshll.u32 %v16439_v30, 16 }
 0x2fe   : > { %v12540_v45 = vpop.f32.mrf.mxu1  ;;  %12785 = vmatprep.mubr.bf16.mxu0 %v18805_v19 }
 0x2ff   : > { %18802 = vst [vmem:[#allocation261_spill] sm:$0xff] %v16441_v16  ;;  %v16448_v41 = vadd.f32 %v5961_v3, %v5658_v26  ;;  %v5661_v56 = vadd.f32 %v12540_v45, %v15796_v23  ;;  %v5977_v17 = vpop.f32.mrf.mxu0  ;;  %v5781_v3 = vrot.slane %v5779_v28, 4  ;;  %v5784_v26 = vrot.slane %v5782_v50, 5  ;;  %v18811_v50 = vld [vmem:[#allocation62_spill] sm:$0xff] }
 0x300   : > { %v5174_v48 = vpop.f32.mrf.mxu1  ;;  %v5790_v58 = vrot.slane %v5788_v54, 5 }
 0x301   : > { %18806 = vst [vmem:[#allocation262_spill] sm:$0xff] %v16448_v41  ;;  %v16453_v60 = vadd.f32 %v12684_v24, %v5661_v56  ;;  %v5659_v19 = vadd.f32 %v5174_v48, %v15805_v42  ;;  %v12688_v14 = vpop.f32.mrf.mxu0  ;;  %v5794_v24 = vrot.slane %v5792_v5, 4  ;;  %v16465_v56 = vld [vmem:[%s13886_s3 + $0x28c] sm:$0xf] }
 0x302   : > { %v12543_v16 = vpop.f32.mrf.mxu1  ;;  %12638 = vmatmul.mubr.bf16.gmra.mxu1 %v15818_v1  ;;  %v5812_v54 = vshrl.u32 %v16465_v56, 16  ;;  %v5808_v5 = vshll.u32 %v16465_v56, 16 }
 0x303   : > { %18807 = vst [vmem:[#allocation265_spill] sm:$0xff] %v16453_v60  ;;  %v16457_v41 = vadd.f32 %v5964_v49, %v5659_v19  ;;  %v5664_v23 = vadd.f32 %v12543_v16, %v15813_v22  ;;  %v5980_v45 = vpop.f32.mrf.mxu0  ;;  %12641 = vmatprep.mubr.bf16.mxu1 %v15822_v8  ;;  %v18810_v60 = vld [vmem:[#allocation284_spill] sm:$0xff]  ;;  %v18812_v19 = vld [vmem:[#allocation66_spill] sm:$0xff]  ;;  %v5798_v22 = vshll.u32 %v16462_v11, 16  ;;  %v5802_v16 = vshrl.u32 %v16462_v11, 16 }
 0x304   : > { %v5187_v42 = vpop.f32.mrf.mxu1  ;;  %v5810_v43 = vrot.slane %v5808_v5, 5 }
 0x305   : > { %18808 = vst [vmem:[#allocation268_spill] sm:$0xff] %v16457_v41  ;;  %v16467_v48 = vadd.f32 %v12687_v40, %v5664_v23  ;;  %v5662_v1 = vadd.f32 %v5187_v42, %v18810_v60  ;;  %v12691_v28 = vpop.f32.mrf.mxu0  ;;  %12786 = vmatmul.mubr.bf16.gmra.mxu0 %v18811_v50  ;;  %v5785_v60 = vor.u32 %v5784_v26, %v5781_v3  ;;  %v5800_v29 = vrot.slane %v5798_v22, 5  ;;  %v18813_v22 = vld [vmem:[#allocation70_spill] sm:$0xff] }
 0x306   : > { %v12544_v49 = vpop.f32.mrf.mxu1  ;;  %12789 = vmatprep.mubr.bf16.mxu0 %v18812_v19  ;;  %v5795_v42 = vor.u32 %v5794_v24, %v5790_v58  ;;  %v5804_v2 = vrot.slane %v5802_v16, 4  ;;  %v307_v24 = vld [vmem:[%s13886_s3 + $0x290] sm:$0x1] }
 0x307   : > { %18809 = vst [vmem:[#allocation269_spill] sm:$0xff] %v16467_v48  ;;  %v16476_v41 = vadd.f32 %v5977_v17, %v5662_v1  ;;  %v5665_v40 = vadd.f32 %v12544_v49, %v15845_v9  ;;  %v5993_v23 = vpop.f32.mrf.mxu0  ;;  %v5814_v1 = vrot.slane %v5812_v54, 4  ;;  %v5786_v26 = vrot.slane %v5785_v60, 4  ;;  %v18814_v54 = vld [vmem:[#allocation74_spill] sm:$0xff] }
 0x308   : > { %v5190_v48 = vpop.f32.mrf.mxu1 }
 0x309   : > { %v16479_v50 = vadd.f32 %v12688_v14, %v5665_v40  ;;  %v5663_v19 = vadd.f32 %v5190_v48, %v15857_v44  ;;  %v12692_v8 = vpop.f32.mrf.mxu0  ;;  %v5796_v14 = vrot.slane %v5795_v42, 4 }
 0x30a   : > { %v12547_v20 = vpop.f32.mrf.mxu1  ;;  %12642 = vmatmul.mubr.bf16.gmra.mxu1 %v15867_v52 }
 0x30b   : > { %v16483_v17 = vadd.f32 %v5980_v45, %v5663_v19  ;;  %v5668_v9 = vadd.f32 %v12547_v20, %v15862_v15  ;;  %v5996_v3 = vpop.f32.mrf.mxu0  ;;  %12645 = vmatprep.mubr.bf16.mxu1 %v15871_v10  ;;  %v5805_v45 = vor.u32 %v5804_v2, %v5800_v29  ;;  %v5815_v19 = vor.u32 %v5814_v1, %v5810_v43 }
 0x30c   : > { %v5203_v49 = vpop.f32.mrf.mxu1  ;;  %v5818_v20 = vshll.u32 %v307_v24, 16 }
 0x30d   : > { %v16488_v44 = vadd.f32 %v12691_v28, %v5668_v9  ;;  %v5666_v48 = vadd.f32 %v5203_v49, %v15879_v46  ;;  %v12695_v40 = vpop.f32.mrf.mxu0  ;;  %12790 = vmatmul.mubr.bf16.gmra.mxu0 %v18813_v22  ;;  %v5791_v28 = vsel %vm13905_vm2, %v5786_v26, %v5790_v58  ;;  %v5801_v46 = vsel %vm13905_vm2, %v5796_v14, %v5800_v29 }
 0x30e   : > { %v12548_v16 = vpop.f32.mrf.mxu1  ;;  %12793 = vmatprep.mubr.bf16.mxu0 %v18814_v54  ;;  %v16504_v1 = vcombine.low %v5791_v28, %v5801_v46  ;;  %v5820_v24 = vrot.slane %v5818_v20, 5 }
 0x30f   : > { %v16493_v15 = vadd.f32 %v5993_v23, %v5666_v48  ;;  %v5669_v5 = vadd.f32 %v12548_v16, %v15886_v25  ;;  %v6009_v60 = vpop.f32.mrf.mxu0  ;;  %v5806_v23 = vrot.slane %v5805_v45, 4  ;;  %v5816_v25 = vrot.slane %v5815_v19, 4  ;;  %v18817_v16 = vld [vmem:[#allocation79_spill] sm:$0xff] }
 0x310   : > { %v5206_v9 = vpop.f32.mrf.mxu1  ;;  %18816 = vst [vmem:[#allocation272_spill] sm:$0xff] %v16504_v1 }
 0x311   : > { %v16500_v49 = vadd.f32 %v12692_v8, %v5669_v5  ;;  %v5667_v22 = vadd.f32 %v5206_v9, %v15895_v6  ;;  %v12696_v54 = vpop.f32.mrf.mxu0 }
 0x312   : > { %v12551_v2 = vpop.f32.mrf.mxu1  ;;  %12646 = vmatmul.mubr.bf16.gmra.mxu1 %v15905_v27 }
 0x313   : > { %v16506_v48 = vadd.f32 %v5996_v3, %v5667_v22  ;;  %v5672_v58 = vadd.f32 %v12551_v2, %v15899_v36  ;;  %v6012_v26 = vpop.f32.mrf.mxu0  ;;  %12649 = vmatprep.mubr.bf16.mxu1 %v15916_v59  ;;  %v5811_v3 = vsel %vm13905_vm2, %v5806_v23, %v5810_v43  ;;  %v5821_v36 = vsel %vm13905_vm2, %v5816_v25, %v5820_v24 }
 0x314   : > { %v5219_v29 = vpop.f32.mrf.mxu1  ;;  %v16529_v9 = vcombine.low %v5811_v3, %v5821_v36  ;;  %v16542_v25 = vcombine.low %v16462_v11, %v16465_v56 }
 0x315   : > { %v16510_v8 = vadd.f32 %v12695_v40, %v5672_v58  ;;  %v5670_v6 = vadd.f32 %v5219_v29, %v15912_v55  ;;  %v12699_v14 = vpop.f32.mrf.mxu0  ;;  %12794 = vmatmul.mubr.bf16.gmra.mxu0 %v18817_v16  ;;  %v16524_v55 = vcombine.low %v16436_v38, %v16439_v30  ;;  %v18845_v16 = vld [vmem:[#allocation110_spill] sm:$0xff] }
 0x316   : > { %v12552_v45 = vpop.f32.mrf.mxu1  ;;  %12797 = vmatprep.mubr.bf16.mxu0 %v16504_v1  ;;  %18818 = vst [vmem:[#allocation273_spill] sm:$0xff] %v16529_v9  ;;  %v18839_v1 = vld [vmem:[#allocation95_spill] sm:$0xff] }
 0x317   : > { %v16519_v22 = vadd.f32 %v6009_v60, %v5670_v6  ;;  %v5673_v19 = vadd.f32 %v12552_v45, %v15918_v51  ;;  %v6025_v40 = vpop.f32.mrf.mxu0 }
 0x318   : > { %v5222_v20 = vpop.f32.mrf.mxu1 }
 0x319   : > { %v16526_v5 = vadd.f32 %v12696_v54, %v5673_v19  ;;  %v5671_v28 = vadd.f32 %v5222_v20, %v15924_v47  ;;  %v12700_v46 = vpop.f32.mrf.mxu0 }
 0x31a   : > { %v12555_v43 = vpop.f32.mrf.mxu1  ;;  %12650 = vmatmul.mubr.bf16.gmra.mxu1 %v15933_v34 }
 0x31b   : > { %v16532_v60 = vadd.f32 %v6012_v26, %v5671_v28  ;;  %v5676_v51 = vadd.f32 %v12555_v43, %v15928_v7  ;;  %v6028_v2 = vpop.f32.mrf.mxu0  ;;  %12653 = vmatprep.mubr.bf16.mxu1 %v16524_v55  ;;  %v13559_v43 = vld [vmem:[%s17845_s1 + $0x1f0] sm:$0xff]  }
 0x31c   : > { %v5235_v38 = vpop.f32.mrf.mxu1 }
 0x31d   : > { %v16536_v30 = vadd.f32 %v12699_v14, %v5676_v51  ;;  %v5674_v54 = vadd.f32 %v5235_v38, %v15936_v39  ;;  %v12703_v23 = vpop.f32.mrf.mxu0  ;;  %12798 = vmatmul.mubr.bf16.gmra.mxu0 %v16529_v9  ;;  %v18821_v38 = vld [vmem:[#allocation126_spill] sm:$0xff] }
 0x31e   : > { %v12556_v47 = vpop.f32.mrf.mxu1  ;;  %12961 = vmatprep.mubr.bf16.mxu0 %v18499_v32  ;;  %v18819_v32 = vld [vmem:[#allocation81_spill] sm:$0xff] }
 0x31f   : > { %v16545_v24 = vadd.f32 %v6025_v40, %v5674_v54  ;;  %v5677_v7 = vadd.f32 %v12556_v47, %v15939_v57  ;;  %v6041_v58 = vpop.f32.mrf.mxu0  ;;  %v13560_v57 = vld [vmem:[%s17845_s1 + $0x230] sm:$0xff]  }
 0x320   : > { %v5238_v26 = vpop.f32.mrf.mxu1 }
 0x321   : > { %v16548_v29 = vadd.f32 %v12700_v46, %v5677_v7  ;;  %v5675_v39 = vadd.f32 %v5238_v26, %v15943_v31  ;;  %v12704_v6 = vpop.f32.mrf.mxu0  ;;  %v18823_v7 = vld [vmem:[#allocation84_spill] sm:$0xff] }
 0x322   : > { %v12559_v14 = vpop.f32.mrf.mxu1  ;;  %12654 = vmatmul.mubr.bf16.gmra.mxu1 %v16542_v25 }
 0x323   : > { %v16552_v45 = vadd.f32 %v6028_v2, %v5675_v39  ;;  %v5680_v11 = vadd.f32 %v12559_v14, %v15950_v62  ;;  %v6044_v56 = vpop.f32.mrf.mxu0  ;;  %12817 = vmatprep.mubr.bf16.mxu1 %v18819_v32  ;;  %v18820_v2 = vld [vmem:[#allocation83_spill] sm:$0xff] }
 0x324   : > { %v5251_v3 = vpop.f32.mrf.mxu1 }
 0x325   : > { %v16559_v36 = vadd.f32 %v12703_v23, %v5680_v11  ;;  %v5678_v31 = vadd.f32 %v5251_v3, %v15956_v53  ;;  %v12707_v19 = vpop.f32.mrf.mxu0  ;;  %12962 = vmatmul.mubr.bf16.vlgmr.msra.gmra.mxu0 %v18508_v61  ;;  %v13562_v53 = vld [vmem:[%s17845_s1 + $0x228] sm:$0xff]   ;;  %v18822_v23 = vld [vmem:[#allocation111_spill] sm:$0xff] }
 0x326   : > { %v12560_v40 = vpop.f32.mrf.mxu1  ;;  %13234 = vmatpush3.bf16.msra.mxu0 %v16280_v21  ;;  %12965 = vmatprep.mubr.bf16.mxu0 %v18511_v4 }
 0x327   : > { %v16565_v62 = vadd.f32 %v6041_v58, %v5678_v31  ;;  %v5681_v20 = vadd.f32 %v12560_v40, %v15965_v18  ;;  %v6057_v28 = vpop.f32.mrf.mxu0  ;;  %13235 = vmatprep.subr.bf16.mxu0 %v13560_v57  ;;  %v13564_v58 = vld [vmem:[%s17845_s1 + $0x220] sm:$0xff]   ;;  %v18827_v31 = vld [vmem:[#allocation206_spill] sm:$0xff] }
 0x328   : > { %v5254_v46 = vpop.f32.mrf.mxu1 }
 0x329   : > { %v16574_v61 = vadd.f32 %v12704_v6, %v5681_v20  ;;  %v5679_v21 = vadd.f32 %v5254_v46, %v15969_v13  ;;  %v12708_v4 = vpop.f32.mrf.mxu0  ;;  %v13561_v13 = vld [vmem:[%s17845_s1 + $0x1e8] sm:$0xff]   ;;  %v18824_v6 = vld [vmem:[#allocation9_spill] sm:$0xff] }
 0x32a   : > { %v12563_v51 = vpop.f32.mrf.mxu1  ;;  %12818 = vmatmul.mubr.bf16.vlgmr.msra.gmra.mxu1 %v18820_v2  ;;  %13236 = vmatpush3.bf16.msra.mxu0 %v13560_v57  ;;  %v18826_v57 = vld [vmem:[#allocation100_spill] sm:$0xff] }
 0x32b   : > { %v16578_v18 = vadd.f32 %v6044_v56, %v5679_v21  ;;  %v5684_v54 = vadd.f32 %v12563_v51, %v18821_v38  ;;  %13090 = vmatpush3.bf16.msra.mxu1 %v18822_v23  ;;  %v6060_v47 = vpop.f32.mrf.mxu0  ;;  %12821 = vmatprep.mubr.bf16.mxu1 %v18823_v7  ;;  %v18825_v56 = vld [vmem:[#allocation98_spill] sm:$0xff]  ;;  %v13566_v21 = vld [vmem:[%s17845_s1 + $0x218] sm:$0xff]  }
 0x32c   : > { %v5267_v26 = vpop.f32.mrf.mxu1  ;;  %13091 = vmatprep.subr.bf16.mxu1 %v13559_v43  ;;  %13237 = vmatprep.subr.bf16.mxu0 %v13562_v53  ;;  %v18830_v23 = vld [vmem:[#allocation134_spill] sm:$0xff] }
 0x32d   : > { %v16589_v39 = vadd.f32 %v12707_v19, %v5684_v54  ;;  %v5682_v14 = vadd.f32 %v5267_v26, %v18824_v6  ;;  %v12711_v11 = vpop.f32.mrf.mxu0  ;;  %12966 = vmatmul.mubr.bf16.gmra.mxu0 %v18825_v56  ;;  %v13563_v19 = vld [vmem:[%s17845_s1 + $0x1e0] sm:$0xff]  }
 0x32e   : > { %v12564_v32 = vpop.f32.mrf.mxu1  ;;  %12969 = vmatprep.mubr.bf16.mxu0 %v18826_v57  ;;  %13238 = vmatpush3.bf16.msra.mxu0 %v13562_v53  ;;  %v18828_v53 = vld [vmem:[#allocation129_spill] sm:$0xff]  ;;  %v18832_v57 = vld [vmem:[#allocation86_spill] sm:$0xff] }
 0x32f   : > { %v16594_v3 = vadd.f32 %v6057_v28, %v5682_v14  ;;  %v5685_v40 = vadd.f32 %v12564_v32, %v18827_v31  ;;  %v6073_v20 = vpop.f32.mrf.mxu0  ;;  %13092 = vmatpush3.bf16.msra.mxu1 %v13559_v43  ;;  %13239 = vmatprep.subr.bf16.mxu0 %v13564_v58  ;;  %v18829_v54 = vld [vmem:[#allocation89_spill] sm:$0xff]  ;;  %v18831_v14 = vld [vmem:[#allocation90_spill] sm:$0xff] }
 0x330   : > { %v5270_v46 = vpop.f32.mrf.mxu1  ;;  %13093 = vmatprep.subr.bf16.mxu1 %v13561_v13 }
 0x331   : > { %v16603_v51 = vadd.f32 %v12708_v4, %v5685_v40  ;;  %v5683_v28 = vadd.f32 %v5270_v46, %v18828_v53  ;;  %v12712_v2 = vpop.f32.mrf.mxu0  ;;  %v13565_v4 = vld [vmem:[%s17845_s1 + $0x1d8] sm:$0xff]   ;;  %v18834_v46 = vld [vmem:[#allocation106_spill] sm:$0xff] }
 0x332   : > { %v12567_v38 = vpop.f32.mrf.mxu1  ;;  %12822 = vmatmul.mubr.bf16.gmra.mxu1 %v18829_v54  ;;  %13240 = vmatpush3.bf16.msra.mxu0 %v13564_v58 }
 0x333   : > { %v16607_v43 = vadd.f32 %v6060_v47, %v5683_v28  ;;  %v5688_v26 = vadd.f32 %v12567_v38, %v18830_v23  ;;  %v6076_v6 = vpop.f32.mrf.mxu0  ;;  %12825 = vmatprep.mubr.bf16.mxu1 %v18831_v14  ;;  %13094 = vmatpush3.bf16.msra.mxu1 %v13561_v13  ;;  %v18833_v47 = vld [vmem:[#allocation104_spill] sm:$0xff]  ;;  %v18836_v13 = vld [vmem:[#allocation137_spill] sm:$0xff] }
 0x334   : > { %v5283_v56 = vpop.f32.mrf.mxu1  ;;  %13095 = vmatprep.subr.bf16.mxu1 %v13563_v19  ;;  %13241 = vmatprep.subr.bf16.mxu0 %v13566_v21 }
 0x335   : > { %v16614_v32 = vadd.f32 %v12711_v11, %v5688_v26  ;;  %v5686_v31 = vadd.f32 %v5283_v56, %v18832_v57  ;;  %v12715_v58 = vpop.f32.mrf.mxu0  ;;  %12970 = vmatmul.mubr.bf16.gmra.mxu0 %v18833_v47  ;;  %v18838_v11 = vld [vmem:[#allocation202_spill] sm:$0xff] }
 0x336   : > { %v12568_v40 = vpop.f32.mrf.mxu1  ;;  %12973 = vmatprep.mubr.bf16.mxu0 %v18834_v46  ;;  %13242 = vmatpush3.bf16.msra.mxu0 %v13566_v21  ;;  %v18841_v46 = vld [vmem:[#allocation88_spill] sm:$0xff] }
 0x337   : > { %v16619_v53 = vadd.f32 %v6073_v20, %v5686_v31  ;;  %v5689_v28 = vadd.f32 %v12568_v40, %v18836_v13  ;;  %v6089_v38 = vpop.f32.mrf.mxu0  ;;  %13096 = vmatpush3.bf16.msra.mxu1 %v13563_v19  ;;  %v18842_v31 = vld [vmem:[#allocation96_spill] sm:$0xff]  ;;  %v18844_v13 = vld [vmem:[#allocation142_spill] sm:$0xff] }
 0x338   : > { %v5286_v23 = vpop.f32.mrf.mxu1  ;;  %13097 = vmatprep.subr.bf16.mxu1 %v13565_v4 }
 0x339   : > { %18835 = vst [vmem:[#allocation276_spill] sm:$0xff] %v16619_v53  ;;  %v16622_v9 = vadd.f32 %v12712_v2, %v5689_v28  ;;  %v5687_v26 = vadd.f32 %v5286_v23, %v18838_v11  ;;  %v12716_v56 = vpop.f32.mrf.mxu0  ;;  %v18846_v11 = vld [vmem:[#allocation112_spill] sm:$0xff] }
 0x33a   : > { %v12571_v57 = vpop.f32.mrf.mxu1  ;;  %12826 = vmatmul.mubr.bf16.gmra.mxu1 %v18839_v1 }
 0x33b   : > { %18837 = vst [vmem:[#allocation279_spill] sm:$0xff] %v16622_v9  ;;  %v16626_v47 = vadd.f32 %v6076_v6, %v5687_v26  ;;  %v5692_v21 = vadd.f32 %v12571_v57, %v18841_v46  ;;  %v6092_v20 = vpop.f32.mrf.mxu0  ;;  %12829 = vmatprep.mubr.bf16.mxu1 %v18842_v31  ;;  %13098 = vmatpush3.bf16.msra.mxu1 %v13565_v4  ;;  %v18848_v6 = vld [vmem:[#allocation145_spill] sm:$0xff]  ;;  %v18850_v4 = vld [vmem:[#allocation150_spill] sm:$0xff] }
 0x33c   : > { %v5299_v40 = vpop.f32.mrf.mxu1 }
 0x33d   : > { %18840 = vst [vmem:[#allocation284_spill] sm:$0xff] %v16626_v47  ;;  %v16630_v19 = vadd.f32 %v12715_v58, %v5692_v21  ;;  %v5690_v2 = vadd.f32 %v5299_v40, %v18844_v13  ;;  %v12719_v28 = vpop.f32.mrf.mxu0  ;;  %12974 = vmatmul.mubr.bf16.gmra.mxu0 %v18845_v16  ;;  %v18853_v16 = vld [vmem:[#allocation92_spill] sm:$0xff] }
 0x33e   : > { %v12572_v23 = vpop.f32.mrf.mxu1  ;;  %12977 = vmatprep.mubr.bf16.mxu0 %v18846_v11  ;;  %v18854_v11 = vld [vmem:[#allocation102_spill] sm:$0xff] }
 0x33f   : > { %18843 = vst [vmem:[#allocation81_spill] sm:$0xff] %v16630_v19  ;;  %v16635_v42 = vadd.f32 %v6089_v38, %v5690_v2  ;;  %v5693_v26 = vadd.f32 %v12572_v23, %v18848_v6  ;;  %v6105_v57 = vpop.f32.mrf.mxu0  ;;  %v18851_v19 = vld [vmem:[#allocation101_spill] sm:$0xff] }
 0x340   : > { %v5302_v46 = vpop.f32.mrf.mxu1  ;;  %v18856_v23 = vld [vmem:[#allocation153_spill] sm:$0xff] }
 0x341   : > { %18847 = vst [vmem:[#allocation83_spill] sm:$0xff] %v16635_v42  ;;  %v16638_v47 = vadd.f32 %v12716_v56, %v5693_v26  ;;  %v5691_v9 = vadd.f32 %v5302_v46, %v18850_v4  ;;  %v12720_v58 = vpop.f32.mrf.mxu0  ;;  %v18857_v26 = vld [vmem:[#allocation116_spill] sm:$0xff]  ;;  %v18858_v4 = vld [vmem:[#allocation118_spill] sm:$0xff] }
 0x342   : > { %v12575_v21 = vpop.f32.mrf.mxu1  ;;  %12830 = vmatmul.mubr.bf16.gmra.mxu1 %v18851_v19  ;;  %v18862_v42 = vld [vmem:[#allocation158_spill] sm:$0xff] }
 0x343   : > { %18849 = vst [vmem:[#allocation126_spill] sm:$0xff] %v16638_v47  ;;  %v16642_v40 = vadd.f32 %v6092_v20, %v5691_v9  ;;  %v5696_v13 = vadd.f32 %v12575_v21, %v18853_v16  ;;  %v6108_v53 = vpop.f32.mrf.mxu0  ;;  %12833 = vmatprep.mubr.bf16.mxu1 %v18854_v11  ;;  %v18860_v9 = vld [vmem:[#allocation94_spill] sm:$0xff] }
 0x344   : > { %v5315_v38 = vpop.f32.mrf.mxu1 }
 0x345   : > { %18852 = vst [vmem:[#allocation111_spill] sm:$0xff] %v16642_v40  ;;  %v16646_v2 = vadd.f32 %v12719_v28, %v5696_v13  ;;  %v5694_v6 = vadd.f32 %v5315_v38, %v18856_v23  ;;  %v12723_v56 = vpop.f32.mrf.mxu0  ;;  %12978 = vmatmul.mubr.bf16.gmra.mxu0 %v18857_v26  ;;  %v18865_v23 = vld [vmem:[#allocation161_spill] sm:$0xff] }
 0x346   : > { %v12576_v46 = vpop.f32.mrf.mxu1  ;;  %12981 = vmatprep.mubr.bf16.mxu0 %v18858_v4  ;;  %v18866_v4 = vld [vmem:[#allocation108_spill] sm:$0xff] }
 0x347   : > { %18855 = vst [vmem:[#allocation84_spill] sm:$0xff] %v16646_v2  ;;  %v16651_v47 = vadd.f32 %v6105_v57, %v5694_v6  ;;  %v5697_v20 = vadd.f32 %v12576_v46, %v18860_v9  ;;  %v6121_v40 = vpop.f32.mrf.mxu0  ;;  %v18863_v2 = vld [vmem:[#allocation107_spill] sm:$0xff]  ;;  %v18868_v46 = vld [vmem:[#allocation166_spill] sm:$0xff] }
 0x348   : > { %v5318_v21 = vpop.f32.mrf.mxu1 }
 0x349   : > { %18859 = vst [vmem:[#allocation9_spill] sm:$0xff] %v16651_v47  ;;  %v16654_v16 = vadd.f32 %v12720_v58, %v5697_v20  ;;  %v5695_v11 = vadd.f32 %v5318_v21, %v18862_v42  ;;  %v12724_v28 = vpop.f32.mrf.mxu0  ;;  %v18869_v20 = vld [vmem:[#allocation122_spill] sm:$0xff]  ;;  %v13567_v42 = vld [vmem:[%s17845_s1 + $0x1d0] sm:$0xff]  }
 0x34a   : > { %v12579_v13 = vpop.f32.mrf.mxu1  ;;  %12834 = vmatmul.mubr.bf16.gmra.mxu1 %v18863_v2  ;;  %13099 = vmatprep.subr.bf16.mxu1 %v13567_v42 }
 0x34b   : > { %18861 = vst [vmem:[#allocation98_spill] sm:$0xff] %v16654_v16  ;;  %v16658_v38 = vadd.f32 %v6108_v53, %v5695_v11  ;;  %v5700_v26 = vadd.f32 %v12579_v13, %v18865_v23  ;;  %v6124_v19 = vpop.f32.mrf.mxu0  ;;  %12837 = vmatprep.mubr.bf16.mxu1 %v18866_v4  ;;  %v18870_v53 = vld [vmem:[#allocation124_spill] sm:$0xff]  ;;  %v18872_v13 = vld [vmem:[#allocation169_spill] sm:$0xff]  ;;  %13100 = vmatpush3.bf16.msra.mxu1 %v13567_v42 }
 0x34c   : > { %v5331_v57 = vpop.f32.mrf.mxu1 }
 0x34d   : > { %18864 = vst [vmem:[#allocation100_spill] sm:$0xff] %v16658_v38  ;;  %v16662_v6 = vadd.f32 %v12723_v56, %v5700_v26  ;;  %v5698_v9 = vadd.f32 %v5331_v57, %v18868_v46  ;;  %v12727_v58 = vpop.f32.mrf.mxu0  ;;  %12982 = vmatmul.mubr.bf16.gmra.mxu0 %v18869_v20  ;;  %v13568_v56 = vld [vmem:[%s17845_s1 + $0x210] sm:$0xff]   ;;  %v18874_v46 = vld [vmem:[#allocation174_spill] sm:$0xff] }
 0x34e   : > { %v12580_v21 = vpop.f32.mrf.mxu1  ;;  %12985 = vmatprep.mubr.bf16.mxu0 %v18870_v53  ;;  %13243 = vmatprep.subr.bf16.mxu0 %v13568_v56  ;;  %v18875_v53 = vld [vmem:[#allocation113_spill] sm:$0xff] }
 0x34f   : > { %18867 = vst [vmem:[#allocation206_spill] sm:$0xff] %v16662_v6  ;;  %v16670_v11 = vadd.f32 %v6121_v40, %v5698_v9  ;;  %v5701_v23 = vadd.f32 %v12580_v21, %v18872_v13  ;;  %v6137_v38 = vpop.f32.mrf.mxu0  ;;  %13244 = vmatpush3.bf16.msra.mxu0 %v13568_v56  ;;  %v18877_v9 = vld [vmem:[#allocation177_spill] sm:$0xff] }
 0x350   : > { %v5334_v26 = vpop.f32.mrf.mxu1 }
 0x351   : > { %18871 = vst [vmem:[#allocation129_spill] sm:$0xff] %v16670_v11  ;;  %v16676_v57 = vadd.f32 %v12724_v28, %v5701_v23  ;;  %v5699_v20 = vadd.f32 %v5334_v26, %v18874_v46  ;;  %v12728_v6 = vpop.f32.mrf.mxu0  ;;  %v18878_v11 = vld [vmem:[#allocation114_spill] sm:$0xff] }
 0x352   : > { %v12583_v16 = vpop.f32.mrf.mxu1  ;;  %12838 = vmatmul.mubr.bf16.gmra.mxu1 %v18875_v53  ;;  %v18880_v28 = vld [vmem:[#allocation182_spill] sm:$0xff] }
 0x353   : > { %18873 = vst [vmem:[#allocation89_spill] sm:$0xff] %v16676_v57  ;;  %v16680_v40 = vadd.f32 %v6124_v19, %v5699_v20  ;;  %v5704_v21 = vadd.f32 %v12583_v16, %v18877_v9  ;;  %v6140_v13 = vpop.f32.mrf.mxu0  ;;  %12841 = vmatprep.mubr.bf16.mxu1 %v18878_v11  ;;  %v18881_v26 = vld [vmem:[#allocation130_spill] sm:$0xff]  ;;  %v18882_v57 = vld [vmem:[#allocation132_spill] sm:$0xff]  ;;  %v18884_v19 = vld [vmem:[#allocation185_spill] sm:$0xff] }
 0x354   : > { %v5347_v47 = vpop.f32.mrf.mxu1 }
 0x355   : > { %18876 = vst [vmem:[#allocation134_spill] sm:$0xff] %v16680_v40  ;;  %v16684_v4 = vadd.f32 %v12727_v58, %v5704_v21  ;;  %v5702_v42 = vadd.f32 %v5347_v47, %v18880_v28  ;;  %v12731_v23 = vpop.f32.mrf.mxu0  ;;  %12986 = vmatmul.mubr.bf16.gmra.mxu0 %v18881_v26  ;;  %v18886_v40 = vld [vmem:[#allocation190_spill] sm:$0xff]  ;;  %v18889_v28 = vld [vmem:[#allocation193_spill] sm:$0xff] }
 0x356   : > { %v12584_v46 = vpop.f32.mrf.mxu1  ;;  %12989 = vmatprep.mubr.bf16.mxu0 %v18882_v57  ;;  %v18890_v57 = vld [vmem:[#allocation120_spill] sm:$0xff] }
 0x357   : > { %18879 = vst [vmem:[#allocation90_spill] sm:$0xff] %v16684_v4  ;;  %v16689_v53 = vadd.f32 %v6137_v38, %v5702_v42  ;;  %v5705_v56 = vadd.f32 %v12584_v46, %v18884_v19  ;;  %v6153_v20 = vpop.f32.mrf.mxu0  ;;  %v18887_v4 = vld [vmem:[#allocation119_spill] sm:$0xff]  ;;  %v18892_v46 = vld [vmem:[#allocation198_spill] sm:$0xff] }
 0x358   : > { %v5350_v16 = vpop.f32.mrf.mxu1 }
 0x359   : > { %18883 = vst [vmem:[#allocation86_spill] sm:$0xff] %v16689_v53  ;;  %v16692_v9 = vadd.f32 %v12728_v6, %v5705_v56  ;;  %v5703_v11 = vadd.f32 %v5350_v16, %v18886_v40  ;;  %v12732_v58 = vpop.f32.mrf.mxu0  ;;  %v18893_v56 = vld [vmem:[#allocation138_spill] sm:$0xff]  ;;  %v18894_v16 = vld [vmem:[#allocation140_spill] sm:$0xff] }
 0x35a   : > { %v12587_v21 = vpop.f32.mrf.mxu1  ;;  %12842 = vmatmul.mubr.bf16.gmra.mxu1 %v18887_v4  ;;  %v18898_v53 = vld [vmem:[#allocation208_spill] sm:$0xff] }
 0x35b   : > { %18885 = vst [vmem:[#allocation104_spill] sm:$0xff] %v16692_v9  ;;  %v16696_v47 = vadd.f32 %v6140_v13, %v5703_v11  ;;  %v5708_v26 = vadd.f32 %v12587_v21, %v18889_v28  ;;  %v6156_v2 = vpop.f32.mrf.mxu0  ;;  %12845 = vmatprep.mubr.bf16.mxu1 %v18890_v57  ;;  %v18896_v11 = vld [vmem:[#allocation201_spill] sm:$0xff] }
 0x35c   : > { %v5363_v38 = vpop.f32.mrf.mxu1 }
 0x35d   : > { %18888 = vst [vmem:[#allocation106_spill] sm:$0xff] %v16696_v47  ;;  %v16700_v42 = vadd.f32 %v12731_v23, %v5708_v26  ;;  %v5706_v19 = vadd.f32 %v5363_v38, %v18892_v46  ;;  %v12735_v6 = vpop.f32.mrf.mxu0  ;;  %12990 = vmatmul.mubr.bf16.gmra.mxu0 %v18893_v56  ;;  %v18901_v46 = vld [vmem:[#allocation211_spill] sm:$0xff] }
 0x35e   : > { %v12588_v40 = vpop.f32.mrf.mxu1  ;;  %12993 = vmatprep.mubr.bf16.mxu0 %v18894_v16  ;;  %v18902_v16 = vld [vmem:[#allocation127_spill] sm:$0xff] }
 0x35f   : > { %18891 = vst [vmem:[#allocation137_spill] sm:$0xff] %v16700_v42  ;;  %v16705_v9 = vadd.f32 %v6153_v20, %v5706_v19  ;;  %v5709_v13 = vadd.f32 %v12588_v40, %v18896_v11  ;;  %v6169_v47 = vpop.f32.mrf.mxu0  ;;  %v18899_v42 = vld [vmem:[#allocation125_spill] sm:$0xff]  ;;  %v18904_v40 = vld [vmem:[#allocation216_spill] sm:$0xff] }
 0x360   : > { %v5366_v21 = vpop.f32.mrf.mxu1 }
 0x361   : > { %18895 = vst [vmem:[#allocation202_spill] sm:$0xff] %v16705_v9  ;;  %v16708_v28 = vadd.f32 %v12732_v58, %v5709_v13  ;;  %v5707_v57 = vadd.f32 %v5366_v21, %v18898_v53  ;;  %v12736_v23 = vpop.f32.mrf.mxu0  ;;  %v18905_v13 = vld [vmem:[#allocation146_spill] sm:$0xff]  ;;  %v18906_v21 = vld [vmem:[#allocation148_spill] sm:$0xff] }
 0x362   : > { %v12591_v26 = vpop.f32.mrf.mxu1  ;;  %12846 = vmatmul.mubr.bf16.gmra.mxu1 %v18899_v42  ;;  %v18910_v9 = vld [vmem:[#allocation224_spill] sm:$0xff] }
 0x363   : > { %18897 = vst [vmem:[#allocation95_spill] sm:$0xff] %v16708_v28  ;;  %v16712_v38 = vadd.f32 %v6156_v2, %v5707_v57  ;;  %v5712_v56 = vadd.f32 %v12591_v26, %v18901_v46  ;;  %v6172_v4 = vpop.f32.mrf.mxu0  ;;  %12849 = vmatprep.mubr.bf16.mxu1 %v18902_v16  ;;  %v18908_v2 = vld [vmem:[#allocation219_spill] sm:$0xff] }
 0x364   : > { %v5379_v20 = vpop.f32.mrf.mxu1 }
 0x365   : > { %18900 = vst [vmem:[#allocation88_spill] sm:$0xff] %v16712_v38  ;;  %v16716_v19 = vadd.f32 %v12735_v6, %v5712_v56  ;;  %v5710_v11 = vadd.f32 %v5379_v20, %v18904_v40  ;;  %v12739_v58 = vpop.f32.mrf.mxu0  ;;  %12994 = vmatmul.mubr.bf16.gmra.mxu0 %v18905_v13  ;;  %v18913_v40 = vld [vmem:[#allocation227_spill] sm:$0xff] }
 0x366   : > { %v12592_v53 = vpop.f32.mrf.mxu1  ;;  %12997 = vmatprep.mubr.bf16.mxu0 %v18906_v21  ;;  %v18914_v21 = vld [vmem:[#allocation135_spill] sm:$0xff] }
 0x367   : > { %18903 = vst [vmem:[#allocation96_spill] sm:$0xff] %v16716_v19  ;;  %v16721_v28 = vadd.f32 %v6169_v47, %v5710_v11  ;;  %v5713_v57 = vadd.f32 %v12592_v53, %v18908_v2  ;;  %v6185_v38 = vpop.f32.mrf.mxu0  ;;  %v18911_v19 = vld [vmem:[#allocation133_spill] sm:$0xff]  ;;  %v18916_v53 = vld [vmem:[#allocation232_spill] sm:$0xff] }
 0x368   : > { %v5382_v26 = vpop.f32.mrf.mxu1 }
 0x369   : > { %18907 = vst [vmem:[#allocation142_spill] sm:$0xff] %v16721_v28  ;;  %v16724_v46 = vadd.f32 %v12736_v23, %v5713_v57  ;;  %v5711_v16 = vadd.f32 %v5382_v26, %v18910_v9  ;;  %v12740_v6 = vpop.f32.mrf.mxu0  ;;  %v18917_v57 = vld [vmem:[#allocation154_spill] sm:$0xff] }
 0x36a   : > { %v12595_v56 = vpop.f32.mrf.mxu1  ;;  %12850 = vmatmul.mubr.bf16.gmra.mxu1 %v18911_v19  ;;  %v13569_v9 = vld [vmem:[%s17845_s1 + $0x1c8] sm:$0xff]  }
 0x36b   : > { %18909 = vst [vmem:[#allocation110_spill] sm:$0xff] %v16724_v46  ;;  %v16728_v20 = vadd.f32 %v6172_v4, %v5711_v16  ;;  %v5716_v13 = vadd.f32 %v12595_v56, %v18913_v40  ;;  %v6188_v42 = vpop.f32.mrf.mxu0  ;;  %12853 = vmatprep.mubr.bf16.mxu1 %v18914_v21  ;;  %v18918_v4 = vld [vmem:[#allocation156_spill] sm:$0xff]  ;;  %v18920_v56 = vld [vmem:[#allocation235_spill] sm:$0xff]  ;;  %13101 = vmatprep.subr.bf16.mxu1 %v13569_v9 }
 0x36c   : > { %v5395_v47 = vpop.f32.mrf.mxu1  ;;  %13102 = vmatpush3.bf16.msra.mxu1 %v13569_v9 }
 0x36d   : > { %18912 = vst [vmem:[#allocation112_spill] sm:$0xff] %v16728_v20  ;;  %v16732_v11 = vadd.f32 %v12739_v58, %v5716_v13  ;;  %v5714_v2 = vadd.f32 %v5395_v47, %v18916_v53  ;;  %v12743_v23 = vpop.f32.mrf.mxu0  ;;  %12998 = vmatmul.mubr.bf16.gmra.mxu0 %v18917_v57  ;;  %v13570_v58 = vld [vmem:[%s17845_s1 + $0x208] sm:$0xff]   ;;  %v18922_v53 = vld [vmem:[#allocation240_spill] sm:$0xff] }
 0x36e   : > { %v12596_v26 = vpop.f32.mrf.mxu1  ;;  %13001 = vmatprep.mubr.bf16.mxu0 %v18918_v4  ;;  %13245 = vmatprep.subr.bf16.mxu0 %v13570_v58  ;;  %v18923_v4 = vld [vmem:[#allocation141_spill] sm:$0xff] }
 0x36f   : > { %18915 = vst [vmem:[#allocation145_spill] sm:$0xff] %v16732_v11  ;;  %v16740_v16 = vadd.f32 %v6185_v38, %v5714_v2  ;;  %v5717_v40 = vadd.f32 %v12596_v26, %v18920_v56  ;;  %v6201_v20 = vpop.f32.mrf.mxu0  ;;  %13246 = vmatpush3.bf16.msra.mxu0 %v13570_v58  ;;  %v18925_v2 = vld [vmem:[#allocation243_spill] sm:$0xff] }
 0x370   : > { %v5398_v13 = vpop.f32.mrf.mxu1 }
 0x371   : > { %18919 = vst [vmem:[#allocation150_spill] sm:$0xff] %v16740_v16  ;;  %v16746_v47 = vadd.f32 %v12740_v6, %v5717_v40  ;;  %v5715_v57 = vadd.f32 %v5398_v13, %v18922_v53  ;;  %v12744_v11 = vpop.f32.mrf.mxu0  ;;  %v18926_v16 = vld [vmem:[#allocation143_spill] sm:$0xff]  ;;  %v18929_v13 = vld [vmem:[#allocation162_spill] sm:$0xff] }
 0x372   : > { %v12599_v46 = vpop.f32.mrf.mxu1  ;;  %12854 = vmatmul.mubr.bf16.gmra.mxu1 %v18923_v4  ;;  %v18928_v6 = vld [vmem:[#allocation247_spill] sm:$0xff] }
 0x373   : > { %18921 = vst [vmem:[#allocation92_spill] sm:$0xff] %v16746_v47  ;;  %v16750_v38 = vadd.f32 %v6188_v42, %v5715_v57  ;;  %v5720_v26 = vadd.f32 %v12599_v46, %v18925_v2  ;;  %v6204_v56 = vpop.f32.mrf.mxu0  ;;  %12857 = vmatprep.mubr.bf16.mxu1 %v18926_v16  ;;  %v18930_v47 = vld [vmem:[#allocation164_spill] sm:$0xff]  ;;  %v18932_v42 = vld [vmem:[#allocation251_spill] sm:$0xff] }
 0x374   : > { %v5411_v28 = vpop.f32.mrf.mxu1 }
 0x375   : > { %18924 = vst [vmem:[#allocation153_spill] sm:$0xff] %v16750_v38  ;;  %v16754_v21 = vadd.f32 %v12743_v23, %v5720_v26  ;;  %v5718_v9 = vadd.f32 %v5411_v28, %v18928_v6  ;;  %v12747_v40 = vpop.f32.mrf.mxu0  ;;  %13002 = vmatmul.mubr.bf16.gmra.mxu0 %v18929_v13  ;;  %v18934_v38 = vld [vmem:[#allocation254_spill] sm:$0xff]  ;;  %v18937_v6 = vld [vmem:[#allocation256_spill] sm:$0xff] }
 0x376   : > { %v12600_v53 = vpop.f32.mrf.mxu1  ;;  %13005 = vmatprep.mubr.bf16.mxu0 %v18930_v47  ;;  %v18938_v47 = vld [vmem:[#allocation151_spill] sm:$0xff] }
 0x377   : > { %18927 = vst [vmem:[#allocation116_spill] sm:$0xff] %v16754_v21  ;;  %v16759_v4 = vadd.f32 %v6201_v20, %v5718_v9  ;;  %v5721_v58 = vadd.f32 %v12600_v53, %v18932_v42  ;;  %v6217_v57 = vpop.f32.mrf.mxu0  ;;  %v18935_v21 = vld [vmem:[#allocation149_spill] sm:$0xff]  ;;  %v18940_v53 = vld [vmem:[#allocation260_spill] sm:$0xff] }
 0x378   : > { %v5414_v46 = vpop.f32.mrf.mxu1 }
 0x379   : > { %18931 = vst [vmem:[#allocation118_spill] sm:$0xff] %v16759_v4  ;;  %v16762_v2 = vadd.f32 %v12744_v11, %v5721_v58  ;;  %v5719_v16 = vadd.f32 %v5414_v46, %v18934_v38  ;;  %v12748_v23 = vpop.f32.mrf.mxu0  ;;  %v18941_v58 = vld [vmem:[#allocation170_spill] sm:$0xff]  ;;  %v18942_v46 = vld [vmem:[#allocation172_spill] sm:$0xff]  ;;  %v18946_v4 = vld [vmem:[#allocation57_spill] sm:$0xff] }
 0x37a   : > { %v12603_v26 = vpop.f32.mrf.mxu1  ;;  %12858 = vmatmul.mubr.bf16.gmra.mxu1 %v18935_v21 }
 0x37b   : > { %18933 = vst [vmem:[#allocation94_spill] sm:$0xff] %v16762_v2  ;;  %v16766_v28 = vadd.f32 %v6204_v56, %v5719_v16  ;;  %v5724_v13 = vadd.f32 %v12603_v26, %v18937_v6  ;;  %v6220_v19 = vpop.f32.mrf.mxu0  ;;  %12861 = vmatprep.mubr.bf16.mxu1 %v18938_v47  ;;  %v18944_v16 = vld [vmem:[#allocation56_spill] sm:$0xff] }
 0x37c   : > { %v5427_v20 = vpop.f32.mrf.mxu1 }
 0x37d   : > { %18936 = vst [vmem:[#allocation158_spill] sm:$0xff] %v16766_v28  ;;  %v16770_v9 = vadd.f32 %v12747_v40, %v5724_v13  ;;  %v5722_v42 = vadd.f32 %v5427_v20, %v18940_v53  ;;  %v12751_v11 = vpop.f32.mrf.mxu0  ;;  %13006 = vmatmul.mubr.bf16.gmra.mxu0 %v18941_v58  ;;  %v18949_v53 = vld [vmem:[#allocation60_spill] sm:$0xff] }
 0x37e   : > { %v12604_v38 = vpop.f32.mrf.mxu1  ;;  %13009 = vmatprep.mubr.bf16.mxu0 %v18942_v46  ;;  %v18950_v46 = vld [vmem:[#allocation159_spill] sm:$0xff] }
 0x37f   : > { %18939 = vst [vmem:[#allocation161_spill] sm:$0xff] %v16770_v9  ;;  %v16775_v2 = vadd.f32 %v6217_v57, %v5722_v42  ;;  %v5725_v56 = vadd.f32 %v12604_v38, %v18944_v16  ;;  %v6233_v28 = vpop.f32.mrf.mxu0  ;;  %v18947_v9 = vld [vmem:[#allocation157_spill] sm:$0xff] }
 0x380   : > { %v5430_v26 = vpop.f32.mrf.mxu1  ;;  %v18952_v38 = vld [vmem:[#allocation61_spill] sm:$0xff] }
 0x381   : > { %18943 = vst [vmem:[#allocation166_spill] sm:$0xff] %v16775_v2  ;;  %v16778_v6 = vadd.f32 %v12748_v23, %v5725_v56  ;;  %v5723_v47 = vadd.f32 %v5430_v26, %v18946_v4  ;;  %v12752_v40 = vpop.f32.mrf.mxu0  ;;  %v18953_v56 = vld [vmem:[#allocation178_spill] sm:$0xff]  ;;  %v18954_v26 = vld [vmem:[#allocation180_spill] sm:$0xff]  ;;  %v18958_v2 = vld [vmem:[#allocation65_spill] sm:$0xff] }
 0x382   : > { %v12607_v13 = vpop.f32.mrf.mxu1  ;;  %12862 = vmatmul.mubr.bf16.gmra.mxu1 %v18947_v9 }
 0x383   : > { %18945 = vst [vmem:[#allocation122_spill] sm:$0xff] %v16778_v6  ;;  %v16782_v20 = vadd.f32 %v6220_v19, %v5723_v47  ;;  %v5728_v58 = vadd.f32 %v12607_v13, %v18949_v53  ;;  %v6236_v21 = vpop.f32.mrf.mxu0  ;;  %12865 = vmatprep.mubr.bf16.mxu1 %v18950_v46  ;;  %v18956_v19 = vld [vmem:[#allocation63_spill] sm:$0xff] }
 0x384   : > { %v5443_v57 = vpop.f32.mrf.mxu1 }
 0x385   : > { %18948 = vst [vmem:[#allocation124_spill] sm:$0xff] %v16782_v20  ;;  %v16786_v42 = vadd.f32 %v12751_v11, %v5728_v58  ;;  %v5726_v16 = vadd.f32 %v5443_v57, %v18952_v38  ;;  %v12755_v23 = vpop.f32.mrf.mxu0  ;;  %13010 = vmatmul.mubr.bf16.gmra.mxu0 %v18953_v56  ;;  %v18961_v38 = vld [vmem:[#allocation67_spill] sm:$0xff] }
 0x386   : > { %v12608_v4 = vpop.f32.mrf.mxu1  ;;  %13013 = vmatprep.mubr.bf16.mxu0 %v18954_v26  ;;  %v18962_v26 = vld [vmem:[#allocation167_spill] sm:$0xff] }
 0x387   : > { %18951 = vst [vmem:[#allocation169_spill] sm:$0xff] %v16786_v42  ;;  %v16791_v6 = vadd.f32 %v6233_v28, %v5726_v16  ;;  %v5729_v47 = vadd.f32 %v12608_v4, %v18956_v19  ;;  %v6249_v20 = vpop.f32.mrf.mxu0  ;;  %v18959_v42 = vld [vmem:[#allocation165_spill] sm:$0xff] }
 0x388   : > { %v5446_v13 = vpop.f32.mrf.mxu1  ;;  %v18964_v4 = vld [vmem:[#allocation69_spill] sm:$0xff] }
 0x389   : > { %18955 = vst [vmem:[#allocation174_spill] sm:$0xff] %v16791_v6  ;;  %v16794_v53 = vadd.f32 %v12752_v40, %v5729_v47  ;;  %v5727_v46 = vadd.f32 %v5446_v13, %v18958_v2  ;;  %v12756_v11 = vpop.f32.mrf.mxu0  ;;  %v18965_v47 = vld [vmem:[#allocation186_spill] sm:$0xff]  ;;  %v13571_v2 = vld [vmem:[%s17845_s1 + $0x1c0] sm:$0xff]  }
 0x38a   : > { %v12611_v58 = vpop.f32.mrf.mxu1  ;;  %12866 = vmatmul.mubr.bf16.gmra.mxu1 %v18959_v42  ;;  %13103 = vmatprep.subr.bf16.mxu1 %v13571_v2 }
 0x38b   : > { %18957 = vst [vmem:[#allocation177_spill] sm:$0xff] %v16794_v53  ;;  %v16798_v57 = vadd.f32 %v6236_v21, %v5727_v46  ;;  %v5732_v56 = vadd.f32 %v12611_v58, %v18961_v38  ;;  %v6252_v9 = vpop.f32.mrf.mxu0  ;;  %12869 = vmatprep.mubr.bf16.mxu1 %v18962_v26  ;;  %v18966_v21 = vld [vmem:[#allocation188_spill] sm:$0xff]  ;;  %v18968_v58 = vld [vmem:[#allocation71_spill] sm:$0xff]  ;;  %13104 = vmatpush3.bf16.msra.mxu1 %v13571_v2 }
 0x38c   : > { %v5459_v28 = vpop.f32.mrf.mxu1 }
 0x38d   : > { %18960 = vst [vmem:[#allocation182_spill] sm:$0xff] %v16798_v57  ;;  %v16802_v16 = vadd.f32 %v12755_v23, %v5732_v56  ;;  %v5730_v19 = vadd.f32 %v5459_v28, %v18964_v4  ;;  %v12759_v40 = vpop.f32.mrf.mxu0  ;;  %13014 = vmatmul.mubr.bf16.gmra.mxu0 %v18965_v47  ;;  %v13572_v23 = vld [vmem:[%s17845_s1 + $0x200] sm:$0xff]  }
 0x38e   : > { %v12612_v13 = vpop.f32.mrf.mxu1  ;;  %13017 = vmatprep.mubr.bf16.mxu0 %v18966_v21  ;;  %v18970_v4 = vld [vmem:[#allocation73_spill] sm:$0xff]  ;;  %13247 = vmatprep.subr.bf16.mxu0 %v13572_v23 }
 0x38f   : > { %18963 = vst [vmem:[#allocation130_spill] sm:$0xff] %v16802_v16  ;;  %v16810_v46 = vadd.f32 %v6249_v20, %v5730_v19  ;;  %v5733_v38 = vadd.f32 %v12612_v13, %v18968_v58  ;;  %v6265_v57 = vpop.f32.mrf.mxu0  ;;  %v18971_v21 = vld [vmem:[#allocation173_spill] sm:$0xff]  ;;  %13248 = vmatpush3.bf16.msra.mxu0 %v13572_v23  ;;  %v18973_v19 = vld [vmem:[#allocation75_spill] sm:$0xff] }
 0x390   : > { %v5462_v56 = vpop.f32.mrf.mxu1 }
 0x391   : > { %18967 = vst [vmem:[#allocation132_spill] sm:$0xff] %v16810_v46  ;;  %v16816_v28 = vadd.f32 %v12756_v11, %v5733_v38  ;;  %v5731_v47 = vadd.f32 %v5462_v56, %v18970_v4  ;;  %v12760_v16 = vpop.f32.mrf.mxu0  ;;  %v18974_v46 = vld [vmem:[#allocation175_spill] sm:$0xff]  ;;  %v18976_v11 = vld [vmem:[#allocation78_spill] sm:$0xff] }
 0x392   : > { %v12615_v53 = vpop.f32.mrf.mxu1  ;;  %12870 = vmatmul.mubr.bf16.gmra.mxu1 %v18971_v21  ;;  %v18977_v56 = vld [vmem:[#allocation194_spill] sm:$0xff] }
 0x393   : > { %18969 = vst [vmem:[#allocation185_spill] sm:$0xff] %v16816_v28  ;;  %v16820_v20 = vadd.f32 %v6252_v9, %v5731_v47  ;;  %v5736_v13 = vadd.f32 %v12615_v53, %v18973_v19  ;;  %v6268_v58 = vpop.f32.mrf.mxu0  ;;  %12873 = vmatprep.mubr.bf16.mxu1 %v18974_v46  ;;  %v18978_v28 = vld [vmem:[#allocation196_spill] sm:$0xff] }
 0x394   : > { %v5475_v6 = vpop.f32.mrf.mxu1  ;;  %v18980_v9 = vld [vmem:[#allocation80_spill] sm:$0xff] }
 0x395   : > { %18972 = vst [vmem:[#allocation190_spill] sm:$0xff] %v16820_v20  ;;  %v16824_v26 = vadd.f32 %v12759_v40, %v5736_v13  ;;  %v5734_v2 = vadd.f32 %v5475_v6, %v18976_v11  ;;  %v12763_v38 = vpop.f32.mrf.mxu0  ;;  %13018 = vmatmul.mubr.bf16.gmra.mxu0 %v18977_v56  ;;  %v18982_v20 = vld [vmem:[#allocation82_spill] sm:$0xff]  ;;  %v18985_v11 = vld [vmem:[#allocation85_spill] sm:$0xff] }
 0x396   : > { %v12616_v4 = vpop.f32.mrf.mxu1  ;;  %13021 = vmatprep.mubr.bf16.mxu0 %v18978_v28  ;;  %v18986_v28 = vld [vmem:[#allocation183_spill] sm:$0xff] }
 0x397   : > { %18975 = vst [vmem:[#allocation193_spill] sm:$0xff] %v16824_v26  ;;  %v16829_v21 = vadd.f32 %v6265_v57, %v5734_v2  ;;  %v5737_v23 = vadd.f32 %v12616_v4, %v18980_v9  ;;  %v6281_v47 = vpop.f32.mrf.mxu0  ;;  %v18983_v26 = vld [vmem:[#allocation181_spill] sm:$0xff]  ;;  %v18988_v4 = vld [vmem:[#allocation87_spill] sm:$0xff] }
 0x398   : > { %v5478_v53 = vpop.f32.mrf.mxu1 }
 0x399   : > { %18979 = vst [vmem:[#allocation198_spill] sm:$0xff] %v16829_v21  ;;  %v16832_v19 = vadd.f32 %v12760_v16, %v5737_v23  ;;  %v5735_v46 = vadd.f32 %v5478_v53, %v18982_v20  ;;  %v12764_v40 = vpop.f32.mrf.mxu0  ;;  %v18989_v23 = vld [vmem:[#allocation203_spill] sm:$0xff]  ;;  %v18990_v53 = vld [vmem:[#allocation205_spill] sm:$0xff] }
 0x39a   : > { %v12619_v13 = vpop.f32.mrf.mxu1  ;;  %12874 = vmatmul.mubr.bf16.gmra.mxu1 %v18983_v26  ;;  %v18994_v21 = vld [vmem:[#allocation93_spill] sm:$0xff] }
 0x39b   : > { %18981 = vst [vmem:[#allocation138_spill] sm:$0xff] %v16832_v19  ;;  %v16836_v6 = vadd.f32 %v6268_v58, %v5735_v46  ;;  %v5740_v56 = vadd.f32 %v12619_v13, %v18985_v11  ;;  %v6284_v42 = vpop.f32.mrf.mxu0  ;;  %12877 = vmatprep.mubr.bf16.mxu1 %v18986_v28  ;;  %v18992_v46 = vld [vmem:[#allocation91_spill] sm:$0xff] }
 0x39c   : > { %v5491_v57 = vpop.f32.mrf.mxu1 }
 0x39d   : > { %18984 = vst [vmem:[#allocation140_spill] sm:$0xff] %v16836_v6  ;;  %v16840_v2 = vadd.f32 %v12763_v38, %v5740_v56  ;;  %v5738_v9 = vadd.f32 %v5491_v57, %v18988_v4  ;;  %v12767_v16 = vpop.f32.mrf.mxu0  ;;  %13022 = vmatmul.mubr.bf16.gmra.mxu0 %v18989_v23  ;;  %v18997_v4 = vld [vmem:[#allocation97_spill] sm:$0xff] }
 0x39e   : > { %v12620_v20 = vpop.f32.mrf.mxu1  ;;  %13025 = vmatprep.mubr.bf16.mxu0 %v18990_v53  ;;  %v18998_v53 = vld [vmem:[#allocation191_spill] sm:$0xff] }
 0x39f   : > { %18987 = vst [vmem:[#allocation201_spill] sm:$0xff] %v16840_v2  ;;  %v16845_v19 = vadd.f32 %v6281_v47, %v5738_v9  ;;  %v5741_v58 = vadd.f32 %v12620_v20, %v18992_v46  ;;  %v6297_v6 = vpop.f32.mrf.mxu0  ;;  %v18995_v2 = vld [vmem:[#allocation189_spill] sm:$0xff]  ;;  %v19000_v20 = vld [vmem:[#allocation99_spill] sm:$0xff] }
 0x3a0   : > { %v5494_v13 = vpop.f32.mrf.mxu1 }
 0x3a1   : > { %18991 = vst [vmem:[#allocation208_spill] sm:$0xff] %v16845_v19  ;;  %v16848_v11 = vadd.f32 %v12764_v40, %v5741_v58  ;;  %v5739_v28 = vadd.f32 %v5494_v13, %v18994_v21  ;;  %v12768_v38 = vpop.f32.mrf.mxu0  ;;  %v19001_v58 = vld [vmem:[#allocation212_spill] sm:$0xff]  ;;  %v19002_v13 = vld [vmem:[#allocation214_spill] sm:$0xff]  ;;  %v19006_v19 = vld [vmem:[#allocation105_spill] sm:$0xff] }
 0x3a2   : > { %v12623_v56 = vpop.f32.mrf.mxu1  ;;  %12878 = vmatmul.mubr.bf16.gmra.mxu1 %v18995_v2 }
 0x3a3   : > { %18993 = vst [vmem:[#allocation211_spill] sm:$0xff] %v16848_v11  ;;  %v16852_v57 = vadd.f32 %v6284_v42, %v5739_v28  ;;  %v5744_v23 = vadd.f32 %v12623_v56, %v18997_v4  ;;  %v6300_v26 = vpop.f32.mrf.mxu0  ;;  %12881 = vmatprep.mubr.bf16.mxu1 %v18998_v53  ;;  %v19004_v42 = vld [vmem:[#allocation103_spill] sm:$0xff] }
 0x3a4   : > { %v5507_v47 = vpop.f32.mrf.mxu1 }
 0x3a5   : > { %18996 = vst [vmem:[#allocation216_spill] sm:$0xff] %v16852_v57  ;;  %v16856_v9 = vadd.f32 %v12767_v16, %v5744_v23  ;;  %v5742_v46 = vadd.f32 %v5507_v47, %v19000_v20  ;;  %v12771_v40 = vpop.f32.mrf.mxu0  ;;  %13026 = vmatmul.mubr.bf16.gmra.mxu0 %v19001_v58  ;;  %v19009_v20 = vld [vmem:[#allocation109_spill] sm:$0xff] }
 0x3a6   : > { %v12624_v21 = vpop.f32.mrf.mxu1  ;;  %13029 = vmatprep.mubr.bf16.mxu0 %v19002_v13  ;;  %v19010_v13 = vld [vmem:[#allocation199_spill] sm:$0xff] }
 0x3a7   : > { %18999 = vst [vmem:[#allocation146_spill] sm:$0xff] %v16856_v9  ;;  %v16861_v11 = vadd.f32 %v6297_v6, %v5742_v46  ;;  %v5745_v28 = vadd.f32 %v12624_v21, %v19004_v42  ;;  %v6313_v57 = vpop.f32.mrf.mxu0  ;;  %v19007_v9 = vld [vmem:[#allocation197_spill] sm:$0xff]  ;;  %v19012_v21 = vld [vmem:[#allocation115_spill] sm:$0xff] }
 0x3a8   : > { %v5510_v56 = vpop.f32.mrf.mxu1 }
 0x3a9   : > { %19003 = vst [vmem:[#allocation148_spill] sm:$0xff] %v16861_v11  ;;  %v16864_v4 = vadd.f32 %v12768_v38, %v5745_v28  ;;  %v5743_v53 = vadd.f32 %v5510_v56, %v19006_v19  ;;  %v12772_v16 = vpop.f32.mrf.mxu0  ;;  %v19013_v28 = vld [vmem:[#allocation220_spill] sm:$0xff]  ;;  %v19014_v56 = vld [vmem:[#allocation222_spill] sm:$0xff]  ;;  %v19018_v11 = vld [vmem:[#allocation121_spill] sm:$0xff] }
 0x3aa   : > { %v12627_v23 = vpop.f32.mrf.mxu1  ;;  %12882 = vmatmul.mubr.bf16.gmra.mxu1 %v19007_v9 }
 0x3ab   : > { %19005 = vst [vmem:[#allocation219_spill] sm:$0xff] %v16864_v4  ;;  %v16868_v47 = vadd.f32 %v6300_v26, %v5743_v53  ;;  %v5748_v58 = vadd.f32 %v12627_v23, %v19009_v20  ;;  %v6316_v2 = vpop.f32.mrf.mxu0  ;;  %12885 = vmatprep.mubr.bf16.mxu1 %v19010_v13  ;;  %v19016_v26 = vld [vmem:[#allocation117_spill] sm:$0xff] }
 0x3ac   : > { %v5523_v6 = vpop.f32.mrf.mxu1 }
 0x3ad   : > { %19008 = vst [vmem:[#allocation224_spill] sm:$0xff] %v16868_v47  ;;  %v16872_v46 = vadd.f32 %v12771_v40, %v5748_v58  ;;  %v5746_v42 = vadd.f32 %v5523_v6, %v19012_v21  ;;  %v12775_v38 = vpop.f32.mrf.mxu0  ;;  %13030 = vmatmul.mubr.bf16.gmra.mxu0 %v19013_v28  ;;  %v19021_v21 = vld [vmem:[#allocation123_spill] sm:$0xff] }
 0x3ae   : > { %v12628_v19 = vpop.f32.mrf.mxu1  ;;  %13033 = vmatprep.mubr.bf16.mxu0 %v19014_v56  ;;  %v19022_v56 = vld [vmem:[#allocation209_spill] sm:$0xff] }
 0x3af   : > { %19011 = vst [vmem:[#allocation227_spill] sm:$0xff] %v16872_v46  ;;  %v16877_v4 = vadd.f32 %v6313_v57, %v5746_v42  ;;  %v5749_v53 = vadd.f32 %v12628_v19, %v19016_v26  ;;  %v6329_v47 = vpop.f32.mrf.mxu0  ;;  %v19019_v46 = vld [vmem:[#allocation207_spill] sm:$0xff]  ;;  %v19024_v19 = vld [vmem:[#allocation128_spill] sm:$0xff] }
 0x3b0   : > { %v5526_v23 = vpop.f32.mrf.mxu1 }
 0x3b1   : > { %19015 = vst [vmem:[#allocation232_spill] sm:$0xff] %v16877_v4  ;;  %v16880_v20 = vadd.f32 %v12772_v16, %v5749_v53  ;;  %v5747_v13 = vadd.f32 %v5526_v23, %v19018_v11  ;;  %v12776_v40 = vpop.f32.mrf.mxu0  ;;  %v19025_v53 = vld [vmem:[#allocation228_spill] sm:$0xff]  ;;  %v19026_v23 = vld [vmem:[#allocation230_spill] sm:$0xff] }
 0x3b2   : > { %v12631_v58 = vpop.f32.mrf.mxu1  ;;  %12886 = vmatmul.mubr.bf16.gmra.mxu1 %v19019_v46  ;;  %v19030_v4 = vld [vmem:[#allocation136_spill] sm:$0xff] }
 0x3b3   : > { %19017 = vst [vmem:[#allocation154_spill] sm:$0xff] %v16880_v20  ;;  %v16884_v6 = vadd.f32 %v6316_v2, %v5747_v13  ;;  %v5752_v28 = vadd.f32 %v12631_v58, %v19021_v21  ;;  %v6332_v9 = vpop.f32.mrf.mxu0  ;;  %12889 = vmatprep.mubr.bf16.mxu1 %v19022_v56  ;;  %v19028_v2 = vld [vmem:[#allocation131_spill] sm:$0xff] }
 0x3b4   : > { %v5539_v57 = vpop.f32.mrf.mxu1 }
 0x3b5   : > { %19020 = vst [vmem:[#allocation156_spill] sm:$0xff] %v16884_v6  ;;  %v16888_v42 = vadd.f32 %v12775_v38, %v5752_v28  ;;  %v5750_v26 = vadd.f32 %v5539_v57, %v19024_v19  ;;  %v12779_v16 = vpop.f32.mrf.mxu0  ;;  %13034 = vmatmul.mubr.bf16.gmra.mxu0 %v19025_v53  ;;  %v19033_v19 = vld [vmem:[#allocation139_spill] sm:$0xff] }
 0x3b6   : > { %v12632_v11 = vpop.f32.mrf.mxu1  ;;  %13037 = vmatprep.mubr.bf16.mxu0 %v19026_v23  ;;  %v19034_v23 = vld [vmem:[#allocation217_spill] sm:$0xff] }
 0x3b7   : > { %19023 = vst [vmem:[#allocation235_spill] sm:$0xff] %v16888_v42  ;;  %v16893_v20 = vadd.f32 %v6329_v47, %v5750_v26  ;;  %v5753_v13 = vadd.f32 %v12632_v11, %v19028_v2  ;;  %v6345_v6 = vpop.f32.mrf.mxu0  ;;  %v19031_v42 = vld [vmem:[#allocation215_spill] sm:$0xff]  ;;  %v19036_v11 = vld [vmem:[#allocation144_spill] sm:$0xff] }
 0x3b8   : > { %v5542_v58 = vpop.f32.mrf.mxu1 }
 0x3b9   : > { %19027 = vst [vmem:[#allocation240_spill] sm:$0xff] %v16893_v20  ;;  %v16896_v21 = vadd.f32 %v12776_v40, %v5753_v13  ;;  %v5751_v56 = vadd.f32 %v5542_v58, %v19030_v4  ;;  %v12780_v38 = vpop.f32.mrf.mxu0  ;;  %v19037_v13 = vld [vmem:[#allocation236_spill] sm:$0xff]  ;;  %v19038_v58 = vld [vmem:[#allocation238_spill] sm:$0xff] }
 0x3ba   : > { %v12635_v28 = vpop.f32.mrf.mxu1  ;;  %12890 = vmatmul.mubr.bf16.gmra.mxu1 %v19031_v42  ;;  %v19042_v20 = vld [vmem:[#allocation152_spill] sm:$0xff] }
 0x3bb   : > { %19029 = vst [vmem:[#allocation243_spill] sm:$0xff] %v16896_v21  ;;  %v16900_v57 = vadd.f32 %v6332_v9, %v5751_v56  ;;  %v5756_v53 = vadd.f32 %v12635_v28, %v19033_v19  ;;  %v6348_v46 = vpop.f32.mrf.mxu0  ;;  %12893 = vmatprep.mubr.bf16.mxu1 %v19034_v23  ;;  %v19040_v9 = vld [vmem:[#allocation147_spill] sm:$0xff] }
 0x3bc   : > { %v5555_v47 = vpop.f32.mrf.mxu1 }
 0x3bd   : > { %19032 = vst [vmem:[#allocation247_spill] sm:$0xff] %v16900_v57  ;;  %v16904_v26 = vadd.f32 %v12779_v16, %v5756_v53  ;;  %v5754_v2 = vadd.f32 %v5555_v47, %v19036_v11  ;;  %v12783_v40 = vpop.f32.mrf.mxu0  ;;  %13038 = vmatmul.mubr.bf16.gmra.mxu0 %v19037_v13  ;;  %v19045_v11 = vld [vmem:[#allocation155_spill] sm:$0xff] }
 0x3be   : > { %v12636_v4 = vpop.f32.mrf.mxu1  ;;  %13041 = vmatprep.mubr.bf16.mxu0 %v19038_v58  ;;  %v19046_v58 = vld [vmem:[#allocation225_spill] sm:$0xff] }
 0x3bf   : > { %19035 = vst [vmem:[#allocation162_spill] sm:$0xff] %v16904_v26  ;;  %v16909_v21 = vadd.f32 %v6345_v6, %v5754_v2  ;;  %v5757_v56 = vadd.f32 %v12636_v4, %v19040_v9  ;;  %v6361_v57 = vpop.f32.mrf.mxu0  ;;  %v19043_v26 = vld [vmem:[#allocation223_spill] sm:$0xff]  ;;  %v19048_v4 = vld [vmem:[#allocation160_spill] sm:$0xff] }
 0x3c0   : > { %v5558_v28 = vpop.f32.mrf.mxu1 }
 0x3c1   : > { %19039 = vst [vmem:[#allocation164_spill] sm:$0xff] %v16909_v21  ;;  %v16912_v19 = vadd.f32 %v12780_v38, %v5757_v56  ;;  %v5755_v23 = vadd.f32 %v5558_v28, %v19042_v20  ;;  %v12784_v16 = vpop.f32.mrf.mxu0  ;;  %v19049_v56 = vld [vmem:[#allocation244_spill] sm:$0xff]  ;;  %v19050_v28 = vld [vmem:[#allocation246_spill] sm:$0xff] }
 0x3c2   : > { %v12639_v53 = vpop.f32.mrf.mxu1  ;;  %12894 = vmatmul.mubr.bf16.gmra.mxu1 %v19043_v26  ;;  %v19054_v21 = vld [vmem:[#allocation168_spill] sm:$0xff] }
 0x3c3   : > { %19041 = vst [vmem:[#allocation251_spill] sm:$0xff] %v16912_v19  ;;  %v16916_v47 = vadd.f32 %v6348_v46, %v5755_v23  ;;  %v5760_v13 = vadd.f32 %v12639_v53, %v19045_v11  ;;  %v6364_v42 = vpop.f32.mrf.mxu0  ;;  %12897 = vmatprep.mubr.bf16.mxu1 %v19046_v58  ;;  %v19052_v46 = vld [vmem:[#allocation163_spill] sm:$0xff] }
 0x3c4   : > { %v5571_v6 = vpop.f32.mrf.mxu1 }
 0x3c5   : > { %19044 = vst [vmem:[#allocation254_spill] sm:$0xff] %v16916_v47  ;;  %v16920_v2 = vadd.f32 %v12783_v40, %v5760_v13  ;;  %v5758_v9 = vadd.f32 %v5571_v6, %v19048_v4  ;;  %v12787_v38 = vpop.f32.mrf.mxu0  ;;  %13042 = vmatmul.mubr.bf16.gmra.mxu0 %v19049_v56  ;;  %v19057_v4 = vld [vmem:[#allocation171_spill] sm:$0xff] }
 0x3c6   : > { %v12640_v20 = vpop.f32.mrf.mxu1  ;;  %13045 = vmatprep.mubr.bf16.mxu0 %v19050_v28  ;;  %v19058_v28 = vld [vmem:[#allocation234_spill] sm:$0xff] }
 0x3c7   : > { %19047 = vst [vmem:[#allocation256_spill] sm:$0xff] %v16920_v2  ;;  %v16925_v19 = vadd.f32 %v6361_v57, %v5758_v9  ;;  %v5761_v23 = vadd.f32 %v12640_v20, %v19052_v46  ;;  %v6377_v47 = vpop.f32.mrf.mxu0  ;;  %v19055_v2 = vld [vmem:[#allocation231_spill] sm:$0xff]  ;;  %v19060_v20 = vld [vmem:[#allocation176_spill] sm:$0xff] }
 0x3c8   : > { %v5574_v53 = vpop.f32.mrf.mxu1 }
 0x3c9   : > { %19051 = vst [vmem:[#allocation260_spill] sm:$0xff] %v16925_v19  ;;  %v16928_v11 = vadd.f32 %v12784_v16, %v5761_v23  ;;  %v5759_v58 = vadd.f32 %v5574_v53, %v19054_v21  ;;  %v12788_v40 = vpop.f32.mrf.mxu0  ;;  %v19061_v23 = vld [vmem:[#allocation253_spill] sm:$0xff]  ;;  %v19062_v53 = vld [vmem:[#allocation255_spill] sm:$0xff]  ;;  %v19066_v19 = vld [vmem:[#allocation184_spill] sm:$0xff] }
 0x3ca   : > { %v12643_v13 = vpop.f32.mrf.mxu1  ;;  %12898 = vmatmul.mubr.bf16.gmra.mxu1 %v19055_v2 }
 0x3cb   : > { %19053 = vst [vmem:[#allocation170_spill] sm:$0xff] %v16928_v11  ;;  %v16932_v6 = vadd.f32 %v6364_v42, %v5759_v58  ;;  %v5764_v56 = vadd.f32 %v12643_v13, %v19057_v4  ;;  %v6380_v26 = vpop.f32.mrf.mxu0  ;;  %12901 = vmatprep.mubr.bf16.mxu1 %v19058_v28  ;;  %v19064_v42 = vld [vmem:[#allocation179_spill] sm:$0xff] }
 0x3cc   : > { %v5587_v57 = vpop.f32.mrf.mxu1 }
 0x3cd   : > { %19056 = vst [vmem:[#allocation172_spill] sm:$0xff] %v16932_v6  ;;  %v16936_v9 = vadd.f32 %v12787_v38, %v5764_v56  ;;  %v5762_v46 = vadd.f32 %v5587_v57, %v19060_v20  ;;  %v12791_v16 = vpop.f32.mrf.mxu0  ;;  %13046 = vmatmul.mubr.bf16.gmra.mxu0 %v19061_v23  ;;  %v19069_v20 = vld [vmem:[#allocation187_spill] sm:$0xff] }
 0x3ce   : > { %v12644_v21 = vpop.f32.mrf.mxu1  ;;  %13049 = vmatprep.mubr.bf16.mxu0 %v19062_v53  ;;  %v19070_v53 = vld [vmem:[#allocation242_spill] sm:$0xff] }
 0x3cf   : > { %19059 = vst [vmem:[#allocation56_spill] sm:$0xff] %v16936_v9  ;;  %v16941_v11 = vadd.f32 %v6377_v47, %v5762_v46  ;;  %v5765_v58 = vadd.f32 %v12644_v21, %v19064_v42  ;;  %v6393_v6 = vpop.f32.mrf.mxu0  ;;  %v19067_v9 = vld [vmem:[#allocation239_spill] sm:$0xff]  ;;  %v19072_v21 = vld [vmem:[#allocation192_spill] sm:$0xff] }
 0x3d0   : > { %v5590_v13 = vpop.f32.mrf.mxu1 }
 0x3d1   : > { %19063 = vst [vmem:[#allocation57_spill] sm:$0xff] %v16941_v11  ;;  %v16944_v4 = vadd.f32 %v12788_v40, %v5765_v58  ;;  %v5763_v28 = vadd.f32 %v5590_v13, %v19066_v19  ;;  %v12792_v38 = vpop.f32.mrf.mxu0  ;;  %v19073_v58 = vld [vmem:[#allocation264_spill] sm:$0xff] }
 0x3d2   : > { %v12647_v56 = vpop.f32.mrf.mxu1  ;;  %12902 = vmatmul.mubr.bf16.gmra.mxu1 %v19067_v9 }
 0x3d3   : > { %19065 = vst [vmem:[#allocation60_spill] sm:$0xff] %v16944_v4  ;;  %v16948_v57 = vadd.f32 %v6380_v26, %v5763_v28  ;;  %v5768_v23 = vadd.f32 %v12647_v56, %v19069_v20  ;;  %v6396_v2 = vpop.f32.mrf.mxu0  ;;  %12905 = vmatprep.mubr.bf16.mxu1 %v19070_v53  ;;  %v19075_v26 = vld [vmem:[#allocation195_spill] sm:$0xff]  ;;  %v19077_v4 = vld [vmem:[#allocation200_spill] sm:$0xff] }
 0x3d4   : > { %v5603_v47 = vpop.f32.mrf.mxu1 }
 0x3d5   : > { %19068 = vst [vmem:[#allocation61_spill] sm:$0xff] %v16948_v57  ;;  %v16952_v46 = vadd.f32 %v12791_v16, %v5768_v23  ;;  %v5766_v42 = vadd.f32 %v5603_v47, %v19072_v21  ;;  %v12795_v40 = vpop.f32.mrf.mxu0  ;;  %13050 = vmatmul.mubr.bf16.gmra.mxu0 %v18773_v0  ;;  %v19080_v0 = vld [vmem:[#allocation204_spill] sm:$0xff] }
 0x3d6   : > { %v12648_v19 = vpop.f32.mrf.mxu1  ;;  %13053 = vmatprep.mubr.bf16.mxu0 %v19073_v58  ;;  %v19081_v58 = vld [vmem:[#allocation250_spill] sm:$0xff] }
 0x3d7   : > { %19071 = vst [vmem:[#allocation178_spill] sm:$0xff] %v16952_v46  ;;  %v16957_v13 = vadd.f32 %v6393_v6, %v5766_v42  ;;  %v5769_v28 = vadd.f32 %v12648_v19, %v19075_v26  ;;  %v6409_v57 = vpop.f32.mrf.mxu0  ;;  %v19078_v46 = vld [vmem:[#allocation248_spill] sm:$0xff]  ;;  %v19083_v19 = vld [vmem:[#allocation210_spill] sm:$0xff] }
 0x3d8   : > { %v5606_v56 = vpop.f32.mrf.mxu1 }
 0x3d9   : > { %19074 = vst [vmem:[#allocation180_spill] sm:$0xff] %v16957_v13  ;;  %v16960_v20 = vadd.f32 %v12792_v38, %v5769_v28  ;;  %v5767_v11 = vadd.f32 %v5606_v56, %v19077_v4  ;;  %v12796_v16 = vpop.f32.mrf.mxu0 }
 0x3da   : > { %v12651_v23 = vpop.f32.mrf.mxu1  ;;  %12906 = vmatmul.mubr.bf16.gmra.mxu1 %v19078_v46 }
 0x3db   : > { %19076 = vst [vmem:[#allocation63_spill] sm:$0xff] %v16960_v20  ;;  %v16964_v47 = vadd.f32 %v6396_v2, %v5767_v11  ;;  %v5772_v21 = vadd.f32 %v12651_v23, %v19080_v0  ;;  %v6412_v53 = vpop.f32.mrf.mxu0  ;;  %12909 = vmatprep.mubr.bf16.mxu1 %v19081_v58  ;;  %v19084_v2 = vld [vmem:[#allocation213_spill] sm:$0xff] }
 0x3dc   : > { %v5619_v6 = vpop.f32.mrf.mxu1 }
 0x3dd   : > { %19079 = vst [vmem:[#allocation65_spill] sm:$0xff] %v16964_v47  ;;  %v16968_v42 = vadd.f32 %v12795_v40, %v5772_v21  ;;  %v5770_v26 = vadd.f32 %v5619_v6, %v19083_v19  ;;  %v12799_v38 = vpop.f32.mrf.mxu0  ;;  %13054 = vmatmul.mubr.bf16.gmra.mxu0 %v15672_v63  ;;  %v19086_v47 = vld [vmem:[#allocation218_spill] sm:$0xff]  ;;  %v19089_v63 = vld [vmem:[#allocation221_spill] sm:$0xff] }
 0x3de   : > { %v12652_v4 = vpop.f32.mrf.mxu1  ;;  %13057 = vmatprep.mubr.bf16.mxu0 %v15675_v33  ;;  %v19090_v33 = vld [vmem:[#allocation259_spill] sm:$0xff] }
 0x3df   : > { %19082 = vst [vmem:[#allocation67_spill] sm:$0xff] %v16968_v42  ;;  %v16973_v28 = vadd.f32 %v6409_v57, %v5770_v26  ;;  %v5773_v11 = vadd.f32 %v12652_v4, %v19084_v2  ;;  %v6425_v56 = vpop.f32.mrf.mxu0  ;;  %v19087_v42 = vld [vmem:[#allocation257_spill] sm:$0xff] }
 0x3e0   : > { %v5622_v23 = vpop.f32.mrf.mxu1 }
 0x3e1   : > { %v16976_v0 = vadd.f32 %v12796_v16, %v5773_v11  ;;  %v5771_v20 = vadd.f32 %v5622_v23, %v19086_v47  ;;  %v12800_v40 = vpop.f32.mrf.mxu0 }
 0x3e2   : > { %v12655_v21 = vpop.f32.mrf.mxu1  ;;  %12910 = vmatmul.mubr.bf16.gmra.mxu1 %v19087_v42 }
 0x3e3   : > { %19085 = vst [vmem:[#allocation69_spill] sm:$0xff] %v16976_v0  ;;  %v16980_v6 = vadd.f32 %v6412_v53, %v5771_v20  ;;  %v5776_v19 = vadd.f32 %v12655_v21, %v19089_v63  ;;  %v6428_v13 = vpop.f32.mrf.mxu0  ;;  %12913 = vmatprep.mubr.bf16.mxu1 %v19090_v33  ;;  %v19093_v53 = vld [vmem:[#allocation226_spill] sm:$0xff]  ;;  %v19095_v63 = vld [vmem:[#allocation229_spill] sm:$0xff] }
 0x3e4   : > { %v5635_v57 = vpop.f32.mrf.mxu1 }
 0x3e5   : > { %19088 = vst [vmem:[#allocation186_spill] sm:$0xff] %v16980_v6  ;;  %v16984_v26 = vadd.f32 %v12799_v38, %v5776_v19  ;;  %v5774_v4 = vadd.f32 %v5635_v57, %v16392_v37  ;;  %v12963_v16 = vpop.f32.mrf.mxu0  ;;  %13058 = vmatmul.mubr.bf16.gmra.mxu0 %v15720_v35  ;;  %v19098_v35 = vld [vmem:[#allocation233_spill] sm:$0xff] }
 0x3e6   : > { %v12656_v47 = vpop.f32.mrf.mxu1  ;;  %13061 = vmatprep.mubr.bf16.mxu0 %v15724_v12  ;;  %v19099_v12 = vld [vmem:[#allocation267_spill] sm:$0xff] }
 0x3e7   : > { %19091 = vst [vmem:[#allocation188_spill] sm:$0xff] %v16984_v26  ;;  %v16989_v2 = vadd.f32 %v6425_v56, %v5774_v4  ;;  %v5777_v20 = vadd.f32 %v12656_v47, %v19093_v53  ;;  %v7439_v11 = vpop.f32.mrf.mxu0  ;;  %v19096_v26 = vld [vmem:[#allocation266_spill] sm:$0xff]  ;;  %v19101_v47 = vld [vmem:[#allocation237_spill] sm:$0xff] }
 0x3e8   : > { %v5638_v23 = vpop.f32.mrf.mxu1 }
 0x3e9   : > { %19092 = vst [vmem:[#allocation71_spill] sm:$0xff] %v16989_v2  ;;  %v16992_v21 = vadd.f32 %v12800_v40, %v5777_v20  ;;  %v5775_v6 = vadd.f32 %v5638_v23, %v19095_v63  ;;  %v12964_v38 = vpop.f32.mrf.mxu0  ;;  %v19102_v20 = vld [vmem:[#allocation277_spill] sm:$0xff]  ;;  %v19103_v63 = vld [vmem:[#allocation278_spill] sm:$0xff] }
 0x3ea   : > { %v12819_v19 = vpop.f32.mrf.mxu1  ;;  %12914 = vmatmul.mubr.bf16.gmra.mxu1 %v19096_v26  ;;  %v19107_v2 = vld [vmem:[#allocation245_spill] sm:$0xff] }
 0x3eb   : > { %19094 = vst [vmem:[#allocation73_spill] sm:$0xff] %v16992_v21  ;;  %v16996_v37 = vadd.f32 %v6428_v13, %v5775_v6  ;;  %v7202_v57 = vadd.f32 %v12819_v19, %v19098_v35  ;;  %v7442_v0 = vpop.f32.mrf.mxu0  ;;  %12917 = vmatprep.mubr.bf16.mxu1 %v19099_v12  ;;  %v19105_v13 = vld [vmem:[#allocation241_spill] sm:$0xff] }
 0x3ec   : > { %v6689_v56 = vpop.f32.mrf.mxu1 }
 0x3ed   : > { %19097 = vst [vmem:[#allocation75_spill] sm:$0xff] %v16996_v37  ;;  %v17000_v4 = vadd.f32 %v12963_v16, %v7202_v57  ;;  %v7200_v53 = vadd.f32 %v6689_v56, %v19101_v47  ;;  %v12967_v40 = vpop.f32.mrf.mxu0  ;;  %13062 = vmatmul.mubr.bf16.gmra.mxu0 %v19102_v20  ;;  %v19110_v47 = vld [vmem:[#allocation249_spill] sm:$0xff] }
 0x3ee   : > { %v12820_v23 = vpop.f32.mrf.mxu1  ;;  %13065 = vmatprep.mubr.bf16.mxu0 %v19103_v63  ;;  %v19111_v63 = vld [vmem:[#allocation271_spill] sm:$0xff] }
 0x3ef   : > { %19100 = vst [vmem:[#allocation78_spill] sm:$0xff] %v17000_v4  ;;  %v17005_v21 = vadd.f32 %v7439_v11, %v7200_v53  ;;  %v7203_v6 = vadd.f32 %v12820_v23, %v19105_v13  ;;  %v7455_v37 = vpop.f32.mrf.mxu0  ;;  %v19108_v4 = vld [vmem:[#allocation270_spill] sm:$0xff]  ;;  %v19113_v23 = vld [vmem:[#allocation252_spill] sm:$0xff] }
 0x3f0   : > { %v6692_v19 = vpop.f32.mrf.mxu1 }
 0x3f1   : > { %19104 = vst [vmem:[#allocation194_spill] sm:$0xff] %v17005_v21  ;;  %v17008_v35 = vadd.f32 %v12964_v38, %v7203_v6  ;;  %v7201_v12 = vadd.f32 %v6692_v19, %v19107_v2  ;;  %v12968_v16 = vpop.f32.mrf.mxu0  ;;  %v19114_v6 = vld [vmem:[#allocation282_spill] sm:$0xff]  ;;  %v19115_v19 = vld [vmem:[#allocation283_spill] sm:$0xff] }
 0x3f2   : > { %v12823_v57 = vpop.f32.mrf.mxu1  ;;  %12918 = vmatmul.mubr.bf16.gmra.mxu1 %v19108_v4  ;;  %v19119_v21 = vld [vmem:[#allocation258_spill] sm:$0xff] }
 0x3f3   : > { %19106 = vst [vmem:[#allocation196_spill] sm:$0xff] %v17008_v35  ;;  %v17012_v56 = vadd.f32 %v7442_v0, %v7201_v12  ;;  %v7206_v20 = vadd.f32 %v12823_v57, %v19110_v47  ;;  %v7458_v26 = vpop.f32.mrf.mxu0  ;;  %12921 = vmatprep.mubr.bf16.mxu1 %v19111_v63  ;;  %v19117_v0 = vld [vmem:[#allocation263_spill] sm:$0xff] }
 0x3f4   : > { %v6705_v11 = vpop.f32.mrf.mxu1 }
 0x3f5   : > { %19109 = vst [vmem:[#allocation80_spill] sm:$0xff] %v17012_v56  ;;  %v17016_v53 = vadd.f32 %v12967_v40, %v7206_v20  ;;  %v7204_v13 = vadd.f32 %v6705_v11, %v19113_v23  ;;  %v12971_v38 = vpop.f32.mrf.mxu0  ;;  %13066 = vmatmul.mubr.bf16.gmra.mxu0 %v19114_v6  ;;  %v19122_v23 = vld [vmem:[#allocation261_spill] sm:$0xff] }
 0x3f6   : > { %v12824_v2 = vpop.f32.mrf.mxu1  ;;  %13069 = vmatprep.mubr.bf16.mxu0 %v19115_v19  ;;  %v19123_v19 = vld [vmem:[#allocation275_spill] sm:$0xff] }
 0x3f7   : > { %19112 = vst [vmem:[#allocation82_spill] sm:$0xff] %v17016_v53  ;;  %v17021_v35 = vadd.f32 %v7455_v37, %v7204_v13  ;;  %v7207_v12 = vadd.f32 %v12824_v2, %v19117_v0  ;;  %v7471_v56 = vpop.f32.mrf.mxu0  ;;  %v19120_v53 = vld [vmem:[#allocation274_spill] sm:$0xff] }
 0x3f8   : > { %v6708_v57 = vpop.f32.mrf.mxu1  ;;  %v19125_v2 = vld [vmem:[#allocation262_spill] sm:$0xff] }
 0x3f9   : > { %19116 = vst [vmem:[#allocation85_spill] sm:$0xff] %v17021_v35  ;;  %v17024_v47 = vadd.f32 %v12968_v16, %v7207_v12  ;;  %v7205_v63 = vadd.f32 %v6708_v57, %v19119_v21  ;;  %v12972_v40 = vpop.f32.mrf.mxu0 }
 0x3fa   : > { %v12827_v20 = vpop.f32.mrf.mxu1  ;;  %12922 = vmatmul.mubr.bf16.gmra.mxu1 %v19120_v53 }
 0x3fb   : > { %19118 = vst [vmem:[#allocation87_spill] sm:$0xff] %v17024_v47  ;;  %v17028_v11 = vadd.f32 %v7458_v26, %v7205_v63  ;;  %v7210_v6 = vadd.f32 %v12827_v20, %v19122_v23  ;;  %v7474_v4 = vpop.f32.mrf.mxu0  ;;  %12925 = vmatprep.mubr.bf16.mxu1 %v19123_v19  ;;  %v19126_v26 = vld [vmem:[#allocation265_spill] sm:$0xff] }
 0x3fc   : > { %v6721_v37 = vpop.f32.mrf.mxu1 }
 0x3fd   : > { %19121 = vst [vmem:[#allocation203_spill] sm:$0xff] %v17028_v11  ;;  %v17032_v13 = vadd.f32 %v12971_v38, %v7210_v6  ;;  %v7208_v0 = vadd.f32 %v6721_v37, %v19125_v2  ;;  %v12975_v16 = vpop.f32.mrf.mxu0  ;;  %13070 = vmatmul.mubr.bf16.gmra.mxu0 %v15867_v52  ;;  %v19127_v11 = vld [vmem:[#allocation268_spill] sm:$0xff]  ;;  %v19129_v52 = vld [vmem:[#allocation269_spill] sm:$0xff] }
 0x3fe   : > { %v12828_v21 = vpop.f32.mrf.mxu1  ;;  %13073 = vmatprep.mubr.bf16.mxu0 %v15871_v10  ;;  %v19130_v10 = vld [vmem:[#allocation281_spill] sm:$0xff] }
 0x3ff   : > { %19124 = vst [vmem:[#allocation205_spill] sm:$0xff] %v17032_v13  ;;  %v17037_v12 = vadd.f32 %v7471_v56, %v7208_v0  ;;  %v7211_v63 = vadd.f32 %v12828_v21, %v19126_v26  ;;  %v7487_v57 = vpop.f32.mrf.mxu0  ;;  %v19128_v13 = vld [vmem:[#allocation280_spill] sm:$0xff] }
 0x400   : > { %v6724_v20 = vpop.f32.mrf.mxu1 }
 0x401   : > { %v17040_v23 = vadd.f32 %v12972_v40, %v7211_v63  ;;  %v7209_v47 = vadd.f32 %v6724_v20, %v19127_v11  ;;  %v12976_v38 = vpop.f32.mrf.mxu0 }
 0x402   : > { %v12831_v6 = vpop.f32.mrf.mxu1  ;;  %12926 = vmatmul.mubr.bf16.gmra.mxu1 %v19128_v13 }
 0x403   : > { %v17044_v37 = vadd.f32 %v7474_v4, %v7209_v47  ;;  %v7214_v2 = vadd.f32 %v12831_v6, %v19129_v52  ;;  %v7490_v35 = vpop.f32.mrf.mxu0  ;;  %12929 = vmatprep.mubr.bf16.mxu1 %v19130_v10 }
 0x404   : > { %v6737_v56 = vpop.f32.mrf.mxu1 }
 0x405   : > { %v17048_v0 = vadd.f32 %v12975_v16, %v7214_v2  ;;  %v7212_v21 = vadd.f32 %v6737_v56, %v16476_v41  ;;  %v12979_v40 = vpop.f32.mrf.mxu0  ;;  %13074 = vmatmul.mubr.bf16.gmra.mxu0 %v15905_v27  ;;  %v19134_v41 = vld [vmem:[#allocation285_spill] sm:$0xff] }
 0x406   : > { %v12832_v11 = vpop.f32.mrf.mxu1  ;;  %13077 = vmatprep.mubr.bf16.mxu0 %v15916_v59  ;;  %v13735_v56 = vld [vmem:[%s13886_s3 + $0x284] sm:$0xf] }
 0x407   : > { %19131 = vst [vmem:[#allocation91_spill] sm:$0xff] %v17048_v0  ;;  %v17053_v26 = vadd.f32 %v7487_v57, %v7212_v21  ;;  %v7215_v4 = vadd.f32 %v12832_v11, %v16479_v50  ;;  %v7503_v47 = vpop.f32.mrf.mxu0  ;;  %v19136_v57 = vld [vmem:[#allocation286_spill] sm:$0xff]  ;;  %v19142_v0 = vld [vmem:[#allocation288_spill] sm:$0xff] }
 0x408   : > { %v6740_v63 = vpop.f32.mrf.mxu1 }
 0x409   : > { %19132 = vst [vmem:[#allocation93_spill] sm:$0xff] %v17053_v26  ;;  %v17056_v20 = vadd.f32 %v12976_v38, %v7215_v4  ;;  %v7213_v16 = vadd.f32 %v6740_v63, %v16483_v17  ;;  %v12980_v6 = vpop.f32.mrf.mxu0  ;;  %v6571_v38 = vrot.slane %v13735_v56, 5 }
 0x40a   : > { %v12835_v52 = vpop.f32.mrf.mxu1  ;;  %12930 = vmatmul.mubr.bf16.gmra.mxu1 %v19134_v41 }
 0x40b   : > { %19133 = vst [vmem:[#allocation97_spill] sm:$0xff] %v17056_v20  ;;  %v17060_v2 = vadd.f32 %v7490_v35, %v7213_v16  ;;  %v7218_v27 = vadd.f32 %v12835_v52, %v16488_v44  ;;  %v7506_v59 = vpop.f32.mrf.mxu0  ;;  %12933 = vmatprep.mubr.bf16.mxu1 %v19136_v57  ;;  %v308_v16 = vld [vmem:[%s13886_s3 + $0x294] sm:$0xf]  ;;  %v309_v52 = vld [vmem:[%s13886_s3 + $0x298] sm:$0xf] }
 0x40c   : > { %v6753_v50 = vpop.f32.mrf.mxu1 }
 0x40d   : > { %19135 = vst [vmem:[#allocation99_spill] sm:$0xff] %v17060_v2  ;;  %v17065_v21 = vadd.f32 %v12979_v40, %v7218_v27  ;;  %v7216_v17 = vadd.f32 %v6753_v50, %v16493_v15  ;;  %v12983_v11 = vpop.f32.mrf.mxu0  ;;  %13078 = vmatmul.mubr.bf16.gmra.mxu0 %v15933_v34  ;;  %v13736_v2 = vld [vmem:[%s13886_s3 + $0x280] sm:$0xf]  ;;  %v6573_v27 = vrot.slane %v6571_v38, 4 }
 0x40e   : > { %v12836_v35 = vpop.f32.mrf.mxu1  ;;  %13081 = vmatprep.mubr.bf16.mxu0 %v16524_v55  ;;  %v10682_v40 = vrot.slane %v13736_v2, 9 }
 0x40f   : > { %19137 = vst [vmem:[#allocation212_spill] sm:$0xff] %v17065_v21  ;;  %v17070_v44 = vadd.f32 %v7503_v47, %v7216_v17  ;;  %v7219_v4 = vadd.f32 %v12836_v35, %v16500_v49  ;;  %v7519_v63 = vpop.f32.mrf.mxu0  ;;  %v13737_v21 = vld [vmem:[%s13886_s3 + $0x288] sm:$0xf]  ;;  %v19140_v47 = vld [vmem:[#allocation287_spill] sm:$0xff]  ;;  %v10725_v17 = vcombine.low %v308_v16, %v309_v52  ;;  %v13738_v49 = vld [vmem:[%s13886_s3 + $0x28c] sm:$0xf] }
 0x410   : > { %v6756_v56 = vpop.f32.mrf.mxu1  ;;  %v6574_v15 = vrot.slane %v13737_v21, 5  ;;  %v6577_v35 = vrot.slane %v13738_v49, 5  ;;  %v311_v49 = vld [vmem:[%s13886_s3 + $0x2a0] sm:$0xf] }
 0x411   : > { %19138 = vst [vmem:[#allocation214_spill] sm:$0xff] %v17070_v44  ;;  %v17077_v50 = vadd.f32 %v12980_v6, %v7219_v4  ;;  %v7217_v34 = vadd.f32 %v6756_v56, %v16506_v48  ;;  %v12984_v20 = vpop.f32.mrf.mxu0  ;;  %v6572_v48 = vsel %vm14627_vm5, %v10682_v40, %v6571_v38 }
 0x412   : > { %v12839_v55 = vpop.f32.mrf.mxu1  ;;  %12934 = vmatmul.mubr.bf16.gmra.mxu1 %v19140_v47  ;;  %v6575_v4 = vsel %vm14627_vm5, %v6573_v27, %v6574_v15 }
 0x413   : > { %19139 = vst [vmem:[#allocation103_spill] sm:$0xff] %v17077_v50  ;;  %v17082_v44 = vadd.f32 %v7506_v59, %v7217_v34  ;;  %v7222_v2 = vadd.f32 %v12839_v55, %v16510_v8  ;;  %v7522_v26 = vpop.f32.mrf.mxu0  ;;  %12937 = vmatprep.mubr.bf16.mxu1 %v19142_v0  ;;  %v6576_v8 = vrot.slane %v6574_v15, 4  ;;  %v6579_v34 = vrot.slane %v6577_v35, 4  ;;  %v310_v55 = vld [vmem:[%s13886_s3 + $0x29c] sm:$0xf] }
 0x414   : > { %v6769_v6 = vpop.f32.mrf.mxu1  ;;  %v17099_v50 = vcombine.low %v6572_v48, %v6575_v4  ;;  %v10726_v15 = vcombine.low %v310_v55, %v311_v49 }
 0x415   : > { %19141 = vst [vmem:[#allocation105_spill] sm:$0xff] %v17082_v44  ;;  %v17090_v16 = vadd.f32 %v12983_v11, %v7222_v2  ;;  %v7220_v52 = vadd.f32 %v6769_v6, %v16519_v22  ;;  %v12987_v59 = vpop.f32.mrf.mxu0  ;;  %13082 = vmatmul.mubr.bf16.gmra.mxu0 %v16542_v25  ;;  %v13739_v11 = vld [vmem:[%s13886_s3 + $0x290] sm:$0x1]  ;;  %v6578_v48 = vsel %vm14627_vm5, %v6576_v8, %v6577_v35 }
 0x416   : > { %v12840_v56 = vpop.f32.mrf.mxu1  ;;  %13085 = vmatprep.mubr.bf16.mxu0 %v10725_v17  ;;  %v6580_v27 = vrot.slane %v13739_v11, 5 }
 0x417   : > { %19144 = vst [vmem:[#allocation109_spill] sm:$0xff] %v17090_v16  ;;  %v17096_v44 = vadd.f32 %v7519_v63, %v7220_v52  ;;  %v7223_v38 = vadd.f32 %v12840_v56, %v16526_v5  ;;  %v7535_v40 = vpop.f32.mrf.mxu0  ;;  %v19145_v16 = vld [vmem:[#allocation289_spill] sm:$0xff] }
 0x418   : > { %v6772_v2 = vpop.f32.mrf.mxu1 }
 0x419   : > { %v17102_v22 = vadd.f32 %v12984_v20, %v7223_v38  ;;  %v7221_v25 = vadd.f32 %v6772_v2, %v16532_v60  ;;  %v12988_v6 = vpop.f32.mrf.mxu0  ;;  %v6581_v20 = vsel %vm14627_vm5, %v6579_v34, %v6580_v27 }
 0x41a   : > { %v12843_v17 = vpop.f32.mrf.mxu1  ;;  %12938 = vmatmul.mubr.bf16.gmra.mxu1 %v19145_v16  ;;  %v17117_v55 = vcombine.low %v6578_v48, %v6581_v20 }
 0x41b   : > { %v17106_v0 = vadd.f32 %v7522_v26, %v7221_v25  ;;  %v7226_v63 = vadd.f32 %v12843_v17, %v16536_v30  ;;  %v7538_v5 = vpop.f32.mrf.mxu0  ;;  %12941 = vmatprep.mubr.bf16.mxu1 %v17099_v50 }
 0x41c   : > { %v6785_v4 = vpop.f32.mrf.mxu1 }
 0x41d   : > { %v17114_v60 = vadd.f32 %v12987_v59, %v7226_v63  ;;  %v7224_v52 = vadd.f32 %v6785_v4, %v16545_v24  ;;  %v12991_v56 = vpop.f32.mrf.mxu0  ;;  %13086 = vmatmul.mubr.bf16.gmra.mxu0 %v10726_v15 }
 0x41e   : > { %v12844_v26 = vpop.f32.mrf.mxu1  ;;  %13249 = vmatprep.mubr.bf16.mxu0 %v18823_v7  ;;  %v19146_v7 = vld [vmem:[#allocation11_spill] sm:$0xff] }
 0x41f   : > { %v17120_v30 = vadd.f32 %v7535_v40, %v7224_v52  ;;  %v7227_v49 = vadd.f32 %v12844_v26, %v16548_v29  ;;  %v7551_v35 = vpop.f32.mrf.mxu0  ;;  %v19147_v52 = vld [vmem:[#allocation13_spill] sm:$0xff] }
 0x420   : > { %v6788_v8 = vpop.f32.mrf.mxu1 }
 0x421   : > { %v17123_v38 = vadd.f32 %v12988_v6, %v7227_v49  ;;  %v7225_v59 = vadd.f32 %v6788_v8, %v16552_v45  ;;  %v12992_v34 = vpop.f32.mrf.mxu0 }
 0x422   : > { %v12847_v11 = vpop.f32.mrf.mxu1  ;;  %12942 = vmatmul.mubr.bf16.gmra.mxu1 %v17117_v55 }
 0x423   : > { %v17127_v24 = vadd.f32 %v7538_v5, %v7225_v59  ;;  %v7230_v27 = vadd.f32 %v12847_v11, %v16559_v36  ;;  %v7554_v2 = vpop.f32.mrf.mxu0  ;;  %13105 = vmatprep.mubr.bf16.mxu1 %v19146_v7 }
 0x424   : > { %v6801_v40 = vpop.f32.mrf.mxu1 }
 0x425   : > { %v17131_v25 = vadd.f32 %v12991_v56, %v7230_v27  ;;  %v7228_v29 = vadd.f32 %v6801_v40, %v16565_v62  ;;  %v12995_v6 = vpop.f32.mrf.mxu0  ;;  %13250 = vmatmul.mubr.bf16.vlgmr.msra.gmra.mxu0 %v18829_v54  ;;  %v19149_v40 = vld [vmem:[#allocation17_spill] sm:$0xff] }
 0x426   : > { %v12848_v45 = vpop.f32.mrf.mxu1  ;;  %13253 = vmatprep.mubr.bf16.mxu0 %v18831_v14  ;;  %v19148_v14 = vld [vmem:[#allocation15_spill] sm:$0xff] }
 0x427   : > { %v17136_v15 = vadd.f32 %v7551_v35, %v7228_v29  ;;  %v7231_v17 = vadd.f32 %v12848_v45, %v16574_v61  ;;  %v7567_v63 = vpop.f32.mrf.mxu0 }
 0x428   : > { %v6804_v36 = vpop.f32.mrf.mxu1 }
 0x429   : > { %v17139_v5 = vadd.f32 %v12992_v34, %v7231_v17  ;;  %v7229_v48 = vadd.f32 %v6804_v36, %v16578_v18  ;;  %v12996_v20 = vpop.f32.mrf.mxu0  ;;  %v19152_v36 = vld [vmem:[#allocation101_spill] sm:$0xff] }
 0x42a   : > { %v12851_v4 = vpop.f32.mrf.mxu1  ;;  %13106 = vmatmul.mubr.bf16.vlgmr.msra.gmra.mxu1 %v19147_v52 }
 0x42b   : > { %v17143_v62 = vadd.f32 %v7554_v2, %v7229_v48  ;;  %v7234_v54 = vadd.f32 %v12851_v4, %v16589_v39  ;;  %v7570_v56 = vpop.f32.mrf.mxu0  ;;  %13109 = vmatprep.mubr.bf16.mxu1 %v19148_v14  ;;  %v19153_v48 = vld [vmem:[#allocation102_spill] sm:$0xff]  ;;  %v19154_v4 = vld [vmem:[#allocation279_spill] sm:$0xff]  ;;  %v19155_v14 = vld [vmem:[#allocation284_spill] sm:$0xff] }
 0x42c   : > { %v6817_v26 = vpop.f32.mrf.mxu1 }
 0x42d   : > { %v17147_v49 = vadd.f32 %v12995_v6, %v7234_v54  ;;  %v7232_v61 = vadd.f32 %v6817_v26, %v16594_v3  ;;  %v12999_v35 = vpop.f32.mrf.mxu0  ;;  %13254 = vmatmul.mubr.bf16.gmra.mxu0 %v18839_v1 }
 0x42e   : > { %v12852_v18 = vpop.f32.mrf.mxu1  ;;  %13257 = vmatprep.mubr.bf16.mxu0 %v18842_v31  ;;  %v19150_v31 = vld [vmem:[#allocation19_spill] sm:$0xff] }
 0x42f   : > { %v17152_v8 = vadd.f32 %v7567_v63, %v7232_v61  ;;  %v7235_v59 = vadd.f32 %v12852_v18, %v16603_v51  ;;  %v7583_v34 = vpop.f32.mrf.mxu0  ;;  %v19151_v51 = vld [vmem:[#allocation276_spill] sm:$0xff]  ;;  %v19156_v18 = vld [vmem:[#allocation21_spill] sm:$0xff] }
 0x430   : > { %v6820_v39 = vpop.f32.mrf.mxu1 }
 0x431   : > { %v17155_v11 = vadd.f32 %v12996_v20, %v7235_v59  ;;  %v7233_v27 = vadd.f32 %v6820_v39, %v16607_v43  ;;  %v13000_v2 = vpop.f32.mrf.mxu0  ;;  %v19157_v39 = vld [vmem:[#allocation81_spill] sm:$0xff] }
 0x432   : > { %v12855_v7 = vpop.f32.mrf.mxu1  ;;  %13110 = vmatmul.mubr.bf16.gmra.mxu1 %v19149_v40  ;;  %v19158_v40 = vld [vmem:[#allocation23_spill] sm:$0xff] }
 0x433   : > { %v17159_v3 = vadd.f32 %v7570_v56, %v7233_v27  ;;  %v7238_v1 = vadd.f32 %v12855_v7, %v16614_v32  ;;  %v7586_v29 = vpop.f32.mrf.mxu0  ;;  %13113 = vmatprep.mubr.bf16.mxu1 %v19150_v31  ;;  %v19159_v31 = vld [vmem:[#allocation83_spill] sm:$0xff] }
 0x434   : > { %v6833_v6 = vpop.f32.mrf.mxu1 }
 0x435   : > { %v17163_v45 = vadd.f32 %v12999_v35, %v7238_v1  ;;  %v7236_v17 = vadd.f32 %v6833_v6, %v19151_v51  ;;  %v13003_v63 = vpop.f32.mrf.mxu0  ;;  %13258 = vmatmul.mubr.bf16.gmra.mxu0 %v19152_v36  ;;  %v19160_v51 = vld [vmem:[#allocation107_spill] sm:$0xff]  ;;  %v19161_v36 = vld [vmem:[#allocation108_spill] sm:$0xff] }
 0x436   : > { %v12856_v43 = vpop.f32.mrf.mxu1  ;;  %13261 = vmatprep.mubr.bf16.mxu0 %v19153_v48 }
 0x437   : > { %v17168_v20 = vadd.f32 %v7583_v34, %v7236_v17  ;;  %v7239_v52 = vadd.f32 %v12856_v43, %v19154_v4  ;;  %v7599_v54 = vpop.f32.mrf.mxu0 }
 0x438   : > { %v6836_v32 = vpop.f32.mrf.mxu1 }
 0x439   : > { %v17171_v56 = vadd.f32 %v13000_v2, %v7239_v52  ;;  %v7237_v26 = vadd.f32 %v6836_v32, %v19155_v14  ;;  %v13004_v61 = vpop.f32.mrf.mxu0  ;;  %v19163_v14 = vld [vmem:[#allocation111_spill] sm:$0xff] }
 0x43a   : > { %v12859_v35 = vpop.f32.mrf.mxu1  ;;  %13114 = vmatmul.mubr.bf16.gmra.mxu1 %v19156_v18  ;;  %v19164_v18 = vld [vmem:[#allocation25_spill] sm:$0xff] }
 0x43b   : > { %v17175_v59 = vadd.f32 %v7586_v29, %v7237_v26  ;;  %v7242_v27 = vadd.f32 %v12859_v35, %v19157_v39  ;;  %v7602_v7 = vpop.f32.mrf.mxu0  ;;  %13117 = vmatprep.mubr.bf16.mxu1 %v19158_v40  ;;  %v19162_v29 = vld [vmem:[#allocation126_spill] sm:$0xff] }
 0x43c   : > { %v6849_v34 = vpop.f32.mrf.mxu1 }
 0x43d   : > { %v17179_v1 = vadd.f32 %v13003_v63, %v7242_v27  ;;  %v7240_v6 = vadd.f32 %v6849_v34, %v19159_v31  ;;  %v13007_v2 = vpop.f32.mrf.mxu0  ;;  %13262 = vmatmul.mubr.bf16.gmra.mxu0 %v19160_v51  ;;  %v19166_v27 = vld [vmem:[#allocation84_spill] sm:$0xff]  ;;  %v19167_v31 = vld [vmem:[#allocation27_spill] sm:$0xff]  ;;  %v19169_v51 = vld [vmem:[#allocation9_spill] sm:$0xff] }
 0x43e   : > { %v12860_v17 = vpop.f32.mrf.mxu1  ;;  %13265 = vmatprep.mubr.bf16.mxu0 %v19161_v36  ;;  %v19170_v36 = vld [vmem:[#allocation113_spill] sm:$0xff] }
 0x43f   : > { %v17184_v43 = vadd.f32 %v7599_v54, %v7240_v6  ;;  %v7243_v48 = vadd.f32 %v12860_v17, %v19162_v29  ;;  %v7615_v4 = vpop.f32.mrf.mxu0 }
 0x440   : > { %v6852_v52 = vpop.f32.mrf.mxu1 }
 0x441   : > { %v17187_v32 = vadd.f32 %v13004_v61, %v7243_v48  ;;  %v7241_v26 = vadd.f32 %v6852_v52, %v19163_v14  ;;  %v13008_v63 = vpop.f32.mrf.mxu0  ;;  %v19171_v48 = vld [vmem:[#allocation114_spill] sm:$0xff] }
 0x442   : > { %v12863_v35 = vpop.f32.mrf.mxu1  ;;  %13118 = vmatmul.mubr.bf16.gmra.mxu1 %v19164_v18 }
 0x443   : > { %v17191_v39 = vadd.f32 %v7602_v7, %v7241_v26  ;;  %v7246_v40 = vadd.f32 %v12863_v35, %v19166_v27  ;;  %v7618_v34 = vpop.f32.mrf.mxu0  ;;  %13121 = vmatprep.mubr.bf16.mxu1 %v19167_v31  ;;  %v19173_v7 = vld [vmem:[#allocation98_spill] sm:$0xff]  ;;  %v19175_v27 = vld [vmem:[#allocation100_spill] sm:$0xff] }
 0x444   : > { %v6865_v54 = vpop.f32.mrf.mxu1 }
 0x445   : > { %19165 = vst [vmem:[#allocation115_spill] sm:$0xff] %v17191_v39  ;;  %v17195_v6 = vadd.f32 %v13007_v2, %v7246_v40  ;;  %v7244_v17 = vadd.f32 %v6865_v54, %v19169_v51  ;;  %v13011_v61 = vpop.f32.mrf.mxu0  ;;  %13266 = vmatmul.mubr.bf16.gmra.mxu0 %v19170_v36  ;;  %v19178_v51 = vld [vmem:[#allocation206_spill] sm:$0xff] }
 0x446   : > { %v12864_v29 = vpop.f32.mrf.mxu1  ;;  %13269 = vmatprep.mubr.bf16.mxu0 %v19171_v48  ;;  %v19179_v48 = vld [vmem:[#allocation31_spill] sm:$0xff] }
 0x447   : > { %19168 = vst [vmem:[#allocation220_spill] sm:$0xff] %v17195_v6  ;;  %v17200_v52 = vadd.f32 %v7615_v4, %v7244_v17  ;;  %v7247_v14 = vadd.f32 %v12864_v29, %v19173_v7  ;;  %v7631_v26 = vpop.f32.mrf.mxu0  ;;  %v19176_v6 = vld [vmem:[#allocation29_spill] sm:$0xff] }
 0x448   : > { %v6868_v35 = vpop.f32.mrf.mxu1  ;;  %v19181_v29 = vld [vmem:[#allocation129_spill] sm:$0xff] }
 0x449   : > { %19172 = vst [vmem:[#allocation222_spill] sm:$0xff] %v17200_v52  ;;  %v17203_v18 = vadd.f32 %v13008_v63, %v7247_v14  ;;  %v7245_v31 = vadd.f32 %v6868_v35, %v19175_v27  ;;  %v13012_v2 = vpop.f32.mrf.mxu0  ;;  %v19182_v14 = vld [vmem:[#allocation119_spill] sm:$0xff]  ;;  %v19183_v27 = vld [vmem:[#allocation120_spill] sm:$0xff] }
 0x44a   : > { %v12867_v40 = vpop.f32.mrf.mxu1  ;;  %13122 = vmatmul.mubr.bf16.gmra.mxu1 %v19176_v6 }
 0x44b   : > { %19174 = vst [vmem:[#allocation117_spill] sm:$0xff] %v17203_v18  ;;  %v17207_v54 = vadd.f32 %v7618_v34, %v7245_v31  ;;  %v7250_v36 = vadd.f32 %v12867_v40, %v19178_v51  ;;  %v7634_v39 = vpop.f32.mrf.mxu0  ;;  %13125 = vmatprep.mubr.bf16.mxu1 %v19179_v48  ;;  %v19185_v34 = vld [vmem:[#allocation89_spill] sm:$0xff]  ;;  %v19187_v48 = vld [vmem:[#allocation134_spill] sm:$0xff] }
 0x44c   : > { %v6881_v4 = vpop.f32.mrf.mxu1 }
 0x44d   : > { %19177 = vst [vmem:[#allocation121_spill] sm:$0xff] %v17207_v54  ;;  %v17211_v17 = vadd.f32 %v13011_v61, %v7250_v36  ;;  %v7248_v7 = vadd.f32 %v6881_v4, %v19181_v29  ;;  %v13015_v63 = vpop.f32.mrf.mxu0  ;;  %13270 = vmatmul.mubr.bf16.gmra.mxu0 %v19182_v14  ;;  %v19190_v29 = vld [vmem:[#allocation90_spill] sm:$0xff] }
 0x44e   : > { %v12868_v35 = vpop.f32.mrf.mxu1  ;;  %13273 = vmatprep.mubr.bf16.mxu0 %v19183_v27  ;;  %v19191_v27 = vld [vmem:[#allocation35_spill] sm:$0xff] }
 0x44f   : > { %19180 = vst [vmem:[#allocation123_spill] sm:$0xff] %v17211_v17  ;;  %v17216_v18 = vadd.f32 %v7631_v26, %v7248_v7  ;;  %v7251_v6 = vadd.f32 %v12868_v35, %v19185_v34  ;;  %v7647_v31 = vpop.f32.mrf.mxu0  ;;  %v19188_v17 = vld [vmem:[#allocation33_spill] sm:$0xff]  ;;  %v19193_v35 = vld [vmem:[#allocation86_spill] sm:$0xff] }
 0x450   : > { %v6884_v40 = vpop.f32.mrf.mxu1 }
 0x451   : > { %19184 = vst [vmem:[#allocation128_spill] sm:$0xff] %v17216_v18  ;;  %v17219_v51 = vadd.f32 %v13012_v2, %v7251_v6  ;;  %v7249_v54 = vadd.f32 %v6884_v40, %v19187_v48  ;;  %v13016_v61 = vpop.f32.mrf.mxu0  ;;  %v19194_v6 = vld [vmem:[#allocation125_spill] sm:$0xff]  ;;  %v19195_v48 = vld [vmem:[#allocation127_spill] sm:$0xff] }
 0x452   : > { %v12871_v36 = vpop.f32.mrf.mxu1  ;;  %13126 = vmatmul.mubr.bf16.gmra.mxu1 %v19188_v17 }
 0x453   : > { %19186 = vst [vmem:[#allocation228_spill] sm:$0xff] %v17219_v51  ;;  %v17223_v4 = vadd.f32 %v7634_v39, %v7249_v54  ;;  %v7254_v14 = vadd.f32 %v12871_v36, %v19190_v29  ;;  %v7650_v52 = vpop.f32.mrf.mxu0  ;;  %13129 = vmatprep.mubr.bf16.mxu1 %v19191_v27  ;;  %v19197_v39 = vld [vmem:[#allocation104_spill] sm:$0xff]  ;;  %v19199_v27 = vld [vmem:[#allocation106_spill] sm:$0xff] }
 0x454   : > { %v6897_v26 = vpop.f32.mrf.mxu1 }
 0x455   : > { %19189 = vst [vmem:[#allocation230_spill] sm:$0xff] %v17223_v4  ;;  %v17227_v7 = vadd.f32 %v13015_v63, %v7254_v14  ;;  %v7252_v34 = vadd.f32 %v6897_v26, %v19193_v35  ;;  %v13019_v2 = vpop.f32.mrf.mxu0  ;;  %13274 = vmatmul.mubr.bf16.gmra.mxu0 %v19194_v6  ;;  %v19202_v35 = vld [vmem:[#allocation137_spill] sm:$0xff] }
 0x456   : > { %v12872_v40 = vpop.f32.mrf.mxu1  ;;  %13277 = vmatprep.mubr.bf16.mxu0 %v19195_v48  ;;  %v19203_v48 = vld [vmem:[#allocation39_spill] sm:$0xff] }
 0x457   : > { %19192 = vst [vmem:[#allocation131_spill] sm:$0xff] %v17227_v7  ;;  %v17232_v51 = vadd.f32 %v7647_v31, %v7252_v34  ;;  %v7255_v54 = vadd.f32 %v12872_v40, %v19197_v39  ;;  %v7663_v17 = vpop.f32.mrf.mxu0  ;;  %v19200_v7 = vld [vmem:[#allocation37_spill] sm:$0xff]  ;;  %v19205_v40 = vld [vmem:[#allocation202_spill] sm:$0xff] }
 0x458   : > { %v6900_v36 = vpop.f32.mrf.mxu1 }
 0x459   : > { %19196 = vst [vmem:[#allocation136_spill] sm:$0xff] %v17232_v51  ;;  %v17235_v29 = vadd.f32 %v13016_v61, %v7255_v54  ;;  %v7253_v4 = vadd.f32 %v6900_v36, %v19199_v27  ;;  %v13020_v63 = vpop.f32.mrf.mxu0  ;;  %v19206_v54 = vld [vmem:[#allocation133_spill] sm:$0xff]  ;;  %v19207_v27 = vld [vmem:[#allocation135_spill] sm:$0xff] }
 0x45a   : > { %v12875_v14 = vpop.f32.mrf.mxu1  ;;  %13130 = vmatmul.mubr.bf16.gmra.mxu1 %v19200_v7 }
 0x45b   : > { %19198 = vst [vmem:[#allocation139_spill] sm:$0xff] %v17235_v29  ;;  %v17239_v26 = vadd.f32 %v7650_v52, %v7253_v4  ;;  %v7258_v6 = vadd.f32 %v12875_v14, %v19202_v35  ;;  %v7666_v18 = vpop.f32.mrf.mxu0  ;;  %13133 = vmatprep.mubr.bf16.mxu1 %v19203_v48  ;;  %v19209_v52 = vld [vmem:[#allocation95_spill] sm:$0xff]  ;;  %v19211_v48 = vld [vmem:[#allocation88_spill] sm:$0xff] }
 0x45c   : > { %v6913_v31 = vpop.f32.mrf.mxu1 }
 0x45d   : > { %19201 = vst [vmem:[#allocation144_spill] sm:$0xff] %v17239_v26  ;;  %v17243_v34 = vadd.f32 %v13019_v2, %v7258_v6  ;;  %v7256_v39 = vadd.f32 %v6913_v31, %v19205_v40  ;;  %v13023_v61 = vpop.f32.mrf.mxu0  ;;  %13278 = vmatmul.mubr.bf16.gmra.mxu0 %v19206_v54  ;;  %v19214_v40 = vld [vmem:[#allocation96_spill] sm:$0xff] }
 0x45e   : > { %v12876_v36 = vpop.f32.mrf.mxu1  ;;  %13281 = vmatprep.mubr.bf16.mxu0 %v19207_v27  ;;  %v19215_v27 = vld [vmem:[#allocation43_spill] sm:$0xff] }
 0x45f   : > { %19204 = vst [vmem:[#allocation236_spill] sm:$0xff] %v17243_v34  ;;  %v17248_v29 = vadd.f32 %v7663_v17, %v7256_v39  ;;  %v7259_v4 = vadd.f32 %v12876_v36, %v19209_v52  ;;  %v7679_v7 = vpop.f32.mrf.mxu0  ;;  %v19212_v34 = vld [vmem:[#allocation41_spill] sm:$0xff]  ;;  %v19217_v36 = vld [vmem:[#allocation142_spill] sm:$0xff] }
 0x460   : > { %v6916_v14 = vpop.f32.mrf.mxu1 }
 0x461   : > { %19208 = vst [vmem:[#allocation238_spill] sm:$0xff] %v17248_v29  ;;  %v17251_v35 = vadd.f32 %v13020_v63, %v7259_v4  ;;  %v7257_v26 = vadd.f32 %v6916_v14, %v19211_v48  ;;  %v13024_v2 = vpop.f32.mrf.mxu0  ;;  %v19218_v4 = vld [vmem:[#allocation141_spill] sm:$0xff]  ;;  %v19219_v48 = vld [vmem:[#allocation143_spill] sm:$0xff] }
 0x462   : > { %v12879_v6 = vpop.f32.mrf.mxu1  ;;  %13134 = vmatmul.mubr.bf16.gmra.mxu1 %v19212_v34 }
 0x463   : > { %19210 = vst [vmem:[#allocation147_spill] sm:$0xff] %v17251_v35  ;;  %v17255_v31 = vadd.f32 %v7666_v18, %v7257_v26  ;;  %v7262_v54 = vadd.f32 %v12879_v6, %v19214_v40  ;;  %v7682_v51 = vpop.f32.mrf.mxu0  ;;  %13137 = vmatprep.mubr.bf16.mxu1 %v19215_v27  ;;  %v19221_v18 = vld [vmem:[#allocation110_spill] sm:$0xff]  ;;  %v19223_v27 = vld [vmem:[#allocation112_spill] sm:$0xff] }
 0x464   : > { %v6929_v17 = vpop.f32.mrf.mxu1 }
 0x465   : > { %19213 = vst [vmem:[#allocation152_spill] sm:$0xff] %v17255_v31  ;;  %v17259_v39 = vadd.f32 %v13023_v61, %v7262_v54  ;;  %v7260_v52 = vadd.f32 %v6929_v17, %v19217_v36  ;;  %v13027_v63 = vpop.f32.mrf.mxu0  ;;  %13282 = vmatmul.mubr.bf16.gmra.mxu0 %v19218_v4  ;;  %v19226_v36 = vld [vmem:[#allocation145_spill] sm:$0xff] }
 0x466   : > { %v12880_v14 = vpop.f32.mrf.mxu1  ;;  %13285 = vmatprep.mubr.bf16.mxu0 %v19219_v48  ;;  %v19227_v48 = vld [vmem:[#allocation47_spill] sm:$0xff] }
 0x467   : > { %19216 = vst [vmem:[#allocation155_spill] sm:$0xff] %v17259_v39  ;;  %v17264_v35 = vadd.f32 %v7679_v7, %v7260_v52  ;;  %v7263_v26 = vadd.f32 %v12880_v14, %v19221_v18  ;;  %v7695_v34 = vpop.f32.mrf.mxu0  ;;  %v19224_v39 = vld [vmem:[#allocation45_spill] sm:$0xff]  ;;  %v19229_v14 = vld [vmem:[#allocation150_spill] sm:$0xff] }
 0x468   : > { %v6932_v6 = vpop.f32.mrf.mxu1 }
 0x469   : > { %19220 = vst [vmem:[#allocation160_spill] sm:$0xff] %v17264_v35  ;;  %v17267_v40 = vadd.f32 %v13024_v2, %v7263_v26  ;;  %v7261_v31 = vadd.f32 %v6932_v6, %v19223_v27  ;;  %v13028_v61 = vpop.f32.mrf.mxu0  ;;  %v19230_v26 = vld [vmem:[#allocation149_spill] sm:$0xff]  ;;  %v19231_v27 = vld [vmem:[#allocation151_spill] sm:$0xff] }
 0x46a   : > { %v12883_v54 = vpop.f32.mrf.mxu1  ;;  %13138 = vmatmul.mubr.bf16.gmra.mxu1 %v19224_v39 }
 0x46b   : > { %19222 = vst [vmem:[#allocation244_spill] sm:$0xff] %v17267_v40  ;;  %v17271_v17 = vadd.f32 %v7682_v51, %v7261_v31  ;;  %v7266_v4 = vadd.f32 %v12883_v54, %v19226_v36  ;;  %v7698_v29 = vpop.f32.mrf.mxu0  ;;  %13141 = vmatprep.mubr.bf16.mxu1 %v19227_v48  ;;  %v19233_v51 = vld [vmem:[#allocation92_spill] sm:$0xff]  ;;  %v19235_v48 = vld [vmem:[#allocation153_spill] sm:$0xff] }
 0x46c   : > { %v6945_v7 = vpop.f32.mrf.mxu1 }
 0x46d   : > { %19225 = vst [vmem:[#allocation246_spill] sm:$0xff] %v17271_v17  ;;  %v17275_v52 = vadd.f32 %v13027_v63, %v7266_v4  ;;  %v7264_v18 = vadd.f32 %v6945_v7, %v19229_v14  ;;  %v13031_v2 = vpop.f32.mrf.mxu0  ;;  %13286 = vmatmul.mubr.bf16.gmra.mxu0 %v19230_v26  ;;  %v19238_v14 = vld [vmem:[#allocation116_spill] sm:$0xff] }
 0x46e   : > { %v12884_v6 = vpop.f32.mrf.mxu1  ;;  %13289 = vmatprep.mubr.bf16.mxu0 %v19231_v27  ;;  %v19239_v27 = vld [vmem:[#allocation51_spill] sm:$0xff] }
 0x46f   : > { %19228 = vst [vmem:[#allocation163_spill] sm:$0xff] %v17275_v52  ;;  %v17280_v40 = vadd.f32 %v7695_v34, %v7264_v18  ;;  %v7267_v31 = vadd.f32 %v12884_v6, %v19233_v51  ;;  %v7711_v39 = vpop.f32.mrf.mxu0  ;;  %v19236_v52 = vld [vmem:[#allocation49_spill] sm:$0xff]  ;;  %v19241_v6 = vld [vmem:[#allocation118_spill] sm:$0xff] }
 0x470   : > { %v6948_v54 = vpop.f32.mrf.mxu1 }
 0x471   : > { %19232 = vst [vmem:[#allocation168_spill] sm:$0xff] %v17280_v40  ;;  %v17283_v36 = vadd.f32 %v13028_v61, %v7267_v31  ;;  %v7265_v17 = vadd.f32 %v6948_v54, %v19235_v48  ;;  %v13032_v63 = vpop.f32.mrf.mxu0  ;;  %v19242_v31 = vld [vmem:[#allocation157_spill] sm:$0xff]  ;;  %v19243_v48 = vld [vmem:[#allocation159_spill] sm:$0xff] }
 0x472   : > { %v12887_v4 = vpop.f32.mrf.mxu1  ;;  %13142 = vmatmul.mubr.bf16.gmra.mxu1 %v19236_v52 }
 0x473   : > { %19234 = vst [vmem:[#allocation171_spill] sm:$0xff] %v17283_v36  ;;  %v17287_v7 = vadd.f32 %v7698_v29, %v7265_v17  ;;  %v7270_v26 = vadd.f32 %v12887_v4, %v19238_v14  ;;  %v7714_v35 = vpop.f32.mrf.mxu0  ;;  %13145 = vmatprep.mubr.bf16.mxu1 %v19239_v27  ;;  %v19245_v29 = vld [vmem:[#allocation94_spill] sm:$0xff] }
 0x474   : > { %v6961_v34 = vpop.f32.mrf.mxu1  ;;  %v19247_v27 = vld [vmem:[#allocation158_spill] sm:$0xff] }
 0x475   : > { %19237 = vst [vmem:[#allocation176_spill] sm:$0xff] %v17287_v7  ;;  %v17291_v18 = vadd.f32 %v13031_v2, %v7270_v26  ;;  %v7268_v51 = vadd.f32 %v6961_v34, %v19241_v6  ;;  %v13035_v61 = vpop.f32.mrf.mxu0  ;;  %13290 = vmatmul.mubr.bf16.gmra.mxu0 %v19242_v31  ;;  %v19250_v6 = vld [vmem:[#allocation161_spill] sm:$0xff] }
 0x476   : > { %v12888_v54 = vpop.f32.mrf.mxu1  ;;  %13293 = vmatprep.mubr.bf16.mxu0 %v19243_v48  ;;  %v19251_v48 = vld [vmem:[#allocation55_spill] sm:$0xff] }
 0x477   : > { %19240 = vst [vmem:[#allocation253_spill] sm:$0xff] %v17291_v18  ;;  %v17296_v36 = vadd.f32 %v7711_v39, %v7268_v51  ;;  %v7271_v17 = vadd.f32 %v12888_v54, %v19245_v29  ;;  %v7727_v52 = vpop.f32.mrf.mxu0  ;;  %v19248_v18 = vld [vmem:[#allocation53_spill] sm:$0xff]  ;;  %v19253_v54 = vld [vmem:[#allocation166_spill] sm:$0xff] }
 0x478   : > { %v6964_v4 = vpop.f32.mrf.mxu1 }
 0x479   : > { %19244 = vst [vmem:[#allocation255_spill] sm:$0xff] %v17296_v36  ;;  %v17299_v14 = vadd.f32 %v13032_v63, %v7271_v17  ;;  %v7269_v7 = vadd.f32 %v6964_v4, %v19247_v27  ;;  %v13036_v2 = vpop.f32.mrf.mxu0  ;;  %v19254_v17 = vld [vmem:[#allocation165_spill] sm:$0xff]  ;;  %v19255_v27 = vld [vmem:[#allocation167_spill] sm:$0xff] }
 0x47a   : > { %v12891_v26 = vpop.f32.mrf.mxu1  ;;  %13146 = vmatmul.mubr.bf16.gmra.mxu1 %v19248_v18 }
 0x47b   : > { %19246 = vst [vmem:[#allocation179_spill] sm:$0xff] %v17299_v14  ;;  %v17303_v34 = vadd.f32 %v7714_v35, %v7269_v7  ;;  %v7274_v31 = vadd.f32 %v12891_v26, %v19250_v6  ;;  %v7730_v40 = vpop.f32.mrf.mxu0  ;;  %13149 = vmatprep.mubr.bf16.mxu1 %v19251_v48  ;;  %v19257_v35 = vld [vmem:[#allocation122_spill] sm:$0xff]  ;;  %v19259_v48 = vld [vmem:[#allocation124_spill] sm:$0xff] }
 0x47c   : > { %v6977_v39 = vpop.f32.mrf.mxu1 }
 0x47d   : > { %19249 = vst [vmem:[#allocation184_spill] sm:$0xff] %v17303_v34  ;;  %v17307_v51 = vadd.f32 %v13035_v61, %v7274_v31  ;;  %v7272_v29 = vadd.f32 %v6977_v39, %v19253_v54  ;;  %v13039_v63 = vpop.f32.mrf.mxu0  ;;  %13294 = vmatmul.mubr.bf16.gmra.mxu0 %v19254_v17  ;;  %v19262_v54 = vld [vmem:[#allocation169_spill] sm:$0xff] }
 0x47e   : > { %v12892_v4 = vpop.f32.mrf.mxu1  ;;  %13297 = vmatprep.mubr.bf16.mxu0 %v19255_v27  ;;  %v19263_v27 = vld [vmem:[#allocation64_spill] sm:$0xff] }
 0x47f   : > { %19252 = vst [vmem:[#allocation239_spill] sm:$0xff] %v17307_v51  ;;  %v17312_v14 = vadd.f32 %v7727_v52, %v7272_v29  ;;  %v7275_v7 = vadd.f32 %v12892_v4, %v19257_v35  ;;  %v7743_v18 = vpop.f32.mrf.mxu0  ;;  %v19260_v51 = vld [vmem:[#allocation59_spill] sm:$0xff]  ;;  %v19265_v4 = vld [vmem:[#allocation174_spill] sm:$0xff] }
 0x480   : > { %v6980_v26 = vpop.f32.mrf.mxu1 }
 0x481   : > { %19256 = vst [vmem:[#allocation187_spill] sm:$0xff] %v17312_v14  ;;  %v17315_v6 = vadd.f32 %v13036_v2, %v7275_v7  ;;  %v7273_v34 = vadd.f32 %v6980_v26, %v19259_v48  ;;  %v13040_v61 = vpop.f32.mrf.mxu0  ;;  %v19266_v7 = vld [vmem:[#allocation173_spill] sm:$0xff]  ;;  %v19267_v48 = vld [vmem:[#allocation175_spill] sm:$0xff] }
 0x482   : > { %v12895_v31 = vpop.f32.mrf.mxu1  ;;  %13150 = vmatmul.mubr.bf16.gmra.mxu1 %v19260_v51 }
 0x483   : > { %19258 = vst [vmem:[#allocation192_spill] sm:$0xff] %v17315_v6  ;;  %v17319_v39 = vadd.f32 %v7730_v40, %v7273_v34  ;;  %v7278_v17 = vadd.f32 %v12895_v31, %v19262_v54  ;;  %v7746_v36 = vpop.f32.mrf.mxu0  ;;  %13153 = vmatprep.mubr.bf16.mxu1 %v19263_v27  ;;  %v19269_v40 = vld [vmem:[#allocation177_spill] sm:$0xff]  ;;  %v19271_v27 = vld [vmem:[#allocation182_spill] sm:$0xff] }
 0x484   : > { %v6993_v52 = vpop.f32.mrf.mxu1 }
 0x485   : > { %19261 = vst [vmem:[#allocation264_spill] sm:$0xff] %v17319_v39  ;;  %v17323_v29 = vadd.f32 %v13039_v63, %v7278_v17  ;;  %v7276_v35 = vadd.f32 %v6993_v52, %v19265_v4  ;;  %v13043_v2 = vpop.f32.mrf.mxu0  ;;  %13298 = vmatmul.mubr.bf16.gmra.mxu0 %v19266_v7  ;;  %v19274_v4 = vld [vmem:[#allocation130_spill] sm:$0xff] }
 0x486   : > { %v12896_v26 = vpop.f32.mrf.mxu1  ;;  %13301 = vmatprep.mubr.bf16.mxu0 %v19267_v48  ;;  %v19275_v48 = vld [vmem:[#allocation72_spill] sm:$0xff] }
 0x487   : > { %19264 = vst [vmem:[#allocation195_spill] sm:$0xff] %v17323_v29  ;;  %v17328_v6 = vadd.f32 %v7743_v18, %v7276_v35  ;;  %v7279_v34 = vadd.f32 %v12896_v26, %v19269_v40  ;;  %v7759_v51 = vpop.f32.mrf.mxu0  ;;  %v19272_v29 = vld [vmem:[#allocation68_spill] sm:$0xff] }
 0x488   : > { %v6996_v31 = vpop.f32.mrf.mxu1  ;;  %v19277_v26 = vld [vmem:[#allocation132_spill] sm:$0xff] }
 0x489   : > { %19268 = vst [vmem:[#allocation200_spill] sm:$0xff] %v17328_v6  ;;  %v17331_v54 = vadd.f32 %v13040_v61, %v7279_v34  ;;  %v7277_v39 = vadd.f32 %v6996_v31, %v19271_v27  ;;  %v13044_v63 = vpop.f32.mrf.mxu0  ;;  %v19278_v34 = vld [vmem:[#allocation181_spill] sm:$0xff]  ;;  %v19279_v27 = vld [vmem:[#allocation183_spill] sm:$0xff] }
 0x48a   : > { %v12899_v17 = vpop.f32.mrf.mxu1  ;;  %13154 = vmatmul.mubr.bf16.gmra.mxu1 %v19272_v29 }
 0x48b   : > { %19270 = vst [vmem:[#allocation248_spill] sm:$0xff] %v17331_v54  ;;  %v17335_v52 = vadd.f32 %v7746_v36, %v7277_v39  ;;  %v7282_v7 = vadd.f32 %v12899_v17, %v19274_v4  ;;  %v7762_v14 = vpop.f32.mrf.mxu0  ;;  %13157 = vmatprep.mubr.bf16.mxu1 %v19275_v48  ;;  %v19281_v36 = vld [vmem:[#allocation185_spill] sm:$0xff]  ;;  %v19283_v48 = vld [vmem:[#allocation190_spill] sm:$0xff] }
 0x48c   : > { %v7009_v18 = vpop.f32.mrf.mxu1 }
 0x48d   : > { %19273 = vst [vmem:[#allocation204_spill] sm:$0xff] %v17335_v52  ;;  %v17339_v35 = vadd.f32 %v13043_v2, %v7282_v7  ;;  %v7280_v40 = vadd.f32 %v7009_v18, %v19277_v26  ;;  %v13047_v61 = vpop.f32.mrf.mxu0  ;;  %13302 = vmatmul.mubr.bf16.gmra.mxu0 %v19278_v34  ;;  %v19286_v26 = vld [vmem:[#allocation193_spill] sm:$0xff] }
 0x48e   : > { %v12900_v31 = vpop.f32.mrf.mxu1  ;;  %13305 = vmatprep.mubr.bf16.mxu0 %v19279_v27  ;;  %v19287_v27 = vld [vmem:[#allocation6_spill] sm:$0xff] }
 0x48f   : > { %19276 = vst [vmem:[#allocation250_spill] sm:$0xff] %v17339_v35  ;;  %v17344_v54 = vadd.f32 %v7759_v51, %v7280_v40  ;;  %v7283_v39 = vadd.f32 %v12900_v31, %v19281_v36  ;;  %v7775_v29 = vpop.f32.mrf.mxu0  ;;  %v19284_v35 = vld [vmem:[#allocation76_spill] sm:$0xff]  ;;  %v19289_v31 = vld [vmem:[#allocation198_spill] sm:$0xff] }
 0x490   : > { %v7012_v17 = vpop.f32.mrf.mxu1 }
 0x491   : > { %19280 = vst [vmem:[#allocation210_spill] sm:$0xff] %v17344_v54  ;;  %v17347_v4 = vadd.f32 %v13044_v63, %v7283_v39  ;;  %v7281_v52 = vadd.f32 %v7012_v17, %v19283_v48  ;;  %v13048_v2 = vpop.f32.mrf.mxu0  ;;  %v19290_v39 = vld [vmem:[#allocation189_spill] sm:$0xff]  ;;  %v19291_v48 = vld [vmem:[#allocation191_spill] sm:$0xff] }
 0x492   : > { %v12903_v7 = vpop.f32.mrf.mxu1  ;;  %13158 = vmatmul.mubr.bf16.gmra.mxu1 %v19284_v35 }
 0x493   : > { %19282 = vst [vmem:[#allocation213_spill] sm:$0xff] %v17347_v4  ;;  %v17351_v18 = vadd.f32 %v7762_v14, %v7281_v52  ;;  %v7286_v34 = vadd.f32 %v12903_v7, %v19286_v26  ;;  %v7778_v6 = vpop.f32.mrf.mxu0  ;;  %13161 = vmatprep.mubr.bf16.mxu1 %v19287_v27  ;;  %v19293_v14 = vld [vmem:[#allocation138_spill] sm:$0xff]  ;;  %v19295_v27 = vld [vmem:[#allocation140_spill] sm:$0xff] }
 0x494   : > { %v7025_v51 = vpop.f32.mrf.mxu1 }
 0x495   : > { %19285 = vst [vmem:[#allocation218_spill] sm:$0xff] %v17351_v18  ;;  %v17355_v40 = vadd.f32 %v13047_v61, %v7286_v34  ;;  %v7284_v36 = vadd.f32 %v7025_v51, %v19289_v31  ;;  %v13051_v63 = vpop.f32.mrf.mxu0  ;;  %13306 = vmatmul.mubr.bf16.gmra.mxu0 %v19290_v39  ;;  %v19298_v31 = vld [vmem:[#allocation201_spill] sm:$0xff] }
 0x496   : > { %v12904_v17 = vpop.f32.mrf.mxu1  ;;  %13309 = vmatprep.mubr.bf16.mxu0 %v19291_v48  ;;  %v19299_v48 = vld [vmem:[#allocation8_spill] sm:$0xff] }
 0x497   : > { %19288 = vst [vmem:[#allocation257_spill] sm:$0xff] %v17355_v40  ;;  %v17360_v4 = vadd.f32 %v7775_v29, %v7284_v36  ;;  %v7287_v52 = vadd.f32 %v12904_v17, %v19293_v14  ;;  %v7791_v35 = vpop.f32.mrf.mxu0  ;;  %v19296_v40 = vld [vmem:[#allocation7_spill] sm:$0xff]  ;;  %v19301_v17 = vld [vmem:[#allocation208_spill] sm:$0xff] }
 0x498   : > { %v7028_v7 = vpop.f32.mrf.mxu1 }
 0x499   : > { %19292 = vst [vmem:[#allocation221_spill] sm:$0xff] %v17360_v4  ;;  %v17363_v26 = vadd.f32 %v13048_v2, %v7287_v52  ;;  %v7285_v18 = vadd.f32 %v7028_v7, %v19295_v27  ;;  %v13052_v61 = vpop.f32.mrf.mxu0  ;;  %v19302_v52 = vld [vmem:[#allocation197_spill] sm:$0xff]  ;;  %v19303_v27 = vld [vmem:[#allocation199_spill] sm:$0xff] }
 0x49a   : > { %v12907_v34 = vpop.f32.mrf.mxu1  ;;  %13162 = vmatmul.mubr.bf16.gmra.mxu1 %v19296_v40 }
 0x49b   : > { %19294 = vst [vmem:[#allocation259_spill] sm:$0xff] %v17363_v26  ;;  %v17367_v51 = vadd.f32 %v7778_v6, %v7285_v18  ;;  %v7290_v39 = vadd.f32 %v12907_v34, %v19298_v31  ;;  %v7794_v54 = vpop.f32.mrf.mxu0  ;;  %13165 = vmatprep.mubr.bf16.mxu1 %v19299_v48  ;;  %v19305_v6 = vld [vmem:[#allocation211_spill] sm:$0xff]  ;;  %v19307_v48 = vld [vmem:[#allocation216_spill] sm:$0xff] }
 0x49c   : > { %v7041_v29 = vpop.f32.mrf.mxu1 }
 0x49d   : > { %19297 = vst [vmem:[#allocation226_spill] sm:$0xff] %v17367_v51  ;;  %v17371_v36 = vadd.f32 %v13051_v63, %v7290_v39  ;;  %v7288_v14 = vadd.f32 %v7041_v29, %v19301_v17  ;;  %v13055_v2 = vpop.f32.mrf.mxu0  ;;  %13310 = vmatmul.mubr.bf16.gmra.mxu0 %v19302_v52  ;;  %v19310_v17 = vld [vmem:[#allocation146_spill] sm:$0xff] }
 0x49e   : > { %v12908_v7 = vpop.f32.mrf.mxu1  ;;  %13313 = vmatprep.mubr.bf16.mxu0 %v19303_v27  ;;  %v19311_v27 = vld [vmem:[#allocation12_spill] sm:$0xff] }
 0x49f   : > { %19300 = vst [vmem:[#allocation229_spill] sm:$0xff] %v17371_v36  ;;  %v17376_v26 = vadd.f32 %v7791_v35, %v7288_v14  ;;  %v7291_v18 = vadd.f32 %v12908_v7, %v19305_v6  ;;  %v7807_v40 = vpop.f32.mrf.mxu0  ;;  %v19308_v36 = vld [vmem:[#allocation10_spill] sm:$0xff]  ;;  %v19313_v7 = vld [vmem:[#allocation148_spill] sm:$0xff] }
 0x4a0   : > { %v7044_v34 = vpop.f32.mrf.mxu1 }
 0x4a1   : > { %19304 = vst [vmem:[#allocation233_spill] sm:$0xff] %v17376_v26  ;;  %v17379_v31 = vadd.f32 %v13052_v61, %v7291_v18  ;;  %v7289_v51 = vadd.f32 %v7044_v34, %v19307_v48  ;;  %v13056_v63 = vpop.f32.mrf.mxu0  ;;  %v19314_v18 = vld [vmem:[#allocation207_spill] sm:$0xff]  ;;  %v19315_v48 = vld [vmem:[#allocation209_spill] sm:$0xff] }
 0x4a2   : > { %v12911_v39 = vpop.f32.mrf.mxu1  ;;  %13166 = vmatmul.mubr.bf16.gmra.mxu1 %v19308_v36 }
 0x4a3   : > { %19306 = vst [vmem:[#allocation237_spill] sm:$0xff] %v17379_v31  ;;  %v17383_v29 = vadd.f32 %v7794_v54, %v7289_v51  ;;  %v7294_v52 = vadd.f32 %v12911_v39, %v19310_v17  ;;  %v7810_v4 = vpop.f32.mrf.mxu0  ;;  %13169 = vmatprep.mubr.bf16.mxu1 %v19311_v27  ;;  %v19317_v54 = vld [vmem:[#allocation219_spill] sm:$0xff]  ;;  %v19319_v27 = vld [vmem:[#allocation224_spill] sm:$0xff] }
 0x4a4   : > { %v7057_v35 = vpop.f32.mrf.mxu1 }
 0x4a5   : > { %19309 = vst [vmem:[#allocation277_spill] sm:$0xff] %v17383_v29  ;;  %v17387_v14 = vadd.f32 %v13055_v2, %v7294_v52  ;;  %v7292_v6 = vadd.f32 %v7057_v35, %v19313_v7  ;;  %v13059_v61 = vpop.f32.mrf.mxu0  ;;  %13314 = vmatmul.mubr.bf16.gmra.mxu0 %v19314_v18  ;;  %v19322_v7 = vld [vmem:[#allocation227_spill] sm:$0xff] }
 0x4a6   : > { %v12912_v34 = vpop.f32.mrf.mxu1  ;;  %13317 = vmatprep.mubr.bf16.mxu0 %v19315_v48  ;;  %v19323_v48 = vld [vmem:[#allocation16_spill] sm:$0xff] }
 0x4a7   : > { %19312 = vst [vmem:[#allocation278_spill] sm:$0xff] %v17387_v14  ;;  %v17392_v31 = vadd.f32 %v7807_v40, %v7292_v6  ;;  %v7295_v51 = vadd.f32 %v12912_v34, %v19317_v54  ;;  %v7823_v36 = vpop.f32.mrf.mxu0  ;;  %v19320_v14 = vld [vmem:[#allocation14_spill] sm:$0xff]  ;;  %v19325_v34 = vld [vmem:[#allocation232_spill] sm:$0xff] }
 0x4a8   : > { %v7060_v39 = vpop.f32.mrf.mxu1 }
 0x4a9   : > { %19316 = vst [vmem:[#allocation241_spill] sm:$0xff] %v17392_v31  ;;  %v17395_v17 = vadd.f32 %v13056_v63, %v7295_v51  ;;  %v7293_v29 = vadd.f32 %v7060_v39, %v19319_v27  ;;  %v13060_v2 = vpop.f32.mrf.mxu0  ;;  %v19326_v51 = vld [vmem:[#allocation215_spill] sm:$0xff]  ;;  %v19327_v27 = vld [vmem:[#allocation217_spill] sm:$0xff] }
 0x4aa   : > { %v12915_v52 = vpop.f32.mrf.mxu1  ;;  %13170 = vmatmul.mubr.bf16.gmra.mxu1 %v19320_v14 }
 0x4ab   : > { %19318 = vst [vmem:[#allocation245_spill] sm:$0xff] %v17395_v17  ;;  %v17399_v35 = vadd.f32 %v7810_v4, %v7293_v29  ;;  %v7298_v18 = vadd.f32 %v12915_v52, %v19322_v7  ;;  %v7826_v26 = vpop.f32.mrf.mxu0  ;;  %13173 = vmatprep.mubr.bf16.mxu1 %v19323_v48  ;;  %v19329_v4 = vld [vmem:[#allocation154_spill] sm:$0xff]  ;;  %v19331_v48 = vld [vmem:[#allocation156_spill] sm:$0xff] }
 0x4ac   : > { %v7073_v40 = vpop.f32.mrf.mxu1 }
 0x4ad   : > { %19321 = vst [vmem:[#allocation249_spill] sm:$0xff] %v17399_v35  ;;  %v17403_v6 = vadd.f32 %v13059_v61, %v7298_v18  ;;  %v7296_v54 = vadd.f32 %v7073_v40, %v19325_v34  ;;  %v13063_v63 = vpop.f32.mrf.mxu0  ;;  %13318 = vmatmul.mubr.bf16.gmra.mxu0 %v19326_v51  ;;  %v19334_v34 = vld [vmem:[#allocation235_spill] sm:$0xff] }
 0x4ae   : > { %v12916_v39 = vpop.f32.mrf.mxu1  ;;  %13321 = vmatprep.mubr.bf16.mxu0 %v19327_v27  ;;  %v19335_v27 = vld [vmem:[#allocation20_spill] sm:$0xff] }
 0x4af   : > { %19324 = vst [vmem:[#allocation252_spill] sm:$0xff] %v17403_v6  ;;  %v17408_v17 = vadd.f32 %v7823_v36, %v7296_v54  ;;  %v7299_v29 = vadd.f32 %v12916_v39, %v19329_v4  ;;  %v7839_v14 = vpop.f32.mrf.mxu0  ;;  %v19332_v6 = vld [vmem:[#allocation18_spill] sm:$0xff]  ;;  %v19337_v39 = vld [vmem:[#allocation240_spill] sm:$0xff] }
 0x4b0   : > { %v7076_v52 = vpop.f32.mrf.mxu1 }
 0x4b1   : > { %19328 = vst [vmem:[#allocation282_spill] sm:$0xff] %v17408_v17  ;;  %v17411_v7 = vadd.f32 %v13060_v2, %v7299_v29  ;;  %v7297_v35 = vadd.f32 %v7076_v52, %v19331_v48  ;;  %v13064_v61 = vpop.f32.mrf.mxu0  ;;  %v19338_v29 = vld [vmem:[#allocation223_spill] sm:$0xff]  ;;  %v19339_v48 = vld [vmem:[#allocation225_spill] sm:$0xff] }
 0x4b2   : > { %v12919_v18 = vpop.f32.mrf.mxu1  ;;  %13174 = vmatmul.mubr.bf16.gmra.mxu1 %v19332_v6 }
 0x4b3   : > { %19330 = vst [vmem:[#allocation283_spill] sm:$0xff] %v17411_v7  ;;  %v17415_v40 = vadd.f32 %v7826_v26, %v7297_v35  ;;  %v7302_v51 = vadd.f32 %v12919_v18, %v19334_v34  ;;  %v7842_v31 = vpop.f32.mrf.mxu0  ;;  %13177 = vmatprep.mubr.bf16.mxu1 %v19335_v27  ;;  %v19341_v26 = vld [vmem:[#allocation243_spill] sm:$0xff] }
 0x4b4   : > { %v7089_v36 = vpop.f32.mrf.mxu1  ;;  %v19343_v27 = vld [vmem:[#allocation247_spill] sm:$0xff] }
 0x4b5   : > { %19333 = vst [vmem:[#allocation263_spill] sm:$0xff] %v17415_v40  ;;  %v17419_v54 = vadd.f32 %v13063_v63, %v7302_v51  ;;  %v7300_v4 = vadd.f32 %v7089_v36, %v19337_v39  ;;  %v13067_v2 = vpop.f32.mrf.mxu0  ;;  %13322 = vmatmul.mubr.bf16.gmra.mxu0 %v19338_v29  ;;  %v19346_v39 = vld [vmem:[#allocation162_spill] sm:$0xff] }
 0x4b6   : > { %v12920_v52 = vpop.f32.mrf.mxu1  ;;  %13325 = vmatprep.mubr.bf16.mxu0 %v19339_v48  ;;  %v19347_v48 = vld [vmem:[#allocation24_spill] sm:$0xff] }
 0x4b7   : > { %19336 = vst [vmem:[#allocation258_spill] sm:$0xff] %v17419_v54  ;;  %v17424_v7 = vadd.f32 %v7839_v14, %v7300_v4  ;;  %v7303_v35 = vadd.f32 %v12920_v52, %v19341_v26  ;;  %v7855_v6 = vpop.f32.mrf.mxu0  ;;  %v19344_v54 = vld [vmem:[#allocation22_spill] sm:$0xff]  ;;  %v19349_v52 = vld [vmem:[#allocation164_spill] sm:$0xff] }
 0x4b8   : > { %v7092_v18 = vpop.f32.mrf.mxu1 }
 0x4b9   : > { %19340 = vst [vmem:[#allocation274_spill] sm:$0xff] %v17424_v7  ;;  %v17427_v34 = vadd.f32 %v13064_v61, %v7303_v35  ;;  %v7301_v40 = vadd.f32 %v7092_v18, %v19343_v27  ;;  %v13068_v63 = vpop.f32.mrf.mxu0  ;;  %v19350_v35 = vld [vmem:[#allocation231_spill] sm:$0xff]  ;;  %v19351_v27 = vld [vmem:[#allocation234_spill] sm:$0xff] }
 0x4ba   : > { %v12923_v51 = vpop.f32.mrf.mxu1  ;;  %13178 = vmatmul.mubr.bf16.gmra.mxu1 %v19344_v54 }
 0x4bb   : > { %19342 = vst [vmem:[#allocation261_spill] sm:$0xff] %v17427_v34  ;;  %v17431_v36 = vadd.f32 %v7842_v31, %v7301_v40  ;;  %v7306_v29 = vadd.f32 %v12923_v51, %v19346_v39  ;;  %v7858_v17 = vpop.f32.mrf.mxu0  ;;  %13181 = vmatprep.mubr.bf16.mxu1 %v19347_v48  ;;  %v19352_v31 = vld [vmem:[#allocation251_spill] sm:$0xff]  ;;  %v19354_v48 = vld [vmem:[#allocation254_spill] sm:$0xff] }
 0x4bc   : > { %v7105_v14 = vpop.f32.mrf.mxu1 }
 0x4bd   : > { %19345 = vst [vmem:[#allocation275_spill] sm:$0xff] %v17431_v36  ;;  %v17435_v4 = vadd.f32 %v13067_v2, %v7306_v29  ;;  %v7304_v26 = vadd.f32 %v7105_v14, %v19349_v52  ;;  %v13071_v61 = vpop.f32.mrf.mxu0  ;;  %13326 = vmatmul.mubr.bf16.gmra.mxu0 %v19350_v35  ;;  %v19357_v52 = vld [vmem:[#allocation256_spill] sm:$0xff] }
 0x4be   : > { %v12924_v18 = vpop.f32.mrf.mxu1  ;;  %13329 = vmatprep.mubr.bf16.mxu0 %v19351_v27  ;;  %v19358_v27 = vld [vmem:[#allocation28_spill] sm:$0xff] }
 0x4bf   : > { %19348 = vst [vmem:[#allocation262_spill] sm:$0xff] %v17435_v4  ;;  %v17440_v34 = vadd.f32 %v7855_v6, %v7304_v26  ;;  %v7307_v40 = vadd.f32 %v12924_v18, %v19352_v31  ;;  %v7871_v54 = vpop.f32.mrf.mxu0  ;;  %v19355_v4 = vld [vmem:[#allocation26_spill] sm:$0xff]  ;;  %v19360_v18 = vld [vmem:[#allocation260_spill] sm:$0xff] }
 0x4c0   : > { %v7108_v51 = vpop.f32.mrf.mxu1 }
 0x4c1   : > { %v17443_v39 = vadd.f32 %v13068_v63, %v7307_v40  ;;  %v7305_v36 = vadd.f32 %v7108_v51, %v19354_v48  ;;  %v13072_v2 = vpop.f32.mrf.mxu0  ;;  %v19361_v51 = vld [vmem:[#allocation242_spill] sm:$0xff] }
 0x4c2   : > { %v12927_v29 = vpop.f32.mrf.mxu1  ;;  %13182 = vmatmul.mubr.bf16.gmra.mxu1 %v19355_v4 }
 0x4c3   : > { %19353 = vst [vmem:[#allocation265_spill] sm:$0xff] %v17443_v39  ;;  %v17447_v14 = vadd.f32 %v7858_v17, %v7305_v36  ;;  %v7310_v35 = vadd.f32 %v12927_v29, %v19357_v52  ;;  %v7874_v7 = vpop.f32.mrf.mxu0  ;;  %13185 = vmatprep.mubr.bf16.mxu1 %v19358_v27  ;;  %v19363_v17 = vld [vmem:[#allocation170_spill] sm:$0xff]  ;;  %v19365_v27 = vld [vmem:[#allocation172_spill] sm:$0xff] }
 0x4c4   : > { %v7121_v6 = vpop.f32.mrf.mxu1 }
 0x4c5   : > { %19356 = vst [vmem:[#allocation268_spill] sm:$0xff] %v17447_v14  ;;  %v17451_v26 = vadd.f32 %v13071_v61, %v7310_v35  ;;  %v7308_v31 = vadd.f32 %v7121_v6, %v19360_v18  ;;  %v13075_v63 = vpop.f32.mrf.mxu0  ;;  %13330 = vmatmul.mubr.bf16.gmra.mxu0 %v19067_v9  ;;  %v19368_v9 = vld [vmem:[#allocation56_spill] sm:$0xff] }
 0x4c6   : > { %v12928_v40 = vpop.f32.mrf.mxu1  ;;  %13333 = vmatprep.mubr.bf16.mxu0 %v19361_v51  ;;  %v19369_v51 = vld [vmem:[#allocation32_spill] sm:$0xff] }
 0x4c7   : > { %19359 = vst [vmem:[#allocation280_spill] sm:$0xff] %v17451_v26  ;;  %v17456_v48 = vadd.f32 %v7871_v54, %v7308_v31  ;;  %v7311_v36 = vadd.f32 %v12928_v40, %v19363_v17  ;;  %v7887_v4 = vpop.f32.mrf.mxu0  ;;  %v19366_v26 = vld [vmem:[#allocation30_spill] sm:$0xff]  ;;  %v19371_v40 = vld [vmem:[#allocation57_spill] sm:$0xff] }
 0x4c8   : > { %v7124_v29 = vpop.f32.mrf.mxu1 }
 0x4c9   : > { %19362 = vst [vmem:[#allocation269_spill] sm:$0xff] %v17456_v48  ;;  %v17459_v52 = vadd.f32 %v13072_v2, %v7311_v36  ;;  %v7309_v14 = vadd.f32 %v7124_v29, %v19365_v27  ;;  %v13076_v61 = vpop.f32.mrf.mxu0 }
 0x4ca   : > { %v12931_v35 = vpop.f32.mrf.mxu1  ;;  %13186 = vmatmul.mubr.bf16.gmra.mxu1 %v19366_v26 }
 0x4cb   : > { %19364 = vst [vmem:[#allocation281_spill] sm:$0xff] %v17459_v52  ;;  %v17463_v6 = vadd.f32 %v7874_v7, %v7309_v14  ;;  %v7314_v18 = vadd.f32 %v12931_v35, %v19368_v9  ;;  %v7890_v39 = vpop.f32.mrf.mxu0  ;;  %13189 = vmatprep.mubr.bf16.mxu1 %v19369_v51  ;;  %v19373_v7 = vld [vmem:[#allocation60_spill] sm:$0xff]  ;;  %v19375_v9 = vld [vmem:[#allocation61_spill] sm:$0xff] }
 0x4cc   : > { %v7137_v54 = vpop.f32.mrf.mxu1 }
 0x4cd   : > { %19367 = vst [vmem:[#allocation285_spill] sm:$0xff] %v17463_v6  ;;  %v17467_v31 = vadd.f32 %v13075_v63, %v7314_v18  ;;  %v7312_v17 = vadd.f32 %v7137_v54, %v19371_v40  ;;  %v13079_v2 = vpop.f32.mrf.mxu0  ;;  %13334 = vmatmul.mubr.bf16.gmra.mxu0 %v19078_v46  ;;  %v19378_v46 = vld [vmem:[#allocation178_spill] sm:$0xff] }
 0x4ce   : > { %v12932_v36 = vpop.f32.mrf.mxu1  ;;  %13337 = vmatprep.mubr.bf16.mxu0 %v19081_v58  ;;  %v19379_v58 = vld [vmem:[#allocation36_spill] sm:$0xff] }
 0x4cf   : > { %19370 = vst [vmem:[#allocation286_spill] sm:$0xff] %v17467_v31  ;;  %v17472_v29 = vadd.f32 %v7887_v4, %v7312_v17  ;;  %v7315_v14 = vadd.f32 %v12932_v36, %v19373_v7  ;;  %v7903_v26 = vpop.f32.mrf.mxu0  ;;  %v19376_v31 = vld [vmem:[#allocation34_spill] sm:$0xff]  ;;  %v19381_v36 = vld [vmem:[#allocation180_spill] sm:$0xff] }
 0x4d0   : > { %v7140_v27 = vpop.f32.mrf.mxu1 }
 0x4d1   : > { %19372 = vst [vmem:[#allocation287_spill] sm:$0xff] %v17472_v29  ;;  %v17475_v35 = vadd.f32 %v13076_v61, %v7315_v14  ;;  %v7313_v51 = vadd.f32 %v7140_v27, %v19375_v9  ;;  %v13080_v63 = vpop.f32.mrf.mxu0  ;;  %v19434_v29 = vld [vmem:[#allocation212_spill] sm:$0xff] }
 0x4d2   : > { %v12935_v18 = vpop.f32.mrf.mxu1  ;;  %13190 = vmatmul.mubr.bf16.gmra.mxu1 %v19376_v31 }
 0x4d3   : > { %19374 = vst [vmem:[#allocation77_spill] sm:$0xff] %v17475_v35  ;;  %v17479_v54 = vadd.f32 %v7890_v39, %v7313_v51  ;;  %v7318_v40 = vadd.f32 %v12935_v18, %v19378_v46  ;;  %v7906_v6 = vpop.f32.mrf.mxu0  ;;  %13193 = vmatprep.mubr.bf16.mxu1 %v19379_v58  ;;  %v19383_v39 = vld [vmem:[#allocation63_spill] sm:$0xff]  ;;  %v19385_v46 = vld [vmem:[#allocation65_spill] sm:$0xff]  ;;  %v19417_v35 = vld [vmem:[#allocation52_spill] sm:$0xff] }
 0x4d4   : > { %v7153_v4 = vpop.f32.mrf.mxu1 }
 0x4d5   : > { %19377 = vst [vmem:[#allocation289_spill] sm:$0xff] %v17479_v54  ;;  %v17483_v17 = vadd.f32 %v13079_v2, %v7318_v40  ;;  %v7316_v7 = vadd.f32 %v7153_v4, %v19381_v36  ;;  %v13083_v61 = vpop.f32.mrf.mxu0  ;;  %13338 = vmatmul.mubr.bf16.gmra.mxu0 %v19087_v42  ;;  %v19388_v42 = vld [vmem:[#allocation67_spill] sm:$0xff] }
 0x4d6   : > { %v12936_v14 = vpop.f32.mrf.mxu1  ;;  %13341 = vmatprep.mubr.bf16.mxu0 %v19090_v33  ;;  %v19389_v33 = vld [vmem:[#allocation40_spill] sm:$0xff] }
 0x4d7   : > { %19380 = vst [vmem:[#allocation11_spill] sm:$0xff] %v17483_v17  ;;  %v17488_v27 = vadd.f32 %v7903_v26, %v7316_v7  ;;  %v7319_v31 = vadd.f32 %v12936_v14, %v19383_v39  ;;  %v7919_v9 = vpop.f32.mrf.mxu0  ;;  %v19386_v17 = vld [vmem:[#allocation38_spill] sm:$0xff] }
 0x4d8   : > { %v7156_v51 = vpop.f32.mrf.mxu1  ;;  %v19391_v39 = vld [vmem:[#allocation266_spill] sm:$0xff] }
 0x4d9   : > { %19382 = vst [vmem:[#allocation13_spill] sm:$0xff] %v17488_v27  ;;  %v17491_v18 = vadd.f32 %v13080_v63, %v7319_v31  ;;  %v7317_v58 = vadd.f32 %v7156_v51, %v19385_v46  ;;  %v13084_v2 = vpop.f32.mrf.mxu0  ;;  %v19392_v51 = vld [vmem:[#allocation267_spill] sm:$0xff] }
 0x4da   : > { %v12939_v40 = vpop.f32.mrf.mxu1  ;;  %13194 = vmatmul.mubr.bf16.gmra.mxu1 %v19386_v17 }
 0x4db   : > { %19384 = vst [vmem:[#allocation15_spill] sm:$0xff] %v17491_v18  ;;  %v17495_v4 = vadd.f32 %v7906_v6, %v7317_v58  ;;  %v7322_v36 = vadd.f32 %v12939_v40, %v19388_v42  ;;  %v7922_v54 = vpop.f32.mrf.mxu0  ;;  %13197 = vmatprep.mubr.bf16.mxu1 %v19389_v33  ;;  %v19394_v6 = vld [vmem:[#allocation69_spill] sm:$0xff]  ;;  %v19396_v33 = vld [vmem:[#allocation186_spill] sm:$0xff] }
 0x4dc   : > { %v7169_v26 = vpop.f32.mrf.mxu1 }
 0x4dd   : > { %19387 = vst [vmem:[#allocation17_spill] sm:$0xff] %v17495_v4  ;;  %v17499_v7 = vadd.f32 %v13083_v61, %v7322_v36  ;;  %v7320_v14 = vadd.f32 %v7169_v26, %v16973_v28  ;;  %v13087_v63 = vpop.f32.mrf.mxu0  ;;  %13342 = vmatmul.mubr.bf16.gmra.mxu0 %v19391_v39  ;;  %v19399_v26 = vld [vmem:[#allocation188_spill] sm:$0xff] }
 0x4de   : > { %v12940_v31 = vpop.f32.mrf.mxu1  ;;  %13345 = vmatprep.mubr.bf16.mxu0 %v19392_v51  ;;  %v19400_v51 = vld [vmem:[#allocation44_spill] sm:$0xff] }
 0x4df   : > { %19390 = vst [vmem:[#allocation19_spill] sm:$0xff] %v17499_v7  ;;  %v17504_v46 = vadd.f32 %v7919_v9, %v7320_v14  ;;  %v7323_v17 = vadd.f32 %v12940_v31, %v19394_v6  ;;  %v7935_v58 = vpop.f32.mrf.mxu0  ;;  %v19397_v7 = vld [vmem:[#allocation42_spill] sm:$0xff]  ;;  %v19402_v31 = vld [vmem:[#allocation71_spill] sm:$0xff] }
 0x4e0   : > { %v7172_v40 = vpop.f32.mrf.mxu1 }
 0x4e1   : > { %19393 = vst [vmem:[#allocation276_spill] sm:$0xff] %v17504_v46  ;;  %v17507_v42 = vadd.f32 %v13084_v2, %v7323_v17  ;;  %v7321_v4 = vadd.f32 %v7172_v40, %v19396_v33  ;;  %v13088_v61 = vpop.f32.mrf.mxu0  ;;  %v19403_v17 = vld [vmem:[#allocation270_spill] sm:$0xff]  ;;  %v19404_v33 = vld [vmem:[#allocation271_spill] sm:$0xff] }
 0x4e2   : > { %v12943_v36 = vpop.f32.mrf.mxu1  ;;  %13198 = vmatmul.mubr.bf16.gmra.mxu1 %v19397_v7 }
 0x4e3   : > { %19395 = vst [vmem:[#allocation101_spill] sm:$0xff] %v17507_v42  ;;  %v17511_v28 = vadd.f32 %v7922_v54, %v7321_v4  ;;  %v7326_v39 = vadd.f32 %v12943_v36, %v19399_v26  ;;  %v7938_v18 = vpop.f32.mrf.mxu0  ;;  %13201 = vmatprep.mubr.bf16.mxu1 %v19400_v51  ;;  %v19406_v54 = vld [vmem:[#allocation73_spill] sm:$0xff]  ;;  %v19408_v51 = vld [vmem:[#allocation75_spill] sm:$0xff]  ;;  %v19411_v42 = vld [vmem:[#allocation48_spill] sm:$0xff] }
 0x4e4   : > { %v7185_v9 = vpop.f32.mrf.mxu1 }
 0x4e5   : > { %19398 = vst [vmem:[#allocation102_spill] sm:$0xff] %v17511_v28  ;;  %v17515_v14 = vadd.f32 %v13087_v63, %v7326_v39  ;;  %v7324_v6 = vadd.f32 %v7185_v9, %v19402_v31  ;;  %v13251_v2 = vpop.f32.mrf.mxu0  ;;  %13346 = vmatmul.mubr.bf16.gmra.mxu0 %v19403_v17  ;;  %v19409_v31 = vld [vmem:[#allocation46_spill] sm:$0xff] }
 0x4e6   : > { %v12944_v40 = vpop.f32.mrf.mxu1  ;;  %13349 = vmatprep.mubr.bf16.mxu0 %v19404_v33 }
 0x4e7   : > { %19401 = vst [vmem:[#allocation279_spill] sm:$0xff] %v17515_v14  ;;  %v17520_v7 = vadd.f32 %v7935_v58, %v7324_v6  ;;  %v7327_v4 = vadd.f32 %v12944_v40, %v19406_v54  ;;  %v8989_v36 = vpop.f32.mrf.mxu0  ;;  %v19412_v6 = vld [vmem:[#allocation78_spill] sm:$0xff] }
 0x4e8   : > { %v7188_v26 = vpop.f32.mrf.mxu1  ;;  %v19413_v54 = vld [vmem:[#allocation194_spill] sm:$0xff] }
 0x4e9   : > { %19405 = vst [vmem:[#allocation284_spill] sm:$0xff] %v17520_v7  ;;  %v17523_v28 = vadd.f32 %v13088_v61, %v7327_v4  ;;  %v7325_v63 = vadd.f32 %v7188_v26, %v19408_v51  ;;  %v13252_v39 = vpop.f32.mrf.mxu0  ;;  %v19414_v26 = vld [vmem:[#allocation196_spill] sm:$0xff] }
 0x4ea   : > { %v13107_v9 = vpop.f32.mrf.mxu1  ;;  %13202 = vmatmul.mubr.bf16.gmra.mxu1 %v19409_v31 }
 0x4eb   : > { %19407 = vst [vmem:[#allocation21_spill] sm:$0xff] %v17523_v28  ;;  %v17527_v17 = vadd.f32 %v7938_v18, %v7325_v63  ;;  %v8992_v14 = vpop.f32.mrf.mxu0  ;;  %13205 = vmatprep.mubr.bf16.mxu1 %v19411_v42  ;;  %v8742_v40 = vadd.f32 %v13107_v9, %v19412_v6  ;;  %v19416_v6 = vld [vmem:[#allocation50_spill] sm:$0xff] }
 0x4ec   : > { %v8229_v58 = vpop.f32.mrf.mxu1 }
 0x4ed   : > { %19410 = vst [vmem:[#allocation81_spill] sm:$0xff] %v17527_v17  ;;  %v13255_v33 = vpop.f32.mrf.mxu0  ;;  %13350 = vmatmul.mubr.bf16.gmra.mxu0 %v19120_v53  ;;  %v8740_v4 = vadd.f32 %v8229_v58, %v19413_v54  ;;  %v9502_v31 = vadd.f32 %v13251_v2, %v8742_v40  ;;  %v19415_v17 = vld [vmem:[#allocation80_spill] sm:$0xff] }
 0x4ee   : > { %v13108_v61 = vpop.f32.mrf.mxu1  ;;  %13353 = vmatprep.mubr.bf16.mxu0 %v19123_v19 }
 0x4ef   : > { %v8743_v51 = vadd.f32 %v13108_v61, %v19414_v26  ;;  %v9005_v18 = vpop.f32.mrf.mxu0  ;;  %v9500_v53 = vadd.f32 %v8989_v36, %v8740_v4  ;;  %v19420_v36 = vld [vmem:[#allocation87_spill] sm:$0xff] }
 0x4f0   : > { %v8232_v63 = vpop.f32.mrf.mxu1 }
 0x4f1   : > { %v9503_v42 = vadd.f32 %v13252_v39, %v8743_v51  ;;  %v8741_v28 = vadd.f32 %v8232_v63, %v19415_v17  ;;  %v13256_v7 = vpop.f32.mrf.mxu0  ;;  %v19418_v39 = vld [vmem:[#allocation82_spill] sm:$0xff] }
 0x4f2   : > { %v13111_v9 = vpop.f32.mrf.mxu1  ;;  %13206 = vmatmul.mubr.bf16.gmra.mxu1 %v19416_v6 }
 0x4f3   : > { %v11058_v46 = vpack.c.bf16 %v9503_v42, %v9502_v31  ;;  %v9501_v27 = vadd.f32 %v8992_v14, %v8741_v28  ;;  %v9008_v19 = vpop.f32.mrf.mxu0  ;;  %13209 = vmatprep.mubr.bf16.mxu1 %v19417_v35  ;;  %v8746_v40 = vadd.f32 %v13111_v9, %v19418_v39  ;;  %v19419_v28 = vld [vmem:[#allocation85_spill] sm:$0xff]  ;;  %v19422_v42 = vld [vmem:[#allocation54_spill] sm:$0xff] }
 0x4f4   : > { %v8245_v58 = vpop.f32.mrf.mxu1 }
 0x4f5   : > { %11370 = vst [vmem:[%s17541_s4 + $0x8] sm:$0xff] %v11058_v46   ;;  %v11053_v2 = vpack.c.bf16 %v9501_v27, %v9500_v53  ;;  %v13259_v17 = vpop.f32.mrf.mxu0  ;;  %13354 = vmatmul.mubr.bf16.gmra.mxu0 %v19128_v13  ;;  %v8744_v14 = vadd.f32 %v8245_v58, %v19419_v28  ;;  %v9506_v26 = vadd.f32 %v13255_v33, %v8746_v40  ;;  %v19421_v46 = vld [vmem:[#allocation203_spill] sm:$0xff]  ;;  %v19423_v53 = vld [vmem:[#allocation58_spill] sm:$0xff]  ;;  %v19424_v33 = vld [vmem:[#allocation205_spill] sm:$0xff] }
 0x4f6   : > { %v13112_v61 = vpop.f32.mrf.mxu1  ;;  %13357 = vmatprep.mubr.bf16.mxu0 %v19130_v10  ;;  %v17561_v28 = vld [vmem:[%s13886_s3 + $0x294] sm:$0xf] }
 0x4f7   : > { %11054 = vst [vmem:[%s17541_s4] sm:$0xff] %v11053_v2   ;;  %v8747_v35 = vadd.f32 %v13112_v61, %v19420_v36  ;;  %v9021_v54 = vpop.f32.mrf.mxu0  ;;  %v9504_v13 = vadd.f32 %v9005_v18, %v8744_v14  ;;  %v8079_v14 = vshrl.u32 %v17561_v28, 16  ;;  %v8082_v36 = vshll.u32 %v17561_v28, 16 }
 0x4f8   : > { %v8248_v4 = vpop.f32.mrf.mxu1 }
 0x4f9   : > { %v9507_v51 = vadd.f32 %v13256_v7, %v8747_v35  ;;  %v8745_v27 = vadd.f32 %v8248_v4, %v19421_v46  ;;  %v13260_v63 = vpop.f32.mrf.mxu0  ;;  %v17566_v35 = vld [vmem:[%s13886_s3 + $0x298] sm:$0xf] }
 0x4fa   : > { %v13115_v31 = vpop.f32.mrf.mxu1  ;;  %13210 = vmatmul.mubr.bf16.gmra.mxu1 %v19422_v42  ;;  %v8092_v4 = vshrl.u32 %v17566_v35, 16 }
 0x4fb   : > { %v11068_v9 = vpack.c.bf16 %v9507_v51, %v9506_v26  ;;  %v9505_v10 = vadd.f32 %v9008_v19, %v8745_v27  ;;  %v9024_v6 = vpop.f32.mrf.mxu0  ;;  %13213 = vmatprep.mubr.bf16.mxu1 %v19423_v53  ;;  %v8750_v7 = vadd.f32 %v13115_v31, %v19424_v33  ;;  %v19425_v27 = vld [vmem:[#allocation62_spill] sm:$0xff] }
 0x4fc   : > { %v8261_v58 = vpop.f32.mrf.mxu1 }
 0x4fd   : > { %11372 = vst [vmem:[%s17541_s4 + $0x18] sm:$0xff] %v11068_v9   ;;  %v11063_v2 = vpack.c.bf16 %v9505_v10, %v9504_v13  ;;  %v13263_v39 = vpop.f32.mrf.mxu0  ;;  %13358 = vmatmul.mubr.bf16.gmra.mxu0 %v19134_v41  ;;  %v8748_v18 = vadd.f32 %v8261_v58, %v17037_v12  ;;  %v9510_v26 = vadd.f32 %v13259_v17, %v8750_v7  ;;  %v19426_v10 = vld [vmem:[#allocation66_spill] sm:$0xff]  ;;  %v8081_v58 = vrot.slane %v8079_v14, 4 }
 0x4fe   : > { %v13116_v40 = vpop.f32.mrf.mxu1  ;;  %13361 = vmatprep.mubr.bf16.mxu0 %v19136_v57 }
 0x4ff   : > { %11371 = vst [vmem:[%s17541_s4 + $0x10] sm:$0xff] %v11063_v2   ;;  %v8751_v19 = vadd.f32 %v13116_v40, %v17040_v23  ;;  %v9037_v61 = vpop.f32.mrf.mxu0  ;;  %v8088_v23 = vshll.u32 %v17566_v35, 16  ;;  %v9508_v31 = vadd.f32 %v9021_v54, %v8748_v18  ;;  %v8084_v2 = vrot.slane %v8082_v36, 5  ;;  %v19430_v36 = vld [vmem:[#allocation97_spill] sm:$0xff] }
 0x500   : > { %v8264_v41 = vpop.f32.mrf.mxu1  ;;  %v8094_v54 = vrot.slane %v8092_v4, 4  ;;  %v8871_v18 = vrot.slane %v17566_v35, 5  ;;  %v19431_v4 = vld [vmem:[#allocation99_spill] sm:$0xff] }
 0x501   : > { %v9511_v57 = vadd.f32 %v13260_v63, %v8751_v19  ;;  %v8749_v51 = vadd.f32 %v8264_v41, %v17044_v37  ;;  %v13264_v12 = vpop.f32.mrf.mxu0  ;;  %v19427_v37 = vld [vmem:[#allocation91_spill] sm:$0xff]  ;;  %v17576_v7 = vrot.slane %v8088_v23, 5  ;;  %v19429_v19 = vld [vmem:[#allocation93_spill] sm:$0xff] }
 0x502   : > { %v13119_v46 = vpop.f32.mrf.mxu1  ;;  %13214 = vmatmul.mubr.bf16.gmra.mxu1 %v19425_v27 }
 0x503   : > { %v11078_v42 = vpack.c.bf16 %v9511_v57, %v9510_v26  ;;  %v9509_v13 = vadd.f32 %v9024_v6, %v8749_v51  ;;  %v9040_v9 = vpop.f32.mrf.mxu0  ;;  %13217 = vmatprep.mubr.bf16.mxu1 %v19426_v10  ;;  %v8754_v63 = vadd.f32 %v13119_v46, %v19427_v37  ;;  %v19428_v6 = vld [vmem:[#allocation288_spill] sm:$0xff]  ;;  %v8085_v51 = vor.u32 %v8084_v2, %v8081_v58  ;;  %v17587_v37 = vld [vmem:[%s13886_s3 + $0x2a0] sm:$0xf] }
 0x504   : > { %v8277_v53 = vpop.f32.mrf.mxu1  ;;  %v13742_v46 = vld [vmem:[%s13886_s3 + $0x29c] sm:$0xf]  ;;  %v8095_v10 = vor.u32 %v8094_v54, %v17576_v7  ;;  %v8112_v35 = vshrl.u32 %v17587_v37, 16  ;;  %v10761_v58 = vrot.slane %v17561_v28, 9  ;;  %v8873_v2 = vrot.slane %v8871_v18, 4 }
 0x505   : > { %11374 = vst [vmem:[%s17541_s4 + $0x28] sm:$0xff] %v11078_v42   ;;  %v11073_v17 = vpack.c.bf16 %v9509_v13, %v9508_v31  ;;  %v13267_v33 = vpop.f32.mrf.mxu0  ;;  %13362 = vmatmul.mubr.bf16.gmra.mxu0 %v19140_v47  ;;  %v8752_v14 = vadd.f32 %v8277_v53, %v19429_v19  ;;  %v8098_v27 = vshll.u32 %v13742_v46, 16  ;;  %v8102_v47 = vshrl.u32 %v13742_v46, 16  ;;  %v19433_v19 = vld [vmem:[#allocation74_spill] sm:$0xff] }
 0x506   : > { %v13120_v40 = vpop.f32.mrf.mxu1  ;;  %13365 = vmatprep.mubr.bf16.mxu0 %v19428_v6  ;;  %v9514_v23 = vadd.f32 %v13263_v39, %v8754_v63  ;;  %v8108_v54 = vshll.u32 %v17587_v37, 16 }
 0x507   : > { %11373 = vst [vmem:[%s17541_s4 + $0x20] sm:$0xff] %v11073_v17   ;;  %v8755_v41 = vadd.f32 %v13120_v40, %v19430_v36  ;;  %v9053_v26 = vpop.f32.mrf.mxu0  ;;  %v19432_v17 = vld [vmem:[#allocation70_spill] sm:$0xff]  ;;  %v8874_v40 = vrot.slane %v13742_v46, 5  ;;  %v9512_v6 = vadd.f32 %v9037_v61, %v8752_v14  ;;  %v8096_v61 = vrot.slane %v8095_v10, 4 }
 0x508   : > { %v8280_v57 = vpop.f32.mrf.mxu1  ;;  %v8872_v14 = vsel %vm14627_vm5, %v10761_v58, %v8871_v18  ;;  %v8877_v46 = vrot.slane %v17587_v37, 5  ;;  %v8114_v10 = vrot.slane %v8112_v35, 4  ;;  %v19438_v37 = vld [vmem:[#allocation105_spill] sm:$0xff] }
 0x509   : > { %v9515_v31 = vadd.f32 %v13264_v12, %v8755_v41  ;;  %v8753_v42 = vadd.f32 %v8280_v57, %v19431_v4  ;;  %v13268_v13 = vpop.f32.mrf.mxu0  ;;  %v8086_v41 = vrot.slane %v8085_v51, 4  ;;  %v8100_v57 = vrot.slane %v8098_v27, 5  ;;  %v19435_v27 = vld [vmem:[#allocation214_spill] sm:$0xff] }
 0x50a   : > { %v13123_v53 = vpop.f32.mrf.mxu1  ;;  %13218 = vmatmul.mubr.bf16.gmra.mxu1 %v19432_v17  ;;  %v8104_v4 = vrot.slane %v8102_v47, 4  ;;  %v8875_v51 = vsel %vm14627_vm5, %v8873_v2, %v8874_v40 }
 0x50b   : > { %v11088_v39 = vpack.c.bf16 %v9515_v31, %v9514_v23  ;;  %v9513_v12 = vadd.f32 %v9040_v9, %v8753_v42  ;;  %v9056_v63 = vpop.f32.mrf.mxu0  ;;  %13221 = vmatprep.mubr.bf16.mxu1 %v19433_v19  ;;  %v8758_v28 = vadd.f32 %v13123_v53, %v19434_v29  ;;  %v19436_v23 = vld [vmem:[#allocation103_spill] sm:$0xff]  ;;  %v312_v42 = vld [vmem:[%s13886_s3 + $0x2a4] sm:$0x1]  ;;  %v8091_v18 = vsel %vm13905_vm2, %v8086_v41, %v17576_v7  ;;  %s11049_s3 = sshll.u32 %s13845_s13, 13  ;;  %s17804_s13 = scalar_lea.sflag [#allocation3], %s134_s29 }
 0x50c   : > { %v8293_v36 = vpop.f32.mrf.mxu1  ;;  %v8105_v58 = vor.u32 %v8104_v4, %v8100_v57  ;;  %v10778_v35 = vcombine.low %v8872_v14, %v8875_v51  ;;  %s17796_s8 = scalar_lea.hbm %s17846_s2, %s11049_s3 }
 0x50d   : > { %11376 = vst [vmem:[%s17541_s4 + $0x38] sm:$0xff] %v11088_v39   ;;  %v11083_v17 = vpack.c.bf16 %v9513_v12, %v9512_v6  ;;  %v13271_v52 = vpop.f32.mrf.mxu0  ;;  %13366 = vmatmul.mubr.bf16.gmra.mxu0 %v19145_v16  ;;  %v8756_v47 = vadd.f32 %v8293_v36, %v19435_v27  ;;  %v17607_v16 = vrot.slane %v8108_v54, 5  ;;  %v8876_v6 = vrot.slane %v8874_v40, 4  ;;  %v19439_v54 = vld [vmem:[#allocation79_spill] sm:$0xff] }
 0x50e   : > { %v13124_v9 = vpop.f32.mrf.mxu1  ;;  %13369 = vmatprep.mubr.bf16.mxu0 %v17099_v50  ;;  %v9518_v2 = vadd.f32 %v13267_v33, %v8758_v28  ;;  %v8101_v36 = vsel %vm13905_vm2, %v8096_v61, %v8100_v57  ;;  %v8879_v27 = vrot.slane %v8877_v46, 4  ;;  %v19441_v57 = vld [vmem:[#allocation109_spill] sm:$0xff]  ;;  %v8106_v51 = vrot.slane %v8105_v58, 4 }
 0x50f   : > { %11375 = vst [vmem:[%s17541_s4 + $0x30] sm:$0xff] %v11083_v17   ;;  %v8759_v29 = vadd.f32 %v13124_v9, %v19436_v23  ;;  %v9069_v31 = vpop.f32.mrf.mxu0  ;;  %v8118_v9 = vshll.u32 %v312_v42, 16  ;;  %v8880_v23 = vrot.slane %v312_v42, 5  ;;  %v9516_v48 = vadd.f32 %v9053_v26, %v8756_v47 }
 0x510   : > { %v8296_v53 = vpop.f32.mrf.mxu1  ;;  %v8115_v40 = vor.u32 %v8114_v10, %v17607_v16  ;;  %v10751_v42 = vcombine.low %v8091_v18, %v8101_v36  ;;  %v8878_v26 = vsel %vm14627_vm5, %v8876_v6, %v8877_v46  ;;  %v19442_v6 = vld [vmem:[#allocation273_spill] sm:$0xff] }
 0x511   : > { %v9519_v39 = vadd.f32 %v13268_v13, %v8759_v29  ;;  %v8757_v12 = vadd.f32 %v8296_v53, %v19438_v37  ;;  %v13272_v19 = vpop.f32.mrf.mxu0  ;;  %v19440_v13 = vld [vmem:[#allocation272_spill] sm:$0xff] }
 0x512   : > { %v13127_v17 = vpop.f32.mrf.mxu1  ;;  %13222 = vmatmul.mubr.bf16.gmra.mxu1 %v19439_v54  ;;  %v8116_v53 = vrot.slane %v8115_v40, 4 }
 0x513   : > { %v11098_v7 = vpack.c.bf16 %v9519_v39, %v9518_v2  ;;  %v9517_v41 = vadd.f32 %v9056_v63, %v8757_v12  ;;  %v9072_v33 = vpop.f32.mrf.mxu0  ;;  %13225 = vmatprep.mubr.bf16.mxu1 %v19440_v13  ;;  %v8762_v61 = vadd.f32 %v13127_v17, %v19441_v57  ;;  %v8881_v63 = vsel %vm14627_vm5, %v8879_v27, %v8880_v23 }
 0x514   : > { %v8309_v4 = vpop.f32.mrf.mxu1  ;;  %v8120_v2 = vrot.slane %v8118_v9, 5  ;;  %v10779_v12 = vcombine.low %v8878_v26, %v8881_v63 }
 0x515   : > { %11378 = vst [vmem:[%s17541_s4 + $0x48] sm:$0xff] %v11098_v7   ;;  %v11093_v28 = vpack.c.bf16 %v9517_v41, %v9516_v48  ;;  %v13275_v29 = vpop.f32.mrf.mxu0  ;;  %13370 = vmatmul.mubr.bf16.gmra.mxu0 %v17117_v55  ;;  %v8760_v47 = vadd.f32 %v8309_v4, %v17096_v44  ;;  %v9522_v55 = vadd.f32 %v13271_v52, %v8762_v61 }
 0x516   : > { %v13128_v14 = vpop.f32.mrf.mxu1  ;;  %13373 = vmatprep.mubr.bf16.mxu0 %v10778_v35  ;;  %v8111_v44 = vsel %vm13905_vm2, %v8106_v51, %v17607_v16  ;;  %v8121_v52 = vsel %vm13905_vm2, %v8116_v53, %v8120_v2 }
 0x517   : > { %11377 = vst [vmem:[%s17541_s4 + $0x40] sm:$0xff] %v11093_v28   ;;  %v8763_v48 = vadd.f32 %v13128_v14, %v17102_v22  ;;  %v9085_v10 = vpop.f32.mrf.mxu0  ;;  %v9520_v21 = vadd.f32 %v9069_v31, %v8760_v47  ;;  %v10752_v27 = vcombine.low %v8111_v44, %v8121_v52 }
 0x518   : > { %v8312_v39 = vpop.f32.mrf.mxu1 }
 0x519   : > { %v9523_v58 = vadd.f32 %v13272_v19, %v8763_v48  ;;  %v8761_v18 = vadd.f32 %v8312_v39, %v17106_v0  ;;  %v13276_v37 = vpop.f32.mrf.mxu0 }
 0x51a   : > { %v13131_v46 = vpop.f32.mrf.mxu1  ;;  %13226 = vmatmul.mubr.bf16.gmra.mxu1 %v19442_v6 }
 0x51b   : > { %v11108_v22 = vpack.c.bf16 %v9523_v58, %v9522_v55  ;;  %v9521_v36 = vadd.f32 %v9072_v33, %v8761_v18  ;;  %v9088_v17 = vpop.f32.mrf.mxu0  ;;  %13229 = vmatprep.mubr.bf16.mxu1 %v10751_v42  ;;  %v8766_v54 = vadd.f32 %v13131_v46, %v17114_v60 }
 0x51c   : > { %v8325_v19 = vpop.f32.mrf.mxu1 }
 0x51d   : > { %11380 = vst [vmem:[%s17541_s4 + $0x58] sm:$0xff] %v11108_v22   ;;  %v11103_v0 = vpack.c.bf16 %v9521_v36, %v9520_v21  ;;  %v13279_v35 = vpop.f32.mrf.mxu0  ;;  %13374 = vmatmul.mubr.bf16.gmra.mxu0 %v10779_v12  ;;  %v8764_v31 = vadd.f32 %v8325_v19, %v17120_v30  ;;  %v9526_v41 = vadd.f32 %v13275_v29, %v8766_v54 }
 0x51e   : > { %v13132_v9 = vpop.f32.mrf.mxu1 }
 0x51f   : > { %11379 = vst [vmem:[%s17541_s4 + $0x50] sm:$0xff] %v11103_v0   ;;  %v8767_v16 = vadd.f32 %v13132_v9, %v17123_v38  ;;  %v9101_v23 = vpop.f32.mrf.mxu0  ;;  %v9524_v60 = vadd.f32 %v9085_v10, %v8764_v31 }
 0x520   : > { %v8328_v7 = vpop.f32.mrf.mxu1 }
 0x521   : > { %v9527_v50 = vadd.f32 %v13276_v37, %v8767_v16  ;;  %v8765_v33 = vadd.f32 %v8328_v7, %v17127_v24  ;;  %v13280_v13 = vpop.f32.mrf.mxu0 }
 0x522   : > { %v13135_v40 = vpop.f32.mrf.mxu1  ;;  %13230 = vmatmul.mubr.bf16.gmra.mxu1 %v10752_v27 }
 0x523   : > { %v11118_v4 = vpack.c.bf16 %v9527_v50, %v9526_v41  ;;  %v9525_v28 = vadd.f32 %v9088_v17, %v8765_v33  ;;  %v9104_v57 = vpop.f32.mrf.mxu0  ;;  %v8770_v30 = vadd.f32 %v13135_v40, %v17131_v25 }
 0x524   : > { %v8341_v61 = vpop.f32.mrf.mxu1 }
 0x525   : > { %11382 = vst [vmem:[%s17541_s4 + $0x68] sm:$0xff] %v11118_v4   ;;  %v11113_v14 = vpack.c.bf16 %v9525_v28, %v9524_v60  ;;  %v13283_v38 = vpop.f32.mrf.mxu0  ;;  %v8768_v29 = vadd.f32 %v8341_v61, %v17136_v15  ;;  %v9530_v63 = vadd.f32 %v13279_v35, %v8770_v30 }
 0x526   : > { %v13136_v51 = vpop.f32.mrf.mxu1 }
 0x527   : > { %11381 = vst [vmem:[%s17541_s4 + $0x60] sm:$0xff] %v11113_v14   ;;  %v8771_v24 = vadd.f32 %v13136_v51, %v17139_v5  ;;  %v9117_v42 = vpop.f32.mrf.mxu0  ;;  %v9528_v2 = vadd.f32 %v9101_v23, %v8768_v29  ;;  %v19443_v29 = vld [vmem:[#allocation115_spill] sm:$0xff] }
 0x528   : > { %v8344_v26 = vpop.f32.mrf.mxu1 }
 0x529   : > { %v9531_v47 = vadd.f32 %v13280_v13, %v8771_v24  ;;  %v8769_v48 = vadd.f32 %v8344_v26, %v17143_v62  ;;  %v13284_v10 = vpop.f32.mrf.mxu0 }
 0x52a   : > { %v13139_v53 = vpop.f32.mrf.mxu1 }
 0x52b   : > { %v11128_v39 = vpack.c.bf16 %v9531_v47, %v9530_v63  ;;  %v9529_v25 = vadd.f32 %v9104_v57, %v8769_v48  ;;  %v9120_v55 = vpop.f32.mrf.mxu0  ;;  %v8774_v15 = vadd.f32 %v13139_v53, %v17147_v49 }
 0x52c   : > { %v8357_v58 = vpop.f32.mrf.mxu1 }
 0x52d   : > { %11384 = vst [vmem:[%s17541_s4 + $0x78] sm:$0xff] %v11128_v39   ;;  %v11123_v18 = vpack.c.bf16 %v9529_v25, %v9528_v2  ;;  %v13287_v37 = vpop.f32.mrf.mxu0  ;;  %v8772_v12 = vadd.f32 %v8357_v58, %v17152_v8  ;;  %v9534_v44 = vadd.f32 %v13283_v38, %v8774_v15  ;;  %v19444_v2 = vld [vmem:[#allocation220_spill] sm:$0xff]  ;;  %v19445_v25 = vld [vmem:[#allocation222_spill] sm:$0xff]  ;;  %v19446_v58 = vld [vmem:[#allocation117_spill] sm:$0xff] }
 0x52e   : > { %v13140_v5 = vpop.f32.mrf.mxu1 }
 0x52f   : > { %11383 = vst [vmem:[%s17541_s4 + $0x70] sm:$0xff] %v11123_v18   ;;  %v8775_v46 = vadd.f32 %v13140_v5, %v17155_v11  ;;  %v9133_v62 = vpop.f32.mrf.mxu0  ;;  %v9532_v52 = vadd.f32 %v9117_v42, %v8772_v12 }
 0x530   : > { %v8360_v6 = vpop.f32.mrf.mxu1 }
 0x531   : > { %v9535_v21 = vadd.f32 %v13284_v10, %v8775_v46  ;;  %v8773_v22 = vadd.f32 %v8360_v6, %v17159_v3  ;;  %v13288_v36 = vpop.f32.mrf.mxu0  ;;  %v19447_v46 = vld [vmem:[#allocation121_spill] sm:$0xff] }
 0x532   : > { %v13143_v17 = vpop.f32.mrf.mxu1 }
 0x533   : > { %v11138_v19 = vpack.c.bf16 %v9535_v21, %v9534_v44  ;;  %v9533_v49 = vadd.f32 %v9120_v55, %v8773_v22  ;;  %v9136_v0 = vpop.f32.mrf.mxu0  ;;  %v8778_v8 = vadd.f32 %v13143_v17, %v17163_v45 }
 0x534   : > { %v8373_v54 = vpop.f32.mrf.mxu1 }
 0x535   : > { %11386 = vst [vmem:[%s17541_s4 + $0x88] sm:$0xff] %v11138_v19   ;;  %v11133_v35 = vpack.c.bf16 %v9533_v49, %v9532_v52  ;;  %v13291_v9 = vpop.f32.mrf.mxu0  ;;  %v8776_v27 = vadd.f32 %v8373_v54, %v17168_v20  ;;  %v9538_v23 = vadd.f32 %v13287_v37, %v8778_v8  ;;  %v19448_v49 = vld [vmem:[#allocation123_spill] sm:$0xff]  ;;  %v19449_v8 = vld [vmem:[#allocation128_spill] sm:$0xff] }
 0x536   : > { %v13144_v11 = vpop.f32.mrf.mxu1 }
 0x537   : > { %11385 = vst [vmem:[%s17541_s4 + $0x80] sm:$0xff] %v11133_v35   ;;  %v8779_v31 = vadd.f32 %v13144_v11, %v17171_v56  ;;  %v9149_v3 = vpop.f32.mrf.mxu0  ;;  %v9536_v13 = vadd.f32 %v9133_v62, %v8776_v27  ;;  %v19450_v11 = vld [vmem:[#allocation228_spill] sm:$0xff] }
 0x538   : > { %v8376_v16 = vpop.f32.mrf.mxu1 }
 0x539   : > { %v9539_v7 = vadd.f32 %v13288_v36, %v8779_v31  ;;  %v8777_v41 = vadd.f32 %v8376_v16, %v17175_v59  ;;  %v13292_v50 = vpop.f32.mrf.mxu0 }
 0x53a   : > { %v13147_v33 = vpop.f32.mrf.mxu1 }
 0x53b   : > { %v11148_v40 = vpack.c.bf16 %v9539_v7, %v9538_v23  ;;  %v9537_v45 = vadd.f32 %v9136_v0, %v8777_v41  ;;  %v9152_v60 = vpop.f32.mrf.mxu0  ;;  %v8782_v20 = vadd.f32 %v13147_v33, %v17179_v1  ;;  %v19451_v7 = vld [vmem:[#allocation230_spill] sm:$0xff] }
 0x53c   : > { %v8389_v4 = vpop.f32.mrf.mxu1 }
 0x53d   : > { %11388 = vst [vmem:[%s17541_s4 + $0x98] sm:$0xff] %v11148_v40   ;;  %v11143_v28 = vpack.c.bf16 %v9537_v45, %v9536_v13  ;;  %v13295_v57 = vpop.f32.mrf.mxu0  ;;  %v8780_v61 = vadd.f32 %v8389_v4, %v17184_v43  ;;  %v9542_v38 = vadd.f32 %v13291_v9, %v8782_v20  ;;  %v19452_v20 = vld [vmem:[#allocation131_spill] sm:$0xff] }
 0x53e   : > { %v13148_v56 = vpop.f32.mrf.mxu1 }
 0x53f   : > { %11387 = vst [vmem:[%s17541_s4 + $0x90] sm:$0xff] %v11143_v28   ;;  %v8783_v14 = vadd.f32 %v13148_v56, %v17187_v32  ;;  %v9165_v59 = vpop.f32.mrf.mxu0  ;;  %v9540_v63 = vadd.f32 %v9149_v3, %v8780_v61 }
 0x540   : > { %v8392_v30 = vpop.f32.mrf.mxu1 }
 0x541   : > { %v9543_v51 = vadd.f32 %v13292_v50, %v8783_v14  ;;  %v8781_v24 = vadd.f32 %v8392_v30, %v19443_v29  ;;  %v13296_v42 = vpop.f32.mrf.mxu0  ;;  %v19453_v14 = vld [vmem:[#allocation136_spill] sm:$0xff]  ;;  %v19454_v30 = vld [vmem:[#allocation139_spill] sm:$0xff] }
 0x542   : > { %v13151_v26 = vpop.f32.mrf.mxu1 }
 0x543   : > { %v11158_v47 = vpack.c.bf16 %v9543_v51, %v9542_v38  ;;  %v9541_v1 = vadd.f32 %v9152_v60, %v8781_v24  ;;  %v9168_v48 = vpop.f32.mrf.mxu0  ;;  %v8786_v43 = vadd.f32 %v13151_v26, %v19444_v2  ;;  %v19455_v26 = vld [vmem:[#allocation144_spill] sm:$0xff] }
 0x544   : > { %v8405_v10 = vpop.f32.mrf.mxu1 }
 0x545   : > { %11390 = vst [vmem:[%s17541_s4 + $0xa8] sm:$0xff] %v11158_v47   ;;  %v11153_v53 = vpack.c.bf16 %v9541_v1, %v9540_v63  ;;  %v13299_v39 = vpop.f32.mrf.mxu0  ;;  %v8784_v55 = vadd.f32 %v8405_v10, %v19445_v25  ;;  %v9546_v5 = vadd.f32 %v13295_v57, %v8786_v43 }
 0x546   : > { %v13152_v32 = vpop.f32.mrf.mxu1 }
 0x547   : > { %11389 = vst [vmem:[%s17541_s4 + $0xa0] sm:$0xff] %v11153_v53   ;;  %v8787_v18 = vadd.f32 %v13152_v32, %v19446_v58  ;;  %v9181_v15 = vpop.f32.mrf.mxu0  ;;  %v9544_v21 = vadd.f32 %v9165_v59, %v8784_v55  ;;  %v19456_v32 = vld [vmem:[#allocation236_spill] sm:$0xff] }
 0x548   : > { %v8408_v37 = vpop.f32.mrf.mxu1 }
 0x549   : > { %v9547_v12 = vadd.f32 %v13296_v42, %v8787_v18  ;;  %v8785_v62 = vadd.f32 %v8408_v37, %v19447_v46  ;;  %v13300_v6 = vpop.f32.mrf.mxu0  ;;  %v19457_v18 = vld [vmem:[#allocation238_spill] sm:$0xff]  ;;  %v19458_v37 = vld [vmem:[#allocation147_spill] sm:$0xff] }
 0x54a   : > { %v13155_v44 = vpop.f32.mrf.mxu1 }
 0x54b   : > { %v11168_v22 = vpack.c.bf16 %v9547_v12, %v9546_v5  ;;  %v9545_v36 = vadd.f32 %v9168_v48, %v8785_v62  ;;  %v9184_v17 = vpop.f32.mrf.mxu0  ;;  %v8790_v0 = vadd.f32 %v13155_v44, %v19448_v49  ;;  %v19459_v44 = vld [vmem:[#allocation152_spill] sm:$0xff] }
 0x54c   : > { %v8421_v52 = vpop.f32.mrf.mxu1 }
 0x54d   : > { %11392 = vst [vmem:[%s17541_s4 + $0xb8] sm:$0xff] %v11168_v22   ;;  %v11163_v19 = vpack.c.bf16 %v9545_v36, %v9544_v21  ;;  %v13303_v54 = vpop.f32.mrf.mxu0  ;;  %v8788_v9 = vadd.f32 %v8421_v52, %v19449_v8  ;;  %v9550_v16 = vadd.f32 %v13299_v39, %v8790_v0 }
 0x54e   : > { %v13156_v35 = vpop.f32.mrf.mxu1 }
 0x54f   : > { %11391 = vst [vmem:[%s17541_s4 + $0xb0] sm:$0xff] %v11163_v19   ;;  %v8791_v27 = vadd.f32 %v13156_v35, %v19450_v11  ;;  %v9197_v31 = vpop.f32.mrf.mxu0  ;;  %v9548_v13 = vadd.f32 %v9181_v15, %v8788_v9  ;;  %v19460_v35 = vld [vmem:[#allocation155_spill] sm:$0xff] }
 0x550   : > { %v8424_v3 = vpop.f32.mrf.mxu1 }
 0x551   : > { %v9551_v23 = vadd.f32 %v13300_v6, %v8791_v27  ;;  %v8789_v41 = vadd.f32 %v8424_v3, %v19451_v7  ;;  %v13304_v50 = vpop.f32.mrf.mxu0  ;;  %v19461_v27 = vld [vmem:[#allocation160_spill] sm:$0xff] }
 0x552   : > { %v13159_v33 = vpop.f32.mrf.mxu1  ;;  %v19462_v3 = vld [vmem:[#allocation244_spill] sm:$0xff] }
 0x553   : > { %v11178_v40 = vpack.c.bf16 %v9551_v23, %v9550_v16  ;;  %v9549_v45 = vadd.f32 %v9184_v17, %v8789_v41  ;;  %v9200_v60 = vpop.f32.mrf.mxu0  ;;  %v8794_v57 = vadd.f32 %v13159_v33, %v19452_v20  ;;  %v19463_v33 = vld [vmem:[#allocation246_spill] sm:$0xff] }
 0x554   : > { %v8437_v4 = vpop.f32.mrf.mxu1 }
 0x555   : > { %11394 = vst [vmem:[%s17541_s4 + $0xc8] sm:$0xff] %v11178_v40   ;;  %v11173_v28 = vpack.c.bf16 %v9549_v45, %v9548_v13  ;;  %v13307_v56 = vpop.f32.mrf.mxu0  ;;  %v8792_v59 = vadd.f32 %v8437_v4, %v19453_v14  ;;  %v9554_v24 = vadd.f32 %v13303_v54, %v8794_v57 }
 0x556   : > { %v13160_v61 = vpop.f32.mrf.mxu1 }
 0x557   : > { %11393 = vst [vmem:[%s17541_s4 + $0xc0] sm:$0xff] %v11173_v28   ;;  %v8795_v38 = vadd.f32 %v13160_v61, %v19454_v30  ;;  %v9213_v51 = vpop.f32.mrf.mxu0  ;;  %v9552_v48 = vadd.f32 %v9197_v31, %v8792_v59  ;;  %v19464_v61 = vld [vmem:[#allocation163_spill] sm:$0xff] }
 0x558   : > { %v8440_v29 = vpop.f32.mrf.mxu1 }
 0x559   : > { %v9555_v42 = vadd.f32 %v13304_v50, %v8795_v38  ;;  %v8793_v63 = vadd.f32 %v8440_v29, %v19455_v26  ;;  %v13308_v47 = vpop.f32.mrf.mxu0  ;;  %v19465_v38 = vld [vmem:[#allocation168_spill] sm:$0xff]  ;;  %v19466_v29 = vld [vmem:[#allocation171_spill] sm:$0xff] }
 0x55a   : > { %v13163_v1 = vpop.f32.mrf.mxu1 }
 0x55b   : > { %v11188_v10 = vpack.c.bf16 %v9555_v42, %v9554_v24  ;;  %v9553_v53 = vadd.f32 %v9200_v60, %v8793_v63  ;;  %v9216_v2 = vpop.f32.mrf.mxu0  ;;  %v8798_v25 = vadd.f32 %v13163_v1, %v19456_v32  ;;  %v19467_v1 = vld [vmem:[#allocation176_spill] sm:$0xff] }
 0x55c   : > { %v8453_v43 = vpop.f32.mrf.mxu1 }
 0x55d   : > { %11396 = vst [vmem:[%s17541_s4 + $0xd8] sm:$0xff] %v11188_v10   ;;  %v11183_v39 = vpack.c.bf16 %v9553_v53, %v9552_v48  ;;  %v13311_v55 = vpop.f32.mrf.mxu0  ;;  %v8796_v15 = vadd.f32 %v8453_v43, %v19457_v18  ;;  %v9558_v62 = vadd.f32 %v13307_v56, %v8798_v25 }
 0x55e   : > { %v13164_v58 = vpop.f32.mrf.mxu1 }
 0x55f   : > { %11395 = vst [vmem:[%s17541_s4 + $0xd0] sm:$0xff] %v11183_v39   ;;  %v8799_v5 = vadd.f32 %v13164_v58, %v19458_v37  ;;  %v9229_v12 = vpop.f32.mrf.mxu0  ;;  %v9556_v17 = vadd.f32 %v9213_v51, %v8796_v15  ;;  %v19468_v58 = vld [vmem:[#allocation253_spill] sm:$0xff] }
 0x560   : > { %v8456_v46 = vpop.f32.mrf.mxu1 }
 0x561   : > { %v9559_v6 = vadd.f32 %v13308_v47, %v8799_v5  ;;  %v8797_v21 = vadd.f32 %v8456_v46, %v19459_v44  ;;  %v13312_v22 = vpop.f32.mrf.mxu0  ;;  %v19469_v5 = vld [vmem:[#allocation255_spill] sm:$0xff] }
 0x562   : > { %v13167_v36 = vpop.f32.mrf.mxu1  ;;  %v19470_v46 = vld [vmem:[#allocation179_spill] sm:$0xff] }
 0x563   : > { %v11198_v52 = vpack.c.bf16 %v9559_v6, %v9558_v62  ;;  %v9557_v19 = vadd.f32 %v9216_v2, %v8797_v21  ;;  %v9232_v49 = vpop.f32.mrf.mxu0  ;;  %v8802_v8 = vadd.f32 %v13167_v36, %v19460_v35  ;;  %v19471_v36 = vld [vmem:[#allocation184_spill] sm:$0xff] }
 0x564   : > { %v8469_v0 = vpop.f32.mrf.mxu1 }
 0x565   : > { %11398 = vst [vmem:[%s17541_s4 + $0xe8] sm:$0xff] %v11198_v52   ;;  %v11193_v54 = vpack.c.bf16 %v9557_v19, %v9556_v17  ;;  %v13315_v9 = vpop.f32.mrf.mxu0  ;;  %v8800_v31 = vadd.f32 %v8469_v0, %v19461_v27  ;;  %v9562_v41 = vadd.f32 %v13311_v55, %v8802_v8 }
 0x566   : > { %v13168_v11 = vpop.f32.mrf.mxu1 }
 0x567   : > { %11397 = vst [vmem:[%s17541_s4 + $0xe0] sm:$0xff] %v11193_v54   ;;  %v8803_v16 = vadd.f32 %v13168_v11, %v19462_v3  ;;  %v9245_v23 = vpop.f32.mrf.mxu0  ;;  %v9560_v60 = vadd.f32 %v9229_v12, %v8800_v31  ;;  %v19472_v11 = vld [vmem:[#allocation239_spill] sm:$0xff] }
 0x568   : > { %v8472_v7 = vpop.f32.mrf.mxu1 }
 0x569   : > { %v9563_v50 = vadd.f32 %v13312_v22, %v8803_v16  ;;  %v8801_v13 = vadd.f32 %v8472_v7, %v19463_v33  ;;  %v13316_v40 = vpop.f32.mrf.mxu0  ;;  %v19473_v16 = vld [vmem:[#allocation187_spill] sm:$0xff]  ;;  %v19474_v7 = vld [vmem:[#allocation192_spill] sm:$0xff] }
 0x56a   : > { %v13171_v45 = vpop.f32.mrf.mxu1 }
 0x56b   : > { %v11208_v4 = vpack.c.bf16 %v9563_v50, %v9562_v41  ;;  %v9561_v28 = vadd.f32 %v9232_v49, %v8801_v13  ;;  %v9248_v20 = vpop.f32.mrf.mxu0  ;;  %v8806_v14 = vadd.f32 %v13171_v45, %v19464_v61  ;;  %v19475_v45 = vld [vmem:[#allocation264_spill] sm:$0xff] }
 0x56c   : > { %v8485_v57 = vpop.f32.mrf.mxu1 }
 0x56d   : > { %11400 = vst [vmem:[%s17541_s4 + $0xf8] sm:$0xff] %v11208_v4   ;;  %v11203_v56 = vpack.c.bf16 %v9561_v28, %v9560_v60  ;;  %v13319_v59 = vpop.f32.mrf.mxu0  ;;  %v8804_v51 = vadd.f32 %v8485_v57, %v19465_v38  ;;  %v9566_v63 = vadd.f32 %v13315_v9, %v8806_v14 }
 0x56e   : > { %v13172_v30 = vpop.f32.mrf.mxu1 }
 0x56f   : > { %11399 = vst [vmem:[%s17541_s4 + $0xf0] sm:$0xff] %v11203_v56   ;;  %v8807_v24 = vadd.f32 %v13172_v30, %v19466_v29  ;;  %v9261_v42 = vpop.f32.mrf.mxu0  ;;  %v9564_v2 = vadd.f32 %v9245_v23, %v8804_v51  ;;  %v19476_v30 = vld [vmem:[#allocation195_spill] sm:$0xff] }
 0x570   : > { %v8488_v26 = vpop.f32.mrf.mxu1 }
 0x571   : > { %v9567_v47 = vadd.f32 %v13316_v40, %v8807_v24  ;;  %v8805_v48 = vadd.f32 %v8488_v26, %v19467_v1  ;;  %v13320_v10 = vpop.f32.mrf.mxu0  ;;  %v19477_v24 = vld [vmem:[#allocation200_spill] sm:$0xff] }
 0x572   : > { %v13175_v53 = vpop.f32.mrf.mxu1  ;;  %v19478_v26 = vld [vmem:[#allocation248_spill] sm:$0xff] }
 0x573   : > { %v11218_v43 = vpack.c.bf16 %v9567_v47, %v9566_v63  ;;  %v9565_v39 = vadd.f32 %v9248_v20, %v8805_v48  ;;  %v9264_v32 = vpop.f32.mrf.mxu0  ;;  %v8810_v18 = vadd.f32 %v13175_v53, %v19468_v58  ;;  %v19479_v53 = vld [vmem:[#allocation204_spill] sm:$0xff] }
 0x574   : > { %v8501_v25 = vpop.f32.mrf.mxu1 }
 0x575   : > { %11402 = vst [vmem:[%s17541_s4 + $0x108] sm:$0xff] %v11218_v43   ;;  %v11213_v55 = vpack.c.bf16 %v9565_v39, %v9564_v2  ;;  %v13323_v15 = vpop.f32.mrf.mxu0  ;;  %v8808_v12 = vadd.f32 %v8501_v25, %v19469_v5  ;;  %v9570_v21 = vadd.f32 %v13319_v59, %v8810_v18 }
 0x576   : > { %v13176_v37 = vpop.f32.mrf.mxu1 }
 0x577   : > { %11401 = vst [vmem:[%s17541_s4 + $0x100] sm:$0xff] %v11213_v55   ;;  %v8811_v62 = vadd.f32 %v13176_v37, %v19470_v46  ;;  %v9277_v6 = vpop.f32.mrf.mxu0  ;;  %v9568_v49 = vadd.f32 %v9261_v42, %v8808_v12  ;;  %v19480_v37 = vld [vmem:[#allocation250_spill] sm:$0xff] }
 0x578   : > { %v8504_v44 = vpop.f32.mrf.mxu1 }
 0x579   : > { %v9571_v22 = vadd.f32 %v13320_v10, %v8811_v62  ;;  %v8809_v17 = vadd.f32 %v8504_v44, %v19471_v36  ;;  %v13324_v52 = vpop.f32.mrf.mxu0  ;;  %v19481_v62 = vld [vmem:[#allocation210_spill] sm:$0xff]  ;;  %v19482_v44 = vld [vmem:[#allocation213_spill] sm:$0xff] }
 0x57a   : > { %v13179_v19 = vpop.f32.mrf.mxu1 }
 0x57b   : > { %v11228_v0 = vpack.c.bf16 %v9571_v22, %v9570_v21  ;;  %v9569_v54 = vadd.f32 %v9264_v32, %v8809_v17  ;;  %v9280_v35 = vpop.f32.mrf.mxu0  ;;  %v8814_v27 = vadd.f32 %v13179_v19, %v19472_v11  ;;  %v19483_v19 = vld [vmem:[#allocation218_spill] sm:$0xff] }
 0x57c   : > { %v8517_v8 = vpop.f32.mrf.mxu1 }
 0x57d   : > { %11404 = vst [vmem:[%s17541_s4 + $0x118] sm:$0xff] %v11228_v0   ;;  %v11223_v9 = vpack.c.bf16 %v9569_v54, %v9568_v49  ;;  %v13327_v31 = vpop.f32.mrf.mxu0  ;;  %v8812_v23 = vadd.f32 %v8517_v8, %v19473_v16  ;;  %v9574_v13 = vadd.f32 %v13323_v15, %v8814_v27 }
 0x57e   : > { %v13180_v3 = vpop.f32.mrf.mxu1 }
 0x57f   : > { %11403 = vst [vmem:[%s17541_s4 + $0x110] sm:$0xff] %v11223_v9   ;;  %v8815_v41 = vadd.f32 %v13180_v3, %v19474_v7  ;;  %v9293_v50 = vpop.f32.mrf.mxu0  ;;  %v9572_v20 = vadd.f32 %v9277_v6, %v8812_v23  ;;  %v19484_v3 = vld [vmem:[#allocation257_spill] sm:$0xff] }
 0x580   : > { %v8520_v33 = vpop.f32.mrf.mxu1 }
 0x581   : > { %v9575_v40 = vadd.f32 %v13324_v52, %v8815_v41  ;;  %v8813_v60 = vadd.f32 %v8520_v33, %v19475_v45  ;;  %v13328_v4 = vpop.f32.mrf.mxu0  ;;  %v19485_v41 = vld [vmem:[#allocation221_spill] sm:$0xff]  ;;  %v19486_v33 = vld [vmem:[#allocation259_spill] sm:$0xff] }
 0x582   : > { %v13183_v28 = vpop.f32.mrf.mxu1 }
 0x583   : > { %v11238_v57 = vpack.c.bf16 %v9575_v40, %v9574_v13  ;;  %v9573_v56 = vadd.f32 %v9280_v35, %v8813_v60  ;;  %v9296_v61 = vpop.f32.mrf.mxu0  ;;  %v8818_v38 = vadd.f32 %v13183_v28, %v19476_v30  ;;  %v19487_v28 = vld [vmem:[#allocation226_spill] sm:$0xff] }
 0x584   : > { %v8533_v14 = vpop.f32.mrf.mxu1 }
 0x585   : > { %11406 = vst [vmem:[%s17541_s4 + $0x128] sm:$0xff] %v11238_v57   ;;  %v11233_v59 = vpack.c.bf16 %v9573_v56, %v9572_v20  ;;  %v13331_v51 = vpop.f32.mrf.mxu0  ;;  %v8816_v42 = vadd.f32 %v8533_v14, %v19477_v24  ;;  %v9578_v48 = vadd.f32 %v13327_v31, %v8818_v38 }
 0x586   : > { %v13184_v29 = vpop.f32.mrf.mxu1 }
 0x587   : > { %11405 = vst [vmem:[%s17541_s4 + $0x120] sm:$0xff] %v11233_v59   ;;  %v8819_v63 = vadd.f32 %v13184_v29, %v19478_v26  ;;  %v9309_v47 = vpop.f32.mrf.mxu0  ;;  %v9576_v32 = vadd.f32 %v9293_v50, %v8816_v42  ;;  %v19488_v29 = vld [vmem:[#allocation229_spill] sm:$0xff] }
 0x588   : > { %v8536_v1 = vpop.f32.mrf.mxu1 }
 0x589   : > { %v9579_v10 = vadd.f32 %v13328_v4, %v8819_v63  ;;  %v8817_v2 = vadd.f32 %v8536_v1, %v19479_v53  ;;  %v13332_v43 = vpop.f32.mrf.mxu0  ;;  %v19489_v63 = vld [vmem:[#allocation233_spill] sm:$0xff] }
 0x58a   : > { %v13187_v39 = vpop.f32.mrf.mxu1  ;;  %v19490_v1 = vld [vmem:[#allocation237_spill] sm:$0xff] }
 0x58b   : > { %v11248_v25 = vpack.c.bf16 %v9579_v10, %v9578_v48  ;;  %v9577_v55 = vadd.f32 %v9296_v61, %v8817_v2  ;;  %v9312_v58 = vpop.f32.mrf.mxu0  ;;  %v8822_v5 = vadd.f32 %v13187_v39, %v19480_v37  ;;  %v19491_v39 = vld [vmem:[#allocation277_spill] sm:$0xff] }
 0x58c   : > { %v8549_v18 = vpop.f32.mrf.mxu1 }
 0x58d   : > { %11408 = vst [vmem:[%s17541_s4 + $0x138] sm:$0xff] %v11248_v25   ;;  %v11243_v15 = vpack.c.bf16 %v9577_v55, %v9576_v32  ;;  %v13335_v12 = vpop.f32.mrf.mxu0  ;;  %v8820_v6 = vadd.f32 %v8549_v18, %v19481_v62  ;;  %v9582_v17 = vadd.f32 %v13331_v51, %v8822_v5 }
 0x58e   : > { %v13188_v46 = vpop.f32.mrf.mxu1 }
 0x58f   : > { %11407 = vst [vmem:[%s17541_s4 + $0x130] sm:$0xff] %v11243_v15   ;;  %v8823_v21 = vadd.f32 %v13188_v46, %v19482_v44  ;;  %v9325_v22 = vpop.f32.mrf.mxu0  ;;  %v9580_v35 = vadd.f32 %v9309_v47, %v8820_v6  ;;  %v19492_v46 = vld [vmem:[#allocation278_spill] sm:$0xff] }
 0x590   : > { %v8552_v36 = vpop.f32.mrf.mxu1 }
 0x591   : > { %v9583_v52 = vadd.f32 %v13332_v43, %v8823_v21  ;;  %v8821_v49 = vadd.f32 %v8552_v36, %v19483_v19  ;;  %v13336_v0 = vpop.f32.mrf.mxu0  ;;  %v19493_v21 = vld [vmem:[#allocation241_spill] sm:$0xff] }
 0x592   : > { %v13191_v54 = vpop.f32.mrf.mxu1  ;;  %v19494_v36 = vld [vmem:[#allocation245_spill] sm:$0xff] }
 0x593   : > { %v11258_v8 = vpack.c.bf16 %v9583_v52, %v9582_v17  ;;  %v9581_v9 = vadd.f32 %v9312_v58, %v8821_v49  ;;  %v9328_v11 = vpop.f32.mrf.mxu0  ;;  %v8826_v16 = vadd.f32 %v13191_v54, %v19484_v3  ;;  %v19495_v54 = vld [vmem:[#allocation249_spill] sm:$0xff] }
 0x594   : > { %v8565_v27 = vpop.f32.mrf.mxu1 }
 0x595   : > { %11410 = vst [vmem:[%s17541_s4 + $0x148] sm:$0xff] %v11258_v8   ;;  %v11253_v31 = vpack.c.bf16 %v9581_v9, %v9580_v35  ;;  %v13339_v23 = vpop.f32.mrf.mxu0  ;;  %v8824_v50 = vadd.f32 %v8565_v27, %v19485_v41  ;;  %v9586_v60 = vadd.f32 %v13335_v12, %v8826_v16 }
 0x596   : > { %v13192_v7 = vpop.f32.mrf.mxu1 }
 0x597   : > { %11409 = vst [vmem:[%s17541_s4 + $0x140] sm:$0xff] %v11253_v31   ;;  %v8827_v13 = vadd.f32 %v13192_v7, %v19486_v33  ;;  %v9341_v40 = vpop.f32.mrf.mxu0  ;;  %v9584_v61 = vadd.f32 %v9325_v22, %v8824_v50  ;;  %v19496_v7 = vld [vmem:[#allocation252_spill] sm:$0xff] }
 0x598   : > { %v8568_v45 = vpop.f32.mrf.mxu1 }
 0x599   : > { %v9587_v4 = vadd.f32 %v13336_v0, %v8827_v13  ;;  %v8825_v20 = vadd.f32 %v8568_v45, %v19487_v28  ;;  %v13340_v57 = vpop.f32.mrf.mxu0  ;;  %v19497_v13 = vld [vmem:[#allocation282_spill] sm:$0xff]  ;;  %v19498_v45 = vld [vmem:[#allocation283_spill] sm:$0xff] }
 0x59a   : > { %v13195_v56 = vpop.f32.mrf.mxu1 }
 0x59b   : > { %v11268_v14 = vpack.c.bf16 %v9587_v4, %v9586_v60  ;;  %v9585_v59 = vadd.f32 %v9328_v11, %v8825_v20  ;;  %v9344_v30 = vpop.f32.mrf.mxu0  ;;  %v8830_v24 = vadd.f32 %v13195_v56, %v19488_v29  ;;  %v19499_v56 = vld [vmem:[#allocation263_spill] sm:$0xff] }
 0x59c   : > { %v8581_v38 = vpop.f32.mrf.mxu1 }
 0x59d   : > { %11412 = vst [vmem:[%s17541_s4 + $0x158] sm:$0xff] %v11268_v14   ;;  %v11263_v51 = vpack.c.bf16 %v9585_v59, %v9584_v61  ;;  %v13343_v42 = vpop.f32.mrf.mxu0  ;;  %v8828_v47 = vadd.f32 %v8581_v38, %v19489_v63  ;;  %v9590_v2 = vadd.f32 %v13339_v23, %v8830_v24 }
 0x59e   : > { %v13196_v26 = vpop.f32.mrf.mxu1 }
 0x59f   : > { %11411 = vst [vmem:[%s17541_s4 + $0x150] sm:$0xff] %v11263_v51   ;;  %v8831_v48 = vadd.f32 %v13196_v26, %v19490_v1  ;;  %v9357_v10 = vpop.f32.mrf.mxu0  ;;  %v9588_v58 = vadd.f32 %v9341_v40, %v8828_v47  ;;  %v19500_v26 = vld [vmem:[#allocation258_spill] sm:$0xff] }
 0x5a0   : > { %v8584_v53 = vpop.f32.mrf.mxu1 }
 0x5a1   : > { %v9591_v43 = vadd.f32 %v13340_v57, %v8831_v48  ;;  %v8829_v32 = vadd.f32 %v8584_v53, %v19491_v39  ;;  %v13344_v25 = vpop.f32.mrf.mxu0  ;;  %v19501_v48 = vld [vmem:[#allocation274_spill] sm:$0xff]  ;;  %v19502_v53 = vld [vmem:[#allocation261_spill] sm:$0xff] }
 0x5a2   : > { %v13199_v55 = vpop.f32.mrf.mxu1 }
 0x5a3   : > { %v11278_v18 = vpack.c.bf16 %v9591_v43, %v9590_v2  ;;  %v9589_v15 = vadd.f32 %v9344_v30, %v8829_v32  ;;  %v9360_v37 = vpop.f32.mrf.mxu0  ;;  %v8834_v62 = vadd.f32 %v13199_v55, %v19492_v46  ;;  %v19503_v55 = vld [vmem:[#allocation275_spill] sm:$0xff] }
 0x5a4   : > { %v8597_v5 = vpop.f32.mrf.mxu1 }
 0x5a5   : > { %11414 = vst [vmem:[%s17541_s4 + $0x168] sm:$0xff] %v11278_v18   ;;  %v11273_v12 = vpack.c.bf16 %v9589_v15, %v9588_v58  ;;  %v13347_v6 = vpop.f32.mrf.mxu0  ;;  %v8832_v22 = vadd.f32 %v8597_v5, %v19493_v21  ;;  %v9594_v49 = vadd.f32 %v13343_v42, %v8834_v62 }
 0x5a6   : > { %v13200_v44 = vpop.f32.mrf.mxu1 }
 0x5a7   : > { %11413 = vst [vmem:[%s17541_s4 + $0x160] sm:$0xff] %v11273_v12   ;;  %v8835_v17 = vadd.f32 %v13200_v44, %v19494_v36  ;;  %v9373_v52 = vpop.f32.mrf.mxu0  ;;  %v9592_v11 = vadd.f32 %v9357_v10, %v8832_v22  ;;  %v19504_v44 = vld [vmem:[#allocation262_spill] sm:$0xff] }
 0x5a8   : > { %v8600_v19 = vpop.f32.mrf.mxu1 }
 0x5a9   : > { %v9595_v0 = vadd.f32 %v13344_v25, %v8835_v17  ;;  %v8833_v35 = vadd.f32 %v8600_v19, %v19495_v54  ;;  %v13348_v8 = vpop.f32.mrf.mxu0 }
 0x5aa   : > { %v13203_v9 = vpop.f32.mrf.mxu1 }
 0x5ab   : > { %v11288_v27 = vpack.c.bf16 %v9595_v0, %v9594_v49  ;;  %v9593_v31 = vadd.f32 %v9360_v37, %v8833_v35  ;;  %v9376_v3 = vpop.f32.mrf.mxu0  ;;  %v8838_v41 = vadd.f32 %v13203_v9, %v19496_v7 }
 0x5ac   : > { %v8613_v16 = vpop.f32.mrf.mxu1 }
 0x5ad   : > { %11416 = vst [vmem:[%s17541_s4 + $0x178] sm:$0xff] %v11288_v27   ;;  %v11283_v23 = vpack.c.bf16 %v9593_v31, %v9592_v11  ;;  %v13351_v50 = vpop.f32.mrf.mxu0  ;;  %v8836_v40 = vadd.f32 %v8613_v16, %v19497_v13  ;;  %v9598_v20 = vadd.f32 %v13347_v6, %v8838_v41 }
 0x5ae   : > { %v13204_v33 = vpop.f32.mrf.mxu1 }
 0x5af   : > { %11415 = vst [vmem:[%s17541_s4 + $0x170] sm:$0xff] %v11283_v23   ;;  %v8839_v60 = vadd.f32 %v13204_v33, %v19498_v45  ;;  %v9389_v4 = vpop.f32.mrf.mxu0  ;;  %v9596_v30 = vadd.f32 %v9373_v52, %v8836_v40  ;;  %v19505_v52 = vld [vmem:[#allocation265_spill] sm:$0xff] }
 0x5b0   : > { %v8616_v28 = vpop.f32.mrf.mxu1  ;;  %v19508_v40 = vld [vmem:[#allocation269_spill] sm:$0xff] }
 0x5b1   : > { %v9599_v57 = vadd.f32 %v13348_v8, %v8839_v60  ;;  %v8837_v61 = vadd.f32 %v8616_v28, %v19499_v56  ;;  %v13352_v14 = vpop.f32.mrf.mxu0  ;;  %v19506_v8 = vld [vmem:[#allocation268_spill] sm:$0xff]  ;;  %v19509_v60 = vld [vmem:[#allocation281_spill] sm:$0xff] }
 0x5b2   : > { %v13207_v59 = vpop.f32.mrf.mxu1 }
 0x5b3   : > { %v11298_v38 = vpack.c.bf16 %v9599_v57, %v9598_v20  ;;  %v9597_v51 = vadd.f32 %v9376_v3, %v8837_v61  ;;  %v9392_v29 = vpop.f32.mrf.mxu0  ;;  %v8842_v63 = vadd.f32 %v13207_v59, %v19500_v26  ;;  %v19510_v61 = vld [vmem:[#allocation285_spill] sm:$0xff] }
 0x5b4   : > { %v8629_v24 = vpop.f32.mrf.mxu1 }
 0x5b5   : > { %11418 = vst [vmem:[%s17541_s4 + $0x188] sm:$0xff] %v11298_v38   ;;  %v11293_v42 = vpack.c.bf16 %v9597_v51, %v9596_v30  ;;  %v13355_v47 = vpop.f32.mrf.mxu0  ;;  %v8840_v10 = vadd.f32 %v8629_v24, %v19501_v48  ;;  %v9602_v32 = vadd.f32 %v13351_v50, %v8842_v63  ;;  %v19507_v50 = vld [vmem:[#allocation280_spill] sm:$0xff]  ;;  %v19511_v63 = vld [vmem:[#allocation286_spill] sm:$0xff] }
 0x5b6   : > { %v13208_v1 = vpop.f32.mrf.mxu1 }
 0x5b7   : > { %11417 = vst [vmem:[%s17541_s4 + $0x180] sm:$0xff] %v11293_v42   ;;  %v8843_v2 = vadd.f32 %v13208_v1, %v19502_v53  ;;  %v9405_v43 = vpop.f32.mrf.mxu0  ;;  %v9600_v37 = vadd.f32 %v9389_v4, %v8840_v10  ;;  %v19512_v10 = vld [vmem:[#allocation287_spill] sm:$0xff] }
 0x5b8   : > { %v8632_v39 = vpop.f32.mrf.mxu1 }
 0x5b9   : > { %v9603_v25 = vadd.f32 %v13352_v14, %v8843_v2  ;;  %v8841_v58 = vadd.f32 %v8632_v39, %v19503_v55  ;;  %v13356_v18 = vpop.f32.mrf.mxu0  ;;  %v19513_v2 = vld [vmem:[#allocation77_spill] sm:$0xff] }
 0x5ba   : > { %v13211_v15 = vpop.f32.mrf.mxu1 }
 0x5bb   : > { %v11308_v5 = vpack.c.bf16 %v9603_v25, %v9602_v32  ;;  %v9601_v12 = vadd.f32 %v9392_v29, %v8841_v58  ;;  %v9408_v46 = vpop.f32.mrf.mxu0  ;;  %v8846_v21 = vadd.f32 %v13211_v15, %v19504_v44  ;;  %v19514_v58 = vld [vmem:[#allocation289_spill] sm:$0xff] }
 0x5bc   : > { %v8645_v62 = vpop.f32.mrf.mxu1 }
 0x5bd   : > { %11420 = vst [vmem:[%s17541_s4 + $0x198] sm:$0xff] %v11308_v5   ;;  %v11303_v6 = vpack.c.bf16 %v9601_v12, %v9600_v37  ;;  %v13359_v22 = vpop.f32.mrf.mxu0  ;;  %v8844_v17 = vadd.f32 %v8645_v62, %v17440_v34  ;;  %v9606_v54 = vadd.f32 %v13355_v47, %v8846_v21  ;;  %v19515_v21 = vld [vmem:[#allocation11_spill] sm:$0xff] }
 0x5be   : > { %v13212_v36 = vpop.f32.mrf.mxu1 }
 0x5bf   : > { %11419 = vst [vmem:[%s17541_s4 + $0x190] sm:$0xff] %v11303_v6   ;;  %v8847_v19 = vadd.f32 %v13212_v36, %v19505_v52  ;;  %v9421_v49 = vpop.f32.mrf.mxu0  ;;  %v9604_v31 = vadd.f32 %v9405_v43, %v8844_v17  ;;  %v19516_v52 = vld [vmem:[#allocation13_spill] sm:$0xff] }
 0x5c0   : > { %v8648_v0 = vpop.f32.mrf.mxu1 }
 0x5c1   : > { %v9607_v35 = vadd.f32 %v13356_v18, %v8847_v19  ;;  %v8845_v9 = vadd.f32 %v8648_v0, %v19506_v8  ;;  %v13360_v11 = vpop.f32.mrf.mxu0 }
 0x5c2   : > { %v13215_v27 = vpop.f32.mrf.mxu1 }
 0x5c3   : > { %v11318_v3 = vpack.c.bf16 %v9607_v35, %v9606_v54  ;;  %v9605_v16 = vadd.f32 %v9408_v46, %v8845_v9  ;;  %v9424_v23 = vpop.f32.mrf.mxu0  ;;  %v8850_v34 = vadd.f32 %v13215_v27, %v19507_v50 }
 0x5c4   : > { %v8661_v7 = vpop.f32.mrf.mxu1 }
 0x5c5   : > { %11422 = vst [vmem:[%s17541_s4 + $0x1a8] sm:$0xff] %v11318_v3   ;;  %v11313_v41 = vpack.c.bf16 %v9605_v16, %v9604_v31  ;;  %v13363_v33 = vpop.f32.mrf.mxu0  ;;  %v8848_v45 = vadd.f32 %v8661_v7, %v19508_v40  ;;  %v9610_v57 = vadd.f32 %v13359_v22, %v8850_v34 }
 0x5c6   : > { %v13216_v13 = vpop.f32.mrf.mxu1 }
 0x5c7   : > { %11421 = vst [vmem:[%s17541_s4 + $0x1a0] sm:$0xff] %v11313_v41   ;;  %v8851_v4 = vadd.f32 %v13216_v13, %v19509_v60  ;;  %v9437_v28 = vpop.f32.mrf.mxu0  ;;  %v9608_v38 = vadd.f32 %v9421_v49, %v8848_v45  ;;  %v19517_v49 = vld [vmem:[#allocation15_spill] sm:$0xff]  ;;  %v19520_v60 = vld [vmem:[#allocation276_spill] sm:$0xff] }
 0x5c8   : > { %v8664_v20 = vpop.f32.mrf.mxu1 }
 0x5c9   : > { %v9611_v56 = vadd.f32 %v13360_v11, %v8851_v4  ;;  %v8849_v14 = vadd.f32 %v8664_v20, %v19510_v61  ;;  %v13364_v59 = vpop.f32.mrf.mxu0  ;;  %v19518_v11 = vld [vmem:[#allocation17_spill] sm:$0xff] }
 0x5ca   : > { %v13219_v30 = vpop.f32.mrf.mxu1 }
 0x5cb   : > { %v11328_v51 = vpack.c.bf16 %v9611_v56, %v9610_v57  ;;  %v9609_v29 = vadd.f32 %v9424_v23, %v8849_v14  ;;  %v9440_v24 = vpop.f32.mrf.mxu0  ;;  %v8854_v47 = vadd.f32 %v13219_v30, %v19511_v63  ;;  %v19522_v14 = vld [vmem:[#allocation102_spill] sm:$0xff]  ;;  %v19523_v63 = vld [vmem:[#allocation279_spill] sm:$0xff] }
 0x5cc   : > { %v8677_v42 = vpop.f32.mrf.mxu1 }
 0x5cd   : > { %11424 = vst [vmem:[%s17541_s4 + $0x1b8] sm:$0xff] %v11328_v51   ;;  %v11323_v26 = vpack.c.bf16 %v9609_v29, %v9608_v38  ;;  %v13367_v1 = vpop.f32.mrf.mxu0  ;;  %v8852_v53 = vadd.f32 %v8677_v42, %v19512_v10  ;;  %v9614_v25 = vadd.f32 %v13363_v33, %v8854_v47  ;;  %v19519_v33 = vld [vmem:[#allocation19_spill] sm:$0xff]  ;;  %v19524_v10 = vld [vmem:[#allocation284_spill] sm:$0xff] }
 0x5ce   : > { %v13220_v48 = vpop.f32.mrf.mxu1 }
 0x5cf   : > { %11423 = vst [vmem:[%s17541_s4 + $0x1b0] sm:$0xff] %v11323_v26   ;;  %v8855_v43 = vadd.f32 %v13220_v48, %v19513_v2  ;;  %v9453_v39 = vpop.f32.mrf.mxu0  ;;  %v9612_v5 = vadd.f32 %v9437_v28, %v8852_v53  ;;  %v19521_v28 = vld [vmem:[#allocation101_spill] sm:$0xff] }
 0x5d0   : > { %v8680_v32 = vpop.f32.mrf.mxu1  ;;  %v19525_v2 = vld [vmem:[#allocation21_spill] sm:$0xff] }
 0x5d1   : > { %v9615_v55 = vadd.f32 %v13364_v59, %v8855_v43  ;;  %v8853_v18 = vadd.f32 %v8680_v32, %v19514_v58  ;;  %v13368_v15 = vpop.f32.mrf.mxu0 }
 0x5d2   : > { %v13223_v37 = vpop.f32.mrf.mxu1 }
 0x5d3   : > { %v11338_v12 = vpack.c.bf16 %v9615_v55, %v9614_v25  ;;  %v9613_v46 = vadd.f32 %v9440_v24, %v8853_v18  ;;  %v9456_v62 = vpop.f32.mrf.mxu0  ;;  %v8858_v22 = vadd.f32 %v13223_v37, %v19515_v21  ;;  %v19526_v55 = vld [vmem:[#allocation81_spill] sm:$0xff] }
 0x5d4   : > { %v8693_v6 = vpop.f32.mrf.mxu1 }
 0x5d5   : > { %11426 = vst [vmem:[%s17541_s4 + $0x1c8] sm:$0xff] %v11338_v12   ;;  %v11333_v44 = vpack.c.bf16 %v9613_v46, %v9612_v5  ;;  %v13371_v36 = vpop.f32.mrf.mxu0  ;;  %v8856_v19 = vadd.f32 %v8693_v6, %v19516_v52  ;;  %v9618_v8 = vadd.f32 %v13367_v1, %v8858_v22 }
 0x5d6   : > { %v13224_v17 = vpop.f32.mrf.mxu1 }
 0x5d7   : > { %11425 = vst [vmem:[%s17541_s4 + $0x1c0] sm:$0xff] %v11333_v44   ;;  %v8859_v0 = vadd.f32 %v13224_v17, %v19517_v49  ;;  %v9469_v54 = vpop.f32.mrf.mxu0  ;;  %v9616_v16 = vadd.f32 %v9453_v39, %v8856_v19 }
 0x5d8   : > { %v8696_v35 = vpop.f32.mrf.mxu1 }
 0x5d9   : > { %v9619_v9 = vadd.f32 %v13368_v15, %v8859_v0  ;;  %v8857_v27 = vadd.f32 %v8696_v35, %v19518_v11  ;;  %v13372_v31 = vpop.f32.mrf.mxu0 }
 0x5da   : > { %v13227_v3 = vpop.f32.mrf.mxu1 }
 0x5db   : > { %v11348_v23 = vpack.c.bf16 %v9619_v9, %v9618_v8  ;;  %v9617_v7 = vadd.f32 %v9456_v62, %v8857_v27  ;;  %v9472_v41 = vpop.f32.mrf.mxu0  ;;  %v8862_v13 = vadd.f32 %v13227_v3, %v19519_v33 }
 0x5dc   : > { %v8709_v50 = vpop.f32.mrf.mxu1 }
 0x5dd   : > { %11428 = vst [vmem:[%s17541_s4 + $0x1d8] sm:$0xff] %v11348_v23   ;;  %v11343_v34 = vpack.c.bf16 %v9617_v7, %v9616_v16  ;;  %v13375_v45 = vpop.f32.mrf.mxu0  ;;  %v8860_v4 = vadd.f32 %v8709_v50, %v19520_v60  ;;  %v9622_v56 = vadd.f32 %v13371_v36, %v8862_v13 }
 0x5de   : > { %v13228_v40 = vpop.f32.mrf.mxu1 }
 0x5df   : > { %11427 = vst [vmem:[%s17541_s4 + $0x1d0] sm:$0xff] %v11343_v34   ;;  %v8863_v20 = vadd.f32 %v13228_v40, %v19521_v28  ;;  %v9485_v38 = vpop.f32.mrf.mxu0  ;;  %v9620_v51 = vadd.f32 %v9469_v54, %v8860_v4 }
 0x5e0   : > { %v8712_v57 = vpop.f32.mrf.mxu1 }
 0x5e1   : > { %v9623_v61 = vadd.f32 %v13372_v31, %v8863_v20  ;;  %v8861_v59 = vadd.f32 %v8712_v57, %v19522_v14  ;;  %v13376_v48 = vpop.f32.mrf.mxu0 }
 0x5e2   : > { %v13231_v30 = vpop.f32.mrf.mxu1 }
 0x5e3   : > { %v11358_v29 = vpack.c.bf16 %v9623_v61, %v9622_v56  ;;  %v9621_v24 = vadd.f32 %v9472_v41, %v8861_v59  ;;  %v8866_v47 = vadd.f32 %v13231_v30, %v19523_v63  ;;  %v9488_v18 = vpop.f32.mrf.mxu0 }
 0x5e4   : > { %v8725_v42 = vpop.f32.mrf.mxu1 }
 0x5e5   : > { %11430 = vst [vmem:[%s17541_s4 + $0x1e8] sm:$0xff] %v11358_v29   ;;  %v11353_v26 = vpack.c.bf16 %v9621_v24, %v9620_v51  ;;  %v8864_v53 = vadd.f32 %v8725_v42, %v19524_v10  ;;  %v9626_v32 = vadd.f32 %v13375_v45, %v8866_v47 }
 0x5e6   : > { %v13232_v1 = vpop.f32.mrf.mxu1 }
 0x5e7   : > { %11429 = vst [vmem:[%s17541_s4 + $0x1e0] sm:$0xff] %v11353_v26   ;;  %v8867_v43 = vadd.f32 %v13232_v1, %v19525_v2  ;;  %v9624_v15 = vadd.f32 %v9485_v38, %v8864_v53 }
 0x5e8   : > { %v8728_v39 = vpop.f32.mrf.mxu1 }
 0x5e9   : > { %v9627_v25 = vadd.f32 %v13376_v48, %v8867_v43  ;;  %v8865_v58 = vadd.f32 %v8728_v39, %v19526_v55 }
 0x5eb   : > { %v11368_v37 = vpack.c.bf16 %v9627_v25, %v9626_v32  ;;  %v9625_v5 = vadd.f32 %v9488_v18, %v8865_v58 }
 0x5ed   : > { %11432 = vst [vmem:[%s17541_s4 + $0x1f8] sm:$0xff] %v11368_v37   ;;  %v11363_v12 = vpack.c.bf16 %v9625_v5, %v9624_v15 }
 0x5ef   : > { %11431 = vst [vmem:[%s17541_s4 + $0x1f0] sm:$0xff] %v11363_v12  }
 0x5f0   : > { %13757 = shalt.err (!%p13754_p3)
}
 0x5f1   : > { %s13758_s22 = scalar_lea.hbm %s17796_s8, 8192  ;;  %s13762_s25 = scalar_lea.hbm %s17846_s2, 16384 }
 0x5f2   : > { %p13759_p4 = scmp.ne.s32.totalorder %s17796_s8, %s13758_s22  ;;  %p13763_p9 = scmp.lt.s32.totalorder %s17796_s8, %s17846_s2 }
 0x5f3   : > { %p13764_p10 = scmp.lt.s32.totalorder %s13762_s25, %s13758_s22 }
 0x5f4   : > { %p13760_p7 = pnand %p13759_p4, %p13862_p5 }
 0x5f5   : > { %p13765_p11 = por %p13764_p10, %p13763_p9 }
 0x5f6   : > { %p13761_p8 = pneg %p13760_p7 }
 0x5f8   : > { %p13766_p12 = pnand %p13765_p11, %p13761_p8 }
 0x5fa   : > { %13769 = shalt.err (!%p13766_p12)
}
 0x5fb   : > { %s13807_s28 = smov 64   ;;  %s13808_s29 = smov 4  }
 0x5fc   : > { %13394 = dma.vmem_to_hbm [thread:$0]  (%p13862_p5), %s17798_s5, 8192, %s17796_s8, %s17804_s13, %s13807_s28, %s13807_s28, %s13808_s29  }
 0x5fd PF: > { %p13400_p13 = scmp.ge.s32.totalorder %s13804_s12, 2  ;;  %s10297_s30 = sand.u32 1, %s13792_s9  }
 0x5fe   : > { %s10298_s4 = scalar_lea.sflag [#allocation3], %s10297_s30 }
 0x5ff   : > { %p13397_p0 = pnand %p13400_p13, %p13866_p6 }
 0x601   : > { %p13398_p1 = pneg %p13397_p0 }
 0x603   : > { %13787 = dma.done.wait (%p13398_p1), %s10298_s4, 8192  }
 0x604   : > { %13789 = vsyncadd (%p13398_p1), %s10298_s4, 4294959104  ;;  %p12_p2 = scmp.ge.s32.totalorder %s13849_s15, 4   ;;  %s19527_s9 = smov %s13796_s10 }
 0x605   : > { %s19528_s10 = smov %s13800_s11  ;;  %s19529_s11 = smov %s13860_s18 }
 0x606   : > { %s19530_s12 = smov %s13849_s15  ;;  %14 = sbr.rel (!%p12_p2) target bundleno = 3 (0x3), region = 71 }
 0x60b   :  { %10303 = vsyncpa [#allocation3], 1 }
 0x60c   :  { %10305 = vsyncpa [#allocation3 + $0x1], 1 }

</bundles_post_ra>
